<compile_context>
chip_gen: v5e
topology: v5e:2x2
jax: 0.10.0
libtpu: 0.0.40
codegen_flags: <defaults>
</compile_context>

<pallas_src>
import math

import jax
import jax.numpy as jnp
from jax.experimental import pallas as pl
from jax.experimental.pallas import tpu as pltpu

# ---- small synthetic config (stand-in for BERT-base sizes) ----
VOCAB = 100
MAX_POS = 64
H = 32               # bert hidden_size (synthetic stand-in for 768)
NHEAD = 8            # matches nn.TransformerEncoderLayer(nhead=8)
DH = H // NHEAD
FF_BERT = 4 * H      # BERT intermediate ratio
FF_TRANS = 64        # stand-in for dim_feedforward=2048
FF_MAX = max(FF_BERT, FF_TRANS)
N_BERT_LAYERS = 2
N_TRANS_LAYERS = 6
N_LAYERS = N_BERT_LAYERS + N_TRANS_LAYERS
HIDDEN_OUT = 256     # self.hidden = nn.Linear(hidden_size, 256)
NUM_LABELS = 9       # len(config.label2id)
N_OUT = 2 + NUM_LABELS   # [start | end | type...]
BERT_EPS = 1e-12
TORCH_LN_EPS = 1e-5


def _gelu(x):
    # TODO(synk): PyTorch F.gelu default is erf-based; tanh approximation used
    # here (erf has no guaranteed Mosaic lowering).
    c = 0.7978845608028654
    return 0.5 * x * (1.0 + jnp.tanh(c * (x + 0.044715 * x * x * x)))


def _layernorm(x, g, b, eps):
    mu = jnp.mean(x, axis=-1, keepdims=True)
    xc = x - mu
    var = jnp.mean(xc * xc, axis=-1, keepdims=True)
    return xc * jax.lax.rsqrt(var + eps) * g + b


# ---------------- the single fused forward kernel ----------------

def _fused_forward_kernel(
    x_ref, bias_ref,                      # per-batch activations / mask bias
    embg_ref, embb_ref,                   # embedding LayerNorm
    wqkv_ref, bqkv_ref, wo_ref, bo_ref,   # stacked attention weights (L, ...)
    ln1g_ref, ln1b_ref,
    w1_ref, b1_ref, w2_ref, b2_ref,
    ln2g_ref, ln2b_ref,
    hw_ref, hb_ref, cw_ref, cb_ref,       # hidden projection + merged heads
    out_ref,
):
    x = x_ref[0]          # (S, H)
    bias = bias_ref[0]    # (1, S) additive key-mask bias (BERT layers only)
    S = x.shape[0]
    scale = 1.0 / math.sqrt(DH)

    # Embedding LayerNorm (no residual -> no zeros buffer).
    x = _layernorm(x, embg_ref[...], embb_ref[...], BERT_EPS)

    for layer in range(N_LAYERS):
        is_bert = layer < N_BERT_LAYERS
        eps = BERT_EPS if is_bert else TORCH_LN_EPS

        # --- multi-head self-attention, all heads batched ---
        # wqkv[layer]: (3*NHEAD, H, DH); head split is encoded in the weights.
        x_b = jnp.broadcast_to(x[None], (3 * NHEAD, S, H))
        qkv = jax.lax.dot_general(
            x_b, wqkv_ref[layer], (((2,), (1,)), ((0,), (0,))),
            preferred_element_type=jnp.float32) + bqkv_ref[layer]   # (3nh,S,DH)
        q3 = qkv[:NHEAD]
        k3 = qkv[NHEAD:2 * NHEAD]
        v3 = qkv[2 * NHEAD:]

        s = jax.lax.dot_general(
            q3, k3, (((2,), (2,)), ((0,), (0,))),
            preferred_element_type=jnp.float32) * scale             # (nh,S,S)
        if is_bert:
            s = s + bias[None]        # additive mask only inside BERT encoder
        s = s - jnp.max(s, axis=-1, keepdims=True)
        p = jnp.exp(s)
        p = p * pl.reciprocal(jnp.sum(p, axis=-1, keepdims=True), approx=True)

        ctx = jax.lax.dot_general(
            p, v3, (((2,), (1,)), ((0,), (0,))),
            preferred_element_type=jnp.float32)                     # (nh,S,DH)
        # Output projection fused with the head merge: per-head (DH,H) matmul,
        # then sum over heads.  Avoids any activation reshape/transpose.
        attn = jax.lax.dot_general(
            ctx, wo_ref[layer], (((2,), (1,)), ((0,), (0,))),
            preferred_element_type=jnp.float32)                     # (nh,S,H)
        attn = jnp.sum(attn, axis=0) + bo_ref[layer]                # (S,H)

        x = _layernorm(x + attn, ln1g_ref[layer], ln1b_ref[layer], eps)

        # --- feed-forward (FF dims zero-padded to FF_MAX; padding is inert) ---
        ff = jnp.dot(x, w1_ref[layer],
                     preferred_element_type=jnp.float32) + b1_ref[layer]
        ff = _gelu(ff)
        ff = jnp.dot(ff, w2_ref[layer],
                     preferred_element_type=jnp.float32) + b2_ref[layer]

        x = _layernorm(x + ff, ln2g_ref[layer], ln2b_ref[layer], eps)

    # --- hidden projection + merged [start|end|type] classifier heads ---
    # (dropout is identity at inference)
    h = jnp.dot(x, hw_ref[...], preferred_element_type=jnp.float32) + hb_ref[...]
    logits = jnp.dot(h, cw_ref[...],
                     preferred_element_type=jnp.float32) + cb_ref[...]   # (S, 11)
    out_ref[0] = logits.astype(out_ref.dtype)


# ---------------- wrapper ----------------

_WEIGHT_NAMES = (
    "emb_ln_g", "emb_ln_b",
    "wqkv", "bqkv", "wo", "bo",
    "ln1_g", "ln1_b", "w1", "b1", "w2", "b2", "ln2_g", "ln2_b",
    "hidden_w", "hidden_b", "head_w", "head_b",
)


def forward(packed, input_ids, attention_mask):
    B, S = input_ids.shape

    # Embedding gather + sum in plain JAX (data-dependent gather), LN in-kernel.
    emb = (packed["word_emb"][input_ids]
           + packed["pos_emb"][:S][None, :, :]
           + packed["type_emb"][0][None, None, :])                  # (B, S, H)
    bias = ((1.0 - attention_mask.astype(jnp.float32)) * -1e9)[:, None, :]  # (B,1,S)

    weights = [packed[n] for n in _WEIGHT_NAMES]

    def batch_spec(shape):
        nd = len(shape)
        return pl.BlockSpec((1,) + tuple(shape[1:]),
                            lambda b: (b,) + (0,) * (nd - 1))

    def full_spec(shape):
        zeros = (0,) * len(shape)
        return pl.BlockSpec(tuple(shape), lambda b: zeros)

    in_specs = ([batch_spec(emb.shape), batch_spec(bias.shape)]
                + [full_spec(w.shape) for w in weights])

    out = pl.pallas_call(
        _fused_forward_kernel,
        out_shape=jax.ShapeDtypeStruct((B, S, N_OUT), jnp.float32),
        grid=(B,),
        in_specs=in_specs,
        out_specs=pl.BlockSpec((1, S, N_OUT), lambda b: (b, 0, 0)),
        compiler_params=pltpu.CompilerParams(
            dimension_semantics=("parallel",)),   # v7x: one batch elem per TC
    )(emb, bias, *weights)

    start_logits = out[:, :, 0]
    end_logits = out[:, :, 1]
    type_logits = out[:, :, 2:]
    return start_logits, end_logits, type_logits


# ---------------- parameter init & packing (plain JAX, done once) ----------------

def _dense(key, shape, scale=0.02):
    return scale * jax.random.normal(key, shape, dtype=jnp.float32)


def init_encoder_layer(key, d, ff):
    ks = jax.random.split(key, 6)
    z = lambda n: jnp.zeros((1, n), jnp.float32)
    o = lambda n: jnp.ones((1, n), jnp.float32)
    return {
        "wq": _dense(ks[0], (d, d)), "bq": z(d),
        "wk": _dense(ks[1], (d, d)), "bk": z(d),
        "wv": _dense(ks[2], (d, d)), "bv": z(d),
        "wo": _dense(ks[3], (d, d)), "bo": z(d),
        "ln1_g": o(d), "ln1_b": z(d),
        "w1": _dense(ks[4], (d, ff)), "b1": z(ff),
        "w2": _dense(ks[5], (ff, d)), "b2": z(d),
        "ln2_g": o(d), "ln2_b": z(d),
    }


def init_params(key):
    n_keys = 8 + N_BERT_LAYERS + N_TRANS_LAYERS
    keys = jax.random.split(key, n_keys)
    z = lambda n: jnp.zeros((1, n), jnp.float32)
    return {
        "word_emb": _dense(keys[0], (VOCAB, H)),
        "pos_emb": _dense(keys[1], (MAX_POS, H)),
        "type_emb": _dense(keys[2], (2, H)),
        "emb_ln_g": jnp.ones((1, H), jnp.float32),
        "emb_ln_b": z(H),
        "hidden_w": _dense(keys[3], (H, HIDDEN_OUT)), "hidden_b": z(HIDDEN_OUT),
        "type_w": _dense(keys[4], (HIDDEN_OUT, NUM_LABELS)), "type_b": z(NUM_LABELS),
        "start_w": _dense(keys[5], (HIDDEN_OUT, 1)), "start_b": z(1),
        "end_w": _dense(keys[6], (HIDDEN_OUT, 1)), "end_b": z(1),
        "bert_layers": [init_encoder_layer(keys[8 + i], H, FF_BERT)
                        for i in range(N_BERT_LAYERS)],
        "trans_layers": [init_encoder_layer(keys[8 + N_BERT_LAYERS + i], H, FF_TRANS)
                         for i in range(N_TRANS_LAYERS)],
    }


def pack_params(params):
    """Rearrange per-layer weights into stacked, kernel-friendly layouts."""
    layers = params["bert_layers"] + params["trans_layers"]

    def split_heads_w(w):          # (H, H) -> (NHEAD, H, DH)
        return w.reshape(H, NHEAD, DH).transpose(1, 0, 2)

    def split_heads_b(b):          # (1, H) -> (NHEAD, 1, DH)
        return b.reshape(NHEAD, DH)[:, None, :]

    wqkv, bqkv, wo, bo = [], [], [], []
    ln1g, ln1b, w1, b1, w2, b2, ln2g, ln2b = ([] for _ in range(8))
    for lp in layers:
        wqkv.append(jnp.concatenate(
            [split_heads_w(lp["wq"]), split_heads_w(lp["wk"]),
             split_heads_w(lp["wv"])], axis=0))                   # (3nh, H, DH)
        bqkv.append(jnp.concatenate(
            [split_heads_b(lp["bq"]), split_heads_b(lp["bk"]),
             split_heads_b(lp["bv"])], axis=0))                   # (3nh, 1, DH)
        wo.append(lp["wo"].reshape(NHEAD, DH, H))                 # (nh, DH, H)
        bo.append(lp["bo"])
        ln1g.append(lp["ln1_g"]); ln1b.append(lp["ln1_b"])
        ff = lp["w1"].shape[1]
        w1.append(jnp.pad(lp["w1"], ((0, 0), (0, FF_MAX - ff))))  # zero-pad FF
        b1.append(jnp.pad(lp["b1"], ((0, 0), (0, FF_MAX - ff))))
        w2.append(jnp.pad(lp["w2"], ((0, FF_MAX - ff), (0, 0))))
        b2.append(lp["b2"])
        ln2g.append(lp["ln2_g"]); ln2b.append(lp["ln2_b"])

    stack = lambda xs: jnp.stack(xs, axis=0)
    head_w = jnp.concatenate(
        [params["start_w"], params["end_w"], params["type_w"]], axis=1)   # (256, 11)
    head_b = jnp.concatenate(
        [params["start_b"], params["end_b"], params["type_b"]], axis=1)   # (1, 11)

    return {
        "word_emb": params["word_emb"],
        "pos_emb": params["pos_emb"],
        "type_emb": params["type_emb"],
        "emb_ln_g": params["emb_ln_g"], "emb_ln_b": params["emb_ln_b"],
        "wqkv": stack(wqkv), "bqkv": stack(bqkv),
        "wo": stack(wo), "bo": stack(bo),
        "ln1_g": stack(ln1g), "ln1_b": stack(ln1b),
        "w1": stack(w1), "b1": stack(b1),
        "w2": stack(w2), "b2": stack(b2),
        "ln2_g": stack(ln2g), "ln2_b": stack(ln2b),
        "hidden_w": params["hidden_w"], "hidden_b": params["hidden_b"],
        "head_w": head_w, "head_b": head_b,
    }


if __name__ == "__main__":
    key = jax.random.PRNGKey(0)
    k_params, k_ids = jax.random.split(key)
    params = init_params(k_params)
    packed = pack_params(params)

    B, S = 2, 8
    input_ids = jax.random.randint(k_ids, (B, S), 0, VOCAB, dtype=jnp.int32)
    attention_mask = jnp.ones((B, S), jnp.int32).at[1, 6:].set(0)

    fwd = jax.jit(forward)
    start_logits, end_logits, type_logits = fwd(packed, input_ids, attention_mask)
    jax.block_until_ready((start_logits, end_logits, type_logits))

    assert start_logits.shape == (B, S)
    assert end_logits.shape == (B, S)
    assert type_logits.shape == (B, S, NUM_LABELS)
    print("KERNEL_OK")
</pallas_src>

<mosaic_0001>
module attributes {stable_mosaic.version = 11 : i64} {
  func.func @_fused_forward_kernel(%arg0: i32, %arg1: memref<1x8x32xf32, #tpu.memory_space<vmem>>, %arg2: memref<1x1x8xf32, #tpu.memory_space<vmem>>, %arg3: memref<1x32xf32, #tpu.memory_space<vmem>>, %arg4: memref<1x32xf32, #tpu.memory_space<vmem>>, %arg5: memref<8x24x32x4xf32, #tpu.memory_space<vmem>>, %arg6: memref<8x24x1x4xf32, #tpu.memory_space<vmem>>, %arg7: memref<8x8x4x32xf32, #tpu.memory_space<vmem>>, %arg8: memref<8x1x32xf32, #tpu.memory_space<vmem>>, %arg9: memref<8x1x32xf32, #tpu.memory_space<vmem>>, %arg10: memref<8x1x32xf32, #tpu.memory_space<vmem>>, %arg11: memref<8x32x128xf32, #tpu.memory_space<vmem>>, %arg12: memref<8x1x128xf32, #tpu.memory_space<vmem>>, %arg13: memref<8x128x32xf32, #tpu.memory_space<vmem>>, %arg14: memref<8x1x32xf32, #tpu.memory_space<vmem>>, %arg15: memref<8x1x32xf32, #tpu.memory_space<vmem>>, %arg16: memref<8x1x32xf32, #tpu.memory_space<vmem>>, %arg17: memref<32x256xf32, #tpu.memory_space<vmem>>, %arg18: memref<1x256xf32, #tpu.memory_space<vmem>>, %arg19: memref<256x11xf32, #tpu.memory_space<vmem>>, %arg20: memref<1x11xf32, #tpu.memory_space<vmem>>, %arg21: memref<1x8x11xf32, #tpu.memory_space<vmem>>) attributes {dimension_semantics = [#tpu.dimension_semantics<parallel>], iteration_bounds = array<i64: 2>, scalar_prefetch = 0 : i64, scratch_operands = 0 : i64, tpu.core_type = #tpu.core_type<tc>, window_params = [{transform_indices = @transform_0, window_bounds = array<i64: 1, 8, 32>}, {transform_indices = @transform_1, window_bounds = array<i64: 1, 1, 8>}, {pipeline_mode = #tpu.pipeline_mode<synchronous>, transform_indices = @transform_2, window_bounds = array<i64: 1, 32>}, {pipeline_mode = #tpu.pipeline_mode<synchronous>, transform_indices = @transform_3, window_bounds = array<i64: 1, 32>}, {pipeline_mode = #tpu.pipeline_mode<synchronous>, transform_indices = @transform_4, window_bounds = array<i64: 8, 24, 32, 4>}, {pipeline_mode = #tpu.pipeline_mode<synchronous>, transform_indices = @transform_5, window_bounds = array<i64: 8, 24, 1, 4>}, {pipeline_mode = #tpu.pipeline_mode<synchronous>, transform_indices = @transform_6, window_bounds = array<i64: 8, 8, 4, 32>}, {pipeline_mode = #tpu.pipeline_mode<synchronous>, transform_indices = @transform_7, window_bounds = array<i64: 8, 1, 32>}, {pipeline_mode = #tpu.pipeline_mode<synchronous>, transform_indices = @transform_8, window_bounds = array<i64: 8, 1, 32>}, {pipeline_mode = #tpu.pipeline_mode<synchronous>, transform_indices = @transform_9, window_bounds = array<i64: 8, 1, 32>}, {pipeline_mode = #tpu.pipeline_mode<synchronous>, transform_indices = @transform_10, window_bounds = array<i64: 8, 32, 128>}, {pipeline_mode = #tpu.pipeline_mode<synchronous>, transform_indices = @transform_11, window_bounds = array<i64: 8, 1, 128>}, {pipeline_mode = #tpu.pipeline_mode<synchronous>, transform_indices = @transform_12, window_bounds = array<i64: 8, 128, 32>}, {pipeline_mode = #tpu.pipeline_mode<synchronous>, transform_indices = @transform_13, window_bounds = array<i64: 8, 1, 32>}, {pipeline_mode = #tpu.pipeline_mode<synchronous>, transform_indices = @transform_14, window_bounds = array<i64: 8, 1, 32>}, {pipeline_mode = #tpu.pipeline_mode<synchronous>, transform_indices = @transform_15, window_bounds = array<i64: 8, 1, 32>}, {pipeline_mode = #tpu.pipeline_mode<synchronous>, transform_indices = @transform_16, window_bounds = array<i64: 32, 256>}, {pipeline_mode = #tpu.pipeline_mode<synchronous>, transform_indices = @transform_17, window_bounds = array<i64: 1, 256>}, {pipeline_mode = #tpu.pipeline_mode<synchronous>, transform_indices = @transform_18, window_bounds = array<i64: 256, 11>}, {pipeline_mode = #tpu.pipeline_mode<synchronous>, transform_indices = @transform_19, window_bounds = array<i64: 1, 11>}, {transform_indices = @transform_20, window_bounds = array<i64: 1, 8, 11>}]} {
    %c0 = arith.constant 0 : index
    %c0_0 = arith.constant 0 : index
    %c0_1 = arith.constant 0 : index
    %0 = vector.load %arg1[%c0, %c0_0, %c0_1] : memref<1x8x32xf32, #tpu.memory_space<vmem>>, vector<1x8x32xf32>
    %1 = vector.shape_cast %0 : vector<1x8x32xf32> to vector<8x32xf32>
    %c0_2 = arith.constant 0 : index
    %c0_3 = arith.constant 0 : index
    %c0_4 = arith.constant 0 : index
    %2 = vector.load %arg2[%c0_2, %c0_3, %c0_4] : memref<1x1x8xf32, #tpu.memory_space<vmem>>, vector<1x1x8xf32>
    %3 = vector.shape_cast %2 : vector<1x1x8xf32> to vector<1x8xf32>
    %c0_5 = arith.constant 0 : index
    %c0_6 = arith.constant 0 : index
    %4 = vector.load %arg3[%c0_5, %c0_6] : memref<1x32xf32, #tpu.memory_space<vmem>>, vector<1x32xf32>
    %c0_7 = arith.constant 0 : index
    %c0_8 = arith.constant 0 : index
    %5 = vector.load %arg4[%c0_7, %c0_8] : memref<1x32xf32, #tpu.memory_space<vmem>>, vector<1x32xf32>
    %cst = arith.constant dense<0.000000e+00> : vector<8xf32>
    %6 = vector.multi_reduction <add>, %1, %cst [1] : vector<8x32xf32> to vector<8xf32>
    %7 = vector.shape_cast %6 : vector<8xf32> to vector<8x1xf32>
    %cst_9 = arith.constant 3.200000e+01 : f32
    %8 = vector.broadcast %cst_9 : f32 to vector<8x1xf32>
    %9 = arith.divf %7, %8 : vector<8x1xf32>
    %10 = vector.broadcast %9 : vector<8x1xf32> to vector<8x32xf32>
    %11 = arith.subf %1, %10 : vector<8x32xf32>
    %12 = arith.mulf %11, %11 : vector<8x32xf32>
    %cst_10 = arith.constant dense<0.000000e+00> : vector<8xf32>
    %13 = vector.multi_reduction <add>, %12, %cst_10 [1] : vector<8x32xf32> to vector<8xf32>
    %14 = vector.shape_cast %13 : vector<8xf32> to vector<8x1xf32>
    %cst_11 = arith.constant 3.200000e+01 : f32
    %15 = vector.broadcast %cst_11 : f32 to vector<8x1xf32>
    %16 = arith.divf %14, %15 : vector<8x1xf32>
    %cst_12 = arith.constant 9.99999996E-13 : f32
    %17 = vector.broadcast %cst_12 : f32 to vector<8x1xf32>
    %18 = arith.addf %16, %17 : vector<8x1xf32>
    %19 = math.rsqrt %18 : vector<8x1xf32>
    %20 = vector.broadcast %19 : vector<8x1xf32> to vector<8x32xf32>
    %21 = arith.mulf %11, %20 : vector<8x32xf32>
    %22 = vector.broadcast %4 : vector<1x32xf32> to vector<8x32xf32>
    %23 = arith.mulf %21, %22 : vector<8x32xf32>
    %24 = vector.broadcast %5 : vector<1x32xf32> to vector<8x32xf32>
    %25 = arith.addf %23, %24 : vector<8x32xf32>
    %26 = vector.shape_cast %25 : vector<8x32xf32> to vector<1x8x32xf32>
    %27 = vector.shape_cast %26 : vector<1x8x32xf32> to vector<1x8x32xf32>
    %28 = vector.broadcast %27 : vector<1x8x32xf32> to vector<24x8x32xf32>
    %c0_13 = arith.constant 0 : index
    %c0_14 = arith.constant 0 : index
    %c0_15 = arith.constant 0 : index
    %c0_16 = arith.constant 0 : index
    %29 = vector.load %arg5[%c0_13, %c0_14, %c0_15, %c0_16] : memref<8x24x32x4xf32, #tpu.memory_space<vmem>>, vector<1x24x32x4xf32>
    %30 = vector.shape_cast %29 : vector<1x24x32x4xf32> to vector<24x32x4xf32>
    %cst_17 = arith.constant dense<0.000000e+00> : vector<24x8x4xf32>
    %31 = tpu.matmul %28, %30, %cst_17 {dimension_numbers = #tpu.dot_dimension_numbers<[2], [1], [1], [2], [0, 0, 0, 1, 1, 2], [0], [0]>} : vector<24x8x32xf32>, vector<24x32x4xf32>, vector<24x8x4xf32> -> vector<24x8x4xf32>
    %c0_18 = arith.constant 0 : index
    %c0_19 = arith.constant 0 : index
    %c0_20 = arith.constant 0 : index
    %c0_21 = arith.constant 0 : index
    %32 = vector.load %arg6[%c0_18, %c0_19, %c0_20, %c0_21] : memref<8x24x1x4xf32, #tpu.memory_space<vmem>>, vector<1x24x1x4xf32>
    %33 = vector.shape_cast %32 : vector<1x24x1x4xf32> to vector<24x1x4xf32>
    %34 = vector.broadcast %33 : vector<24x1x4xf32> to vector<24x8x4xf32>
    %35 = arith.addf %31, %34 : vector<24x8x4xf32>
    %36 = vector.extract_strided_slice %35 {offsets = [0, 0, 0], sizes = [8, 8, 4], strides = [1, 1, 1]} : vector<24x8x4xf32> to vector<8x8x4xf32>
    %37 = vector.extract_strided_slice %35 {offsets = [8, 0, 0], sizes = [8, 8, 4], strides = [1, 1, 1]} : vector<24x8x4xf32> to vector<8x8x4xf32>
    %38 = vector.extract_strided_slice %35 {offsets = [16, 0, 0], sizes = [8, 8, 4], strides = [1, 1, 1]} : vector<24x8x4xf32> to vector<8x8x4xf32>
    %cst_22 = arith.constant dense<0.000000e+00> : vector<8x8x8xf32>
    %39 = tpu.matmul %36, %37, %cst_22 {dimension_numbers = #tpu.dot_dimension_numbers<[2], [2], [1], [1], [0, 0, 0, 1, 1, 1], [0], [0]>} : vector<8x8x4xf32>, vector<8x8x4xf32>, vector<8x8x8xf32> -> vector<8x8x8xf32>
    %cst_23 = arith.constant 5.000000e-01 : f32
    %40 = vector.broadcast %cst_23 : f32 to vector<8x8x8xf32>
    %41 = arith.mulf %39, %40 : vector<8x8x8xf32>
    %42 = vector.shape_cast %3 : vector<1x8xf32> to vector<1x1x8xf32>
    %43 = vector.broadcast %42 : vector<1x1x8xf32> to vector<8x8x8xf32>
    %44 = arith.addf %41, %43 : vector<8x8x8xf32>
    %cst_24 = arith.constant dense<0xFF800000> : vector<8x8xf32>
    %45 = vector.multi_reduction <maximumf>, %44, %cst_24 [2] : vector<8x8x8xf32> to vector<8x8xf32>
    %46 = vector.shape_cast %45 : vector<8x8xf32> to vector<8x8x1xf32>
    %47 = vector.broadcast %46 : vector<8x8x1xf32> to vector<8x8x8xf32>
    %48 = arith.subf %44, %47 : vector<8x8x8xf32>
    %49 = math.exp %48 : vector<8x8x8xf32>
    %cst_25 = arith.constant dense<0.000000e+00> : vector<8x8xf32>
    %50 = vector.multi_reduction <add>, %49, %cst_25 [2] : vector<8x8x8xf32> to vector<8x8xf32>
    %51 = vector.shape_cast %50 : vector<8x8xf32> to vector<8x8x1xf32>
    %52 = tpu.reciprocal %51 {approx = true} : vector<8x8x1xf32> -> vector<8x8x1xf32>
    %53 = vector.broadcast %52 : vector<8x8x1xf32> to vector<8x8x8xf32>
    %54 = arith.mulf %49, %53 : vector<8x8x8xf32>
    %cst_26 = arith.constant dense<0.000000e+00> : vector<8x8x4xf32>
    %55 = tpu.matmul %54, %38, %cst_26 {dimension_numbers = #tpu.dot_dimension_numbers<[2], [1], [1], [2], [0, 0, 0, 1, 1, 2], [0], [0]>} : vector<8x8x8xf32>, vector<8x8x4xf32>, vector<8x8x4xf32> -> vector<8x8x4xf32>
    %c0_27 = arith.constant 0 : index
    %c0_28 = arith.constant 0 : index
    %c0_29 = arith.constant 0 : index
    %c0_30 = arith.constant 0 : index
    %56 = vector.load %arg7[%c0_27, %c0_28, %c0_29, %c0_30] : memref<8x8x4x32xf32, #tpu.memory_space<vmem>>, vector<1x8x4x32xf32>
    %57 = vector.shape_cast %56 : vector<1x8x4x32xf32> to vector<8x4x32xf32>
    %cst_31 = arith.constant dense<0.000000e+00> : vector<8x8x32xf32>
    %58 = tpu.matmul %55, %57, %cst_31 {dimension_numbers = #tpu.dot_dimension_numbers<[2], [1], [1], [2], [0, 0, 0, 1, 1, 2], [0], [0]>} : vector<8x8x4xf32>, vector<8x4x32xf32>, vector<8x8x32xf32> -> vector<8x8x32xf32>
    %cst_32 = arith.constant dense<0.000000e+00> : vector<8x32xf32>
    %59 = vector.multi_reduction <add>, %58, %cst_32 [0] : vector<8x8x32xf32> to vector<8x32xf32>
    %c0_33 = arith.constant 0 : index
    %c0_34 = arith.constant 0 : index
    %c0_35 = arith.constant 0 : index
    %60 = vector.load %arg8[%c0_33, %c0_34, %c0_35] : memref<8x1x32xf32, #tpu.memory_space<vmem>>, vector<1x1x32xf32>
    %61 = vector.shape_cast %60 : vector<1x1x32xf32> to vector<1x32xf32>
    %62 = vector.broadcast %61 : vector<1x32xf32> to vector<8x32xf32>
    %63 = arith.addf %59, %62 : vector<8x32xf32>
    %64 = arith.addf %25, %63 : vector<8x32xf32>
    %c0_36 = arith.constant 0 : index
    %c0_37 = arith.constant 0 : index
    %c0_38 = arith.constant 0 : index
    %65 = vector.load %arg9[%c0_36, %c0_37, %c0_38] : memref<8x1x32xf32, #tpu.memory_space<vmem>>, vector<1x1x32xf32>
    %66 = vector.shape_cast %65 : vector<1x1x32xf32> to vector<1x32xf32>
    %c0_39 = arith.constant 0 : index
    %c0_40 = arith.constant 0 : index
    %c0_41 = arith.constant 0 : index
    %67 = vector.load %arg10[%c0_39, %c0_40, %c0_41] : memref<8x1x32xf32, #tpu.memory_space<vmem>>, vector<1x1x32xf32>
    %68 = vector.shape_cast %67 : vector<1x1x32xf32> to vector<1x32xf32>
    %cst_42 = arith.constant dense<0.000000e+00> : vector<8xf32>
    %69 = vector.multi_reduction <add>, %64, %cst_42 [1] : vector<8x32xf32> to vector<8xf32>
    %70 = vector.shape_cast %69 : vector<8xf32> to vector<8x1xf32>
    %cst_43 = arith.constant 3.200000e+01 : f32
    %71 = vector.broadcast %cst_43 : f32 to vector<8x1xf32>
    %72 = arith.divf %70, %71 : vector<8x1xf32>
    %73 = vector.broadcast %72 : vector<8x1xf32> to vector<8x32xf32>
    %74 = arith.subf %64, %73 : vector<8x32xf32>
    %75 = arith.mulf %74, %74 : vector<8x32xf32>
    %cst_44 = arith.constant dense<0.000000e+00> : vector<8xf32>
    %76 = vector.multi_reduction <add>, %75, %cst_44 [1] : vector<8x32xf32> to vector<8xf32>
    %77 = vector.shape_cast %76 : vector<8xf32> to vector<8x1xf32>
    %cst_45 = arith.constant 3.200000e+01 : f32
    %78 = vector.broadcast %cst_45 : f32 to vector<8x1xf32>
    %79 = arith.divf %77, %78 : vector<8x1xf32>
    %cst_46 = arith.constant 9.99999996E-13 : f32
    %80 = vector.broadcast %cst_46 : f32 to vector<8x1xf32>
    %81 = arith.addf %79, %80 : vector<8x1xf32>
    %82 = math.rsqrt %81 : vector<8x1xf32>
    %83 = vector.broadcast %82 : vector<8x1xf32> to vector<8x32xf32>
    %84 = arith.mulf %74, %83 : vector<8x32xf32>
    %85 = vector.broadcast %66 : vector<1x32xf32> to vector<8x32xf32>
    %86 = arith.mulf %84, %85 : vector<8x32xf32>
    %87 = vector.broadcast %68 : vector<1x32xf32> to vector<8x32xf32>
    %88 = arith.addf %86, %87 : vector<8x32xf32>
    %c0_47 = arith.constant 0 : index
    %c0_48 = arith.constant 0 : index
    %c0_49 = arith.constant 0 : index
    %89 = vector.load %arg11[%c0_47, %c0_48, %c0_49] : memref<8x32x128xf32, #tpu.memory_space<vmem>>, vector<1x32x128xf32>
    %90 = vector.shape_cast %89 : vector<1x32x128xf32> to vector<32x128xf32>
    %cst_50 = arith.constant dense<0.000000e+00> : vector<8x128xf32>
    %91 = tpu.matmul %88, %90, %cst_50 {dimension_numbers = #tpu.dot_dimension_numbers<[1], [0], [0], [1], [0, 0, 1, 1], [], []>} : vector<8x32xf32>, vector<32x128xf32>, vector<8x128xf32> -> vector<8x128xf32>
    %c0_51 = arith.constant 0 : index
    %c0_52 = arith.constant 0 : index
    %c0_53 = arith.constant 0 : index
    %92 = vector.load %arg12[%c0_51, %c0_52, %c0_53] : memref<8x1x128xf32, #tpu.memory_space<vmem>>, vector<1x1x128xf32>
    %93 = vector.shape_cast %92 : vector<1x1x128xf32> to vector<1x128xf32>
    %94 = vector.broadcast %93 : vector<1x128xf32> to vector<8x128xf32>
    %95 = arith.addf %91, %94 : vector<8x128xf32>
    %cst_54 = arith.constant 5.000000e-01 : f32
    %96 = vector.broadcast %cst_54 : f32 to vector<8x128xf32>
    %97 = arith.mulf %96, %95 : vector<8x128xf32>
    %cst_55 = arith.constant 4.471500e-02 : f32
    %98 = vector.broadcast %cst_55 : f32 to vector<8x128xf32>
    %99 = arith.mulf %98, %95 : vector<8x128xf32>
    %100 = arith.mulf %99, %95 : vector<8x128xf32>
    %101 = arith.mulf %100, %95 : vector<8x128xf32>
    %102 = arith.addf %95, %101 : vector<8x128xf32>
    %cst_56 = arith.constant 0.797884583 : f32
    %103 = vector.broadcast %cst_56 : f32 to vector<8x128xf32>
    %104 = arith.mulf %103, %102 : vector<8x128xf32>
    %105 = math.tanh %104 : vector<8x128xf32>
    %cst_57 = arith.constant 1.000000e+00 : f32
    %106 = vector.broadcast %cst_57 : f32 to vector<8x128xf32>
    %107 = arith.addf %106, %105 : vector<8x128xf32>
    %108 = arith.mulf %97, %107 : vector<8x128xf32>
    %c0_58 = arith.constant 0 : index
    %c0_59 = arith.constant 0 : index
    %c0_60 = arith.constant 0 : index
    %109 = vector.load %arg13[%c0_58, %c0_59, %c0_60] : memref<8x128x32xf32, #tpu.memory_space<vmem>>, vector<1x128x32xf32>
    %110 = vector.shape_cast %109 : vector<1x128x32xf32> to vector<128x32xf32>
    %cst_61 = arith.constant dense<0.000000e+00> : vector<8x32xf32>
    %111 = tpu.matmul %108, %110, %cst_61 {dimension_numbers = #tpu.dot_dimension_numbers<[1], [0], [0], [1], [0, 0, 1, 1], [], []>} : vector<8x128xf32>, vector<128x32xf32>, vector<8x32xf32> -> vector<8x32xf32>
    %c0_62 = arith.constant 0 : index
    %c0_63 = arith.constant 0 : index
    %c0_64 = arith.constant 0 : index
    %112 = vector.load %arg14[%c0_62, %c0_63, %c0_64] : memref<8x1x32xf32, #tpu.memory_space<vmem>>, vector<1x1x32xf32>
    %113 = vector.shape_cast %112 : vector<1x1x32xf32> to vector<1x32xf32>
    %114 = vector.broadcast %113 : vector<1x32xf32> to vector<8x32xf32>
    %115 = arith.addf %111, %114 : vector<8x32xf32>
    %116 = arith.addf %88, %115 : vector<8x32xf32>
    %c0_65 = arith.constant 0 : index
    %c0_66 = arith.constant 0 : index
    %c0_67 = arith.constant 0 : index
    %117 = vector.load %arg15[%c0_65, %c0_66, %c0_67] : memref<8x1x32xf32, #tpu.memory_space<vmem>>, vector<1x1x32xf32>
    %118 = vector.shape_cast %117 : vector<1x1x32xf32> to vector<1x32xf32>
    %c0_68 = arith.constant 0 : index
    %c0_69 = arith.constant 0 : index
    %c0_70 = arith.constant 0 : index
    %119 = vector.load %arg16[%c0_68, %c0_69, %c0_70] : memref<8x1x32xf32, #tpu.memory_space<vmem>>, vector<1x1x32xf32>
    %120 = vector.shape_cast %119 : vector<1x1x32xf32> to vector<1x32xf32>
    %cst_71 = arith.constant dense<0.000000e+00> : vector<8xf32>
    %121 = vector.multi_reduction <add>, %116, %cst_71 [1] : vector<8x32xf32> to vector<8xf32>
    %122 = vector.shape_cast %121 : vector<8xf32> to vector<8x1xf32>
    %cst_72 = arith.constant 3.200000e+01 : f32
    %123 = vector.broadcast %cst_72 : f32 to vector<8x1xf32>
    %124 = arith.divf %122, %123 : vector<8x1xf32>
    %125 = vector.broadcast %124 : vector<8x1xf32> to vector<8x32xf32>
    %126 = arith.subf %116, %125 : vector<8x32xf32>
    %127 = arith.mulf %126, %126 : vector<8x32xf32>
    %cst_73 = arith.constant dense<0.000000e+00> : vector<8xf32>
    %128 = vector.multi_reduction <add>, %127, %cst_73 [1] : vector<8x32xf32> to vector<8xf32>
    %129 = vector.shape_cast %128 : vector<8xf32> to vector<8x1xf32>
    %cst_74 = arith.constant 3.200000e+01 : f32
    %130 = vector.broadcast %cst_74 : f32 to vector<8x1xf32>
    %131 = arith.divf %129, %130 : vector<8x1xf32>
    %cst_75 = arith.constant 9.99999996E-13 : f32
    %132 = vector.broadcast %cst_75 : f32 to vector<8x1xf32>
    %133 = arith.addf %131, %132 : vector<8x1xf32>
    %134 = math.rsqrt %133 : vector<8x1xf32>
    %135 = vector.broadcast %134 : vector<8x1xf32> to vector<8x32xf32>
    %136 = arith.mulf %126, %135 : vector<8x32xf32>
    %137 = vector.broadcast %118 : vector<1x32xf32> to vector<8x32xf32>
    %138 = arith.mulf %136, %137 : vector<8x32xf32>
    %139 = vector.broadcast %120 : vector<1x32xf32> to vector<8x32xf32>
    %140 = arith.addf %138, %139 : vector<8x32xf32>
    %141 = vector.shape_cast %140 : vector<8x32xf32> to vector<1x8x32xf32>
    %142 = vector.shape_cast %141 : vector<1x8x32xf32> to vector<1x8x32xf32>
    %143 = vector.broadcast %142 : vector<1x8x32xf32> to vector<24x8x32xf32>
    %c1 = arith.constant 1 : index
    %c0_76 = arith.constant 0 : index
    %c0_77 = arith.constant 0 : index
    %c0_78 = arith.constant 0 : index
    %144 = vector.load %arg5[%c1, %c0_76, %c0_77, %c0_78] : memref<8x24x32x4xf32, #tpu.memory_space<vmem>>, vector<1x24x32x4xf32>
    %145 = vector.shape_cast %144 : vector<1x24x32x4xf32> to vector<24x32x4xf32>
    %cst_79 = arith.constant dense<0.000000e+00> : vector<24x8x4xf32>
    %146 = tpu.matmul %143, %145, %cst_79 {dimension_numbers = #tpu.dot_dimension_numbers<[2], [1], [1], [2], [0, 0, 0, 1, 1, 2], [0], [0]>} : vector<24x8x32xf32>, vector<24x32x4xf32>, vector<24x8x4xf32> -> vector<24x8x4xf32>
    %c1_80 = arith.constant 1 : index
    %c0_81 = arith.constant 0 : index
    %c0_82 = arith.constant 0 : index
    %c0_83 = arith.constant 0 : index
    %147 = vector.load %arg6[%c1_80, %c0_81, %c0_82, %c0_83] : memref<8x24x1x4xf32, #tpu.memory_space<vmem>>, vector<1x24x1x4xf32>
    %148 = vector.shape_cast %147 : vector<1x24x1x4xf32> to vector<24x1x4xf32>
    %149 = vector.broadcast %148 : vector<24x1x4xf32> to vector<24x8x4xf32>
    %150 = arith.addf %146, %149 : vector<24x8x4xf32>
    %151 = vector.extract_strided_slice %150 {offsets = [0, 0, 0], sizes = [8, 8, 4], strides = [1, 1, 1]} : vector<24x8x4xf32> to vector<8x8x4xf32>
    %152 = vector.extract_strided_slice %150 {offsets = [8, 0, 0], sizes = [8, 8, 4], strides = [1, 1, 1]} : vector<24x8x4xf32> to vector<8x8x4xf32>
    %153 = vector.extract_strided_slice %150 {offsets = [16, 0, 0], sizes = [8, 8, 4], strides = [1, 1, 1]} : vector<24x8x4xf32> to vector<8x8x4xf32>
    %cst_84 = arith.constant dense<0.000000e+00> : vector<8x8x8xf32>
    %154 = tpu.matmul %151, %152, %cst_84 {dimension_numbers = #tpu.dot_dimension_numbers<[2], [2], [1], [1], [0, 0, 0, 1, 1, 1], [0], [0]>} : vector<8x8x4xf32>, vector<8x8x4xf32>, vector<8x8x8xf32> -> vector<8x8x8xf32>
    %cst_85 = arith.constant 5.000000e-01 : f32
    %155 = vector.broadcast %cst_85 : f32 to vector<8x8x8xf32>
    %156 = arith.mulf %154, %155 : vector<8x8x8xf32>
    %157 = vector.shape_cast %3 : vector<1x8xf32> to vector<1x1x8xf32>
    %158 = vector.broadcast %157 : vector<1x1x8xf32> to vector<8x8x8xf32>
    %159 = arith.addf %156, %158 : vector<8x8x8xf32>
    %cst_86 = arith.constant dense<0xFF800000> : vector<8x8xf32>
    %160 = vector.multi_reduction <maximumf>, %159, %cst_86 [2] : vector<8x8x8xf32> to vector<8x8xf32>
    %161 = vector.shape_cast %160 : vector<8x8xf32> to vector<8x8x1xf32>
    %162 = vector.broadcast %161 : vector<8x8x1xf32> to vector<8x8x8xf32>
    %163 = arith.subf %159, %162 : vector<8x8x8xf32>
    %164 = math.exp %163 : vector<8x8x8xf32>
    %cst_87 = arith.constant dense<0.000000e+00> : vector<8x8xf32>
    %165 = vector.multi_reduction <add>, %164, %cst_87 [2] : vector<8x8x8xf32> to vector<8x8xf32>
    %166 = vector.shape_cast %165 : vector<8x8xf32> to vector<8x8x1xf32>
    %167 = tpu.reciprocal %166 {approx = true} : vector<8x8x1xf32> -> vector<8x8x1xf32>
    %168 = vector.broadcast %167 : vector<8x8x1xf32> to vector<8x8x8xf32>
    %169 = arith.mulf %164, %168 : vector<8x8x8xf32>
    %cst_88 = arith.constant dense<0.000000e+00> : vector<8x8x4xf32>
    %170 = tpu.matmul %169, %153, %cst_88 {dimension_numbers = #tpu.dot_dimension_numbers<[2], [1], [1], [2], [0, 0, 0, 1, 1, 2], [0], [0]>} : vector<8x8x8xf32>, vector<8x8x4xf32>, vector<8x8x4xf32> -> vector<8x8x4xf32>
    %c1_89 = arith.constant 1 : index
    %c0_90 = arith.constant 0 : index
    %c0_91 = arith.constant 0 : index
    %c0_92 = arith.constant 0 : index
    %171 = vector.load %arg7[%c1_89, %c0_90, %c0_91, %c0_92] : memref<8x8x4x32xf32, #tpu.memory_space<vmem>>, vector<1x8x4x32xf32>
    %172 = vector.shape_cast %171 : vector<1x8x4x32xf32> to vector<8x4x32xf32>
    %cst_93 = arith.constant dense<0.000000e+00> : vector<8x8x32xf32>
    %173 = tpu.matmul %170, %172, %cst_93 {dimension_numbers = #tpu.dot_dimension_numbers<[2], [1], [1], [2], [0, 0, 0, 1, 1, 2], [0], [0]>} : vector<8x8x4xf32>, vector<8x4x32xf32>, vector<8x8x32xf32> -> vector<8x8x32xf32>
    %cst_94 = arith.constant dense<0.000000e+00> : vector<8x32xf32>
    %174 = vector.multi_reduction <add>, %173, %cst_94 [0] : vector<8x8x32xf32> to vector<8x32xf32>
    %c1_95 = arith.constant 1 : index
    %c0_96 = arith.constant 0 : index
    %c0_97 = arith.constant 0 : index
    %175 = vector.load %arg8[%c1_95, %c0_96, %c0_97] : memref<8x1x32xf32, #tpu.memory_space<vmem>>, vector<1x1x32xf32>
    %176 = vector.shape_cast %175 : vector<1x1x32xf32> to vector<1x32xf32>
    %177 = vector.broadcast %176 : vector<1x32xf32> to vector<8x32xf32>
    %178 = arith.addf %174, %177 : vector<8x32xf32>
    %179 = arith.addf %140, %178 : vector<8x32xf32>
    %c1_98 = arith.constant 1 : index
    %c0_99 = arith.constant 0 : index
    %c0_100 = arith.constant 0 : index
    %180 = vector.load %arg9[%c1_98, %c0_99, %c0_100] : memref<8x1x32xf32, #tpu.memory_space<vmem>>, vector<1x1x32xf32>
    %181 = vector.shape_cast %180 : vector<1x1x32xf32> to vector<1x32xf32>
    %c1_101 = arith.constant 1 : index
    %c0_102 = arith.constant 0 : index
    %c0_103 = arith.constant 0 : index
    %182 = vector.load %arg10[%c1_101, %c0_102, %c0_103] : memref<8x1x32xf32, #tpu.memory_space<vmem>>, vector<1x1x32xf32>
    %183 = vector.shape_cast %182 : vector<1x1x32xf32> to vector<1x32xf32>
    %cst_104 = arith.constant dense<0.000000e+00> : vector<8xf32>
    %184 = vector.multi_reduction <add>, %179, %cst_104 [1] : vector<8x32xf32> to vector<8xf32>
    %185 = vector.shape_cast %184 : vector<8xf32> to vector<8x1xf32>
    %cst_105 = arith.constant 3.200000e+01 : f32
    %186 = vector.broadcast %cst_105 : f32 to vector<8x1xf32>
    %187 = arith.divf %185, %186 : vector<8x1xf32>
    %188 = vector.broadcast %187 : vector<8x1xf32> to vector<8x32xf32>
    %189 = arith.subf %179, %188 : vector<8x32xf32>
    %190 = arith.mulf %189, %189 : vector<8x32xf32>
    %cst_106 = arith.constant dense<0.000000e+00> : vector<8xf32>
    %191 = vector.multi_reduction <add>, %190, %cst_106 [1] : vector<8x32xf32> to vector<8xf32>
    %192 = vector.shape_cast %191 : vector<8xf32> to vector<8x1xf32>
    %cst_107 = arith.constant 3.200000e+01 : f32
    %193 = vector.broadcast %cst_107 : f32 to vector<8x1xf32>
    %194 = arith.divf %192, %193 : vector<8x1xf32>
    %cst_108 = arith.constant 9.99999996E-13 : f32
    %195 = vector.broadcast %cst_108 : f32 to vector<8x1xf32>
    %196 = arith.addf %194, %195 : vector<8x1xf32>
    %197 = math.rsqrt %196 : vector<8x1xf32>
    %198 = vector.broadcast %197 : vector<8x1xf32> to vector<8x32xf32>
    %199 = arith.mulf %189, %198 : vector<8x32xf32>
    %200 = vector.broadcast %181 : vector<1x32xf32> to vector<8x32xf32>
    %201 = arith.mulf %199, %200 : vector<8x32xf32>
    %202 = vector.broadcast %183 : vector<1x32xf32> to vector<8x32xf32>
    %203 = arith.addf %201, %202 : vector<8x32xf32>
    %c1_109 = arith.constant 1 : index
    %c0_110 = arith.constant 0 : index
    %c0_111 = arith.constant 0 : index
    %204 = vector.load %arg11[%c1_109, %c0_110, %c0_111] : memref<8x32x128xf32, #tpu.memory_space<vmem>>, vector<1x32x128xf32>
    %205 = vector.shape_cast %204 : vector<1x32x128xf32> to vector<32x128xf32>
    %cst_112 = arith.constant dense<0.000000e+00> : vector<8x128xf32>
    %206 = tpu.matmul %203, %205, %cst_112 {dimension_numbers = #tpu.dot_dimension_numbers<[1], [0], [0], [1], [0, 0, 1, 1], [], []>} : vector<8x32xf32>, vector<32x128xf32>, vector<8x128xf32> -> vector<8x128xf32>
    %c1_113 = arith.constant 1 : index
    %c0_114 = arith.constant 0 : index
    %c0_115 = arith.constant 0 : index
    %207 = vector.load %arg12[%c1_113, %c0_114, %c0_115] : memref<8x1x128xf32, #tpu.memory_space<vmem>>, vector<1x1x128xf32>
    %208 = vector.shape_cast %207 : vector<1x1x128xf32> to vector<1x128xf32>
    %209 = vector.broadcast %208 : vector<1x128xf32> to vector<8x128xf32>
    %210 = arith.addf %206, %209 : vector<8x128xf32>
    %cst_116 = arith.constant 5.000000e-01 : f32
    %211 = vector.broadcast %cst_116 : f32 to vector<8x128xf32>
    %212 = arith.mulf %211, %210 : vector<8x128xf32>
    %cst_117 = arith.constant 4.471500e-02 : f32
    %213 = vector.broadcast %cst_117 : f32 to vector<8x128xf32>
    %214 = arith.mulf %213, %210 : vector<8x128xf32>
    %215 = arith.mulf %214, %210 : vector<8x128xf32>
    %216 = arith.mulf %215, %210 : vector<8x128xf32>
    %217 = arith.addf %210, %216 : vector<8x128xf32>
    %cst_118 = arith.constant 0.797884583 : f32
    %218 = vector.broadcast %cst_118 : f32 to vector<8x128xf32>
    %219 = arith.mulf %218, %217 : vector<8x128xf32>
    %220 = math.tanh %219 : vector<8x128xf32>
    %cst_119 = arith.constant 1.000000e+00 : f32
    %221 = vector.broadcast %cst_119 : f32 to vector<8x128xf32>
    %222 = arith.addf %221, %220 : vector<8x128xf32>
    %223 = arith.mulf %212, %222 : vector<8x128xf32>
    %c1_120 = arith.constant 1 : index
    %c0_121 = arith.constant 0 : index
    %c0_122 = arith.constant 0 : index
    %224 = vector.load %arg13[%c1_120, %c0_121, %c0_122] : memref<8x128x32xf32, #tpu.memory_space<vmem>>, vector<1x128x32xf32>
    %225 = vector.shape_cast %224 : vector<1x128x32xf32> to vector<128x32xf32>
    %cst_123 = arith.constant dense<0.000000e+00> : vector<8x32xf32>
    %226 = tpu.matmul %223, %225, %cst_123 {dimension_numbers = #tpu.dot_dimension_numbers<[1], [0], [0], [1], [0, 0, 1, 1], [], []>} : vector<8x128xf32>, vector<128x32xf32>, vector<8x32xf32> -> vector<8x32xf32>
    %c1_124 = arith.constant 1 : index
    %c0_125 = arith.constant 0 : index
    %c0_126 = arith.constant 0 : index
    %227 = vector.load %arg14[%c1_124, %c0_125, %c0_126] : memref<8x1x32xf32, #tpu.memory_space<vmem>>, vector<1x1x32xf32>
    %228 = vector.shape_cast %227 : vector<1x1x32xf32> to vector<1x32xf32>
    %229 = vector.broadcast %228 : vector<1x32xf32> to vector<8x32xf32>
    %230 = arith.addf %226, %229 : vector<8x32xf32>
    %231 = arith.addf %203, %230 : vector<8x32xf32>
    %c1_127 = arith.constant 1 : index
    %c0_128 = arith.constant 0 : index
    %c0_129 = arith.constant 0 : index
    %232 = vector.load %arg15[%c1_127, %c0_128, %c0_129] : memref<8x1x32xf32, #tpu.memory_space<vmem>>, vector<1x1x32xf32>
    %233 = vector.shape_cast %232 : vector<1x1x32xf32> to vector<1x32xf32>
    %c1_130 = arith.constant 1 : index
    %c0_131 = arith.constant 0 : index
    %c0_132 = arith.constant 0 : index
    %234 = vector.load %arg16[%c1_130, %c0_131, %c0_132] : memref<8x1x32xf32, #tpu.memory_space<vmem>>, vector<1x1x32xf32>
    %235 = vector.shape_cast %234 : vector<1x1x32xf32> to vector<1x32xf32>
    %cst_133 = arith.constant dense<0.000000e+00> : vector<8xf32>
    %236 = vector.multi_reduction <add>, %231, %cst_133 [1] : vector<8x32xf32> to vector<8xf32>
    %237 = vector.shape_cast %236 : vector<8xf32> to vector<8x1xf32>
    %cst_134 = arith.constant 3.200000e+01 : f32
    %238 = vector.broadcast %cst_134 : f32 to vector<8x1xf32>
    %239 = arith.divf %237, %238 : vector<8x1xf32>
    %240 = vector.broadcast %239 : vector<8x1xf32> to vector<8x32xf32>
    %241 = arith.subf %231, %240 : vector<8x32xf32>
    %242 = arith.mulf %241, %241 : vector<8x32xf32>
    %cst_135 = arith.constant dense<0.000000e+00> : vector<8xf32>
    %243 = vector.multi_reduction <add>, %242, %cst_135 [1] : vector<8x32xf32> to vector<8xf32>
    %244 = vector.shape_cast %243 : vector<8xf32> to vector<8x1xf32>
    %cst_136 = arith.constant 3.200000e+01 : f32
    %245 = vector.broadcast %cst_136 : f32 to vector<8x1xf32>
    %246 = arith.divf %244, %245 : vector<8x1xf32>
    %cst_137 = arith.constant 9.99999996E-13 : f32
    %247 = vector.broadcast %cst_137 : f32 to vector<8x1xf32>
    %248 = arith.addf %246, %247 : vector<8x1xf32>
    %249 = math.rsqrt %248 : vector<8x1xf32>
    %250 = vector.broadcast %249 : vector<8x1xf32> to vector<8x32xf32>
    %251 = arith.mulf %241, %250 : vector<8x32xf32>
    %252 = vector.broadcast %233 : vector<1x32xf32> to vector<8x32xf32>
    %253 = arith.mulf %251, %252 : vector<8x32xf32>
    %254 = vector.broadcast %235 : vector<1x32xf32> to vector<8x32xf32>
    %255 = arith.addf %253, %254 : vector<8x32xf32>
    %256 = vector.shape_cast %255 : vector<8x32xf32> to vector<1x8x32xf32>
    %257 = vector.shape_cast %256 : vector<1x8x32xf32> to vector<1x8x32xf32>
    %258 = vector.broadcast %257 : vector<1x8x32xf32> to vector<24x8x32xf32>
    %c2 = arith.constant 2 : index
    %c0_138 = arith.constant 0 : index
    %c0_139 = arith.constant 0 : index
    %c0_140 = arith.constant 0 : index
    %259 = vector.load %arg5[%c2, %c0_138, %c0_139, %c0_140] : memref<8x24x32x4xf32, #tpu.memory_space<vmem>>, vector<1x24x32x4xf32>
    %260 = vector.shape_cast %259 : vector<1x24x32x4xf32> to vector<24x32x4xf32>
    %cst_141 = arith.constant dense<0.000000e+00> : vector<24x8x4xf32>
    %261 = tpu.matmul %258, %260, %cst_141 {dimension_numbers = #tpu.dot_dimension_numbers<[2], [1], [1], [2], [0, 0, 0, 1, 1, 2], [0], [0]>} : vector<24x8x32xf32>, vector<24x32x4xf32>, vector<24x8x4xf32> -> vector<24x8x4xf32>
    %c2_142 = arith.constant 2 : index
    %c0_143 = arith.constant 0 : index
    %c0_144 = arith.constant 0 : index
    %c0_145 = arith.constant 0 : index
    %262 = vector.load %arg6[%c2_142, %c0_143, %c0_144, %c0_145] : memref<8x24x1x4xf32, #tpu.memory_space<vmem>>, vector<1x24x1x4xf32>
    %263 = vector.shape_cast %262 : vector<1x24x1x4xf32> to vector<24x1x4xf32>
    %264 = vector.broadcast %263 : vector<24x1x4xf32> to vector<24x8x4xf32>
    %265 = arith.addf %261, %264 : vector<24x8x4xf32>
    %266 = vector.extract_strided_slice %265 {offsets = [0, 0, 0], sizes = [8, 8, 4], strides = [1, 1, 1]} : vector<24x8x4xf32> to vector<8x8x4xf32>
    %267 = vector.extract_strided_slice %265 {offsets = [8, 0, 0], sizes = [8, 8, 4], strides = [1, 1, 1]} : vector<24x8x4xf32> to vector<8x8x4xf32>
    %268 = vector.extract_strided_slice %265 {offsets = [16, 0, 0], sizes = [8, 8, 4], strides = [1, 1, 1]} : vector<24x8x4xf32> to vector<8x8x4xf32>
    %cst_146 = arith.constant dense<0.000000e+00> : vector<8x8x8xf32>
    %269 = tpu.matmul %266, %267, %cst_146 {dimension_numbers = #tpu.dot_dimension_numbers<[2], [2], [1], [1], [0, 0, 0, 1, 1, 1], [0], [0]>} : vector<8x8x4xf32>, vector<8x8x4xf32>, vector<8x8x8xf32> -> vector<8x8x8xf32>
    %cst_147 = arith.constant 5.000000e-01 : f32
    %270 = vector.broadcast %cst_147 : f32 to vector<8x8x8xf32>
    %271 = arith.mulf %269, %270 : vector<8x8x8xf32>
    %cst_148 = arith.constant dense<0xFF800000> : vector<8x8xf32>
    %272 = vector.multi_reduction <maximumf>, %271, %cst_148 [2] : vector<8x8x8xf32> to vector<8x8xf32>
    %273 = vector.shape_cast %272 : vector<8x8xf32> to vector<8x8x1xf32>
    %274 = vector.broadcast %273 : vector<8x8x1xf32> to vector<8x8x8xf32>
    %275 = arith.subf %271, %274 : vector<8x8x8xf32>
    %276 = math.exp %275 : vector<8x8x8xf32>
    %cst_149 = arith.constant dense<0.000000e+00> : vector<8x8xf32>
    %277 = vector.multi_reduction <add>, %276, %cst_149 [2] : vector<8x8x8xf32> to vector<8x8xf32>
    %278 = vector.shape_cast %277 : vector<8x8xf32> to vector<8x8x1xf32>
    %279 = tpu.reciprocal %278 {approx = true} : vector<8x8x1xf32> -> vector<8x8x1xf32>
    %280 = vector.broadcast %279 : vector<8x8x1xf32> to vector<8x8x8xf32>
    %281 = arith.mulf %276, %280 : vector<8x8x8xf32>
    %cst_150 = arith.constant dense<0.000000e+00> : vector<8x8x4xf32>
    %282 = tpu.matmul %281, %268, %cst_150 {dimension_numbers = #tpu.dot_dimension_numbers<[2], [1], [1], [2], [0, 0, 0, 1, 1, 2], [0], [0]>} : vector<8x8x8xf32>, vector<8x8x4xf32>, vector<8x8x4xf32> -> vector<8x8x4xf32>
    %c2_151 = arith.constant 2 : index
    %c0_152 = arith.constant 0 : index
    %c0_153 = arith.constant 0 : index
    %c0_154 = arith.constant 0 : index
    %283 = vector.load %arg7[%c2_151, %c0_152, %c0_153, %c0_154] : memref<8x8x4x32xf32, #tpu.memory_space<vmem>>, vector<1x8x4x32xf32>
    %284 = vector.shape_cast %283 : vector<1x8x4x32xf32> to vector<8x4x32xf32>
    %cst_155 = arith.constant dense<0.000000e+00> : vector<8x8x32xf32>
    %285 = tpu.matmul %282, %284, %cst_155 {dimension_numbers = #tpu.dot_dimension_numbers<[2], [1], [1], [2], [0, 0, 0, 1, 1, 2], [0], [0]>} : vector<8x8x4xf32>, vector<8x4x32xf32>, vector<8x8x32xf32> -> vector<8x8x32xf32>
    %cst_156 = arith.constant dense<0.000000e+00> : vector<8x32xf32>
    %286 = vector.multi_reduction <add>, %285, %cst_156 [0] : vector<8x8x32xf32> to vector<8x32xf32>
    %c2_157 = arith.constant 2 : index
    %c0_158 = arith.constant 0 : index
    %c0_159 = arith.constant 0 : index
    %287 = vector.load %arg8[%c2_157, %c0_158, %c0_159] : memref<8x1x32xf32, #tpu.memory_space<vmem>>, vector<1x1x32xf32>
    %288 = vector.shape_cast %287 : vector<1x1x32xf32> to vector<1x32xf32>
    %289 = vector.broadcast %288 : vector<1x32xf32> to vector<8x32xf32>
    %290 = arith.addf %286, %289 : vector<8x32xf32>
    %291 = arith.addf %255, %290 : vector<8x32xf32>
    %c2_160 = arith.constant 2 : index
    %c0_161 = arith.constant 0 : index
    %c0_162 = arith.constant 0 : index
    %292 = vector.load %arg9[%c2_160, %c0_161, %c0_162] : memref<8x1x32xf32, #tpu.memory_space<vmem>>, vector<1x1x32xf32>
    %293 = vector.shape_cast %292 : vector<1x1x32xf32> to vector<1x32xf32>
    %c2_163 = arith.constant 2 : index
    %c0_164 = arith.constant 0 : index
    %c0_165 = arith.constant 0 : index
    %294 = vector.load %arg10[%c2_163, %c0_164, %c0_165] : memref<8x1x32xf32, #tpu.memory_space<vmem>>, vector<1x1x32xf32>
    %295 = vector.shape_cast %294 : vector<1x1x32xf32> to vector<1x32xf32>
    %cst_166 = arith.constant dense<0.000000e+00> : vector<8xf32>
    %296 = vector.multi_reduction <add>, %291, %cst_166 [1] : vector<8x32xf32> to vector<8xf32>
    %297 = vector.shape_cast %296 : vector<8xf32> to vector<8x1xf32>
    %cst_167 = arith.constant 3.200000e+01 : f32
    %298 = vector.broadcast %cst_167 : f32 to vector<8x1xf32>
    %299 = arith.divf %297, %298 : vector<8x1xf32>
    %300 = vector.broadcast %299 : vector<8x1xf32> to vector<8x32xf32>
    %301 = arith.subf %291, %300 : vector<8x32xf32>
    %302 = arith.mulf %301, %301 : vector<8x32xf32>
    %cst_168 = arith.constant dense<0.000000e+00> : vector<8xf32>
    %303 = vector.multi_reduction <add>, %302, %cst_168 [1] : vector<8x32xf32> to vector<8xf32>
    %304 = vector.shape_cast %303 : vector<8xf32> to vector<8x1xf32>
    %cst_169 = arith.constant 3.200000e+01 : f32
    %305 = vector.broadcast %cst_169 : f32 to vector<8x1xf32>
    %306 = arith.divf %304, %305 : vector<8x1xf32>
    %cst_170 = arith.constant 9.99999974E-6 : f32
    %307 = vector.broadcast %cst_170 : f32 to vector<8x1xf32>
    %308 = arith.addf %306, %307 : vector<8x1xf32>
    %309 = math.rsqrt %308 : vector<8x1xf32>
    %310 = vector.broadcast %309 : vector<8x1xf32> to vector<8x32xf32>
    %311 = arith.mulf %301, %310 : vector<8x32xf32>
    %312 = vector.broadcast %293 : vector<1x32xf32> to vector<8x32xf32>
    %313 = arith.mulf %311, %312 : vector<8x32xf32>
    %314 = vector.broadcast %295 : vector<1x32xf32> to vector<8x32xf32>
    %315 = arith.addf %313, %314 : vector<8x32xf32>
    %c2_171 = arith.constant 2 : index
    %c0_172 = arith.constant 0 : index
    %c0_173 = arith.constant 0 : index
    %316 = vector.load %arg11[%c2_171, %c0_172, %c0_173] : memref<8x32x128xf32, #tpu.memory_space<vmem>>, vector<1x32x128xf32>
    %317 = vector.shape_cast %316 : vector<1x32x128xf32> to vector<32x128xf32>
    %cst_174 = arith.constant dense<0.000000e+00> : vector<8x128xf32>
    %318 = tpu.matmul %315, %317, %cst_174 {dimension_numbers = #tpu.dot_dimension_numbers<[1], [0], [0], [1], [0, 0, 1, 1], [], []>} : vector<8x32xf32>, vector<32x128xf32>, vector<8x128xf32> -> vector<8x128xf32>
    %c2_175 = arith.constant 2 : index
    %c0_176 = arith.constant 0 : index
    %c0_177 = arith.constant 0 : index
    %319 = vector.load %arg12[%c2_175, %c0_176, %c0_177] : memref<8x1x128xf32, #tpu.memory_space<vmem>>, vector<1x1x128xf32>
    %320 = vector.shape_cast %319 : vector<1x1x128xf32> to vector<1x128xf32>
    %321 = vector.broadcast %320 : vector<1x128xf32> to vector<8x128xf32>
    %322 = arith.addf %318, %321 : vector<8x128xf32>
    %cst_178 = arith.constant 5.000000e-01 : f32
    %323 = vector.broadcast %cst_178 : f32 to vector<8x128xf32>
    %324 = arith.mulf %323, %322 : vector<8x128xf32>
    %cst_179 = arith.constant 4.471500e-02 : f32
    %325 = vector.broadcast %cst_179 : f32 to vector<8x128xf32>
    %326 = arith.mulf %325, %322 : vector<8x128xf32>
    %327 = arith.mulf %326, %322 : vector<8x128xf32>
    %328 = arith.mulf %327, %322 : vector<8x128xf32>
    %329 = arith.addf %322, %328 : vector<8x128xf32>
    %cst_180 = arith.constant 0.797884583 : f32
    %330 = vector.broadcast %cst_180 : f32 to vector<8x128xf32>
    %331 = arith.mulf %330, %329 : vector<8x128xf32>
    %332 = math.tanh %331 : vector<8x128xf32>
    %cst_181 = arith.constant 1.000000e+00 : f32
    %333 = vector.broadcast %cst_181 : f32 to vector<8x128xf32>
    %334 = arith.addf %333, %332 : vector<8x128xf32>
    %335 = arith.mulf %324, %334 : vector<8x128xf32>
    %c2_182 = arith.constant 2 : index
    %c0_183 = arith.constant 0 : index
    %c0_184 = arith.constant 0 : index
    %336 = vector.load %arg13[%c2_182, %c0_183, %c0_184] : memref<8x128x32xf32, #tpu.memory_space<vmem>>, vector<1x128x32xf32>
    %337 = vector.shape_cast %336 : vector<1x128x32xf32> to vector<128x32xf32>
    %cst_185 = arith.constant dense<0.000000e+00> : vector<8x32xf32>
    %338 = tpu.matmul %335, %337, %cst_185 {dimension_numbers = #tpu.dot_dimension_numbers<[1], [0], [0], [1], [0, 0, 1, 1], [], []>} : vector<8x128xf32>, vector<128x32xf32>, vector<8x32xf32> -> vector<8x32xf32>
    %c2_186 = arith.constant 2 : index
    %c0_187 = arith.constant 0 : index
    %c0_188 = arith.constant 0 : index
    %339 = vector.load %arg14[%c2_186, %c0_187, %c0_188] : memref<8x1x32xf32, #tpu.memory_space<vmem>>, vector<1x1x32xf32>
    %340 = vector.shape_cast %339 : vector<1x1x32xf32> to vector<1x32xf32>
    %341 = vector.broadcast %340 : vector<1x32xf32> to vector<8x32xf32>
    %342 = arith.addf %338, %341 : vector<8x32xf32>
    %343 = arith.addf %315, %342 : vector<8x32xf32>
    %c2_189 = arith.constant 2 : index
    %c0_190 = arith.constant 0 : index
    %c0_191 = arith.constant 0 : index
    %344 = vector.load %arg15[%c2_189, %c0_190, %c0_191] : memref<8x1x32xf32, #tpu.memory_space<vmem>>, vector<1x1x32xf32>
    %345 = vector.shape_cast %344 : vector<1x1x32xf32> to vector<1x32xf32>
    %c2_192 = arith.constant 2 : index
    %c0_193 = arith.constant 0 : index
    %c0_194 = arith.constant 0 : index
    %346 = vector.load %arg16[%c2_192, %c0_193, %c0_194] : memref<8x1x32xf32, #tpu.memory_space<vmem>>, vector<1x1x32xf32>
    %347 = vector.shape_cast %346 : vector<1x1x32xf32> to vector<1x32xf32>
    %cst_195 = arith.constant dense<0.000000e+00> : vector<8xf32>
    %348 = vector.multi_reduction <add>, %343, %cst_195 [1] : vector<8x32xf32> to vector<8xf32>
    %349 = vector.shape_cast %348 : vector<8xf32> to vector<8x1xf32>
    %cst_196 = arith.constant 3.200000e+01 : f32
    %350 = vector.broadcast %cst_196 : f32 to vector<8x1xf32>
    %351 = arith.divf %349, %350 : vector<8x1xf32>
    %352 = vector.broadcast %351 : vector<8x1xf32> to vector<8x32xf32>
    %353 = arith.subf %343, %352 : vector<8x32xf32>
    %354 = arith.mulf %353, %353 : vector<8x32xf32>
    %cst_197 = arith.constant dense<0.000000e+00> : vector<8xf32>
    %355 = vector.multi_reduction <add>, %354, %cst_197 [1] : vector<8x32xf32> to vector<8xf32>
    %356 = vector.shape_cast %355 : vector<8xf32> to vector<8x1xf32>
    %cst_198 = arith.constant 3.200000e+01 : f32
    %357 = vector.broadcast %cst_198 : f32 to vector<8x1xf32>
    %358 = arith.divf %356, %357 : vector<8x1xf32>
    %cst_199 = arith.constant 9.99999974E-6 : f32
    %359 = vector.broadcast %cst_199 : f32 to vector<8x1xf32>
    %360 = arith.addf %358, %359 : vector<8x1xf32>
    %361 = math.rsqrt %360 : vector<8x1xf32>
    %362 = vector.broadcast %361 : vector<8x1xf32> to vector<8x32xf32>
    %363 = arith.mulf %353, %362 : vector<8x32xf32>
    %364 = vector.broadcast %345 : vector<1x32xf32> to vector<8x32xf32>
    %365 = arith.mulf %363, %364 : vector<8x32xf32>
    %366 = vector.broadcast %347 : vector<1x32xf32> to vector<8x32xf32>
    %367 = arith.addf %365, %366 : vector<8x32xf32>
    %368 = vector.shape_cast %367 : vector<8x32xf32> to vector<1x8x32xf32>
    %369 = vector.shape_cast %368 : vector<1x8x32xf32> to vector<1x8x32xf32>
    %370 = vector.broadcast %369 : vector<1x8x32xf32> to vector<24x8x32xf32>
    %c3 = arith.constant 3 : index
    %c0_200 = arith.constant 0 : index
    %c0_201 = arith.constant 0 : index
    %c0_202 = arith.constant 0 : index
    %371 = vector.load %arg5[%c3, %c0_200, %c0_201, %c0_202] : memref<8x24x32x4xf32, #tpu.memory_space<vmem>>, vector<1x24x32x4xf32>
    %372 = vector.shape_cast %371 : vector<1x24x32x4xf32> to vector<24x32x4xf32>
    %cst_203 = arith.constant dense<0.000000e+00> : vector<24x8x4xf32>
    %373 = tpu.matmul %370, %372, %cst_203 {dimension_numbers = #tpu.dot_dimension_numbers<[2], [1], [1], [2], [0, 0, 0, 1, 1, 2], [0], [0]>} : vector<24x8x32xf32>, vector<24x32x4xf32>, vector<24x8x4xf32> -> vector<24x8x4xf32>
    %c3_204 = arith.constant 3 : index
    %c0_205 = arith.constant 0 : index
    %c0_206 = arith.constant 0 : index
    %c0_207 = arith.constant 0 : index
    %374 = vector.load %arg6[%c3_204, %c0_205, %c0_206, %c0_207] : memref<8x24x1x4xf32, #tpu.memory_space<vmem>>, vector<1x24x1x4xf32>
    %375 = vector.shape_cast %374 : vector<1x24x1x4xf32> to vector<24x1x4xf32>
    %376 = vector.broadcast %375 : vector<24x1x4xf32> to vector<24x8x4xf32>
    %377 = arith.addf %373, %376 : vector<24x8x4xf32>
    %378 = vector.extract_strided_slice %377 {offsets = [0, 0, 0], sizes = [8, 8, 4], strides = [1, 1, 1]} : vector<24x8x4xf32> to vector<8x8x4xf32>
    %379 = vector.extract_strided_slice %377 {offsets = [8, 0, 0], sizes = [8, 8, 4], strides = [1, 1, 1]} : vector<24x8x4xf32> to vector<8x8x4xf32>
    %380 = vector.extract_strided_slice %377 {offsets = [16, 0, 0], sizes = [8, 8, 4], strides = [1, 1, 1]} : vector<24x8x4xf32> to vector<8x8x4xf32>
    %cst_208 = arith.constant dense<0.000000e+00> : vector<8x8x8xf32>
    %381 = tpu.matmul %378, %379, %cst_208 {dimension_numbers = #tpu.dot_dimension_numbers<[2], [2], [1], [1], [0, 0, 0, 1, 1, 1], [0], [0]>} : vector<8x8x4xf32>, vector<8x8x4xf32>, vector<8x8x8xf32> -> vector<8x8x8xf32>
    %cst_209 = arith.constant 5.000000e-01 : f32
    %382 = vector.broadcast %cst_209 : f32 to vector<8x8x8xf32>
    %383 = arith.mulf %381, %382 : vector<8x8x8xf32>
    %cst_210 = arith.constant dense<0xFF800000> : vector<8x8xf32>
    %384 = vector.multi_reduction <maximumf>, %383, %cst_210 [2] : vector<8x8x8xf32> to vector<8x8xf32>
    %385 = vector.shape_cast %384 : vector<8x8xf32> to vector<8x8x1xf32>
    %386 = vector.broadcast %385 : vector<8x8x1xf32> to vector<8x8x8xf32>
    %387 = arith.subf %383, %386 : vector<8x8x8xf32>
    %388 = math.exp %387 : vector<8x8x8xf32>
    %cst_211 = arith.constant dense<0.000000e+00> : vector<8x8xf32>
    %389 = vector.multi_reduction <add>, %388, %cst_211 [2] : vector<8x8x8xf32> to vector<8x8xf32>
    %390 = vector.shape_cast %389 : vector<8x8xf32> to vector<8x8x1xf32>
    %391 = tpu.reciprocal %390 {approx = true} : vector<8x8x1xf32> -> vector<8x8x1xf32>
    %392 = vector.broadcast %391 : vector<8x8x1xf32> to vector<8x8x8xf32>
    %393 = arith.mulf %388, %392 : vector<8x8x8xf32>
    %cst_212 = arith.constant dense<0.000000e+00> : vector<8x8x4xf32>
    %394 = tpu.matmul %393, %380, %cst_212 {dimension_numbers = #tpu.dot_dimension_numbers<[2], [1], [1], [2], [0, 0, 0, 1, 1, 2], [0], [0]>} : vector<8x8x8xf32>, vector<8x8x4xf32>, vector<8x8x4xf32> -> vector<8x8x4xf32>
    %c3_213 = arith.constant 3 : index
    %c0_214 = arith.constant 0 : index
    %c0_215 = arith.constant 0 : index
    %c0_216 = arith.constant 0 : index
    %395 = vector.load %arg7[%c3_213, %c0_214, %c0_215, %c0_216] : memref<8x8x4x32xf32, #tpu.memory_space<vmem>>, vector<1x8x4x32xf32>
    %396 = vector.shape_cast %395 : vector<1x8x4x32xf32> to vector<8x4x32xf32>
    %cst_217 = arith.constant dense<0.000000e+00> : vector<8x8x32xf32>
    %397 = tpu.matmul %394, %396, %cst_217 {dimension_numbers = #tpu.dot_dimension_numbers<[2], [1], [1], [2], [0, 0, 0, 1, 1, 2], [0], [0]>} : vector<8x8x4xf32>, vector<8x4x32xf32>, vector<8x8x32xf32> -> vector<8x8x32xf32>
    %cst_218 = arith.constant dense<0.000000e+00> : vector<8x32xf32>
    %398 = vector.multi_reduction <add>, %397, %cst_218 [0] : vector<8x8x32xf32> to vector<8x32xf32>
    %c3_219 = arith.constant 3 : index
    %c0_220 = arith.constant 0 : index
    %c0_221 = arith.constant 0 : index
    %399 = vector.load %arg8[%c3_219, %c0_220, %c0_221] : memref<8x1x32xf32, #tpu.memory_space<vmem>>, vector<1x1x32xf32>
    %400 = vector.shape_cast %399 : vector<1x1x32xf32> to vector<1x32xf32>
    %401 = vector.broadcast %400 : vector<1x32xf32> to vector<8x32xf32>
    %402 = arith.addf %398, %401 : vector<8x32xf32>
    %403 = arith.addf %367, %402 : vector<8x32xf32>
    %c3_222 = arith.constant 3 : index
    %c0_223 = arith.constant 0 : index
    %c0_224 = arith.constant 0 : index
    %404 = vector.load %arg9[%c3_222, %c0_223, %c0_224] : memref<8x1x32xf32, #tpu.memory_space<vmem>>, vector<1x1x32xf32>
    %405 = vector.shape_cast %404 : vector<1x1x32xf32> to vector<1x32xf32>
    %c3_225 = arith.constant 3 : index
    %c0_226 = arith.constant 0 : index
    %c0_227 = arith.constant 0 : index
    %406 = vector.load %arg10[%c3_225, %c0_226, %c0_227] : memref<8x1x32xf32, #tpu.memory_space<vmem>>, vector<1x1x32xf32>
    %407 = vector.shape_cast %406 : vector<1x1x32xf32> to vector<1x32xf32>
    %cst_228 = arith.constant dense<0.000000e+00> : vector<8xf32>
    %408 = vector.multi_reduction <add>, %403, %cst_228 [1] : vector<8x32xf32> to vector<8xf32>
    %409 = vector.shape_cast %408 : vector<8xf32> to vector<8x1xf32>
    %cst_229 = arith.constant 3.200000e+01 : f32
    %410 = vector.broadcast %cst_229 : f32 to vector<8x1xf32>
    %411 = arith.divf %409, %410 : vector<8x1xf32>
    %412 = vector.broadcast %411 : vector<8x1xf32> to vector<8x32xf32>
    %413 = arith.subf %403, %412 : vector<8x32xf32>
    %414 = arith.mulf %413, %413 : vector<8x32xf32>
    %cst_230 = arith.constant dense<0.000000e+00> : vector<8xf32>
    %415 = vector.multi_reduction <add>, %414, %cst_230 [1] : vector<8x32xf32> to vector<8xf32>
    %416 = vector.shape_cast %415 : vector<8xf32> to vector<8x1xf32>
    %cst_231 = arith.constant 3.200000e+01 : f32
    %417 = vector.broadcast %cst_231 : f32 to vector<8x1xf32>
    %418 = arith.divf %416, %417 : vector<8x1xf32>
    %cst_232 = arith.constant 9.99999974E-6 : f32
    %419 = vector.broadcast %cst_232 : f32 to vector<8x1xf32>
    %420 = arith.addf %418, %419 : vector<8x1xf32>
    %421 = math.rsqrt %420 : vector<8x1xf32>
    %422 = vector.broadcast %421 : vector<8x1xf32> to vector<8x32xf32>
    %423 = arith.mulf %413, %422 : vector<8x32xf32>
    %424 = vector.broadcast %405 : vector<1x32xf32> to vector<8x32xf32>
    %425 = arith.mulf %423, %424 : vector<8x32xf32>
    %426 = vector.broadcast %407 : vector<1x32xf32> to vector<8x32xf32>
    %427 = arith.addf %425, %426 : vector<8x32xf32>
    %c3_233 = arith.constant 3 : index
    %c0_234 = arith.constant 0 : index
    %c0_235 = arith.constant 0 : index
    %428 = vector.load %arg11[%c3_233, %c0_234, %c0_235] : memref<8x32x128xf32, #tpu.memory_space<vmem>>, vector<1x32x128xf32>
    %429 = vector.shape_cast %428 : vector<1x32x128xf32> to vector<32x128xf32>
    %cst_236 = arith.constant dense<0.000000e+00> : vector<8x128xf32>
    %430 = tpu.matmul %427, %429, %cst_236 {dimension_numbers = #tpu.dot_dimension_numbers<[1], [0], [0], [1], [0, 0, 1, 1], [], []>} : vector<8x32xf32>, vector<32x128xf32>, vector<8x128xf32> -> vector<8x128xf32>
    %c3_237 = arith.constant 3 : index
    %c0_238 = arith.constant 0 : index
    %c0_239 = arith.constant 0 : index
    %431 = vector.load %arg12[%c3_237, %c0_238, %c0_239] : memref<8x1x128xf32, #tpu.memory_space<vmem>>, vector<1x1x128xf32>
    %432 = vector.shape_cast %431 : vector<1x1x128xf32> to vector<1x128xf32>
    %433 = vector.broadcast %432 : vector<1x128xf32> to vector<8x128xf32>
    %434 = arith.addf %430, %433 : vector<8x128xf32>
    %cst_240 = arith.constant 5.000000e-01 : f32
    %435 = vector.broadcast %cst_240 : f32 to vector<8x128xf32>
    %436 = arith.mulf %435, %434 : vector<8x128xf32>
    %cst_241 = arith.constant 4.471500e-02 : f32
    %437 = vector.broadcast %cst_241 : f32 to vector<8x128xf32>
    %438 = arith.mulf %437, %434 : vector<8x128xf32>
    %439 = arith.mulf %438, %434 : vector<8x128xf32>
    %440 = arith.mulf %439, %434 : vector<8x128xf32>
    %441 = arith.addf %434, %440 : vector<8x128xf32>
    %cst_242 = arith.constant 0.797884583 : f32
    %442 = vector.broadcast %cst_242 : f32 to vector<8x128xf32>
    %443 = arith.mulf %442, %441 : vector<8x128xf32>
    %444 = math.tanh %443 : vector<8x128xf32>
    %cst_243 = arith.constant 1.000000e+00 : f32
    %445 = vector.broadcast %cst_243 : f32 to vector<8x128xf32>
    %446 = arith.addf %445, %444 : vector<8x128xf32>
    %447 = arith.mulf %436, %446 : vector<8x128xf32>
    %c3_244 = arith.constant 3 : index
    %c0_245 = arith.constant 0 : index
    %c0_246 = arith.constant 0 : index
    %448 = vector.load %arg13[%c3_244, %c0_245, %c0_246] : memref<8x128x32xf32, #tpu.memory_space<vmem>>, vector<1x128x32xf32>
    %449 = vector.shape_cast %448 : vector<1x128x32xf32> to vector<128x32xf32>
    %cst_247 = arith.constant dense<0.000000e+00> : vector<8x32xf32>
    %450 = tpu.matmul %447, %449, %cst_247 {dimension_numbers = #tpu.dot_dimension_numbers<[1], [0], [0], [1], [0, 0, 1, 1], [], []>} : vector<8x128xf32>, vector<128x32xf32>, vector<8x32xf32> -> vector<8x32xf32>
    %c3_248 = arith.constant 3 : index
    %c0_249 = arith.constant 0 : index
    %c0_250 = arith.constant 0 : index
    %451 = vector.load %arg14[%c3_248, %c0_249, %c0_250] : memref<8x1x32xf32, #tpu.memory_space<vmem>>, vector<1x1x32xf32>
    %452 = vector.shape_cast %451 : vector<1x1x32xf32> to vector<1x32xf32>
    %453 = vector.broadcast %452 : vector<1x32xf32> to vector<8x32xf32>
    %454 = arith.addf %450, %453 : vector<8x32xf32>
    %455 = arith.addf %427, %454 : vector<8x32xf32>
    %c3_251 = arith.constant 3 : index
    %c0_252 = arith.constant 0 : index
    %c0_253 = arith.constant 0 : index
    %456 = vector.load %arg15[%c3_251, %c0_252, %c0_253] : memref<8x1x32xf32, #tpu.memory_space<vmem>>, vector<1x1x32xf32>
    %457 = vector.shape_cast %456 : vector<1x1x32xf32> to vector<1x32xf32>
    %c3_254 = arith.constant 3 : index
    %c0_255 = arith.constant 0 : index
    %c0_256 = arith.constant 0 : index
    %458 = vector.load %arg16[%c3_254, %c0_255, %c0_256] : memref<8x1x32xf32, #tpu.memory_space<vmem>>, vector<1x1x32xf32>
    %459 = vector.shape_cast %458 : vector<1x1x32xf32> to vector<1x32xf32>
    %cst_257 = arith.constant dense<0.000000e+00> : vector<8xf32>
    %460 = vector.multi_reduction <add>, %455, %cst_257 [1] : vector<8x32xf32> to vector<8xf32>
    %461 = vector.shape_cast %460 : vector<8xf32> to vector<8x1xf32>
    %cst_258 = arith.constant 3.200000e+01 : f32
    %462 = vector.broadcast %cst_258 : f32 to vector<8x1xf32>
    %463 = arith.divf %461, %462 : vector<8x1xf32>
    %464 = vector.broadcast %463 : vector<8x1xf32> to vector<8x32xf32>
    %465 = arith.subf %455, %464 : vector<8x32xf32>
    %466 = arith.mulf %465, %465 : vector<8x32xf32>
    %cst_259 = arith.constant dense<0.000000e+00> : vector<8xf32>
    %467 = vector.multi_reduction <add>, %466, %cst_259 [1] : vector<8x32xf32> to vector<8xf32>
    %468 = vector.shape_cast %467 : vector<8xf32> to vector<8x1xf32>
    %cst_260 = arith.constant 3.200000e+01 : f32
    %469 = vector.broadcast %cst_260 : f32 to vector<8x1xf32>
    %470 = arith.divf %468, %469 : vector<8x1xf32>
    %cst_261 = arith.constant 9.99999974E-6 : f32
    %471 = vector.broadcast %cst_261 : f32 to vector<8x1xf32>
    %472 = arith.addf %470, %471 : vector<8x1xf32>
    %473 = math.rsqrt %472 : vector<8x1xf32>
    %474 = vector.broadcast %473 : vector<8x1xf32> to vector<8x32xf32>
    %475 = arith.mulf %465, %474 : vector<8x32xf32>
    %476 = vector.broadcast %457 : vector<1x32xf32> to vector<8x32xf32>
    %477 = arith.mulf %475, %476 : vector<8x32xf32>
    %478 = vector.broadcast %459 : vector<1x32xf32> to vector<8x32xf32>
    %479 = arith.addf %477, %478 : vector<8x32xf32>
    %480 = vector.shape_cast %479 : vector<8x32xf32> to vector<1x8x32xf32>
    %481 = vector.shape_cast %480 : vector<1x8x32xf32> to vector<1x8x32xf32>
    %482 = vector.broadcast %481 : vector<1x8x32xf32> to vector<24x8x32xf32>
    %c4 = arith.constant 4 : index
    %c0_262 = arith.constant 0 : index
    %c0_263 = arith.constant 0 : index
    %c0_264 = arith.constant 0 : index
    %483 = vector.load %arg5[%c4, %c0_262, %c0_263, %c0_264] : memref<8x24x32x4xf32, #tpu.memory_space<vmem>>, vector<1x24x32x4xf32>
    %484 = vector.shape_cast %483 : vector<1x24x32x4xf32> to vector<24x32x4xf32>
    %cst_265 = arith.constant dense<0.000000e+00> : vector<24x8x4xf32>
    %485 = tpu.matmul %482, %484, %cst_265 {dimension_numbers = #tpu.dot_dimension_numbers<[2], [1], [1], [2], [0, 0, 0, 1, 1, 2], [0], [0]>} : vector<24x8x32xf32>, vector<24x32x4xf32>, vector<24x8x4xf32> -> vector<24x8x4xf32>
    %c4_266 = arith.constant 4 : index
    %c0_267 = arith.constant 0 : index
    %c0_268 = arith.constant 0 : index
    %c0_269 = arith.constant 0 : index
    %486 = vector.load %arg6[%c4_266, %c0_267, %c0_268, %c0_269] : memref<8x24x1x4xf32, #tpu.memory_space<vmem>>, vector<1x24x1x4xf32>
    %487 = vector.shape_cast %486 : vector<1x24x1x4xf32> to vector<24x1x4xf32>
    %488 = vector.broadcast %487 : vector<24x1x4xf32> to vector<24x8x4xf32>
    %489 = arith.addf %485, %488 : vector<24x8x4xf32>
    %490 = vector.extract_strided_slice %489 {offsets = [0, 0, 0], sizes = [8, 8, 4], strides = [1, 1, 1]} : vector<24x8x4xf32> to vector<8x8x4xf32>
    %491 = vector.extract_strided_slice %489 {offsets = [8, 0, 0], sizes = [8, 8, 4], strides = [1, 1, 1]} : vector<24x8x4xf32> to vector<8x8x4xf32>
    %492 = vector.extract_strided_slice %489 {offsets = [16, 0, 0], sizes = [8, 8, 4], strides = [1, 1, 1]} : vector<24x8x4xf32> to vector<8x8x4xf32>
    %cst_270 = arith.constant dense<0.000000e+00> : vector<8x8x8xf32>
    %493 = tpu.matmul %490, %491, %cst_270 {dimension_numbers = #tpu.dot_dimension_numbers<[2], [2], [1], [1], [0, 0, 0, 1, 1, 1], [0], [0]>} : vector<8x8x4xf32>, vector<8x8x4xf32>, vector<8x8x8xf32> -> vector<8x8x8xf32>
    %cst_271 = arith.constant 5.000000e-01 : f32
    %494 = vector.broadcast %cst_271 : f32 to vector<8x8x8xf32>
    %495 = arith.mulf %493, %494 : vector<8x8x8xf32>
    %cst_272 = arith.constant dense<0xFF800000> : vector<8x8xf32>
    %496 = vector.multi_reduction <maximumf>, %495, %cst_272 [2] : vector<8x8x8xf32> to vector<8x8xf32>
    %497 = vector.shape_cast %496 : vector<8x8xf32> to vector<8x8x1xf32>
    %498 = vector.broadcast %497 : vector<8x8x1xf32> to vector<8x8x8xf32>
    %499 = arith.subf %495, %498 : vector<8x8x8xf32>
    %500 = math.exp %499 : vector<8x8x8xf32>
    %cst_273 = arith.constant dense<0.000000e+00> : vector<8x8xf32>
    %501 = vector.multi_reduction <add>, %500, %cst_273 [2] : vector<8x8x8xf32> to vector<8x8xf32>
    %502 = vector.shape_cast %501 : vector<8x8xf32> to vector<8x8x1xf32>
    %503 = tpu.reciprocal %502 {approx = true} : vector<8x8x1xf32> -> vector<8x8x1xf32>
    %504 = vector.broadcast %503 : vector<8x8x1xf32> to vector<8x8x8xf32>
    %505 = arith.mulf %500, %504 : vector<8x8x8xf32>
    %cst_274 = arith.constant dense<0.000000e+00> : vector<8x8x4xf32>
    %506 = tpu.matmul %505, %492, %cst_274 {dimension_numbers = #tpu.dot_dimension_numbers<[2], [1], [1], [2], [0, 0, 0, 1, 1, 2], [0], [0]>} : vector<8x8x8xf32>, vector<8x8x4xf32>, vector<8x8x4xf32> -> vector<8x8x4xf32>
    %c4_275 = arith.constant 4 : index
    %c0_276 = arith.constant 0 : index
    %c0_277 = arith.constant 0 : index
    %c0_278 = arith.constant 0 : index
    %507 = vector.load %arg7[%c4_275, %c0_276, %c0_277, %c0_278] : memref<8x8x4x32xf32, #tpu.memory_space<vmem>>, vector<1x8x4x32xf32>
    %508 = vector.shape_cast %507 : vector<1x8x4x32xf32> to vector<8x4x32xf32>
    %cst_279 = arith.constant dense<0.000000e+00> : vector<8x8x32xf32>
    %509 = tpu.matmul %506, %508, %cst_279 {dimension_numbers = #tpu.dot_dimension_numbers<[2], [1], [1], [2], [0, 0, 0, 1, 1, 2], [0], [0]>} : vector<8x8x4xf32>, vector<8x4x32xf32>, vector<8x8x32xf32> -> vector<8x8x32xf32>
    %cst_280 = arith.constant dense<0.000000e+00> : vector<8x32xf32>
    %510 = vector.multi_reduction <add>, %509, %cst_280 [0] : vector<8x8x32xf32> to vector<8x32xf32>
    %c4_281 = arith.constant 4 : index
    %c0_282 = arith.constant 0 : index
    %c0_283 = arith.constant 0 : index
    %511 = vector.load %arg8[%c4_281, %c0_282, %c0_283] : memref<8x1x32xf32, #tpu.memory_space<vmem>>, vector<1x1x32xf32>
    %512 = vector.shape_cast %511 : vector<1x1x32xf32> to vector<1x32xf32>
    %513 = vector.broadcast %512 : vector<1x32xf32> to vector<8x32xf32>
    %514 = arith.addf %510, %513 : vector<8x32xf32>
    %515 = arith.addf %479, %514 : vector<8x32xf32>
    %c4_284 = arith.constant 4 : index
    %c0_285 = arith.constant 0 : index
    %c0_286 = arith.constant 0 : index
    %516 = vector.load %arg9[%c4_284, %c0_285, %c0_286] : memref<8x1x32xf32, #tpu.memory_space<vmem>>, vector<1x1x32xf32>
    %517 = vector.shape_cast %516 : vector<1x1x32xf32> to vector<1x32xf32>
    %c4_287 = arith.constant 4 : index
    %c0_288 = arith.constant 0 : index
    %c0_289 = arith.constant 0 : index
    %518 = vector.load %arg10[%c4_287, %c0_288, %c0_289] : memref<8x1x32xf32, #tpu.memory_space<vmem>>, vector<1x1x32xf32>
    %519 = vector.shape_cast %518 : vector<1x1x32xf32> to vector<1x32xf32>
    %cst_290 = arith.constant dense<0.000000e+00> : vector<8xf32>
    %520 = vector.multi_reduction <add>, %515, %cst_290 [1] : vector<8x32xf32> to vector<8xf32>
    %521 = vector.shape_cast %520 : vector<8xf32> to vector<8x1xf32>
    %cst_291 = arith.constant 3.200000e+01 : f32
    %522 = vector.broadcast %cst_291 : f32 to vector<8x1xf32>
    %523 = arith.divf %521, %522 : vector<8x1xf32>
    %524 = vector.broadcast %523 : vector<8x1xf32> to vector<8x32xf32>
    %525 = arith.subf %515, %524 : vector<8x32xf32>
    %526 = arith.mulf %525, %525 : vector<8x32xf32>
    %cst_292 = arith.constant dense<0.000000e+00> : vector<8xf32>
    %527 = vector.multi_reduction <add>, %526, %cst_292 [1] : vector<8x32xf32> to vector<8xf32>
    %528 = vector.shape_cast %527 : vector<8xf32> to vector<8x1xf32>
    %cst_293 = arith.constant 3.200000e+01 : f32
    %529 = vector.broadcast %cst_293 : f32 to vector<8x1xf32>
    %530 = arith.divf %528, %529 : vector<8x1xf32>
    %cst_294 = arith.constant 9.99999974E-6 : f32
    %531 = vector.broadcast %cst_294 : f32 to vector<8x1xf32>
    %532 = arith.addf %530, %531 : vector<8x1xf32>
    %533 = math.rsqrt %532 : vector<8x1xf32>
    %534 = vector.broadcast %533 : vector<8x1xf32> to vector<8x32xf32>
    %535 = arith.mulf %525, %534 : vector<8x32xf32>
    %536 = vector.broadcast %517 : vector<1x32xf32> to vector<8x32xf32>
    %537 = arith.mulf %535, %536 : vector<8x32xf32>
    %538 = vector.broadcast %519 : vector<1x32xf32> to vector<8x32xf32>
    %539 = arith.addf %537, %538 : vector<8x32xf32>
    %c4_295 = arith.constant 4 : index
    %c0_296 = arith.constant 0 : index
    %c0_297 = arith.constant 0 : index
    %540 = vector.load %arg11[%c4_295, %c0_296, %c0_297] : memref<8x32x128xf32, #tpu.memory_space<vmem>>, vector<1x32x128xf32>
    %541 = vector.shape_cast %540 : vector<1x32x128xf32> to vector<32x128xf32>
    %cst_298 = arith.constant dense<0.000000e+00> : vector<8x128xf32>
    %542 = tpu.matmul %539, %541, %cst_298 {dimension_numbers = #tpu.dot_dimension_numbers<[1], [0], [0], [1], [0, 0, 1, 1], [], []>} : vector<8x32xf32>, vector<32x128xf32>, vector<8x128xf32> -> vector<8x128xf32>
    %c4_299 = arith.constant 4 : index
    %c0_300 = arith.constant 0 : index
    %c0_301 = arith.constant 0 : index
    %543 = vector.load %arg12[%c4_299, %c0_300, %c0_301] : memref<8x1x128xf32, #tpu.memory_space<vmem>>, vector<1x1x128xf32>
    %544 = vector.shape_cast %543 : vector<1x1x128xf32> to vector<1x128xf32>
    %545 = vector.broadcast %544 : vector<1x128xf32> to vector<8x128xf32>
    %546 = arith.addf %542, %545 : vector<8x128xf32>
    %cst_302 = arith.constant 5.000000e-01 : f32
    %547 = vector.broadcast %cst_302 : f32 to vector<8x128xf32>
    %548 = arith.mulf %547, %546 : vector<8x128xf32>
    %cst_303 = arith.constant 4.471500e-02 : f32
    %549 = vector.broadcast %cst_303 : f32 to vector<8x128xf32>
    %550 = arith.mulf %549, %546 : vector<8x128xf32>
    %551 = arith.mulf %550, %546 : vector<8x128xf32>
    %552 = arith.mulf %551, %546 : vector<8x128xf32>
    %553 = arith.addf %546, %552 : vector<8x128xf32>
    %cst_304 = arith.constant 0.797884583 : f32
    %554 = vector.broadcast %cst_304 : f32 to vector<8x128xf32>
    %555 = arith.mulf %554, %553 : vector<8x128xf32>
    %556 = math.tanh %555 : vector<8x128xf32>
    %cst_305 = arith.constant 1.000000e+00 : f32
    %557 = vector.broadcast %cst_305 : f32 to vector<8x128xf32>
    %558 = arith.addf %557, %556 : vector<8x128xf32>
    %559 = arith.mulf %548, %558 : vector<8x128xf32>
    %c4_306 = arith.constant 4 : index
    %c0_307 = arith.constant 0 : index
    %c0_308 = arith.constant 0 : index
    %560 = vector.load %arg13[%c4_306, %c0_307, %c0_308] : memref<8x128x32xf32, #tpu.memory_space<vmem>>, vector<1x128x32xf32>
    %561 = vector.shape_cast %560 : vector<1x128x32xf32> to vector<128x32xf32>
    %cst_309 = arith.constant dense<0.000000e+00> : vector<8x32xf32>
    %562 = tpu.matmul %559, %561, %cst_309 {dimension_numbers = #tpu.dot_dimension_numbers<[1], [0], [0], [1], [0, 0, 1, 1], [], []>} : vector<8x128xf32>, vector<128x32xf32>, vector<8x32xf32> -> vector<8x32xf32>
    %c4_310 = arith.constant 4 : index
    %c0_311 = arith.constant 0 : index
    %c0_312 = arith.constant 0 : index
    %563 = vector.load %arg14[%c4_310, %c0_311, %c0_312] : memref<8x1x32xf32, #tpu.memory_space<vmem>>, vector<1x1x32xf32>
    %564 = vector.shape_cast %563 : vector<1x1x32xf32> to vector<1x32xf32>
    %565 = vector.broadcast %564 : vector<1x32xf32> to vector<8x32xf32>
    %566 = arith.addf %562, %565 : vector<8x32xf32>
    %567 = arith.addf %539, %566 : vector<8x32xf32>
    %c4_313 = arith.constant 4 : index
    %c0_314 = arith.constant 0 : index
    %c0_315 = arith.constant 0 : index
    %568 = vector.load %arg15[%c4_313, %c0_314, %c0_315] : memref<8x1x32xf32, #tpu.memory_space<vmem>>, vector<1x1x32xf32>
    %569 = vector.shape_cast %568 : vector<1x1x32xf32> to vector<1x32xf32>
    %c4_316 = arith.constant 4 : index
    %c0_317 = arith.constant 0 : index
    %c0_318 = arith.constant 0 : index
    %570 = vector.load %arg16[%c4_316, %c0_317, %c0_318] : memref<8x1x32xf32, #tpu.memory_space<vmem>>, vector<1x1x32xf32>
    %571 = vector.shape_cast %570 : vector<1x1x32xf32> to vector<1x32xf32>
    %cst_319 = arith.constant dense<0.000000e+00> : vector<8xf32>
    %572 = vector.multi_reduction <add>, %567, %cst_319 [1] : vector<8x32xf32> to vector<8xf32>
    %573 = vector.shape_cast %572 : vector<8xf32> to vector<8x1xf32>
    %cst_320 = arith.constant 3.200000e+01 : f32
    %574 = vector.broadcast %cst_320 : f32 to vector<8x1xf32>
    %575 = arith.divf %573, %574 : vector<8x1xf32>
    %576 = vector.broadcast %575 : vector<8x1xf32> to vector<8x32xf32>
    %577 = arith.subf %567, %576 : vector<8x32xf32>
    %578 = arith.mulf %577, %577 : vector<8x32xf32>
    %cst_321 = arith.constant dense<0.000000e+00> : vector<8xf32>
    %579 = vector.multi_reduction <add>, %578, %cst_321 [1] : vector<8x32xf32> to vector<8xf32>
    %580 = vector.shape_cast %579 : vector<8xf32> to vector<8x1xf32>
    %cst_322 = arith.constant 3.200000e+01 : f32
    %581 = vector.broadcast %cst_322 : f32 to vector<8x1xf32>
    %582 = arith.divf %580, %581 : vector<8x1xf32>
    %cst_323 = arith.constant 9.99999974E-6 : f32
    %583 = vector.broadcast %cst_323 : f32 to vector<8x1xf32>
    %584 = arith.addf %582, %583 : vector<8x1xf32>
    %585 = math.rsqrt %584 : vector<8x1xf32>
    %586 = vector.broadcast %585 : vector<8x1xf32> to vector<8x32xf32>
    %587 = arith.mulf %577, %586 : vector<8x32xf32>
    %588 = vector.broadcast %569 : vector<1x32xf32> to vector<8x32xf32>
    %589 = arith.mulf %587, %588 : vector<8x32xf32>
    %590 = vector.broadcast %571 : vector<1x32xf32> to vector<8x32xf32>
    %591 = arith.addf %589, %590 : vector<8x32xf32>
    %592 = vector.shape_cast %591 : vector<8x32xf32> to vector<1x8x32xf32>
    %593 = vector.shape_cast %592 : vector<1x8x32xf32> to vector<1x8x32xf32>
    %594 = vector.broadcast %593 : vector<1x8x32xf32> to vector<24x8x32xf32>
    %c5 = arith.constant 5 : index
    %c0_324 = arith.constant 0 : index
    %c0_325 = arith.constant 0 : index
    %c0_326 = arith.constant 0 : index
    %595 = vector.load %arg5[%c5, %c0_324, %c0_325, %c0_326] : memref<8x24x32x4xf32, #tpu.memory_space<vmem>>, vector<1x24x32x4xf32>
    %596 = vector.shape_cast %595 : vector<1x24x32x4xf32> to vector<24x32x4xf32>
    %cst_327 = arith.constant dense<0.000000e+00> : vector<24x8x4xf32>
    %597 = tpu.matmul %594, %596, %cst_327 {dimension_numbers = #tpu.dot_dimension_numbers<[2], [1], [1], [2], [0, 0, 0, 1, 1, 2], [0], [0]>} : vector<24x8x32xf32>, vector<24x32x4xf32>, vector<24x8x4xf32> -> vector<24x8x4xf32>
    %c5_328 = arith.constant 5 : index
    %c0_329 = arith.constant 0 : index
    %c0_330 = arith.constant 0 : index
    %c0_331 = arith.constant 0 : index
    %598 = vector.load %arg6[%c5_328, %c0_329, %c0_330, %c0_331] : memref<8x24x1x4xf32, #tpu.memory_space<vmem>>, vector<1x24x1x4xf32>
    %599 = vector.shape_cast %598 : vector<1x24x1x4xf32> to vector<24x1x4xf32>
    %600 = vector.broadcast %599 : vector<24x1x4xf32> to vector<24x8x4xf32>
    %601 = arith.addf %597, %600 : vector<24x8x4xf32>
    %602 = vector.extract_strided_slice %601 {offsets = [0, 0, 0], sizes = [8, 8, 4], strides = [1, 1, 1]} : vector<24x8x4xf32> to vector<8x8x4xf32>
    %603 = vector.extract_strided_slice %601 {offsets = [8, 0, 0], sizes = [8, 8, 4], strides = [1, 1, 1]} : vector<24x8x4xf32> to vector<8x8x4xf32>
    %604 = vector.extract_strided_slice %601 {offsets = [16, 0, 0], sizes = [8, 8, 4], strides = [1, 1, 1]} : vector<24x8x4xf32> to vector<8x8x4xf32>
    %cst_332 = arith.constant dense<0.000000e+00> : vector<8x8x8xf32>
    %605 = tpu.matmul %602, %603, %cst_332 {dimension_numbers = #tpu.dot_dimension_numbers<[2], [2], [1], [1], [0, 0, 0, 1, 1, 1], [0], [0]>} : vector<8x8x4xf32>, vector<8x8x4xf32>, vector<8x8x8xf32> -> vector<8x8x8xf32>
    %cst_333 = arith.constant 5.000000e-01 : f32
    %606 = vector.broadcast %cst_333 : f32 to vector<8x8x8xf32>
    %607 = arith.mulf %605, %606 : vector<8x8x8xf32>
    %cst_334 = arith.constant dense<0xFF800000> : vector<8x8xf32>
    %608 = vector.multi_reduction <maximumf>, %607, %cst_334 [2] : vector<8x8x8xf32> to vector<8x8xf32>
    %609 = vector.shape_cast %608 : vector<8x8xf32> to vector<8x8x1xf32>
    %610 = vector.broadcast %609 : vector<8x8x1xf32> to vector<8x8x8xf32>
    %611 = arith.subf %607, %610 : vector<8x8x8xf32>
    %612 = math.exp %611 : vector<8x8x8xf32>
    %cst_335 = arith.constant dense<0.000000e+00> : vector<8x8xf32>
    %613 = vector.multi_reduction <add>, %612, %cst_335 [2] : vector<8x8x8xf32> to vector<8x8xf32>
    %614 = vector.shape_cast %613 : vector<8x8xf32> to vector<8x8x1xf32>
    %615 = tpu.reciprocal %614 {approx = true} : vector<8x8x1xf32> -> vector<8x8x1xf32>
    %616 = vector.broadcast %615 : vector<8x8x1xf32> to vector<8x8x8xf32>
    %617 = arith.mulf %612, %616 : vector<8x8x8xf32>
    %cst_336 = arith.constant dense<0.000000e+00> : vector<8x8x4xf32>
    %618 = tpu.matmul %617, %604, %cst_336 {dimension_numbers = #tpu.dot_dimension_numbers<[2], [1], [1], [2], [0, 0, 0, 1, 1, 2], [0], [0]>} : vector<8x8x8xf32>, vector<8x8x4xf32>, vector<8x8x4xf32> -> vector<8x8x4xf32>
    %c5_337 = arith.constant 5 : index
    %c0_338 = arith.constant 0 : index
    %c0_339 = arith.constant 0 : index
    %c0_340 = arith.constant 0 : index
    %619 = vector.load %arg7[%c5_337, %c0_338, %c0_339, %c0_340] : memref<8x8x4x32xf32, #tpu.memory_space<vmem>>, vector<1x8x4x32xf32>
    %620 = vector.shape_cast %619 : vector<1x8x4x32xf32> to vector<8x4x32xf32>
    %cst_341 = arith.constant dense<0.000000e+00> : vector<8x8x32xf32>
    %621 = tpu.matmul %618, %620, %cst_341 {dimension_numbers = #tpu.dot_dimension_numbers<[2], [1], [1], [2], [0, 0, 0, 1, 1, 2], [0], [0]>} : vector<8x8x4xf32>, vector<8x4x32xf32>, vector<8x8x32xf32> -> vector<8x8x32xf32>
    %cst_342 = arith.constant dense<0.000000e+00> : vector<8x32xf32>
    %622 = vector.multi_reduction <add>, %621, %cst_342 [0] : vector<8x8x32xf32> to vector<8x32xf32>
    %c5_343 = arith.constant 5 : index
    %c0_344 = arith.constant 0 : index
    %c0_345 = arith.constant 0 : index
    %623 = vector.load %arg8[%c5_343, %c0_344, %c0_345] : memref<8x1x32xf32, #tpu.memory_space<vmem>>, vector<1x1x32xf32>
    %624 = vector.shape_cast %623 : vector<1x1x32xf32> to vector<1x32xf32>
    %625 = vector.broadcast %624 : vector<1x32xf32> to vector<8x32xf32>
    %626 = arith.addf %622, %625 : vector<8x32xf32>
    %627 = arith.addf %591, %626 : vector<8x32xf32>
    %c5_346 = arith.constant 5 : index
    %c0_347 = arith.constant 0 : index
    %c0_348 = arith.constant 0 : index
    %628 = vector.load %arg9[%c5_346, %c0_347, %c0_348] : memref<8x1x32xf32, #tpu.memory_space<vmem>>, vector<1x1x32xf32>
    %629 = vector.shape_cast %628 : vector<1x1x32xf32> to vector<1x32xf32>
    %c5_349 = arith.constant 5 : index
    %c0_350 = arith.constant 0 : index
    %c0_351 = arith.constant 0 : index
    %630 = vector.load %arg10[%c5_349, %c0_350, %c0_351] : memref<8x1x32xf32, #tpu.memory_space<vmem>>, vector<1x1x32xf32>
    %631 = vector.shape_cast %630 : vector<1x1x32xf32> to vector<1x32xf32>
    %cst_352 = arith.constant dense<0.000000e+00> : vector<8xf32>
    %632 = vector.multi_reduction <add>, %627, %cst_352 [1] : vector<8x32xf32> to vector<8xf32>
    %633 = vector.shape_cast %632 : vector<8xf32> to vector<8x1xf32>
    %cst_353 = arith.constant 3.200000e+01 : f32
    %634 = vector.broadcast %cst_353 : f32 to vector<8x1xf32>
    %635 = arith.divf %633, %634 : vector<8x1xf32>
    %636 = vector.broadcast %635 : vector<8x1xf32> to vector<8x32xf32>
    %637 = arith.subf %627, %636 : vector<8x32xf32>
    %638 = arith.mulf %637, %637 : vector<8x32xf32>
    %cst_354 = arith.constant dense<0.000000e+00> : vector<8xf32>
    %639 = vector.multi_reduction <add>, %638, %cst_354 [1] : vector<8x32xf32> to vector<8xf32>
    %640 = vector.shape_cast %639 : vector<8xf32> to vector<8x1xf32>
    %cst_355 = arith.constant 3.200000e+01 : f32
    %641 = vector.broadcast %cst_355 : f32 to vector<8x1xf32>
    %642 = arith.divf %640, %641 : vector<8x1xf32>
    %cst_356 = arith.constant 9.99999974E-6 : f32
    %643 = vector.broadcast %cst_356 : f32 to vector<8x1xf32>
    %644 = arith.addf %642, %643 : vector<8x1xf32>
    %645 = math.rsqrt %644 : vector<8x1xf32>
    %646 = vector.broadcast %645 : vector<8x1xf32> to vector<8x32xf32>
    %647 = arith.mulf %637, %646 : vector<8x32xf32>
    %648 = vector.broadcast %629 : vector<1x32xf32> to vector<8x32xf32>
    %649 = arith.mulf %647, %648 : vector<8x32xf32>
    %650 = vector.broadcast %631 : vector<1x32xf32> to vector<8x32xf32>
    %651 = arith.addf %649, %650 : vector<8x32xf32>
    %c5_357 = arith.constant 5 : index
    %c0_358 = arith.constant 0 : index
    %c0_359 = arith.constant 0 : index
    %652 = vector.load %arg11[%c5_357, %c0_358, %c0_359] : memref<8x32x128xf32, #tpu.memory_space<vmem>>, vector<1x32x128xf32>
    %653 = vector.shape_cast %652 : vector<1x32x128xf32> to vector<32x128xf32>
    %cst_360 = arith.constant dense<0.000000e+00> : vector<8x128xf32>
    %654 = tpu.matmul %651, %653, %cst_360 {dimension_numbers = #tpu.dot_dimension_numbers<[1], [0], [0], [1], [0, 0, 1, 1], [], []>} : vector<8x32xf32>, vector<32x128xf32>, vector<8x128xf32> -> vector<8x128xf32>
    %c5_361 = arith.constant 5 : index
    %c0_362 = arith.constant 0 : index
    %c0_363 = arith.constant 0 : index
    %655 = vector.load %arg12[%c5_361, %c0_362, %c0_363] : memref<8x1x128xf32, #tpu.memory_space<vmem>>, vector<1x1x128xf32>
    %656 = vector.shape_cast %655 : vector<1x1x128xf32> to vector<1x128xf32>
    %657 = vector.broadcast %656 : vector<1x128xf32> to vector<8x128xf32>
    %658 = arith.addf %654, %657 : vector<8x128xf32>
    %cst_364 = arith.constant 5.000000e-01 : f32
    %659 = vector.broadcast %cst_364 : f32 to vector<8x128xf32>
    %660 = arith.mulf %659, %658 : vector<8x128xf32>
    %cst_365 = arith.constant 4.471500e-02 : f32
    %661 = vector.broadcast %cst_365 : f32 to vector<8x128xf32>
    %662 = arith.mulf %661, %658 : vector<8x128xf32>
    %663 = arith.mulf %662, %658 : vector<8x128xf32>
    %664 = arith.mulf %663, %658 : vector<8x128xf32>
    %665 = arith.addf %658, %664 : vector<8x128xf32>
    %cst_366 = arith.constant 0.797884583 : f32
    %666 = vector.broadcast %cst_366 : f32 to vector<8x128xf32>
    %667 = arith.mulf %666, %665 : vector<8x128xf32>
    %668 = math.tanh %667 : vector<8x128xf32>
    %cst_367 = arith.constant 1.000000e+00 : f32
    %669 = vector.broadcast %cst_367 : f32 to vector<8x128xf32>
    %670 = arith.addf %669, %668 : vector<8x128xf32>
    %671 = arith.mulf %660, %670 : vector<8x128xf32>
    %c5_368 = arith.constant 5 : index
    %c0_369 = arith.constant 0 : index
    %c0_370 = arith.constant 0 : index
    %672 = vector.load %arg13[%c5_368, %c0_369, %c0_370] : memref<8x128x32xf32, #tpu.memory_space<vmem>>, vector<1x128x32xf32>
    %673 = vector.shape_cast %672 : vector<1x128x32xf32> to vector<128x32xf32>
    %cst_371 = arith.constant dense<0.000000e+00> : vector<8x32xf32>
    %674 = tpu.matmul %671, %673, %cst_371 {dimension_numbers = #tpu.dot_dimension_numbers<[1], [0], [0], [1], [0, 0, 1, 1], [], []>} : vector<8x128xf32>, vector<128x32xf32>, vector<8x32xf32> -> vector<8x32xf32>
    %c5_372 = arith.constant 5 : index
    %c0_373 = arith.constant 0 : index
    %c0_374 = arith.constant 0 : index
    %675 = vector.load %arg14[%c5_372, %c0_373, %c0_374] : memref<8x1x32xf32, #tpu.memory_space<vmem>>, vector<1x1x32xf32>
    %676 = vector.shape_cast %675 : vector<1x1x32xf32> to vector<1x32xf32>
    %677 = vector.broadcast %676 : vector<1x32xf32> to vector<8x32xf32>
    %678 = arith.addf %674, %677 : vector<8x32xf32>
    %679 = arith.addf %651, %678 : vector<8x32xf32>
    %c5_375 = arith.constant 5 : index
    %c0_376 = arith.constant 0 : index
    %c0_377 = arith.constant 0 : index
    %680 = vector.load %arg15[%c5_375, %c0_376, %c0_377] : memref<8x1x32xf32, #tpu.memory_space<vmem>>, vector<1x1x32xf32>
    %681 = vector.shape_cast %680 : vector<1x1x32xf32> to vector<1x32xf32>
    %c5_378 = arith.constant 5 : index
    %c0_379 = arith.constant 0 : index
    %c0_380 = arith.constant 0 : index
    %682 = vector.load %arg16[%c5_378, %c0_379, %c0_380] : memref<8x1x32xf32, #tpu.memory_space<vmem>>, vector<1x1x32xf32>
    %683 = vector.shape_cast %682 : vector<1x1x32xf32> to vector<1x32xf32>
    %cst_381 = arith.constant dense<0.000000e+00> : vector<8xf32>
    %684 = vector.multi_reduction <add>, %679, %cst_381 [1] : vector<8x32xf32> to vector<8xf32>
    %685 = vector.shape_cast %684 : vector<8xf32> to vector<8x1xf32>
    %cst_382 = arith.constant 3.200000e+01 : f32
    %686 = vector.broadcast %cst_382 : f32 to vector<8x1xf32>
    %687 = arith.divf %685, %686 : vector<8x1xf32>
    %688 = vector.broadcast %687 : vector<8x1xf32> to vector<8x32xf32>
    %689 = arith.subf %679, %688 : vector<8x32xf32>
    %690 = arith.mulf %689, %689 : vector<8x32xf32>
    %cst_383 = arith.constant dense<0.000000e+00> : vector<8xf32>
    %691 = vector.multi_reduction <add>, %690, %cst_383 [1] : vector<8x32xf32> to vector<8xf32>
    %692 = vector.shape_cast %691 : vector<8xf32> to vector<8x1xf32>
    %cst_384 = arith.constant 3.200000e+01 : f32
    %693 = vector.broadcast %cst_384 : f32 to vector<8x1xf32>
    %694 = arith.divf %692, %693 : vector<8x1xf32>
    %cst_385 = arith.constant 9.99999974E-6 : f32
    %695 = vector.broadcast %cst_385 : f32 to vector<8x1xf32>
    %696 = arith.addf %694, %695 : vector<8x1xf32>
    %697 = math.rsqrt %696 : vector<8x1xf32>
    %698 = vector.broadcast %697 : vector<8x1xf32> to vector<8x32xf32>
    %699 = arith.mulf %689, %698 : vector<8x32xf32>
    %700 = vector.broadcast %681 : vector<1x32xf32> to vector<8x32xf32>
    %701 = arith.mulf %699, %700 : vector<8x32xf32>
    %702 = vector.broadcast %683 : vector<1x32xf32> to vector<8x32xf32>
    %703 = arith.addf %701, %702 : vector<8x32xf32>
    %704 = vector.shape_cast %703 : vector<8x32xf32> to vector<1x8x32xf32>
    %705 = vector.shape_cast %704 : vector<1x8x32xf32> to vector<1x8x32xf32>
    %706 = vector.broadcast %705 : vector<1x8x32xf32> to vector<24x8x32xf32>
    %c6 = arith.constant 6 : index
    %c0_386 = arith.constant 0 : index
    %c0_387 = arith.constant 0 : index
    %c0_388 = arith.constant 0 : index
    %707 = vector.load %arg5[%c6, %c0_386, %c0_387, %c0_388] : memref<8x24x32x4xf32, #tpu.memory_space<vmem>>, vector<1x24x32x4xf32>
    %708 = vector.shape_cast %707 : vector<1x24x32x4xf32> to vector<24x32x4xf32>
    %cst_389 = arith.constant dense<0.000000e+00> : vector<24x8x4xf32>
    %709 = tpu.matmul %706, %708, %cst_389 {dimension_numbers = #tpu.dot_dimension_numbers<[2], [1], [1], [2], [0, 0, 0, 1, 1, 2], [0], [0]>} : vector<24x8x32xf32>, vector<24x32x4xf32>, vector<24x8x4xf32> -> vector<24x8x4xf32>
    %c6_390 = arith.constant 6 : index
    %c0_391 = arith.constant 0 : index
    %c0_392 = arith.constant 0 : index
    %c0_393 = arith.constant 0 : index
    %710 = vector.load %arg6[%c6_390, %c0_391, %c0_392, %c0_393] : memref<8x24x1x4xf32, #tpu.memory_space<vmem>>, vector<1x24x1x4xf32>
    %711 = vector.shape_cast %710 : vector<1x24x1x4xf32> to vector<24x1x4xf32>
    %712 = vector.broadcast %711 : vector<24x1x4xf32> to vector<24x8x4xf32>
    %713 = arith.addf %709, %712 : vector<24x8x4xf32>
    %714 = vector.extract_strided_slice %713 {offsets = [0, 0, 0], sizes = [8, 8, 4], strides = [1, 1, 1]} : vector<24x8x4xf32> to vector<8x8x4xf32>
    %715 = vector.extract_strided_slice %713 {offsets = [8, 0, 0], sizes = [8, 8, 4], strides = [1, 1, 1]} : vector<24x8x4xf32> to vector<8x8x4xf32>
    %716 = vector.extract_strided_slice %713 {offsets = [16, 0, 0], sizes = [8, 8, 4], strides = [1, 1, 1]} : vector<24x8x4xf32> to vector<8x8x4xf32>
    %cst_394 = arith.constant dense<0.000000e+00> : vector<8x8x8xf32>
    %717 = tpu.matmul %714, %715, %cst_394 {dimension_numbers = #tpu.dot_dimension_numbers<[2], [2], [1], [1], [0, 0, 0, 1, 1, 1], [0], [0]>} : vector<8x8x4xf32>, vector<8x8x4xf32>, vector<8x8x8xf32> -> vector<8x8x8xf32>
    %cst_395 = arith.constant 5.000000e-01 : f32
    %718 = vector.broadcast %cst_395 : f32 to vector<8x8x8xf32>
    %719 = arith.mulf %717, %718 : vector<8x8x8xf32>
    %cst_396 = arith.constant dense<0xFF800000> : vector<8x8xf32>
    %720 = vector.multi_reduction <maximumf>, %719, %cst_396 [2] : vector<8x8x8xf32> to vector<8x8xf32>
    %721 = vector.shape_cast %720 : vector<8x8xf32> to vector<8x8x1xf32>
    %722 = vector.broadcast %721 : vector<8x8x1xf32> to vector<8x8x8xf32>
    %723 = arith.subf %719, %722 : vector<8x8x8xf32>
    %724 = math.exp %723 : vector<8x8x8xf32>
    %cst_397 = arith.constant dense<0.000000e+00> : vector<8x8xf32>
    %725 = vector.multi_reduction <add>, %724, %cst_397 [2] : vector<8x8x8xf32> to vector<8x8xf32>
    %726 = vector.shape_cast %725 : vector<8x8xf32> to vector<8x8x1xf32>
    %727 = tpu.reciprocal %726 {approx = true} : vector<8x8x1xf32> -> vector<8x8x1xf32>
    %728 = vector.broadcast %727 : vector<8x8x1xf32> to vector<8x8x8xf32>
    %729 = arith.mulf %724, %728 : vector<8x8x8xf32>
    %cst_398 = arith.constant dense<0.000000e+00> : vector<8x8x4xf32>
    %730 = tpu.matmul %729, %716, %cst_398 {dimension_numbers = #tpu.dot_dimension_numbers<[2], [1], [1], [2], [0, 0, 0, 1, 1, 2], [0], [0]>} : vector<8x8x8xf32>, vector<8x8x4xf32>, vector<8x8x4xf32> -> vector<8x8x4xf32>
    %c6_399 = arith.constant 6 : index
    %c0_400 = arith.constant 0 : index
    %c0_401 = arith.constant 0 : index
    %c0_402 = arith.constant 0 : index
    %731 = vector.load %arg7[%c6_399, %c0_400, %c0_401, %c0_402] : memref<8x8x4x32xf32, #tpu.memory_space<vmem>>, vector<1x8x4x32xf32>
    %732 = vector.shape_cast %731 : vector<1x8x4x32xf32> to vector<8x4x32xf32>
    %cst_403 = arith.constant dense<0.000000e+00> : vector<8x8x32xf32>
    %733 = tpu.matmul %730, %732, %cst_403 {dimension_numbers = #tpu.dot_dimension_numbers<[2], [1], [1], [2], [0, 0, 0, 1, 1, 2], [0], [0]>} : vector<8x8x4xf32>, vector<8x4x32xf32>, vector<8x8x32xf32> -> vector<8x8x32xf32>
    %cst_404 = arith.constant dense<0.000000e+00> : vector<8x32xf32>
    %734 = vector.multi_reduction <add>, %733, %cst_404 [0] : vector<8x8x32xf32> to vector<8x32xf32>
    %c6_405 = arith.constant 6 : index
    %c0_406 = arith.constant 0 : index
    %c0_407 = arith.constant 0 : index
    %735 = vector.load %arg8[%c6_405, %c0_406, %c0_407] : memref<8x1x32xf32, #tpu.memory_space<vmem>>, vector<1x1x32xf32>
    %736 = vector.shape_cast %735 : vector<1x1x32xf32> to vector<1x32xf32>
    %737 = vector.broadcast %736 : vector<1x32xf32> to vector<8x32xf32>
    %738 = arith.addf %734, %737 : vector<8x32xf32>
    %739 = arith.addf %703, %738 : vector<8x32xf32>
    %c6_408 = arith.constant 6 : index
    %c0_409 = arith.constant 0 : index
    %c0_410 = arith.constant 0 : index
    %740 = vector.load %arg9[%c6_408, %c0_409, %c0_410] : memref<8x1x32xf32, #tpu.memory_space<vmem>>, vector<1x1x32xf32>
    %741 = vector.shape_cast %740 : vector<1x1x32xf32> to vector<1x32xf32>
    %c6_411 = arith.constant 6 : index
    %c0_412 = arith.constant 0 : index
    %c0_413 = arith.constant 0 : index
    %742 = vector.load %arg10[%c6_411, %c0_412, %c0_413] : memref<8x1x32xf32, #tpu.memory_space<vmem>>, vector<1x1x32xf32>
    %743 = vector.shape_cast %742 : vector<1x1x32xf32> to vector<1x32xf32>
    %cst_414 = arith.constant dense<0.000000e+00> : vector<8xf32>
    %744 = vector.multi_reduction <add>, %739, %cst_414 [1] : vector<8x32xf32> to vector<8xf32>
    %745 = vector.shape_cast %744 : vector<8xf32> to vector<8x1xf32>
    %cst_415 = arith.constant 3.200000e+01 : f32
    %746 = vector.broadcast %cst_415 : f32 to vector<8x1xf32>
    %747 = arith.divf %745, %746 : vector<8x1xf32>
    %748 = vector.broadcast %747 : vector<8x1xf32> to vector<8x32xf32>
    %749 = arith.subf %739, %748 : vector<8x32xf32>
    %750 = arith.mulf %749, %749 : vector<8x32xf32>
    %cst_416 = arith.constant dense<0.000000e+00> : vector<8xf32>
    %751 = vector.multi_reduction <add>, %750, %cst_416 [1] : vector<8x32xf32> to vector<8xf32>
    %752 = vector.shape_cast %751 : vector<8xf32> to vector<8x1xf32>
    %cst_417 = arith.constant 3.200000e+01 : f32
    %753 = vector.broadcast %cst_417 : f32 to vector<8x1xf32>
    %754 = arith.divf %752, %753 : vector<8x1xf32>
    %cst_418 = arith.constant 9.99999974E-6 : f32
    %755 = vector.broadcast %cst_418 : f32 to vector<8x1xf32>
    %756 = arith.addf %754, %755 : vector<8x1xf32>
    %757 = math.rsqrt %756 : vector<8x1xf32>
    %758 = vector.broadcast %757 : vector<8x1xf32> to vector<8x32xf32>
    %759 = arith.mulf %749, %758 : vector<8x32xf32>
    %760 = vector.broadcast %741 : vector<1x32xf32> to vector<8x32xf32>
    %761 = arith.mulf %759, %760 : vector<8x32xf32>
    %762 = vector.broadcast %743 : vector<1x32xf32> to vector<8x32xf32>
    %763 = arith.addf %761, %762 : vector<8x32xf32>
    %c6_419 = arith.constant 6 : index
    %c0_420 = arith.constant 0 : index
    %c0_421 = arith.constant 0 : index
    %764 = vector.load %arg11[%c6_419, %c0_420, %c0_421] : memref<8x32x128xf32, #tpu.memory_space<vmem>>, vector<1x32x128xf32>
    %765 = vector.shape_cast %764 : vector<1x32x128xf32> to vector<32x128xf32>
    %cst_422 = arith.constant dense<0.000000e+00> : vector<8x128xf32>
    %766 = tpu.matmul %763, %765, %cst_422 {dimension_numbers = #tpu.dot_dimension_numbers<[1], [0], [0], [1], [0, 0, 1, 1], [], []>} : vector<8x32xf32>, vector<32x128xf32>, vector<8x128xf32> -> vector<8x128xf32>
    %c6_423 = arith.constant 6 : index
    %c0_424 = arith.constant 0 : index
    %c0_425 = arith.constant 0 : index
    %767 = vector.load %arg12[%c6_423, %c0_424, %c0_425] : memref<8x1x128xf32, #tpu.memory_space<vmem>>, vector<1x1x128xf32>
    %768 = vector.shape_cast %767 : vector<1x1x128xf32> to vector<1x128xf32>
    %769 = vector.broadcast %768 : vector<1x128xf32> to vector<8x128xf32>
    %770 = arith.addf %766, %769 : vector<8x128xf32>
    %cst_426 = arith.constant 5.000000e-01 : f32
    %771 = vector.broadcast %cst_426 : f32 to vector<8x128xf32>
    %772 = arith.mulf %771, %770 : vector<8x128xf32>
    %cst_427 = arith.constant 4.471500e-02 : f32
    %773 = vector.broadcast %cst_427 : f32 to vector<8x128xf32>
    %774 = arith.mulf %773, %770 : vector<8x128xf32>
    %775 = arith.mulf %774, %770 : vector<8x128xf32>
    %776 = arith.mulf %775, %770 : vector<8x128xf32>
    %777 = arith.addf %770, %776 : vector<8x128xf32>
    %cst_428 = arith.constant 0.797884583 : f32
    %778 = vector.broadcast %cst_428 : f32 to vector<8x128xf32>
    %779 = arith.mulf %778, %777 : vector<8x128xf32>
    %780 = math.tanh %779 : vector<8x128xf32>
    %cst_429 = arith.constant 1.000000e+00 : f32
    %781 = vector.broadcast %cst_429 : f32 to vector<8x128xf32>
    %782 = arith.addf %781, %780 : vector<8x128xf32>
    %783 = arith.mulf %772, %782 : vector<8x128xf32>
    %c6_430 = arith.constant 6 : index
    %c0_431 = arith.constant 0 : index
    %c0_432 = arith.constant 0 : index
    %784 = vector.load %arg13[%c6_430, %c0_431, %c0_432] : memref<8x128x32xf32, #tpu.memory_space<vmem>>, vector<1x128x32xf32>
    %785 = vector.shape_cast %784 : vector<1x128x32xf32> to vector<128x32xf32>
    %cst_433 = arith.constant dense<0.000000e+00> : vector<8x32xf32>
    %786 = tpu.matmul %783, %785, %cst_433 {dimension_numbers = #tpu.dot_dimension_numbers<[1], [0], [0], [1], [0, 0, 1, 1], [], []>} : vector<8x128xf32>, vector<128x32xf32>, vector<8x32xf32> -> vector<8x32xf32>
    %c6_434 = arith.constant 6 : index
    %c0_435 = arith.constant 0 : index
    %c0_436 = arith.constant 0 : index
    %787 = vector.load %arg14[%c6_434, %c0_435, %c0_436] : memref<8x1x32xf32, #tpu.memory_space<vmem>>, vector<1x1x32xf32>
    %788 = vector.shape_cast %787 : vector<1x1x32xf32> to vector<1x32xf32>
    %789 = vector.broadcast %788 : vector<1x32xf32> to vector<8x32xf32>
    %790 = arith.addf %786, %789 : vector<8x32xf32>
    %791 = arith.addf %763, %790 : vector<8x32xf32>
    %c6_437 = arith.constant 6 : index
    %c0_438 = arith.constant 0 : index
    %c0_439 = arith.constant 0 : index
    %792 = vector.load %arg15[%c6_437, %c0_438, %c0_439] : memref<8x1x32xf32, #tpu.memory_space<vmem>>, vector<1x1x32xf32>
    %793 = vector.shape_cast %792 : vector<1x1x32xf32> to vector<1x32xf32>
    %c6_440 = arith.constant 6 : index
    %c0_441 = arith.constant 0 : index
    %c0_442 = arith.constant 0 : index
    %794 = vector.load %arg16[%c6_440, %c0_441, %c0_442] : memref<8x1x32xf32, #tpu.memory_space<vmem>>, vector<1x1x32xf32>
    %795 = vector.shape_cast %794 : vector<1x1x32xf32> to vector<1x32xf32>
    %cst_443 = arith.constant dense<0.000000e+00> : vector<8xf32>
    %796 = vector.multi_reduction <add>, %791, %cst_443 [1] : vector<8x32xf32> to vector<8xf32>
    %797 = vector.shape_cast %796 : vector<8xf32> to vector<8x1xf32>
    %cst_444 = arith.constant 3.200000e+01 : f32
    %798 = vector.broadcast %cst_444 : f32 to vector<8x1xf32>
    %799 = arith.divf %797, %798 : vector<8x1xf32>
    %800 = vector.broadcast %799 : vector<8x1xf32> to vector<8x32xf32>
    %801 = arith.subf %791, %800 : vector<8x32xf32>
    %802 = arith.mulf %801, %801 : vector<8x32xf32>
    %cst_445 = arith.constant dense<0.000000e+00> : vector<8xf32>
    %803 = vector.multi_reduction <add>, %802, %cst_445 [1] : vector<8x32xf32> to vector<8xf32>
    %804 = vector.shape_cast %803 : vector<8xf32> to vector<8x1xf32>
    %cst_446 = arith.constant 3.200000e+01 : f32
    %805 = vector.broadcast %cst_446 : f32 to vector<8x1xf32>
    %806 = arith.divf %804, %805 : vector<8x1xf32>
    %cst_447 = arith.constant 9.99999974E-6 : f32
    %807 = vector.broadcast %cst_447 : f32 to vector<8x1xf32>
    %808 = arith.addf %806, %807 : vector<8x1xf32>
    %809 = math.rsqrt %808 : vector<8x1xf32>
    %810 = vector.broadcast %809 : vector<8x1xf32> to vector<8x32xf32>
    %811 = arith.mulf %801, %810 : vector<8x32xf32>
    %812 = vector.broadcast %793 : vector<1x32xf32> to vector<8x32xf32>
    %813 = arith.mulf %811, %812 : vector<8x32xf32>
    %814 = vector.broadcast %795 : vector<1x32xf32> to vector<8x32xf32>
    %815 = arith.addf %813, %814 : vector<8x32xf32>
    %816 = vector.shape_cast %815 : vector<8x32xf32> to vector<1x8x32xf32>
    %817 = vector.shape_cast %816 : vector<1x8x32xf32> to vector<1x8x32xf32>
    %818 = vector.broadcast %817 : vector<1x8x32xf32> to vector<24x8x32xf32>
    %c7 = arith.constant 7 : index
    %c0_448 = arith.constant 0 : index
    %c0_449 = arith.constant 0 : index
    %c0_450 = arith.constant 0 : index
    %819 = vector.load %arg5[%c7, %c0_448, %c0_449, %c0_450] : memref<8x24x32x4xf32, #tpu.memory_space<vmem>>, vector<1x24x32x4xf32>
    %820 = vector.shape_cast %819 : vector<1x24x32x4xf32> to vector<24x32x4xf32>
    %cst_451 = arith.constant dense<0.000000e+00> : vector<24x8x4xf32>
    %821 = tpu.matmul %818, %820, %cst_451 {dimension_numbers = #tpu.dot_dimension_numbers<[2], [1], [1], [2], [0, 0, 0, 1, 1, 2], [0], [0]>} : vector<24x8x32xf32>, vector<24x32x4xf32>, vector<24x8x4xf32> -> vector<24x8x4xf32>
    %c7_452 = arith.constant 7 : index
    %c0_453 = arith.constant 0 : index
    %c0_454 = arith.constant 0 : index
    %c0_455 = arith.constant 0 : index
    %822 = vector.load %arg6[%c7_452, %c0_453, %c0_454, %c0_455] : memref<8x24x1x4xf32, #tpu.memory_space<vmem>>, vector<1x24x1x4xf32>
    %823 = vector.shape_cast %822 : vector<1x24x1x4xf32> to vector<24x1x4xf32>
    %824 = vector.broadcast %823 : vector<24x1x4xf32> to vector<24x8x4xf32>
    %825 = arith.addf %821, %824 : vector<24x8x4xf32>
    %826 = vector.extract_strided_slice %825 {offsets = [0, 0, 0], sizes = [8, 8, 4], strides = [1, 1, 1]} : vector<24x8x4xf32> to vector<8x8x4xf32>
    %827 = vector.extract_strided_slice %825 {offsets = [8, 0, 0], sizes = [8, 8, 4], strides = [1, 1, 1]} : vector<24x8x4xf32> to vector<8x8x4xf32>
    %828 = vector.extract_strided_slice %825 {offsets = [16, 0, 0], sizes = [8, 8, 4], strides = [1, 1, 1]} : vector<24x8x4xf32> to vector<8x8x4xf32>
    %cst_456 = arith.constant dense<0.000000e+00> : vector<8x8x8xf32>
    %829 = tpu.matmul %826, %827, %cst_456 {dimension_numbers = #tpu.dot_dimension_numbers<[2], [2], [1], [1], [0, 0, 0, 1, 1, 1], [0], [0]>} : vector<8x8x4xf32>, vector<8x8x4xf32>, vector<8x8x8xf32> -> vector<8x8x8xf32>
    %cst_457 = arith.constant 5.000000e-01 : f32
    %830 = vector.broadcast %cst_457 : f32 to vector<8x8x8xf32>
    %831 = arith.mulf %829, %830 : vector<8x8x8xf32>
    %cst_458 = arith.constant dense<0xFF800000> : vector<8x8xf32>
    %832 = vector.multi_reduction <maximumf>, %831, %cst_458 [2] : vector<8x8x8xf32> to vector<8x8xf32>
    %833 = vector.shape_cast %832 : vector<8x8xf32> to vector<8x8x1xf32>
    %834 = vector.broadcast %833 : vector<8x8x1xf32> to vector<8x8x8xf32>
    %835 = arith.subf %831, %834 : vector<8x8x8xf32>
    %836 = math.exp %835 : vector<8x8x8xf32>
    %cst_459 = arith.constant dense<0.000000e+00> : vector<8x8xf32>
    %837 = vector.multi_reduction <add>, %836, %cst_459 [2] : vector<8x8x8xf32> to vector<8x8xf32>
    %838 = vector.shape_cast %837 : vector<8x8xf32> to vector<8x8x1xf32>
    %839 = tpu.reciprocal %838 {approx = true} : vector<8x8x1xf32> -> vector<8x8x1xf32>
    %840 = vector.broadcast %839 : vector<8x8x1xf32> to vector<8x8x8xf32>
    %841 = arith.mulf %836, %840 : vector<8x8x8xf32>
    %cst_460 = arith.constant dense<0.000000e+00> : vector<8x8x4xf32>
    %842 = tpu.matmul %841, %828, %cst_460 {dimension_numbers = #tpu.dot_dimension_numbers<[2], [1], [1], [2], [0, 0, 0, 1, 1, 2], [0], [0]>} : vector<8x8x8xf32>, vector<8x8x4xf32>, vector<8x8x4xf32> -> vector<8x8x4xf32>
    %c7_461 = arith.constant 7 : index
    %c0_462 = arith.constant 0 : index
    %c0_463 = arith.constant 0 : index
    %c0_464 = arith.constant 0 : index
    %843 = vector.load %arg7[%c7_461, %c0_462, %c0_463, %c0_464] : memref<8x8x4x32xf32, #tpu.memory_space<vmem>>, vector<1x8x4x32xf32>
    %844 = vector.shape_cast %843 : vector<1x8x4x32xf32> to vector<8x4x32xf32>
    %cst_465 = arith.constant dense<0.000000e+00> : vector<8x8x32xf32>
    %845 = tpu.matmul %842, %844, %cst_465 {dimension_numbers = #tpu.dot_dimension_numbers<[2], [1], [1], [2], [0, 0, 0, 1, 1, 2], [0], [0]>} : vector<8x8x4xf32>, vector<8x4x32xf32>, vector<8x8x32xf32> -> vector<8x8x32xf32>
    %cst_466 = arith.constant dense<0.000000e+00> : vector<8x32xf32>
    %846 = vector.multi_reduction <add>, %845, %cst_466 [0] : vector<8x8x32xf32> to vector<8x32xf32>
    %c7_467 = arith.constant 7 : index
    %c0_468 = arith.constant 0 : index
    %c0_469 = arith.constant 0 : index
    %847 = vector.load %arg8[%c7_467, %c0_468, %c0_469] : memref<8x1x32xf32, #tpu.memory_space<vmem>>, vector<1x1x32xf32>
    %848 = vector.shape_cast %847 : vector<1x1x32xf32> to vector<1x32xf32>
    %849 = vector.broadcast %848 : vector<1x32xf32> to vector<8x32xf32>
    %850 = arith.addf %846, %849 : vector<8x32xf32>
    %851 = arith.addf %815, %850 : vector<8x32xf32>
    %c7_470 = arith.constant 7 : index
    %c0_471 = arith.constant 0 : index
    %c0_472 = arith.constant 0 : index
    %852 = vector.load %arg9[%c7_470, %c0_471, %c0_472] : memref<8x1x32xf32, #tpu.memory_space<vmem>>, vector<1x1x32xf32>
    %853 = vector.shape_cast %852 : vector<1x1x32xf32> to vector<1x32xf32>
    %c7_473 = arith.constant 7 : index
    %c0_474 = arith.constant 0 : index
    %c0_475 = arith.constant 0 : index
    %854 = vector.load %arg10[%c7_473, %c0_474, %c0_475] : memref<8x1x32xf32, #tpu.memory_space<vmem>>, vector<1x1x32xf32>
    %855 = vector.shape_cast %854 : vector<1x1x32xf32> to vector<1x32xf32>
    %cst_476 = arith.constant dense<0.000000e+00> : vector<8xf32>
    %856 = vector.multi_reduction <add>, %851, %cst_476 [1] : vector<8x32xf32> to vector<8xf32>
    %857 = vector.shape_cast %856 : vector<8xf32> to vector<8x1xf32>
    %cst_477 = arith.constant 3.200000e+01 : f32
    %858 = vector.broadcast %cst_477 : f32 to vector<8x1xf32>
    %859 = arith.divf %857, %858 : vector<8x1xf32>
    %860 = vector.broadcast %859 : vector<8x1xf32> to vector<8x32xf32>
    %861 = arith.subf %851, %860 : vector<8x32xf32>
    %862 = arith.mulf %861, %861 : vector<8x32xf32>
    %cst_478 = arith.constant dense<0.000000e+00> : vector<8xf32>
    %863 = vector.multi_reduction <add>, %862, %cst_478 [1] : vector<8x32xf32> to vector<8xf32>
    %864 = vector.shape_cast %863 : vector<8xf32> to vector<8x1xf32>
    %cst_479 = arith.constant 3.200000e+01 : f32
    %865 = vector.broadcast %cst_479 : f32 to vector<8x1xf32>
    %866 = arith.divf %864, %865 : vector<8x1xf32>
    %cst_480 = arith.constant 9.99999974E-6 : f32
    %867 = vector.broadcast %cst_480 : f32 to vector<8x1xf32>
    %868 = arith.addf %866, %867 : vector<8x1xf32>
    %869 = math.rsqrt %868 : vector<8x1xf32>
    %870 = vector.broadcast %869 : vector<8x1xf32> to vector<8x32xf32>
    %871 = arith.mulf %861, %870 : vector<8x32xf32>
    %872 = vector.broadcast %853 : vector<1x32xf32> to vector<8x32xf32>
    %873 = arith.mulf %871, %872 : vector<8x32xf32>
    %874 = vector.broadcast %855 : vector<1x32xf32> to vector<8x32xf32>
    %875 = arith.addf %873, %874 : vector<8x32xf32>
    %c7_481 = arith.constant 7 : index
    %c0_482 = arith.constant 0 : index
    %c0_483 = arith.constant 0 : index
    %876 = vector.load %arg11[%c7_481, %c0_482, %c0_483] : memref<8x32x128xf32, #tpu.memory_space<vmem>>, vector<1x32x128xf32>
    %877 = vector.shape_cast %876 : vector<1x32x128xf32> to vector<32x128xf32>
    %cst_484 = arith.constant dense<0.000000e+00> : vector<8x128xf32>
    %878 = tpu.matmul %875, %877, %cst_484 {dimension_numbers = #tpu.dot_dimension_numbers<[1], [0], [0], [1], [0, 0, 1, 1], [], []>} : vector<8x32xf32>, vector<32x128xf32>, vector<8x128xf32> -> vector<8x128xf32>
    %c7_485 = arith.constant 7 : index
    %c0_486 = arith.constant 0 : index
    %c0_487 = arith.constant 0 : index
    %879 = vector.load %arg12[%c7_485, %c0_486, %c0_487] : memref<8x1x128xf32, #tpu.memory_space<vmem>>, vector<1x1x128xf32>
    %880 = vector.shape_cast %879 : vector<1x1x128xf32> to vector<1x128xf32>
    %881 = vector.broadcast %880 : vector<1x128xf32> to vector<8x128xf32>
    %882 = arith.addf %878, %881 : vector<8x128xf32>
    %cst_488 = arith.constant 5.000000e-01 : f32
    %883 = vector.broadcast %cst_488 : f32 to vector<8x128xf32>
    %884 = arith.mulf %883, %882 : vector<8x128xf32>
    %cst_489 = arith.constant 4.471500e-02 : f32
    %885 = vector.broadcast %cst_489 : f32 to vector<8x128xf32>
    %886 = arith.mulf %885, %882 : vector<8x128xf32>
    %887 = arith.mulf %886, %882 : vector<8x128xf32>
    %888 = arith.mulf %887, %882 : vector<8x128xf32>
    %889 = arith.addf %882, %888 : vector<8x128xf32>
    %cst_490 = arith.constant 0.797884583 : f32
    %890 = vector.broadcast %cst_490 : f32 to vector<8x128xf32>
    %891 = arith.mulf %890, %889 : vector<8x128xf32>
    %892 = math.tanh %891 : vector<8x128xf32>
    %cst_491 = arith.constant 1.000000e+00 : f32
    %893 = vector.broadcast %cst_491 : f32 to vector<8x128xf32>
    %894 = arith.addf %893, %892 : vector<8x128xf32>
    %895 = arith.mulf %884, %894 : vector<8x128xf32>
    %c7_492 = arith.constant 7 : index
    %c0_493 = arith.constant 0 : index
    %c0_494 = arith.constant 0 : index
    %896 = vector.load %arg13[%c7_492, %c0_493, %c0_494] : memref<8x128x32xf32, #tpu.memory_space<vmem>>, vector<1x128x32xf32>
    %897 = vector.shape_cast %896 : vector<1x128x32xf32> to vector<128x32xf32>
    %cst_495 = arith.constant dense<0.000000e+00> : vector<8x32xf32>
    %898 = tpu.matmul %895, %897, %cst_495 {dimension_numbers = #tpu.dot_dimension_numbers<[1], [0], [0], [1], [0, 0, 1, 1], [], []>} : vector<8x128xf32>, vector<128x32xf32>, vector<8x32xf32> -> vector<8x32xf32>
    %c7_496 = arith.constant 7 : index
    %c0_497 = arith.constant 0 : index
    %c0_498 = arith.constant 0 : index
    %899 = vector.load %arg14[%c7_496, %c0_497, %c0_498] : memref<8x1x32xf32, #tpu.memory_space<vmem>>, vector<1x1x32xf32>
    %900 = vector.shape_cast %899 : vector<1x1x32xf32> to vector<1x32xf32>
    %901 = vector.broadcast %900 : vector<1x32xf32> to vector<8x32xf32>
    %902 = arith.addf %898, %901 : vector<8x32xf32>
    %903 = arith.addf %875, %902 : vector<8x32xf32>
    %c7_499 = arith.constant 7 : index
    %c0_500 = arith.constant 0 : index
    %c0_501 = arith.constant 0 : index
    %904 = vector.load %arg15[%c7_499, %c0_500, %c0_501] : memref<8x1x32xf32, #tpu.memory_space<vmem>>, vector<1x1x32xf32>
    %905 = vector.shape_cast %904 : vector<1x1x32xf32> to vector<1x32xf32>
    %c7_502 = arith.constant 7 : index
    %c0_503 = arith.constant 0 : index
    %c0_504 = arith.constant 0 : index
    %906 = vector.load %arg16[%c7_502, %c0_503, %c0_504] : memref<8x1x32xf32, #tpu.memory_space<vmem>>, vector<1x1x32xf32>
    %907 = vector.shape_cast %906 : vector<1x1x32xf32> to vector<1x32xf32>
    %cst_505 = arith.constant dense<0.000000e+00> : vector<8xf32>
    %908 = vector.multi_reduction <add>, %903, %cst_505 [1] : vector<8x32xf32> to vector<8xf32>
    %909 = vector.shape_cast %908 : vector<8xf32> to vector<8x1xf32>
    %cst_506 = arith.constant 3.200000e+01 : f32
    %910 = vector.broadcast %cst_506 : f32 to vector<8x1xf32>
    %911 = arith.divf %909, %910 : vector<8x1xf32>
    %912 = vector.broadcast %911 : vector<8x1xf32> to vector<8x32xf32>
    %913 = arith.subf %903, %912 : vector<8x32xf32>
    %914 = arith.mulf %913, %913 : vector<8x32xf32>
    %cst_507 = arith.constant dense<0.000000e+00> : vector<8xf32>
    %915 = vector.multi_reduction <add>, %914, %cst_507 [1] : vector<8x32xf32> to vector<8xf32>
    %916 = vector.shape_cast %915 : vector<8xf32> to vector<8x1xf32>
    %cst_508 = arith.constant 3.200000e+01 : f32
    %917 = vector.broadcast %cst_508 : f32 to vector<8x1xf32>
    %918 = arith.divf %916, %917 : vector<8x1xf32>
    %cst_509 = arith.constant 9.99999974E-6 : f32
    %919 = vector.broadcast %cst_509 : f32 to vector<8x1xf32>
    %920 = arith.addf %918, %919 : vector<8x1xf32>
    %921 = math.rsqrt %920 : vector<8x1xf32>
    %922 = vector.broadcast %921 : vector<8x1xf32> to vector<8x32xf32>
    %923 = arith.mulf %913, %922 : vector<8x32xf32>
    %924 = vector.broadcast %905 : vector<1x32xf32> to vector<8x32xf32>
    %925 = arith.mulf %923, %924 : vector<8x32xf32>
    %926 = vector.broadcast %907 : vector<1x32xf32> to vector<8x32xf32>
    %927 = arith.addf %925, %926 : vector<8x32xf32>
    %c0_510 = arith.constant 0 : index
    %c0_511 = arith.constant 0 : index
    %928 = vector.load %arg17[%c0_510, %c0_511] : memref<32x256xf32, #tpu.memory_space<vmem>>, vector<32x256xf32>
    %cst_512 = arith.constant dense<0.000000e+00> : vector<8x256xf32>
    %929 = tpu.matmul %927, %928, %cst_512 {dimension_numbers = #tpu.dot_dimension_numbers<[1], [0], [0], [1], [0, 0, 1, 1], [], []>} : vector<8x32xf32>, vector<32x256xf32>, vector<8x256xf32> -> vector<8x256xf32>
    %c0_513 = arith.constant 0 : index
    %c0_514 = arith.constant 0 : index
    %930 = vector.load %arg18[%c0_513, %c0_514] : memref<1x256xf32, #tpu.memory_space<vmem>>, vector<1x256xf32>
    %931 = vector.broadcast %930 : vector<1x256xf32> to vector<8x256xf32>
    %932 = arith.addf %929, %931 : vector<8x256xf32>
    %c0_515 = arith.constant 0 : index
    %c0_516 = arith.constant 0 : index
    %933 = vector.load %arg19[%c0_515, %c0_516] : memref<256x11xf32, #tpu.memory_space<vmem>>, vector<256x11xf32>
    %cst_517 = arith.constant dense<0.000000e+00> : vector<8x11xf32>
    %934 = tpu.matmul %932, %933, %cst_517 {dimension_numbers = #tpu.dot_dimension_numbers<[1], [0], [0], [1], [0, 0, 1, 1], [], []>} : vector<8x256xf32>, vector<256x11xf32>, vector<8x11xf32> -> vector<8x11xf32>
    %c0_518 = arith.constant 0 : index
    %c0_519 = arith.constant 0 : index
    %935 = vector.load %arg20[%c0_518, %c0_519] : memref<1x11xf32, #tpu.memory_space<vmem>>, vector<1x11xf32>
    %936 = vector.broadcast %935 : vector<1x11xf32> to vector<8x11xf32>
    %937 = arith.addf %934, %936 : vector<8x11xf32>
    %c0_520 = arith.constant 0 : index
    %c0_521 = arith.constant 0 : index
    %c0_522 = arith.constant 0 : index
    %938 = vector.load %arg21[%c0_520, %c0_521, %c0_522] : memref<1x8x11xf32, #tpu.memory_space<vmem>>, vector<1x8x11xf32>
    %939 = vector.shape_cast %938 : vector<1x8x11xf32> to vector<8x11xf32>
    %940 = vector.shape_cast %937 : vector<8x11xf32> to vector<1x8x11xf32>
    tpu.vector_store %arg21[%c0_520, %c0_521, %c0_522], %940 {strides = array<i32>} : memref<1x8x11xf32, #tpu.memory_space<vmem>>, vector<1x8x11xf32>,
    return
  }
  func.func @transform_0(%arg0: i32) -> (i32, i32, i32) {
    %c0_i32 = arith.constant 0 : i32
    %c0_i32_0 = arith.constant 0 : i32
    %c0_i32_1 = arith.constant 0 : i32
    return %arg0, %c0_i32, %c0_i32_0 : i32, i32, i32
  }
  func.func @transform_1(%arg0: i32) -> (i32, i32, i32) {
    %c0_i32 = arith.constant 0 : i32
    %c0_i32_0 = arith.constant 0 : i32
    %c0_i32_1 = arith.constant 0 : i32
    return %arg0, %c0_i32, %c0_i32_0 : i32, i32, i32
  }
  func.func @transform_2(%arg0: i32) -> (i32, i32) {
    %c0_i32 = arith.constant 0 : i32
    %c0_i32_0 = arith.constant 0 : i32
    %c0_i32_1 = arith.constant 0 : i32
    return %c0_i32, %c0_i32_0 : i32, i32
  }
  func.func @transform_3(%arg0: i32) -> (i32, i32) {
    %c0_i32 = arith.constant 0 : i32
    %c0_i32_0 = arith.constant 0 : i32
    %c0_i32_1 = arith.constant 0 : i32
    return %c0_i32, %c0_i32_0 : i32, i32
  }
  func.func @transform_4(%arg0: i32) -> (i32, i32, i32, i32) {
    %c0_i32 = arith.constant 0 : i32
    %c0_i32_0 = arith.constant 0 : i32
    %c0_i32_1 = arith.constant 0 : i32
    %c0_i32_2 = arith.constant 0 : i32
    %c0_i32_3 = arith.constant 0 : i32
    return %c0_i32, %c0_i32_0, %c0_i32_1, %c0_i32_2 : i32, i32, i32, i32
  }
  func.func @transform_5(%arg0: i32) -> (i32, i32, i32, i32) {
    %c0_i32 = arith.constant 0 : i32
    %c0_i32_0 = arith.constant 0 : i32
    %c0_i32_1 = arith.constant 0 : i32
    %c0_i32_2 = arith.constant 0 : i32
    %c0_i32_3 = arith.constant 0 : i32
    return %c0_i32, %c0_i32_0, %c0_i32_1, %c0_i32_2 : i32, i32, i32, i32
  }
  func.func @transform_6(%arg0: i32) -> (i32, i32, i32, i32) {
    %c0_i32 = arith.constant 0 : i32
    %c0_i32_0 = arith.constant 0 : i32
    %c0_i32_1 = arith.constant 0 : i32
    %c0_i32_2 = arith.constant 0 : i32
    %c0_i32_3 = arith.constant 0 : i32
    return %c0_i32, %c0_i32_0, %c0_i32_1, %c0_i32_2 : i32, i32, i32, i32
  }
  func.func @transform_7(%arg0: i32) -> (i32, i32, i32) {
    %c0_i32 = arith.constant 0 : i32
    %c0_i32_0 = arith.constant 0 : i32
    %c0_i32_1 = arith.constant 0 : i32
    %c0_i32_2 = arith.constant 0 : i32
    return %c0_i32, %c0_i32_0, %c0_i32_1 : i32, i32, i32
  }
  func.func @transform_8(%arg0: i32) -> (i32, i32, i32) {
    %c0_i32 = arith.constant 0 : i32
    %c0_i32_0 = arith.constant 0 : i32
    %c0_i32_1 = arith.constant 0 : i32
    %c0_i32_2 = arith.constant 0 : i32
    return %c0_i32, %c0_i32_0, %c0_i32_1 : i32, i32, i32
  }
  func.func @transform_9(%arg0: i32) -> (i32, i32, i32) {
    %c0_i32 = arith.constant 0 : i32
    %c0_i32_0 = arith.constant 0 : i32
    %c0_i32_1 = arith.constant 0 : i32
    %c0_i32_2 = arith.constant 0 : i32
    return %c0_i32, %c0_i32_0, %c0_i32_1 : i32, i32, i32
  }
  func.func @transform_10(%arg0: i32) -> (i32, i32, i32) {
    %c0_i32 = arith.constant 0 : i32
    %c0_i32_0 = arith.constant 0 : i32
    %c0_i32_1 = arith.constant 0 : i32
    %c0_i32_2 = arith.constant 0 : i32
    return %c0_i32, %c0_i32_0, %c0_i32_1 : i32, i32, i32
  }
  func.func @transform_11(%arg0: i32) -> (i32, i32, i32) {
    %c0_i32 = arith.constant 0 : i32
    %c0_i32_0 = arith.constant 0 : i32
    %c0_i32_1 = arith.constant 0 : i32
    %c0_i32_2 = arith.constant 0 : i32
    return %c0_i32, %c0_i32_0, %c0_i32_1 : i32, i32, i32
  }
  func.func @transform_12(%arg0: i32) -> (i32, i32, i32) {
    %c0_i32 = arith.constant 0 : i32
    %c0_i32_0 = arith.constant 0 : i32
    %c0_i32_1 = arith.constant 0 : i32
    %c0_i32_2 = arith.constant 0 : i32
    return %c0_i32, %c0_i32_0, %c0_i32_1 : i32, i32, i32
  }
  func.func @transform_13(%arg0: i32) -> (i32, i32, i32) {
    %c0_i32 = arith.constant 0 : i32
    %c0_i32_0 = arith.constant 0 : i32
    %c0_i32_1 = arith.constant 0 : i32
    %c0_i32_2 = arith.constant 0 : i32
    return %c0_i32, %c0_i32_0, %c0_i32_1 : i32, i32, i32
  }
  func.func @transform_14(%arg0: i32) -> (i32, i32, i32) {
    %c0_i32 = arith.constant 0 : i32
    %c0_i32_0 = arith.constant 0 : i32
    %c0_i32_1 = arith.constant 0 : i32
    %c0_i32_2 = arith.constant 0 : i32
    return %c0_i32, %c0_i32_0, %c0_i32_1 : i32, i32, i32
  }
  func.func @transform_15(%arg0: i32) -> (i32, i32, i32) {
    %c0_i32 = arith.constant 0 : i32
    %c0_i32_0 = arith.constant 0 : i32
    %c0_i32_1 = arith.constant 0 : i32
    %c0_i32_2 = arith.constant 0 : i32
    return %c0_i32, %c0_i32_0, %c0_i32_1 : i32, i32, i32
  }
  func.func @transform_16(%arg0: i32) -> (i32, i32) {
    %c0_i32 = arith.constant 0 : i32
    %c0_i32_0 = arith.constant 0 : i32
    %c0_i32_1 = arith.constant 0 : i32
    return %c0_i32, %c0_i32_0 : i32, i32
  }
  func.func @transform_17(%arg0: i32) -> (i32, i32) {
    %c0_i32 = arith.constant 0 : i32
    %c0_i32_0 = arith.constant 0 : i32
    %c0_i32_1 = arith.constant 0 : i32
    return %c0_i32, %c0_i32_0 : i32, i32
  }
  func.func @transform_18(%arg0: i32) -> (i32, i32) {
    %c0_i32 = arith.constant 0 : i32
    %c0_i32_0 = arith.constant 0 : i32
    %c0_i32_1 = arith.constant 0 : i32
    return %c0_i32, %c0_i32_0 : i32, i32
  }
  func.func @transform_19(%arg0: i32) -> (i32, i32) {
    %c0_i32 = arith.constant 0 : i32
    %c0_i32_0 = arith.constant 0 : i32
    %c0_i32_1 = arith.constant 0 : i32
    return %c0_i32, %c0_i32_0 : i32, i32
  }
  func.func @transform_20(%arg0: i32) -> (i32, i32, i32) {
    %c0_i32 = arith.constant 0 : i32
    %c0_i32_0 = arith.constant 0 : i32
    %c0_i32_1 = arith.constant 0 : i32
    return %arg0, %c0_i32, %c0_i32_0 : i32, i32, i32
  }
}

</mosaic_0001>

<bundles_post_ra>
// kernel: forward.1
= control target key start
LH: loop header
LB: loop body
LE: loop exit
PB: predicated region body
PF: predicated region fallthrough
CT: control target
= control target key end

     0   :  { %s20598_s0 = inlined_call_operand.vmem [shape: f32[2,8,32], index: 0, kind: input, shape index: {}]   ;;  %s20599_s1 = inlined_call_operand.vmem [shape: f32[2,1,8], index: 1, kind: input, shape index: {}]   ;;  %s20600_s2 = inlined_call_operand.vmem [shape: f32[1,32], index: 2, kind: input, shape index: {}]   ;;  %s20601_s3 = inlined_call_operand.vmem [shape: f32[1,32], index: 3, kind: input, shape index: {}]   ;;  %s20602_s4 = inlined_call_operand.vmem [shape: f32[8,24,32,4], index: 4, kind: input, shape index: {}]   ;;  %s20603_s5 = inlined_call_operand.vmem [shape: f32[8,24,1,4], index: 5, kind: input, shape index: {}]   ;;  %s20604_s6 = inlined_call_operand.vmem [shape: f32[8,8,4,32], index: 6, kind: input, shape index: {}]   ;;  %s20605_s7 = inlined_call_operand.vmem [shape: f32[8,1,32], index: 7, kind: input, shape index: {}]   ;;  %s20606_s8 = inlined_call_operand.vmem [shape: f32[8,1,32], index: 8, kind: input, shape index: {}]   ;;  %s20607_s9 = inlined_call_operand.vmem [shape: f32[8,1,32], index: 9, kind: input, shape index: {}]   ;;  %s20608_s10 = inlined_call_operand.vmem [shape: f32[8,32,128], index: 10, kind: input, shape index: {}]   ;;  %s20609_s11 = inlined_call_operand.vmem [shape: f32[8,1,128], index: 11, kind: input, shape index: {}]   ;;  %s20610_s12 = inlined_call_operand.vmem [shape: f32[8,128,32], index: 12, kind: input, shape index: {}]   ;;  %s20611_s13 = inlined_call_operand.vmem [shape: f32[8,1,32], index: 13, kind: input, shape index: {}]   ;;  %s20612_s14 = inlined_call_operand.vmem [shape: f32[8,1,32], index: 14, kind: input, shape index: {}]   ;;  %s20613_s15 = inlined_call_operand.vmem [shape: f32[8,1,32], index: 15, kind: input, shape index: {}]   ;;  %s20614_s16 = inlined_call_operand.vmem [shape: f32[32,256], index: 16, kind: input, shape index: {}]   ;;  %s20615_s17 = inlined_call_operand.vmem [shape: f32[1,256], index: 17, kind: input, shape index: {}]   ;;  %s20616_s18 = inlined_call_operand.vmem [shape: f32[256,11], index: 18, kind: input, shape index: {}]   ;;  %s20617_s19 = inlined_call_operand.vmem [shape: f32[1,11], index: 19, kind: input, shape index: {}]   ;;  %s20618_s20 = inlined_call_operand.vmem [shape: f32[2,8,11], index: 20, kind: output, shape index: {}]  }
   0x1   :  { %20620 = sst [smem:[#allocation2_spill]] %s20598_s0 }
   0x2   :  { %20621 = sst [smem:[#allocation3_spill]] %s20599_s1  ;;  %s15644_s1 = smov 0  }
   0x3   :  { %20622 = sst [smem:[#allocation4_spill]] %s20600_s2 }
   0x4   :  { %20623 = sst [smem:[#allocation5_spill]] %s20601_s3 }
   0x5   :  { %20624 = sst [smem:[#allocation6_spill]] %s20602_s4 }
   0x6 LB: > { %s13344_s22 = sadd.s32 4294967295, %s15536_s1   ;;  %p13348_p0 = scmp.ge.s32.totalorder %s15536_s1, 1  ;;  %s15536_s1 = sphi %s15644_s1, %s30_s1  }
   0x7   : > { %p569_p1 = scmp.lt.s32.totalorder %s15536_s1, 3 }
   0x9   : > { %p570_p2 = pnand %p13348_p0, %p569_p1 }
   0xa   : > { %p628_p3 = scmp.lt.s32.totalorder (!%p570_p2), %s13344_s22, 1  ;;  %s20625_s25 = sld [smem:[#allocation3_spill]] (!%p570_p2) }
   0xb   : > { %573 = sbr.rel (%p570_p2) target bundleno = 13798 (0x35e6), region = 100  ;;  %s20626_s28 = sld [smem:[#allocation2_spill]] (!%p570_p2) }
   0xc   : > { %s20627_s0 = sld [smem:[#allocation6_spill]] (!%p570_p2) }
   0xd   : > { %s20628_s26 = sld [smem:[#allocation4_spill]] (!%p570_p2) }
  0x10   : > { %s20631_s22 = smov (!%p628_p3, %s13344_s22), 1  ;;  %vm643_vm0 = vcmask 261120   ;;  %v15538_v2 = vmov 32.0   ;;  %vm1356_vm5 = vcmask 31744   ;;  %vm1584_vm6 = vcmask 64512  }
  0x11   : > { %s13349_s23 = sshll.u32 %s20631_s22, 3  ;;  %s15659_s3 = scalar_lea.vmem %s20625_s25, %s20631_s22  ;;  %15221 = vrcp.f32 %v15538_v2  ;;  %vm1868_vm7 = vcmask 1043456  }
  0x12   : > { %s631_s4 = scalar_lea.vmem %s20626_s28, %s13349_s23  ;;  %v684_v14 = vld [vmem:[%s20627_s0 + $0x18] sm:$0xff]  ;;  %v683_v18 = vld [vmem:[%s20627_s0 + $0x10] sm:$0xff]  ;;  %v682_v22 = vld [vmem:[%s20627_s0 + $0x8] sm:$0xff]  ;;  %s638_s28 = scalar_lea.vmem %s20618_s20, %s13349_s23 }
  0x13   : > { %v639_v0 = vld [vmem:[%s631_s4] sm:$0xff]  ;;  %v696_v15 = vld [vmem:[%s20627_s0 + $0x78] sm:$0xff]  ;;  %888 = vmatpush.msra.mxu2 %v684_v14  ;;  %v695_v19 = vld [vmem:[%s20627_s0 + $0x70] sm:$0xff]  ;;  %s20629_s4 = sld [smem:[#allocation5_spill]] }
  0x14   : > { %v644_v1 = vsel %vm643_vm0, %v639_v0, 0.0  ;;  %v700_v16 = vld [vmem:[%s20627_s0 + $0x98] sm:$0xff]  ;;  %948 = vmatpush.msra.mxu3 %v696_v15  ;;  %v699_v20 = vld [vmem:[%s20627_s0 + $0x90] sm:$0xff]  ;;  %v694_v23 = vld [vmem:[%s20627_s0 + $0x68] sm:$0xff] }
  0x15   : > { %645 = vadd.xlane.f32.xlu0 %v644_v1  ;;  %v704_v17 = vld [vmem:[%s20627_s0 + $0xb8] sm:$0xff]  ;;  %968 = vmatpush.msra.mxu0 %v700_v16  ;;  %v703_v21 = vld [vmem:[%s20627_s0 + $0xb0] sm:$0xff]  ;;  %v698_v24 = vld [vmem:[%s20627_s0 + $0x88] sm:$0xff] }
  0x16   : > { %988 = vmatpush.msra.mxu1 %v704_v17  ;;  %889 = vmatpush.msra.mxu2 %v683_v18  ;;  %v702_v25 = vld [vmem:[%s20627_s0 + $0xa8] sm:$0xff]  ;;  %v681_v26 = vld [vmem:[%s20627_s0] sm:$0xff]  ;;  %v688_v30 = vld [vmem:[%s20627_s0 + $0x38] sm:$0xff] }
  0x17   : > { %v15222_v3 = vpop.eup %15221  ;;  %949 = vmatpush.msra.mxu3 %v695_v19  ;;  %969 = vmatpush.msra.mxu0 %v699_v20  ;;  %v693_v27 = vld [vmem:[%s20627_s0 + $0x60] sm:$0xff]  ;;  %v712_v31 = vld [vmem:[%s20627_s0 + $0xf8] sm:$0xff]  ;;  %v687_v34 = vld [vmem:[%s20627_s0 + $0x30] sm:$0xff] }
  0x18   : > { %v648_v4 = vmul.f32 32.0, %v15222_v3  ;;  %vm652_vm1 = vweird.f32 %v15222_v3  ;;  %989 = vmatpush.msra.mxu1 %v703_v21  ;;  %890 = vmatpush.msra.mxu2 %v682_v22  ;;  %v697_v28 = vld [vmem:[%s20627_s0 + $0x80] sm:$0xff]  ;;  %v716_v32 = vld [vmem:[%s20627_s0 + $0x118] sm:$0xff]  ;;  %v711_v35 = vld [vmem:[%s20627_s0 + $0xf0] sm:$0xff] }
  0x19   : > { %950 = vmatpush.msra.mxu3 %v694_v23  ;;  %970 = vmatpush.msra.mxu0 %v698_v24  ;;  %v701_v29 = vld [vmem:[%s20627_s0 + $0xa0] sm:$0xff]  ;;  %v720_v33 = vld [vmem:[%s20627_s0 + $0x138] sm:$0xff]  ;;  %v715_v37 = vld [vmem:[%s20627_s0 + $0x110] sm:$0xff] }
  0x1a   : > { %v649_v5 = vsub.f32 1.0, %v648_v4  ;;  %990 = vmatpush.msra.mxu1 %v702_v25  ;;  %891 = vmatpush.msra.mxu2 %v681_v26  ;;  %v719_v38 = vld [vmem:[%s20627_s0 + $0x130] sm:$0xff]  ;;  %v686_v39 = vld [vmem:[%s20627_s0 + $0x28] sm:$0xff]  ;;  %v685_v44 = vld [vmem:[%s20627_s0 + $0x20] sm:$0xff] }
  0x1b   : > { %951 = vmatpush.msra.mxu3 %v693_v27  ;;  %971 = vmatpush.msra.mxu0 %v697_v28  ;;  %v710_v41 = vld [vmem:[%s20627_s0 + $0xe8] sm:$0xff]  ;;  %v709_v45 = vld [vmem:[%s20627_s0 + $0xe0] sm:$0xff]  ;;  %v692_v61 = vld [vmem:[%s20627_s0 + $0x58] sm:$0xff] }
  0x1c   : > { %v650_v6 = vmul.f32 %v15222_v3, %v649_v5  ;;  %991 = vmatpush.msra.mxu1 %v701_v29  ;;  %908 = vmatpush.msrb.mxu2 %v688_v30  ;;  %v714_v42 = vld [vmem:[%s20627_s0 + $0x108] sm:$0xff]  ;;  %v713_v47 = vld [vmem:[%s20627_s0 + $0x100] sm:$0xff]  ;;  %v728_v62 = vld [vmem:[%s20627_s0 + $0x178] sm:$0xff] }
  0x1d   : > { %1028 = vmatpush.msrb.mxu3 %v712_v31  ;;  %1048 = vmatpush.msrb.mxu0 %v716_v32  ;;  %v718_v43 = vld [vmem:[%s20627_s0 + $0x128] sm:$0xff]  ;;  %v717_v48 = vld [vmem:[%s20627_s0 + $0x120] sm:$0xff]  ;;  %v732_v63 = vld [vmem:[%s20627_s0 + $0x198] sm:$0xff] }
  0x1e   : > { %v651_v7 = vadd.f32 %v15222_v3, %v650_v6  ;;  %1068 = vmatpush.msrb.mxu1 %v720_v33  ;;  %909 = vmatpush.msrb.mxu2 %v687_v34  ;;  %v14970_v55 = vld [vmem:[%s20628_s26] ss:$0 sm:$0xff]  ;;  %v691_v1 = vld [vmem:[%s20627_s0 + $0x50] sm:$0xff]  ;;  %v690_v5 = vld [vmem:[%s20627_s0 + $0x48] sm:$0xff] }
  0x1f   : > { %1029 = vmatpush.msrb.mxu3 %v711_v35  ;;  %1049 = vmatpush.msrb.mxu0 %v715_v37  ;;  %v14971_v57 = vld [vmem:[%s20629_s4] ss:$0 sm:$0xff]  ;;  %v727_v2 = vld [vmem:[%s20627_s0 + $0x170] sm:$0xff]  ;;  %v726_v6 = vld [vmem:[%s20627_s0 + $0x168] sm:$0xff] }
  0x20   : > { %v15667_v8 = vsel %vm652_vm1, %v15222_v3, %v651_v7  ;;  %1069 = vmatpush.msrb.mxu1 %v719_v38  ;;  %910 = vmatpush.msrb.mxu2 %v686_v39  ;;  %v731_v3 = vld [vmem:[%s20627_s0 + $0x190] sm:$0xff]  ;;  %v730_v7 = vld [vmem:[%s20627_s0 + $0x188] sm:$0xff]  ;;  %v708_v14 = vld [vmem:[%s20627_s0 + $0xd8] sm:$0xff] }
  0x21   : > { %1030 = vmatpush.msrb.mxu3 %v710_v41  ;;  %1050 = vmatpush.msrb.mxu0 %v714_v42  ;;  %v735_v4 = vld [vmem:[%s20627_s0 + $0x1b0] sm:$0xff]  ;;  %v744_v15 = vld [vmem:[%s20627_s0 + $0x1f8] sm:$0xff]  ;;  %v706_v22 = vld [vmem:[%s20627_s0 + $0xc8] sm:$0xff] }
  0x22   : > { %1070 = vmatpush.msrb.mxu1 %v718_v43  ;;  %911 = vmatpush.msrb.mxu2 %v685_v44  ;;  %v748_v16 = vld [vmem:[%s20627_s0 + $0x218] sm:$0xff]  ;;  %v707_v18 = vld [vmem:[%s20627_s0 + $0xd0] sm:$0xff]  ;;  %v742_v23 = vld [vmem:[%s20627_s0 + $0x1e8] sm:$0xff] }
  0x23   : > { %1031 = vmatpush.msrb.mxu3 %v709_v45  ;;  %1051 = vmatpush.msrb.mxu0 %v713_v47  ;;  %v752_v17 = vld [vmem:[%s20627_s0 + $0x238] sm:$0xff]  ;;  %v743_v19 = vld [vmem:[%s20627_s0 + $0x1f0] sm:$0xff]  ;;  %v746_v24 = vld [vmem:[%s20627_s0 + $0x208] sm:$0xff] }
  0x24   : > { %1071 = vmatpush.msrb.mxu1 %v717_v48  ;;  %v747_v20 = vld [vmem:[%s20627_s0 + $0x210] sm:$0xff]  ;;  %v750_v25 = vld [vmem:[%s20627_s0 + $0x228] sm:$0xff]  ;;  %v705_v26 = vld [vmem:[%s20627_s0 + $0xc0] sm:$0xff] }
  0x25   : > { %v751_v21 = vld [vmem:[%s20627_s0 + $0x230] sm:$0xff]  ;;  %v741_v27 = vld [vmem:[%s20627_s0 + $0x1e0] sm:$0xff]  ;;  %v724_v30 = vld [vmem:[%s20627_s0 + $0x158] sm:$0xff] }
  0x26   : > { %v745_v28 = vld [vmem:[%s20627_s0 + $0x200] sm:$0xff]  ;;  %v760_v31 = vld [vmem:[%s20627_s0 + $0x278] sm:$0xff]  ;;  %v723_v34 = vld [vmem:[%s20627_s0 + $0x150] sm:$0xff] }
  0x27   : > { %v749_v29 = vld [vmem:[%s20627_s0 + $0x220] sm:$0xff]  ;;  %v764_v32 = vld [vmem:[%s20627_s0 + $0x298] sm:$0xff]  ;;  %v759_v35 = vld [vmem:[%s20627_s0 + $0x270] sm:$0xff] }
  0x28   : > { %v768_v33 = vld [vmem:[%s20627_s0 + $0x2b8] sm:$0xff]  ;;  %v767_v37 = vld [vmem:[%s20627_s0 + $0x2b0] sm:$0xff]  ;;  %v722_v38 = vld [vmem:[%s20627_s0 + $0x148] sm:$0xff] }
  0x29   : > { %v758_v39 = vld [vmem:[%s20627_s0 + $0x268] sm:$0xff]  ;;  %v721_v42 = vld [vmem:[%s20627_s0 + $0x140] sm:$0xff]  ;;  %v776_v47 = vld [vmem:[%s20627_s0 + $0x2f8] sm:$0xff] }
  0x2a   : > { %v766_v41 = vld [vmem:[%s20627_s0 + $0x2a8] sm:$0xff]  ;;  %v757_v43 = vld [vmem:[%s20627_s0 + $0x260] sm:$0xff]  ;;  %v739_v48 = vld [vmem:[%s20627_s0 + $0x1d0] sm:$0xff] }
  0x2b   : > { %v761_v44 = vld [vmem:[%s20627_s0 + $0x280] sm:$0xff] }
  0x2c   : > { %v765_v45 = vld [vmem:[%s20627_s0 + $0x2a0] sm:$0xff] }
  0x88   : > { %v646_v9 = vpop.xlane.xlu0 %645 }
  0x89   : > { %v654_v10 = vmul.f32 %v15667_v8, %v646_v9  ;;  %v734_v9 = vld [vmem:[%s20627_s0 + $0x1a8] sm:$0xff] }
  0x8b   : > { %v15670_v11 = vsub.f32 %v639_v0, %v654_v10  ;;  %v736_v0 = vld [vmem:[%s20627_s0 + $0x1b8] sm:$0xff]  ;;  %v689_v10 = vld [vmem:[%s20627_s0 + $0x40] sm:$0xff] }
  0x8d   : > { %v656_v12 = vmul.f32 %v15670_v11, %v15670_v11 }
  0x8f   : > { %v657_v13 = vsel %vm643_vm0, %v656_v12, 0.0  ;;  %v729_v12 = vld [vmem:[%s20627_s0 + $0x180] sm:$0xff] }
  0x90   : > { %658 = vadd.xlane.f32.xlu0 %v657_v13  ;;  %v733_v13 = vld [vmem:[%s20627_s0 + $0x1a0] sm:$0xff] }
 0x103   : > { %v659_v36 = vpop.xlane.xlu0 %658 }
 0x104   : > { %v660_v40 = vmul.f32 %v659_v36, %v15667_v8  ;;  %v763_v36 = vld [vmem:[%s20627_s0 + $0x290] sm:$0xff] }
 0x106   : > { %v661_v46 = vadd.f32 1e-12, %v660_v40  ;;  %v762_v40 = vld [vmem:[%s20627_s0 + $0x288] sm:$0xff] }
 0x108   : > { %15223 = vrsqrt.f32 %v661_v46  ;;  %vm668_vm3 = vweird.f32 %v661_v46 }
 0x10e   : > { %v15224_v49 = vpop.eup %15223 }
 0x10f   : > { %v663_v50 = vmul.f32 %v15224_v49, %v661_v46  ;;  %vm669_vm2 = vweird.f32 %v15224_v49  ;;  %v740_v46 = vld [vmem:[%s20627_s0 + $0x1d8] sm:$0xff] }
 0x110   : > { %vm670_vm4 = vmor %vm668_vm3, %vm669_vm2 }
 0x111   : > { %v664_v51 = vmul.f32 %v15224_v49, %v663_v50  ;;  %v738_v50 = vld [vmem:[%s20627_s0 + $0x1c8] sm:$0xff] }
 0x113   : > { %v665_v52 = vmul.f32 0.5, %v664_v51  ;;  %v774_v51 = vld [vmem:[%s20627_s0 + $0x2e8] sm:$0xff] }
 0x115   : > { %v666_v53 = vsub.f32 1.5, %v665_v52  ;;  %v737_v52 = vld [vmem:[%s20627_s0 + $0x1c0] sm:$0xff] }
 0x117   : > { %v667_v54 = vmul.f32 %v15224_v49, %v666_v53  ;;  %v773_v53 = vld [vmem:[%s20627_s0 + $0x2e0] sm:$0xff] }
 0x119   : > { %v671_v56 = vsel %vm670_vm4, %v15224_v49, %v667_v54  ;;  %v775_v49 = vld [vmem:[%s20627_s0 + $0x2f0] sm:$0xff]  ;;  %v756_v54 = vld [vmem:[%s20627_s0 + $0x258] sm:$0xff] }
 0x11a   : > { %v672_v58 = vmul.f32 %v671_v56, %v15670_v11  ;;  %v725_v11 = vld [vmem:[%s20627_s0 + $0x160] sm:$0xff]  ;;  %v754_v56 = vld [vmem:[%s20627_s0 + $0x248] sm:$0xff] }
 0x11c   : > { %v676_v59 = vmul.f32 %v14970_v55, %v672_v58  ;;  %v755_v55 = vld [vmem:[%s20627_s0 + $0x250] sm:$0xff]  ;;  %v772_v58 = vld [vmem:[%s20627_s0 + $0x2d8] sm:$0xff] }
 0x11e   : > { %v15779_v60 = vadd.f32 %v14971_v57, %v676_v59  ;;  %v753_v57 = vld [vmem:[%s20627_s0 + $0x240] sm:$0xff]  ;;  %v771_v59 = vld [vmem:[%s20627_s0 + $0x2d0] sm:$0xff] }
 0x120   : > { %13351 = vmatmul.msk.f32.vlgmr.msra.gmra.mxu2 %vm643_vm0, %v15779_v60  ;;  %13354 = vmatmul.msk.f32.vlgmr.msra.gmra.mxu3 %vm643_vm0, %v15779_v60 }
 0x121   : > { %13355 = vmatmul.msk.f32.vlgmr.msra.gmra.mxu0 %vm643_vm0, %v15779_v60  ;;  %13356 = vmatmul.msk.f32.vlgmr.msra.gmra.mxu1 %vm643_vm0, %v15779_v60 }
 0x122   : > { %928 = vmatpush.msra.mxu2 %v692_v61  ;;  %1108 = vmatpush.msra.mxu3 %v728_v62  ;;  %v770_v61 = vld [vmem:[%s20627_s0 + $0x2c8] sm:$0xff]  ;;  %v769_v62 = vld [vmem:[%s20627_s0 + $0x2c0] sm:$0xff] }
 0x123   : > { %1128 = vmatpush.msra.mxu0 %v732_v63  ;;  %1148 = vmatpush.msra.mxu1 %v736_v0 }
 0x124   : > { %929 = vmatpush.msra.mxu2 %v691_v1  ;;  %1109 = vmatpush.msra.mxu3 %v727_v2 }
 0x125   : > { %1129 = vmatpush.msra.mxu0 %v731_v3  ;;  %1149 = vmatpush.msra.mxu1 %v735_v4  ;;  %v14976_v3 = vld [vmem:[%s20603_s5 + $0x8] ss:$0 sm:$0xff]  ;;  %v14977_v4 = vld [vmem:[%s20603_s5 + $0x9] ss:$0 sm:$0xff] }
 0x126   : > { %930 = vmatpush.msra.mxu2 %v690_v5  ;;  %1110 = vmatpush.msra.mxu3 %v726_v6  ;;  %v14974_v5 = vld [vmem:[%s20603_s5] ss:$0 sm:$0xff] }
 0x127   : > { %1130 = vmatpush.msra.mxu0 %v730_v7  ;;  %1150 = vmatpush.msra.mxu1 %v734_v9 }
 0x128   : > { %13352 = vmatmul.msk.f32.vlgmr.msrb.gmra.mxu2 %vm643_vm0, %v15779_v60  ;;  %13358 = vmatmul.msk.f32.vlgmr.msrb.gmra.mxu3 %vm643_vm0, %v15779_v60 }
 0x129   : > { %13359 = vmatmul.msk.f32.vlgmr.msrb.gmra.mxu0 %vm643_vm0, %v15779_v60  ;;  %13360 = vmatmul.msk.f32.vlgmr.msrb.gmra.mxu1 %vm643_vm0, %v15779_v60 }
 0x12a   : > { %931 = vmatpush.msra.mxu2 %v689_v10  ;;  %1111 = vmatpush.msra.mxu3 %v725_v11  ;;  %v14978_v11 = vld [vmem:[%s20603_s5 + $0x1] ss:$0 sm:$0xff] }
 0x12b   : > { %1131 = vmatpush.msra.mxu0 %v729_v12  ;;  %1151 = vmatpush.msra.mxu1 %v733_v13 }
 0x12c   : > { %1008 = vmatpush.msrb.mxu2 %v708_v14  ;;  %1188 = vmatpush.msrb.mxu3 %v744_v15  ;;  %v14980_v15 = vld [vmem:[%s20603_s5 + $0xc] ss:$0 sm:$0xff] }
 0x12d   : > { %1208 = vmatpush.msrb.mxu0 %v748_v16  ;;  %1228 = vmatpush.msrb.mxu1 %v752_v17  ;;  %v14981_v16 = vld [vmem:[%s20603_s5 + $0xd] ss:$0 sm:$0xff] }
 0x12e   : > { %1009 = vmatpush.msrb.mxu2 %v707_v18  ;;  %1189 = vmatpush.msrb.mxu3 %v743_v19  ;;  %v14972_v18 = vld [vmem:[%s20603_s5 + $0x4] ss:$0 sm:$0xff] }
 0x12f   : > { %1209 = vmatpush.msrb.mxu0 %v747_v20  ;;  %1229 = vmatpush.msrb.mxu1 %v751_v21 }
 0x130   : > { %13353 = vmatmul.msk.f32.vlgmr.msra.gmra.mxu2 %vm643_vm0, %v15779_v60  ;;  %13362 = vmatmul.msk.f32.vlgmr.msra.gmra.mxu3 %vm643_vm0, %v15779_v60 }
 0x131   : > { %13363 = vmatmul.msk.f32.vlgmr.msra.gmra.mxu0 %vm643_vm0, %v15779_v60  ;;  %13364 = vmatmul.msk.f32.vlgmr.msra.gmra.mxu1 %vm643_vm0, %v15779_v60 }
 0x132   : > { %1010 = vmatpush.msrb.mxu2 %v706_v22  ;;  %1190 = vmatpush.msrb.mxu3 %v742_v23  ;;  %v14973_v23 = vld [vmem:[%s20603_s5 + $0x5] ss:$0 sm:$0xff] }
 0x133   : > { %1210 = vmatpush.msrb.mxu0 %v746_v24  ;;  %1230 = vmatpush.msrb.mxu1 %v750_v25  ;;  %v14983_v24 = vld [vmem:[%s20603_s5 + $0xb] ss:$0 sm:$0xff] }
 0x134   : > { %1011 = vmatpush.msrb.mxu2 %v705_v26  ;;  %1191 = vmatpush.msrb.mxu3 %v741_v27 }
 0x135   : > { %1211 = vmatpush.msrb.mxu0 %v745_v28  ;;  %1231 = vmatpush.msrb.mxu1 %v749_v29  ;;  %v14984_v28 = vld [vmem:[%s20603_s5 + $0x10] ss:$0 sm:$0xff]  ;;  %v14985_v29 = vld [vmem:[%s20603_s5 + $0x11] ss:$0 sm:$0xff] }
 0x136   : > { %1088 = vmatpush.msra.mxu2 %v724_v30  ;;  %1268 = vmatpush.msra.mxu3 %v760_v31  ;;  %v14975_v31 = vld [vmem:[%s20603_s5 + $0x3] ss:$0 sm:$0xff] }
 0x137   : > { %1288 = vmatpush.msra.mxu0 %v764_v32  ;;  %1308 = vmatpush.msra.mxu1 %v768_v33 }
 0x138   : > { %13357 = vmatmul.msk.f32.vlgmr.msrb.gmra.mxu2 %vm643_vm0, %v15779_v60  ;;  %13366 = vmatmul.msk.f32.vlgmr.msrb.gmra.mxu3 %vm643_vm0, %v15779_v60 }
 0x139   : > { %13367 = vmatmul.msk.f32.vlgmr.msrb.gmra.mxu0 %vm643_vm0, %v15779_v60  ;;  %13368 = vmatmul.msk.f32.vlgmr.msrb.gmra.mxu1 %vm643_vm0, %v15779_v60 }
 0x13a   : > { %1089 = vmatpush.msra.mxu2 %v723_v34  ;;  %1269 = vmatpush.msra.mxu3 %v759_v35 }
 0x13b   : > { %1289 = vmatpush.msra.mxu0 %v763_v36  ;;  %1309 = vmatpush.msra.mxu1 %v767_v37 }
 0x13c   : > { %1090 = vmatpush.msra.mxu2 %v722_v38  ;;  %1270 = vmatpush.msra.mxu3 %v758_v39  ;;  %v14987_v38 = vld [vmem:[%s20603_s5 + $0xf] ss:$0 sm:$0xff] }
 0x13d   : > { %1290 = vmatpush.msra.mxu0 %v762_v40  ;;  %1310 = vmatpush.msra.mxu1 %v766_v41  ;;  %v14988_v41 = vld [vmem:[%s20603_s5 + $0x14] ss:$0 sm:$0xff] }
 0x13e   : > { %1091 = vmatpush.msra.mxu2 %v721_v42  ;;  %1271 = vmatpush.msra.mxu3 %v757_v43  ;;  %v14989_v42 = vld [vmem:[%s20603_s5 + $0x15] ss:$0 sm:$0xff]  ;;  %v14979_v43 = vld [vmem:[%s20603_s5 + $0x7] ss:$0 sm:$0xff] }
 0x13f   : > { %1291 = vmatpush.msra.mxu0 %v761_v44  ;;  %1311 = vmatpush.msra.mxu1 %v765_v45 }
 0x140   : > { %13361 = vmatmul.msk.f32.vlgmr.msra.gmra.mxu2 %vm643_vm0, %v15779_v60  ;;  %13370 = vmatmul.msk.f32.vlgmr.msra.gmra.mxu3 %vm643_vm0, %v15779_v60 }
 0x141   : > { %13371 = vmatmul.msk.f32.vlgmr.msra.gmra.mxu0 %vm643_vm0, %v15779_v60  ;;  %13372 = vmatmul.msk.f32.vlgmr.msra.gmra.mxu1 %vm643_vm0, %v15779_v60 }
 0x142   : > { %1168 = vmatpush.msrb.mxu2 %v740_v46  ;;  %1348 = vmatpush.msrb.mxu3 %v776_v47 }
 0x144   : > { %1169 = vmatpush.msrb.mxu2 %v739_v48  ;;  %1349 = vmatpush.msrb.mxu3 %v775_v49 }
 0x146   : > { %1170 = vmatpush.msrb.mxu2 %v738_v50  ;;  %1350 = vmatpush.msrb.mxu3 %v774_v51  ;;  %v14990_v50 = vld [vmem:[%s20603_s5 + $0xa] ss:$0 sm:$0xff]  ;;  %v14991_v51 = vld [vmem:[%s20603_s5 + $0x13] ss:$0 sm:$0xff] }
 0x148   : > { %1171 = vmatpush.msrb.mxu2 %v737_v52  ;;  %1351 = vmatpush.msrb.mxu3 %v773_v53  ;;  %v14982_v52 = vld [vmem:[%s20603_s5 + $0x2] ss:$0 sm:$0xff] }
 0x149   : > { %13365 = vmatmul.msk.f32.vlgmr.msrb.gmra.mxu2 %vm643_vm0, %v15779_v60  ;;  %13374 = vmatmul.msk.f32.vlgmr.msrb.gmra.mxu3 %vm643_vm0, %v15779_v60 }
 0x14a   : > { %1248 = vmatpush.msra.mxu2 %v756_v54 }
 0x14c   : > { %1249 = vmatpush.msra.mxu2 %v755_v55 }
 0x14e   : > { %1250 = vmatpush.msra.mxu2 %v754_v56 }
 0x150   : > { %1251 = vmatpush.msra.mxu2 %v753_v57 }
 0x151   : > { %13369 = vmatmul.msk.f32.vlgmr.msra.gmra.mxu2 %vm643_vm0, %v15779_v60 }
 0x152   : > { %1328 = vmatpush.msrb.mxu2 %v772_v58  ;;  %v14992_v58 = vld [vmem:[%s20603_s5 + $0xe] ss:$0 sm:$0xff] }
 0x154   : > { %1329 = vmatpush.msrb.mxu2 %v771_v59  ;;  %v14993_v59 = vld [vmem:[%s20603_s5 + $0x17] ss:$0 sm:$0xff] }
 0x156   : > { %1330 = vmatpush.msrb.mxu2 %v770_v61  ;;  %v14986_v61 = vld [vmem:[%s20603_s5 + $0x6] ss:$0 sm:$0xff] }
 0x158   : > { %1331 = vmatpush.msrb.mxu2 %v769_v62 }
 0x159   : > { %13373 = vmatmul.msk.f32.vlgmr.msrb.gmra.mxu2 %vm643_vm0, %v15779_v60 }
 0x19e   : > { %v973_v63 = vpop.f32.mrf.mxu0  ;;  %v993_v0 = vpop.f32.mrf.mxu1 }
 0x19f   : > { %v974_v25 = vadd.f32 %v14972_v18, %v973_v63  ;;  %v994_v30 = vadd.f32 %v14973_v23, %v993_v0 }
 0x1a3   : > { %v893_v1 = vpop.f32.mrf.mxu2  ;;  %v953_v2 = vpop.f32.mrf.mxu3 }
 0x1a4   : > { %v894_v12 = vadd.f32 %v14974_v5, %v893_v1  ;;  %v954_v37 = vadd.f32 %v14975_v31, %v953_v2 }
 0x1a6   : > { %v1053_v6 = vpop.f32.mrf.mxu0  ;;  %v1073_v7 = vpop.f32.mrf.mxu1 }
 0x1a7   : > { %v1054_v9 = vadd.f32 %v14976_v3, %v1053_v6  ;;  %v1074_v10 = vadd.f32 %v14977_v4, %v1073_v7  ;;  %v14994_v3 = vld [vmem:[%s20603_s5 + $0x12] ss:$0 sm:$0xff]  ;;  %v14995_v6 = vld [vmem:[%s20603_s5 + $0x16] ss:$0 sm:$0xff] }
 0x1a9   : > { %13375 = vmatpush.xpose.msk.msrb.mxu0 %vm1356_vm5, %v1054_v9  ;;  %13377 = vmatpush.xpose.msk.msrb.mxu1 %vm1356_vm5, %v1074_v10  ;;  %v14969_v10 = vld [vmem:[%s15659_s3] ss:$0 sm:$0xff] }
 0x1ab   : > { %v913_v13 = vpop.f32.mrf.mxu2  ;;  %v1033_v14 = vpop.f32.mrf.mxu3 }
 0x1ac   : > { %v914_v17 = vadd.f32 %v14978_v11, %v913_v13  ;;  %13376 = vmatmul.msk.f32.vlgmr.msrb.gmra.mxu0 %vm1356_vm5, %v894_v12  ;;  %v1034_v49 = vadd.f32 %v14979_v43, %v1033_v14 }
 0x1ae   : > { %v1133_v19 = vpop.f32.mrf.mxu0  ;;  %v1153_v20 = vpop.f32.mrf.mxu1  ;;  %13378 = vmatmul.msk.f32.vlgmr.msrb.gmra.mxu1 %vm1356_vm5, %v914_v17 }
 0x1af   : > { %v1134_v21 = vadd.f32 %v14980_v15, %v1133_v19  ;;  %v1154_v22 = vadd.f32 %v14981_v16, %v1153_v20 }
 0x1b1   : > { %13383 = vmatpush.xpose.msk.msra.mxu0 %vm1356_vm5, %v1134_v21  ;;  %13385 = vmatpush.xpose.msk.msra.mxu1 %vm1356_vm5, %v1154_v22 }
 0x1b3   : > { %v933_v26 = vpop.f32.mrf.mxu2  ;;  %v1113_v27 = vpop.f32.mrf.mxu3 }
 0x1b4   : > { %v1114_v32 = vadd.f32 %v14983_v24, %v1113_v27  ;;  %13384 = vmatmul.msk.f32.vlgmr.msra.gmra.mxu0 %vm1356_vm5, %v974_v25  ;;  %v934_v57 = vadd.f32 %v14982_v52, %v933_v26 }
 0x1b6   : > { %v1213_v33 = vpop.f32.mrf.mxu0  ;;  %v1233_v34 = vpop.f32.mrf.mxu1  ;;  %13381 = vmatpush.xpose.msk.msra.mxu3 %vm1356_vm5, %v1114_v32  ;;  %13386 = vmatmul.msk.f32.vlgmr.msra.gmra.mxu1 %vm1356_vm5, %v994_v30 }
 0x1b7   : > { %v1214_v35 = vadd.f32 %v14984_v28, %v1213_v33  ;;  %v1234_v36 = vadd.f32 %v14985_v29, %v1233_v34 }
 0x1b9   : > { %1691 = vmatpush.msrb.mxu0 %v1214_v35  ;;  %1714 = vmatpush.msrb.mxu1 %v1234_v36 }
 0x1ba   : > { %13382 = vmatmul.msk.f32.vlgmr.msra.gmra.mxu3 %vm1356_vm5, %v954_v37 }
 0x1bb   : > { %v1013_v39 = vpop.f32.mrf.mxu2  ;;  %v1193_v40 = vpop.f32.mrf.mxu3 }
 0x1bc   : > { %v1194_v44 = vadd.f32 %v14987_v38, %v1193_v40  ;;  %v1014_v2 = vadd.f32 %v14986_v61, %v1013_v39 }
 0x1be   : > { %v1293_v45 = vpop.f32.mrf.mxu0  ;;  %v1313_v46 = vpop.f32.mrf.mxu1  ;;  %13389 = vmatpush.xpose.msk.msrb.mxu3 %vm1356_vm5, %v1194_v44 }
 0x1bf   : > { %v1294_v47 = vadd.f32 %v14988_v41, %v1293_v45  ;;  %v1314_v48 = vadd.f32 %v14989_v42, %v1313_v46 }
 0x1c1   : > { %1783 = vmatpush.msra.mxu0 %v1294_v47  ;;  %1806 = vmatpush.msra.mxu1 %v1314_v48 }
 0x1c2   : > { %13390 = vmatmul.msk.f32.vlgmr.msrb.gmra.mxu3 %vm1356_vm5, %v1034_v49 }
 0x1c3   : > { %v1093_v53 = vpop.f32.mrf.mxu2  ;;  %v1273_v54 = vpop.f32.mrf.mxu3 }
 0x1c4   : > { %v1094_v55 = vadd.f32 %v14990_v50, %v1093_v53  ;;  %v1274_v56 = vadd.f32 %v14991_v51, %v1273_v54 }
 0x1c6   : > { %13379 = vmatpush.xpose.msk.msra.mxu2 %vm1356_vm5, %v1094_v55  ;;  %1760 = vmatpush.msra.mxu3 %v1274_v56 }
 0x1c9   : > { %13380 = vmatmul.msk.f32.vlgmr.msra.gmra.mxu2 %vm1356_vm5, %v934_v57 }
 0x1cc   : > { %v1173_v62 = vpop.f32.mrf.mxu2  ;;  %v1353_v63 = vpop.f32.mrf.mxu3 }
 0x1cd   : > { %v1174_v0 = vadd.f32 %v14992_v58, %v1173_v62  ;;  %v1354_v1 = vadd.f32 %v14993_v59, %v1353_v63 }
 0x1cf   : > { %13387 = vmatpush.xpose.msk.msrb.mxu2 %vm1356_vm5, %v1174_v0  ;;  %1852 = vmatpush.msrb.mxu3 %v1354_v1 }
 0x1d2   : > { %13388 = vmatmul.msk.f32.vlgmr.msrb.gmra.mxu2 %vm1356_vm5, %v1014_v2 }
 0x1d4   : > { %v1253_v4 = vpop.f32.mrf.mxu2 }
 0x1d5   : > { %v1254_v5 = vadd.f32 %v14994_v3, %v1253_v4 }
 0x1d7   : > { %1737 = vmatpush.msra.mxu2 %v1254_v5 }
 0x1dc   : > { %v1333_v7 = vpop.f32.mrf.mxu2 }
 0x1dd   : > { %v1334_v9 = vadd.f32 %v14995_v6, %v1333_v7 }
 0x1df   : > { %1829 = vmatpush.msrb.mxu2 %v1334_v9 }
 0x229   : > { %v1380_v11 = vpop.f32.mrf.mxu0 }
 0x22a   : > { %v1565_v12 = vmul.f32 0.5, %v1380_v11 }
 0x22b   : > { %v1406_v13 = vpop.f32.mrf.mxu1 }
 0x22c   : > { %v1566_v14 = vmul.f32 0.5, %v1406_v13  ;;  %v1576_v15 = vadd.f32 %v14969_v10, %v1565_v12 }
 0x22e   : > { %v1585_v16 = vsel %vm1584_vm6, %v1576_v15, -inf  ;;  %v1577_v17 = vadd.f32 %v14969_v10, %v1566_v14 }
 0x22f   : > { %1586 = vmax.xlane.f32.xlu2 %v1585_v16 }
 0x230   : > { %v1588_v18 = vsel %vm1584_vm6, %v1577_v17, -inf }
 0x231   : > { %1589 = vmax.xlane.f32.xlu0 %v1588_v18  ;;  %v1484_v33 = vpop.f32.mrf.mxu0 }
 0x232   : > { %v1569_v37 = vmul.f32 0.5, %v1484_v33 }
 0x233   : > { %v1510_v19 = vpop.f32.mrf.mxu1 }
 0x234   : > { %v1570_v20 = vmul.f32 0.5, %v1510_v19  ;;  %v1580_v40 = vadd.f32 %v14969_v10, %v1569_v37 }
 0x236   : > { %v16112_v21 = vadd.f32 %v14969_v10, %v1570_v20  ;;  %v1597_v42 = vsel %vm1584_vm6, %v1580_v40, -inf }
 0x238   : > { %v1600_v22 = vsel %vm1584_vm6, %v16112_v21, -inf }
 0x239   : > { %1601 = vmax.xlane.f32.xlu0 %v1600_v22 }
 0x23d   : > { %v1458_v23 = vpop.f32.mrf.mxu3 }
 0x23e   : > { %v1568_v27 = vmul.f32 0.5, %v1458_v23 }
 0x240   : > { %v1579_v30 = vadd.f32 %v14969_v10, %v1568_v27 }
 0x242   : > { %v1594_v36 = vsel %vm1584_vm6, %v1579_v30, -inf }
 0x245   : > { %v1562_v31 = vpop.f32.mrf.mxu3 }
 0x246   : > { %v1572_v35 = vmul.f32 0.5, %v1562_v31 }
 0x248   : > { %v1583_v39 = vadd.f32 %v14969_v10, %v1572_v35 }
 0x24a   : > { %v1606_v41 = vsel %vm1584_vm6, %v1583_v39, -inf }
 0x24c   : > { %v1432_v24 = vpop.f32.mrf.mxu2 }
 0x24d   : > { %v1567_v25 = vmul.f32 0.5, %v1432_v24 }
 0x24f   : > { %v1578_v26 = vadd.f32 %v14969_v10, %v1567_v25 }
 0x251   : > { %v1591_v28 = vsel %vm1584_vm6, %v1578_v26, -inf }
 0x252   : > { %1592 = vmax.xlane.f32.xlu1 %v1591_v28 }
 0x255   : > { %v1536_v29 = vpop.f32.mrf.mxu2 }
 0x256   : > { %v1571_v32 = vmul.f32 0.5, %v1536_v29 }
 0x258   : > { %v1582_v34 = vadd.f32 %v14969_v10, %v1571_v32 }
 0x25a   : > { %1595 = vmax.xlane.f32.xlu1 %v1594_v36  ;;  %v1603_v38 = vsel %vm1584_vm6, %v1582_v34, -inf }
 0x25b   : > { %1604 = vmax.xlane.f32.xlu2 %v1603_v38 }
 0x262   : > { %1607 = vmax.xlane.f32.xlu1 %v1606_v41 }
 0x263   : > { %1598 = vmax.xlane.f32.xlu2 %v1597_v42 }
 0x2a2   : > { %v1587_v43 = vpop.xlane.xlu2 %1586 }
 0x2a3   : > { %v1609_v44 = vsub.f32 %v1576_v15, %v1587_v43 }
 0x2a4   : > { %v1590_v51 = vpop.xlane.xlu0 %1589 }
 0x2a5   : > { %v1617_v45 = vmul.f32 1.442695, %v1609_v44  ;;  %v1610_v57 = vsub.f32 %v1577_v17, %v1590_v51  ;;  %v1861_v51 = vld [vmem:[%s20604_s6 + $0x10] sm:$0xf] }
 0x2a7   : > { %15225 = vpow2.f32 %v1617_v45  ;;  %v1619_v62 = vmul.f32 1.442695, %v1610_v57  ;;  %v1857_v45 = vld [vmem:[%s20604_s6] sm:$0xf] }
 0x2ac   : > { %v1602_v63 = vpop.xlane.xlu0 %1601 }
 0x2ad   : > { %v15226_v46 = vpop.eup %15225  ;;  %v1614_v5 = vsub.f32 %v16112_v21, %v1602_v63 }
 0x2ae   : > { %v1633_v47 = vsel %vm1584_vm6, %v15226_v46, 0.0 }
 0x2af   : > { %1634 = vadd.xlane.f32.xlu0 %v1633_v47  ;;  %v1627_v12 = vmul.f32 1.442695, %v1614_v5  ;;  %v1859_v47 = vld [vmem:[%s20604_s6 + $0x8] sm:$0xf] }
 0x2c5   : > { %v1593_v48 = vpop.xlane.xlu1 %1592 }
 0x2c6   : > { %v1611_v49 = vsub.f32 %v1578_v26, %v1593_v48  ;;  %v1860_v48 = vld [vmem:[%s20604_s6 + $0xc] sm:$0xf] }
 0x2c8   : > { %v1621_v50 = vmul.f32 1.442695, %v1611_v49  ;;  %v1858_v49 = vld [vmem:[%s20604_s6 + $0x4] sm:$0xf] }
 0x2ca   : > { %15227 = vpow2.f32 %v1621_v50  ;;  %v1863_v50 = vld [vmem:[%s20604_s6 + $0x18] sm:$0xf] }
 0x2cd   : > { %v1596_v52 = vpop.xlane.xlu1 %1595 }
 0x2ce   : > { %v1612_v53 = vsub.f32 %v1579_v30, %v1596_v52  ;;  %v1605_v54 = vpop.xlane.xlu2 %1604  ;;  %v1864_v52 = vld [vmem:[%s20604_s6 + $0x1c] sm:$0xf] }
 0x2cf   : > { %v1615_v55 = vsub.f32 %v1582_v34, %v1605_v54 }
 0x2d0   : > { %v15228_v56 = vpop.eup %15227  ;;  %v1623_v58 = vmul.f32 1.442695, %v1612_v53  ;;  %v1862_v53 = vld [vmem:[%s20604_s6 + $0x14] sm:$0xf] }
 0x2d1   : > { %v1629_v59 = vmul.f32 1.442695, %v1615_v55  ;;  %v1639_v61 = vsel %vm1584_vm6, %v15228_v56, 0.0 }
 0x2d2   : > { %15229 = vpow2.f32 %v1623_v58  ;;  %1640 = vadd.xlane.f32.xlu1 %v1639_v61 }
 0x2d3   : > { %15231 = vpow2.f32 %v1629_v59 }
 0x2d4   : > { %15233 = vpow2.f32 %v1619_v62 }
 0x2d5   : > { %v1608_v0 = vpop.xlane.xlu1 %1607 }
 0x2d6   : > { %v1616_v1 = vsub.f32 %v1583_v39, %v1608_v0  ;;  %v1599_v2 = vpop.xlane.xlu2 %1598 }
 0x2d7   : > { %v1613_v3 = vsub.f32 %v1580_v40, %v1599_v2 }
 0x2d8   : > { %v15230_v4 = vpop.eup %15229  ;;  %v1631_v6 = vmul.f32 1.442695, %v1616_v1 }
 0x2d9   : > { %v15232_v7 = vpop.eup %15231  ;;  %v1625_v9 = vmul.f32 1.442695, %v1613_v3  ;;  %v1642_v10 = vsel %vm1584_vm6, %v15230_v4, 0.0 }
 0x2da   : > { %15235 = vpow2.f32 %v1631_v6  ;;  %v1651_v11 = vsel %vm1584_vm6, %v15232_v7, 0.0  ;;  %1643 = vadd.xlane.f32.xlu2 %v1642_v10  ;;  %v15234_v13 = vpop.eup %15233 }
 0x2db   : > { %15237 = vpow2.f32 %v1625_v9  ;;  %1652 = vadd.xlane.f32.xlu1 %v1651_v11  ;;  %v1636_v17 = vsel %vm1584_vm6, %v15234_v13, 0.0 }
 0x2dc   : > { %15239 = vpow2.f32 %v1627_v12 }
 0x2e0   : > { %v15236_v14 = vpop.eup %15235 }
 0x2e1   : > { %v15238_v15 = vpop.eup %15237  ;;  %v1654_v16 = vsel %vm1584_vm6, %v15236_v14, 0.0 }
 0x2e2   : > { %1655 = vadd.xlane.f32.xlu0 %v1654_v16  ;;  %1637 = vadd.xlane.f32.xlu2 %v1636_v17  ;;  %v1645_v18 = vsel %vm1584_vm6, %v15238_v15, 0.0  ;;  %v15240_v19 = vpop.eup %15239 }
 0x2e3   : > { %1646 = vadd.xlane.f32.xlu1 %v1645_v18  ;;  %v1648_v20 = vsel %vm1584_vm6, %v15240_v19, 0.0 }
 0x2ea   : > { %1649 = vadd.xlane.f32.xlu2 %v1648_v20 }
 0x322   : > { %v1635_v21 = vpop.xlane.xlu0 %1634 }
 0x323   : > { %15241 = vrcp.f32 %v1635_v21  ;;  %v14996_v21 = vld [vmem:[%s20605_s7] ss:$0 sm:$0xff] }
 0x329   : > { %v15242_v22 = vpop.eup %15241 }
 0x32a   : > { %v1665_v23 = vmul.f32 %v15242_v22, %v15226_v46 }
 0x32c   : > { %13391 = vmatmul.msk.f32.vlgmr.msrb.gmra.mxu0 %vm1584_vm6, %v1665_v23 }
 0x32d   : > { %13399 = vmatpush.msk.msrb.mxu0 %vm1868_vm7, %v1857_v45 }
 0x345   : > { %v1641_v24 = vpop.xlane.xlu1 %1640 }
 0x346   : > { %15243 = vrcp.f32 %v1641_v24 }
 0x34c   : > { %v15244_v25 = vpop.eup %15243 }
 0x34d   : > { %v1667_v26 = vmul.f32 %v15244_v25, %v15228_v56  ;;  %v1644_v27 = vpop.xlane.xlu2 %1643 }
 0x34e   : > { %v1653_v28 = vpop.xlane.xlu1 %1652  ;;  %15245 = vrcp.f32 %v1644_v27 }
 0x34f   : > { %15247 = vrcp.f32 %v1653_v28  ;;  %13393 = vmatmul.msk.f32.vlgmr.msra.gmra.mxu2 %vm1584_vm6, %v1667_v26 }
 0x350   : > { %13403 = vmatpush.msk.msra.mxu2 %vm1868_vm7, %v1859_v47  ;;  %v14997_v47 = vld [vmem:[%s20606_s8] ss:$0 sm:$0xff] }
 0x354   : > { %v15246_v29 = vpop.eup %15245 }
 0x355   : > { %v15248_v30 = vpop.eup %15247  ;;  %v1668_v31 = vmul.f32 %v15246_v29, %v15230_v4  ;;  %v1656_v32 = vpop.xlane.xlu0 %1655 }
 0x356   : > { %v1638_v33 = vpop.xlane.xlu2 %1637  ;;  %v1671_v34 = vmul.f32 %v15248_v30, %v15232_v7  ;;  %15249 = vrcp.f32 %v1656_v32  ;;  %v1647_v35 = vpop.xlane.xlu1 %1646  ;;  %v2128_v32 = vld [vmem:[%s20608_s10 + $0x8] sm:$0xff] }
 0x357   : > { %15251 = vrcp.f32 %v1647_v35  ;;  %13394 = vmatmul.msk.f32.vlgmr.msra.gmra.mxu3 %vm1584_vm6, %v1668_v31  ;;  %v2130_v31 = vld [vmem:[%s20608_s10 + $0x18] sm:$0xff]  ;;  %v2181_v35 = vld [vmem:[%s20610_s12 + $0x70] sm:$0xff] }
 0x358   : > { %15253 = vrcp.f32 %v1638_v33  ;;  %13397 = vmatmul.msk.f32.vlgmr.msrb.gmra.mxu2 %vm1584_vm6, %v1671_v34  ;;  %13405 = vmatpush.msk.msra.mxu3 %vm1868_vm7, %v1860_v48  ;;  %v2127_v33 = vld [vmem:[%s20608_s10] sm:$0xff]  ;;  %v2182_v34 = vld [vmem:[%s20610_s12 + $0x78] sm:$0xff] }
 0x359   : > { %13411 = vmatpush.msk.msrb.mxu2 %vm1868_vm7, %v1863_v50  ;;  %v14998_v50 = vld [vmem:[%s20607_s9] ss:$0 sm:$0xff] }
 0x35c   : > { %v15250_v36 = vpop.eup %15249 }
 0x35d   : > { %v15252_v37 = vpop.eup %15251  ;;  %v1672_v38 = vmul.f32 %v15250_v36, %v15236_v14  ;;  %v2180_v36 = vld [vmem:[%s20610_s12 + $0x68] sm:$0xff] }
 0x35e   : > { %v1650_v39 = vpop.xlane.xlu2 %1649  ;;  %v15254_v40 = vpop.eup %15253  ;;  %v1669_v41 = vmul.f32 %v15252_v37, %v15238_v15 }
 0x35f   : > { %15255 = vrcp.f32 %v1650_v39  ;;  %v1666_v42 = vmul.f32 %v15254_v40, %v15234_v13  ;;  %13398 = vmatmul.msk.f32.vlgmr.msrb.gmra.mxu3 %vm1584_vm6, %v1672_v38  ;;  %v2179_v39 = vld [vmem:[%s20610_s12 + $0x60] sm:$0xff] }
 0x360   : > { %13395 = vmatmul.msk.f32.vlgmr.msra.gmra.mxu0 %vm1584_vm6, %v1669_v41  ;;  %13413 = vmatpush.msk.msrb.mxu3 %vm1868_vm7, %v1864_v52 }
 0x361   : > { %13392 = vmatmul.msk.f32.vlgmr.msrb.gmra.mxu1 %vm1584_vm6, %v1666_v42  ;;  %13407 = vmatpush.msk.msra.mxu0 %vm1868_vm7, %v1861_v51 }
 0x362   : > { %13401 = vmatpush.msk.msrb.mxu1 %vm1868_vm7, %v1858_v49 }
 0x365   : > { %v15256_v43 = vpop.eup %15255 }
 0x366   : > { %v1670_v44 = vmul.f32 %v15256_v43, %v15240_v19 }
 0x369   : > { %13396 = vmatmul.msk.f32.vlgmr.msra.gmra.mxu1 %vm1584_vm6, %v1670_v44 }
 0x36a   : > { %13409 = vmatpush.msk.msra.mxu1 %vm1868_vm7, %v1862_v53  ;;  %v2178_v53 = vld [vmem:[%s20610_s12 + $0x58] sm:$0xff] }
 0x3a9   : > { %v1693_v46 = vpop.f32.mrf.mxu0 }
 0x3aa   : > { %13400 = vmatmul.msk.f32.vlgmr.msrb.gmra.mxu0 %vm1356_vm5, %v1693_v46 }
 0x3ab   : > { %2150 = vmatpush.msrb.mxu0 %v2130_v31  ;;  %v13426_v31 = vld [vmem:[%s20627_s0 + $0x350] sm:$0xff] }
 0x3d2   : > { %v1739_v54 = vpop.f32.mrf.mxu2 }
 0x3d3   : > { %13404 = vmatmul.msk.f32.vlgmr.msra.gmra.mxu2 %vm1356_vm5, %v1739_v54  ;;  %v2177_v54 = vld [vmem:[%s20610_s12 + $0x50] sm:$0xff] }
 0x3da   : > { %v1762_v55 = vpop.f32.mrf.mxu3 }
 0x3db   : > { %v1831_v56 = vpop.f32.mrf.mxu2  ;;  %13406 = vmatmul.msk.f32.vlgmr.msra.gmra.mxu3 %vm1356_vm5, %v1762_v55  ;;  %v2176_v55 = vld [vmem:[%s20610_s12 + $0x48] sm:$0xff] }
 0x3dc   : > { %13412 = vmatmul.msk.f32.vlgmr.msrb.gmra.mxu2 %vm1356_vm5, %v1831_v56  ;;  %v2175_v56 = vld [vmem:[%s20610_s12 + $0x40] sm:$0xff] }
 0x3dd   : > { %v1785_v57 = vpop.f32.mrf.mxu0 }
 0x3de   : > { %v1716_v58 = vpop.f32.mrf.mxu1  ;;  %13408 = vmatmul.msk.f32.vlgmr.msra.gmra.mxu0 %vm1356_vm5, %v1785_v57  ;;  %v2174_v57 = vld [vmem:[%s20610_s12 + $0x38] sm:$0xff] }
 0x3df   : > { %13402 = vmatmul.msk.f32.vlgmr.msrb.gmra.mxu1 %vm1356_vm5, %v1716_v58  ;;  %v2173_v58 = vld [vmem:[%s20610_s12 + $0x30] sm:$0xff] }
 0x3e0   : > { %2187 = vmatpush.msrb.mxu1 %v2182_v34  ;;  %v13425_v34 = vld [vmem:[%s20627_s0 + $0x348] sm:$0xff] }
 0x3e2   : > { %v1854_v59 = vpop.f32.mrf.mxu3  ;;  %2188 = vmatpush.msrb.mxu1 %v2181_v35  ;;  %v13465_v35 = vld [vmem:[%s20627_s0 + $0x488] sm:$0xff] }
 0x3e3   : > { %13414 = vmatmul.msk.f32.vlgmr.msrb.gmra.mxu3 %vm1356_vm5, %v1854_v59  ;;  %v2172_v59 = vld [vmem:[%s20610_s12 + $0x28] sm:$0xff] }
 0x3e4   : > { %2189 = vmatpush.msrb.mxu1 %v2180_v36  ;;  %v13416_v36 = vld [vmem:[%s20627_s0 + $0x300] sm:$0xff] }
 0x3e6   : > { %v1808_v61 = vpop.f32.mrf.mxu1  ;;  %2190 = vmatpush.msrb.mxu1 %v2179_v39  ;;  %v13464_v39 = vld [vmem:[%s20627_s0 + $0x480] sm:$0xff] }
 0x3e7   : > { %13410 = vmatmul.msk.f32.vlgmr.msra.gmra.mxu1 %vm1356_vm5, %v1808_v61  ;;  %v2171_v61 = vld [vmem:[%s20610_s12 + $0x20] sm:$0xff] }
 0x3e8   : > { %2191 = vmatpush.msrb.mxu1 %v2178_v53  ;;  %v13481_v53 = vld [vmem:[%s20627_s0 + $0x508] sm:$0xff] }
 0x3ea   : > { %2192 = vmatpush.msrb.mxu1 %v2177_v54  ;;  %v13428_v54 = vld [vmem:[%s20627_s0 + $0x360] sm:$0xff] }
 0x3ec   : > { %2193 = vmatpush.msrb.mxu1 %v2176_v55  ;;  %v13432_v55 = vld [vmem:[%s20627_s0 + $0x380] sm:$0xff] }
 0x3ee   : > { %2194 = vmatpush.msrb.mxu1 %v2175_v56 }
 0x3f0   : > { %2195 = vmatpush.msrb.mxu1 %v2174_v57  ;;  %v13436_v57 = vld [vmem:[%s20627_s0 + $0x3a0] sm:$0xff] }
 0x3f2   : > { %2196 = vmatpush.msrb.mxu1 %v2173_v58  ;;  %v13480_v58 = vld [vmem:[%s20627_s0 + $0x500] sm:$0xff] }
 0x3f4   : > { %2197 = vmatpush.msrb.mxu1 %v2172_v59 }
 0x3f6   : > { %2198 = vmatpush.msrb.mxu1 %v2171_v61 }
 0x427   : > { %v1889_v62 = vpop.f32.mrf.mxu0 }
 0x428   : > { %v2074_v1 = vsel %vm643_vm0, %v1889_v62, 0.0  ;;  %v2170_v62 = vld [vmem:[%s20610_s12 + $0x18] sm:$0xff] }
 0x429   : > { %2199 = vmatpush.msrb.mxu1 %v2170_v62 }
 0x456   : > { %v1941_v63 = vpop.f32.mrf.mxu2 }
 0x457   : > { %v2077_v5 = vsel %vm643_vm0, %v1941_v63, 0.0  ;;  %v2169_v63 = vld [vmem:[%s20610_s12 + $0x10] sm:$0xff] }
 0x458   : > { %2200 = vmatpush.msrb.mxu1 %v2169_v63 }
 0x45b   : > { %v1993_v7 = vpop.f32.mrf.mxu0 }
 0x45c   : > { %v1915_v0 = vpop.f32.mrf.mxu1  ;;  %v2081_v11 = vsel %vm643_vm0, %v1993_v7, 0.0 }
 0x45d   : > { %v2075_v2 = vsel %vm643_vm0, %v1915_v0, 0.0  ;;  %v2168_v0 = vld [vmem:[%s20610_s12 + $0x8] sm:$0xff] }
 0x45e   : > { %v2076_v3 = vadd.f32 %v2075_v2, %v2074_v1  ;;  %v1967_v4 = vpop.f32.mrf.mxu3  ;;  %v2167_v1 = vld [vmem:[%s20610_s12] sm:$0xff]  ;;  %2201 = vmatpush.msrb.mxu1 %v2168_v0 }
 0x45f   : > { %v2079_v6 = vsel %vm643_vm0, %v1967_v4, 0.0  ;;  %v2045_v12 = vpop.f32.mrf.mxu2  ;;  %v14999_v2 = vld [vmem:[%s20609_s11] ss:$0 sm:$0xff] }
 0x460   : > { %v2078_v9 = vadd.f32 %v2077_v5, %v2076_v3  ;;  %v2085_v18 = vsel %vm643_vm0, %v2045_v12, 0.0  ;;  %2202 = vmatpush.msrb.mxu1 %v2167_v1 }
 0x462   : > { %v2080_v10 = vadd.f32 %v2079_v6, %v2078_v9 }
 0x464   : > { %v2019_v13 = vpop.f32.mrf.mxu1  ;;  %v2082_v14 = vadd.f32 %v2081_v11, %v2080_v10 }
 0x465   : > { %v2083_v15 = vsel %vm643_vm0, %v2019_v13, 0.0 }
 0x466   : > { %v2084_v16 = vadd.f32 %v2083_v15, %v2082_v14  ;;  %v2071_v17 = vpop.f32.mrf.mxu3  ;;  %v15000_v15 = vld [vmem:[%s20611_s13] ss:$0 sm:$0xff] }
 0x467   : > { %v2087_v19 = vsel %vm643_vm0, %v2071_v17, 0.0 }
 0x468   : > { %v2086_v20 = vadd.f32 %v2085_v18, %v2084_v16 }
 0x46a   : > { %v2088_v22 = vadd.f32 %v2087_v19, %v2086_v20 }
 0x46c   : > { %v2093_v23 = vadd.f32 %v14996_v21, %v2088_v22 }
 0x46e   : > { %v2094_v24 = vadd.f32 %v2093_v23, %v15779_v60  ;;  %v2129_v60 = vld [vmem:[%s20608_s10 + $0x10] sm:$0xff] }
 0x46f   : > { %2151 = vmatpush.msrb.mxu0 %v2129_v60  ;;  %v13466_v60 = vld [vmem:[%s20627_s0 + $0x490] sm:$0xff] }
 0x470   : > { %v2097_v25 = vsel %vm643_vm0, %v2094_v24, 0.0 }
 0x471   : > { %2098 = vadd.xlane.f32.xlu0 %v2097_v25  ;;  %2152 = vmatpush.msrb.mxu0 %v2128_v32  ;;  %v13419_v25 = vld [vmem:[%s20627_s0 + $0x318] sm:$0xff]  ;;  %v13417_v32 = vld [vmem:[%s20627_s0 + $0x308] sm:$0xff] }
 0x472   : > { %2449 = vmatpush.msra.mxu2 %v13419_v25  ;;  %v13455_v25 = vld [vmem:[%s20627_s0 + $0x438] sm:$0xff] }
 0x473   : > { %2153 = vmatpush.msrb.mxu0 %v2127_v33  ;;  %v13421_v33 = vld [vmem:[%s20627_s0 + $0x328] sm:$0xff] }
 0x4e4   : > { %v2099_v26 = vpop.xlane.xlu0 %2098 }
 0x4e5   : > { %v2100_v27 = vmul.f32 %v2099_v26, %v15667_v8  ;;  %v13423_v26 = vld [vmem:[%s20627_s0 + $0x338] sm:$0xff] }
 0x4e6   : > { %2469 = vmatpush.msra.mxu3 %v13423_v26  ;;  %v13459_v26 = vld [vmem:[%s20627_s0 + $0x458] sm:$0xff] }
 0x4e7   : > { %v2101_v28 = vsub.f32 %v2094_v24, %v2100_v27  ;;  %v13427_v27 = vld [vmem:[%s20627_s0 + $0x358] sm:$0xff] }
 0x4e8   : > { %2489 = vmatpush.msra.mxu0 %v13427_v27  ;;  %v13463_v27 = vld [vmem:[%s20627_s0 + $0x478] sm:$0xff] }
 0x4e9   : > { %v2102_v29 = vmul.f32 %v2101_v28, %v2101_v28 }
 0x4ea   : > { %2490 = vmatpush.msra.mxu0 %v13426_v31  ;;  %v13453_v31 = vld [vmem:[%s20627_s0 + $0x428] sm:$0xff] }
 0x4eb   : > { %v2103_v30 = vsel %vm643_vm0, %v2102_v29, 0.0  ;;  %v13418_v29 = vld [vmem:[%s20627_s0 + $0x310] sm:$0xff] }
 0x4ec   : > { %2104 = vadd.xlane.f32.xlu1 %v2103_v30  ;;  %v13422_v30 = vld [vmem:[%s20627_s0 + $0x330] sm:$0xff]  ;;  %2450 = vmatpush.msra.mxu2 %v13418_v29 }
 0x4ed   : > { %2470 = vmatpush.msra.mxu3 %v13422_v30  ;;  %2491 = vmatpush.msra.mxu0 %v13425_v34  ;;  %v13458_v29 = vld [vmem:[%s20627_s0 + $0x450] sm:$0xff]  ;;  %v13456_v34 = vld [vmem:[%s20627_s0 + $0x440] sm:$0xff] }
 0x4ee   : > { %2451 = vmatpush.msra.mxu2 %v13417_v32  ;;  %v13462_v30 = vld [vmem:[%s20627_s0 + $0x470] sm:$0xff]  ;;  %v13461_v32 = vld [vmem:[%s20627_s0 + $0x468] sm:$0xff] }
 0x4ef   : > { %2471 = vmatpush.msra.mxu3 %v13421_v33  ;;  %v13452_v33 = vld [vmem:[%s20627_s0 + $0x420] sm:$0xff] }
 0x4f0   : > { %2452 = vmatpush.msra.mxu2 %v13416_v36  ;;  %v13471_v36 = vld [vmem:[%s20627_s0 + $0x4b8] sm:$0xff] }
 0x55f   : > { %v2105_v37 = vpop.xlane.xlu1 %2104 }
 0x560   : > { %v2106_v38 = vmul.f32 %v2105_v37, %v15667_v8  ;;  %v13420_v37 = vld [vmem:[%s20627_s0 + $0x320] sm:$0xff] }
 0x561   : > { %2472 = vmatpush.msra.mxu3 %v13420_v37  ;;  %v13475_v37 = vld [vmem:[%s20627_s0 + $0x4d8] sm:$0xff] }
 0x562   : > { %v2107_v40 = vadd.f32 1e-12, %v2106_v38  ;;  %v13424_v38 = vld [vmem:[%s20627_s0 + $0x340] sm:$0xff] }
 0x563   : > { %2492 = vmatpush.msra.mxu0 %v13424_v38  ;;  %v13479_v38 = vld [vmem:[%s20627_s0 + $0x4f8] sm:$0xff] }
 0x564   : > { %15257 = vrsqrt.f32 %v2107_v40  ;;  %vm2114_vm9 = vweird.f32 %v2107_v40 }
 0x56a   : > { %v15258_v41 = vpop.eup %15257 }
 0x56b   : > { %v2109_v42 = vmul.f32 %v15258_v41, %v2107_v40  ;;  %vm2115_vm8 = vweird.f32 %v15258_v41  ;;  %v13431_v40 = vld [vmem:[%s20627_s0 + $0x378] sm:$0xff] }
 0x56c   : > { %vm2116_vm10 = vmor %vm2114_vm9, %vm2115_vm8  ;;  %2509 = vmatpush.msrb.mxu2 %v13431_v40  ;;  %v13474_v40 = vld [vmem:[%s20627_s0 + $0x4d0] sm:$0xff] }
 0x56d   : > { %v2110_v43 = vmul.f32 %v15258_v41, %v2109_v42  ;;  %v13439_v42 = vld [vmem:[%s20627_s0 + $0x3b8] sm:$0xff] }
 0x56f   : > { %v2111_v44 = vmul.f32 0.5, %v2110_v43  ;;  %v13483_v43 = vld [vmem:[%s20627_s0 + $0x518] sm:$0xff] }
 0x571   : > { %v2112_v45 = vsub.f32 1.5, %v2111_v44  ;;  %v13430_v44 = vld [vmem:[%s20627_s0 + $0x370] sm:$0xff] }
 0x572   : > { %2510 = vmatpush.msrb.mxu2 %v13430_v44  ;;  %v13477_v44 = vld [vmem:[%s20627_s0 + $0x4e8] sm:$0xff] }
 0x573   : > { %v2113_v46 = vmul.f32 %v15258_v41, %v2112_v45  ;;  %v13434_v45 = vld [vmem:[%s20627_s0 + $0x390] sm:$0xff] }
 0x575   : > { %v2117_v48 = vsel %vm2116_vm10, %v15258_v41, %v2113_v46  ;;  %v13435_v41 = vld [vmem:[%s20627_s0 + $0x398] sm:$0xff] }
 0x576   : > { %v2118_v49 = vmul.f32 %v2117_v48, %v2101_v28  ;;  %v13467_v28 = vld [vmem:[%s20627_s0 + $0x498] sm:$0xff]  ;;  %2529 = vmatpush.msrb.mxu3 %v13435_v41  ;;  %v13482_v48 = vld [vmem:[%s20627_s0 + $0x510] sm:$0xff] }
 0x577   : > { %2689 = vmatpush.msra.mxu1 %v13467_v28  ;;  %v13454_v28 = vld [vmem:[%s20627_s0 + $0x430] sm:$0xff] }
 0x578   : > { %v2122_v51 = vmul.f32 %v14997_v47, %v2118_v49  ;;  %v13438_v47 = vld [vmem:[%s20627_s0 + $0x3b0] sm:$0xff]  ;;  %v13429_v49 = vld [vmem:[%s20627_s0 + $0x368] sm:$0xff]  ;;  %2530 = vmatpush.msrb.mxu3 %v13434_v45  ;;  %v13468_v45 = vld [vmem:[%s20627_s0 + $0x4a0] sm:$0xff] }
 0x579   : > { %2690 = vmatpush.msra.mxu1 %v13466_v60  ;;  %2511 = vmatpush.msrb.mxu2 %v13429_v49  ;;  %v13457_v60 = vld [vmem:[%s20627_s0 + $0x448] sm:$0xff]  ;;  %v13478_v41 = vld [vmem:[%s20627_s0 + $0x4f0] sm:$0xff]  ;;  %v13491_v49 = vld [vmem:[%s20627_s0 + $0x558] sm:$0xff] }
 0x57a   : > { %v2126_v52 = vadd.f32 %v14998_v50, %v2122_v51  ;;  %v13433_v51 = vld [vmem:[%s20627_s0 + $0x388] sm:$0xff] }
 0x57b   : > { %2691 = vmatpush.msra.mxu1 %v13465_v35  ;;  %2531 = vmatpush.msrb.mxu3 %v13433_v51  ;;  %v13460_v35 = vld [vmem:[%s20627_s0 + $0x460] sm:$0xff]  ;;  %v13486_v51 = vld [vmem:[%s20627_s0 + $0x530] sm:$0xff] }
 0x57c   : > { %13415 = vmatmul.msk.f32.vlgmr.msrb.gmra.mxu0 %vm643_vm0, %v2126_v52  ;;  %2512 = vmatpush.msrb.mxu2 %v13428_v54  ;;  %v13485_v54 = vld [vmem:[%s20627_s0 + $0x528] sm:$0xff] }
 0x57d   : > { %2692 = vmatpush.msra.mxu1 %v13464_v39  ;;  %2549 = vmatpush.msrb.mxu0 %v13439_v42  ;;  %v13470_v39 = vld [vmem:[%s20627_s0 + $0x4b0] sm:$0xff]  ;;  %v13469_v42 = vld [vmem:[%s20627_s0 + $0x4a8] sm:$0xff] }
 0x57e   : > { %2532 = vmatpush.msrb.mxu3 %v13432_v55  ;;  %v13489_v55 = vld [vmem:[%s20627_s0 + $0x548] sm:$0xff] }
 0x57f   : > { %2550 = vmatpush.msrb.mxu0 %v13438_v47  ;;  %v13487_v47 = vld [vmem:[%s20627_s0 + $0x538] sm:$0xff] }
 0x5f9   : > { %v2155_v3 = vpop.f32.mrf.mxu0 }
 0x5fa   : > { %v2156_v4 = vadd.f32 %v14999_v2, %v2155_v3  ;;  %v15001_v2 = vld [vmem:[%s20612_s14] ss:$0 sm:$0xff] }
 0x5fc   : > { %v2159_v5 = vmul.f32 0.044715, %v2156_v4  ;;  %v2158_v12 = vmul.f32 0.5, %v2156_v4 }
 0x5fe   : > { %v2160_v6 = vmul.f32 %v2159_v5, %v2156_v4 }
 0x600   : > { %v2161_v7 = vmul.f32 %v2160_v6, %v2156_v4 }
 0x602   : > { %v2162_v9 = vadd.f32 %v2161_v7, %v2156_v4  ;;  %v15002_v4 = vld [vmem:[%s20613_s15] ss:$0 sm:$0xff] }
 0x604   : > { %v2163_v10 = vmul.f32 0.7978846, %v2162_v9  ;;  %v13443_v9 = vld [vmem:[%s20627_s0 + $0x3d8] sm:$0xff] }
 0x606   : > { %15259 = vtanh.f32 %v2163_v10  ;;  %v13447_v10 = vld [vmem:[%s20627_s0 + $0x3f8] sm:$0xff] }
 0x60c   : > { %v15260_v11 = vpop.eup %15259 }
 0x60d   : > { %v2165_v13 = vadd.f32 1.0, %v15260_v11  ;;  %v13451_v11 = vld [vmem:[%s20627_s0 + $0x418] sm:$0xff] }
 0x60f   : > { %v2166_v14 = vmul.f32 %v2165_v13, %v2158_v12  ;;  %v13499_v12 = vld [vmem:[%s20627_s0 + $0x598] sm:$0xff]  ;;  %v13442_v13 = vld [vmem:[%s20627_s0 + $0x3d0] sm:$0xff] }
 0x611   : > { %2203 = vmatmul.f32.vlgmr.msrb.gmra.mxu1 %v2166_v14  ;;  %v13446_v14 = vld [vmem:[%s20627_s0 + $0x3f0] sm:$0xff] }
 0x612   : > { %2769 = vmatpush.msrb.mxu1 %v13483_v43  ;;  %v13473_v43 = vld [vmem:[%s20627_s0 + $0x4c8] sm:$0xff] }
 0x614   : > { %2770 = vmatpush.msrb.mxu1 %v13482_v48  ;;  %v13476_v48 = vld [vmem:[%s20627_s0 + $0x4e0] sm:$0xff] }
 0x616   : > { %2771 = vmatpush.msrb.mxu1 %v13481_v53  ;;  %v13494_v53 = vld [vmem:[%s20627_s0 + $0x570] sm:$0xff] }
 0x618   : > { %2772 = vmatpush.msrb.mxu1 %v13480_v58  ;;  %v13488_v58 = vld [vmem:[%s20627_s0 + $0x540] sm:$0xff] }
 0x68e   : > { %v2204_v16 = vpop.f32.mrf.mxu1 }
 0x68f   : > { %v2205_v17 = vadd.f32 %v15000_v15, %v2204_v16  ;;  %v13450_v15 = vld [vmem:[%s20627_s0 + $0x410] sm:$0xff] }
 0x690   : > { %v13498_v16 = vld [vmem:[%s20627_s0 + $0x590] sm:$0xff] }
 0x691   : > { %v2207_v18 = vadd.f32 %v2205_v17, %v2126_v52  ;;  %v13437_v52 = vld [vmem:[%s20627_s0 + $0x3a8] sm:$0xff] }
 0x692   : > { %2551 = vmatpush.msrb.mxu0 %v13437_v52  ;;  %v13441_v17 = vld [vmem:[%s20627_s0 + $0x3c8] sm:$0xff]  ;;  %v13490_v52 = vld [vmem:[%s20627_s0 + $0x550] sm:$0xff] }
 0x693   : > { %v2210_v19 = vsel %vm643_vm0, %v2207_v18, 0.0 }
 0x694   : > { %2211 = vadd.xlane.f32.xlu2 %v2210_v19  ;;  %2552 = vmatpush.msrb.mxu0 %v13436_v57  ;;  %v13449_v19 = vld [vmem:[%s20627_s0 + $0x408] sm:$0xff]  ;;  %v13484_v57 = vld [vmem:[%s20627_s0 + $0x520] sm:$0xff] }
 0x707   : > { %v2212_v20 = vpop.xlane.xlu2 %2211 }
 0x708   : > { %v2213_v21 = vmul.f32 %v2212_v20, %v15667_v8  ;;  %v13497_v20 = vld [vmem:[%s20627_s0 + $0x588] sm:$0xff] }
 0x70a   : > { %v16269_v22 = vsub.f32 %v2207_v18, %v2213_v21  ;;  %v13445_v18 = vld [vmem:[%s20627_s0 + $0x3e8] sm:$0xff]  ;;  %v13440_v21 = vld [vmem:[%s20627_s0 + $0x3c0] sm:$0xff] }
 0x70c   : > { %v2215_v23 = vmul.f32 %v16269_v22, %v16269_v22 }
 0x70e   : > { %v2216_v24 = vsel %vm643_vm0, %v2215_v23, 0.0  ;;  %v13448_v23 = vld [vmem:[%s20627_s0 + $0x400] sm:$0xff] }
 0x70f   : > { %2217 = vadd.xlane.f32.xlu0 %v2216_v24  ;;  %v13496_v24 = vld [vmem:[%s20627_s0 + $0x580] sm:$0xff] }
 0x782   : > { %v2218_v46 = vpop.xlane.xlu0 %2217 }
 0x783   : > { %v2219_v50 = vmul.f32 %v2218_v46, %v15667_v8  ;;  %v13472_v46 = vld [vmem:[%s20627_s0 + $0x4c0] sm:$0xff] }
 0x785   : > { %v2220_v56 = vadd.f32 1e-12, %v2219_v50  ;;  %v13495_v50 = vld [vmem:[%s20627_s0 + $0x578] sm:$0xff] }
 0x787   : > { %15261 = vrsqrt.f32 %v2220_v56  ;;  %vm2227_vm12 = vweird.f32 %v2220_v56 }
 0x78d   : > { %v15262_v59 = vpop.eup %15261 }
 0x78e   : > { %v2222_v61 = vmul.f32 %v15262_v59, %v2220_v56  ;;  %vm2228_vm11 = vweird.f32 %v15262_v59  ;;  %v13493_v56 = vld [vmem:[%s20627_s0 + $0x568] sm:$0xff] }
 0x78f   : > { %vm2229_vm13 = vmor %vm2227_vm12, %vm2228_vm11 }
 0x790   : > { %v2223_v62 = vmul.f32 %v15262_v59, %v2222_v61  ;;  %v13492_v61 = vld [vmem:[%s20627_s0 + $0x560] sm:$0xff] }
 0x792   : > { %v2224_v63 = vmul.f32 0.5, %v2223_v62  ;;  %v13507_v62 = vld [vmem:[%s20627_s0 + $0x5d8] sm:$0xff] }
 0x794   : > { %v2225_v0 = vsub.f32 1.5, %v2224_v63  ;;  %v13511_v63 = vld [vmem:[%s20627_s0 + $0x5f8] sm:$0xff] }
 0x796   : > { %v2226_v1 = vmul.f32 %v15262_v59, %v2225_v0  ;;  %v13502_v0 = vld [vmem:[%s20627_s0 + $0x5b0] sm:$0xff] }
 0x798   : > { %v2230_v3 = vsel %vm2229_vm13, %v15262_v59, %v2226_v1  ;;  %v13503_v59 = vld [vmem:[%s20627_s0 + $0x5b8] sm:$0xff]  ;;  %v13506_v1 = vld [vmem:[%s20627_s0 + $0x5d0] sm:$0xff] }
 0x799   : > { %v2231_v5 = vmul.f32 %v2230_v3, %v16269_v22  ;;  %v13444_v22 = vld [vmem:[%s20627_s0 + $0x3e0] sm:$0xff]  ;;  %v13501_v3 = vld [vmem:[%s20627_s0 + $0x5a8] sm:$0xff] }
 0x79b   : > { %v2235_v6 = vmul.f32 %v15001_v2, %v2231_v5  ;;  %v13510_v2 = vld [vmem:[%s20627_s0 + $0x5f0] sm:$0xff]  ;;  %v13509_v5 = vld [vmem:[%s20627_s0 + $0x5e8] sm:$0xff] }
 0x79d   : > { %v16378_v7 = vadd.f32 %v15002_v4, %v2235_v6  ;;  %v13505_v4 = vld [vmem:[%s20627_s0 + $0x5c8] sm:$0xff]  ;;  %v13500_v6 = vld [vmem:[%s20627_s0 + $0x5a0] sm:$0xff] }
 0x79f   : > { %13536 = vmatmul.msk.f32.vlgmr.msra.gmra.mxu2 %vm643_vm0, %v16378_v7  ;;  %13537 = vmatmul.msk.f32.vlgmr.msra.gmra.mxu3 %vm643_vm0, %v16378_v7 }
 0x7a0   : > { %13538 = vmatmul.msk.f32.vlgmr.msra.gmra.mxu0 %vm643_vm0, %v16378_v7  ;;  %13548 = vmatmul.msk.f32.vlgmr.msra.gmra.mxu1 %vm643_vm0, %v16378_v7 }
 0x7a1   : > { %2569 = vmatpush.msra.mxu2 %v13443_v9  ;;  %2589 = vmatpush.msra.mxu3 %v13447_v10  ;;  %v13504_v9 = vld [vmem:[%s20627_s0 + $0x5c0] sm:$0xff] }
 0x7a2   : > { %2609 = vmatpush.msra.mxu0 %v13451_v11  ;;  %2849 = vmatpush.msra.mxu1 %v13499_v12  ;;  %v13508_v10 = vld [vmem:[%s20627_s0 + $0x5e0] sm:$0xff] }
 0x7a3   : > { %2570 = vmatpush.msra.mxu2 %v13442_v13  ;;  %2590 = vmatpush.msra.mxu3 %v13446_v14 }
 0x7a4   : > { %2610 = vmatpush.msra.mxu0 %v13450_v15  ;;  %2850 = vmatpush.msra.mxu1 %v13498_v16 }
 0x7a5   : > { %2571 = vmatpush.msra.mxu2 %v13441_v17  ;;  %2591 = vmatpush.msra.mxu3 %v13445_v18  ;;  %v15011_v18 = vld [vmem:[%s20603_s5 + $0x20] ss:$0 sm:$0xff] }
 0x7a6   : > { %2611 = vmatpush.msra.mxu0 %v13449_v19  ;;  %2851 = vmatpush.msra.mxu1 %v13497_v20  ;;  %v15004_v19 = vld [vmem:[%s20603_s5 + $0x24] ss:$0 sm:$0xff]  ;;  %v15005_v20 = vld [vmem:[%s20603_s5 + $0x18] ss:$0 sm:$0xff] }
 0x7a7   : > { %13539 = vmatmul.msk.f32.vlgmr.msrb.gmra.mxu2 %vm643_vm0, %v16378_v7  ;;  %13540 = vmatmul.msk.f32.vlgmr.msrb.gmra.mxu3 %vm643_vm0, %v16378_v7 }
 0x7a8   : > { %13541 = vmatmul.msk.f32.vlgmr.msrb.gmra.mxu0 %vm643_vm0, %v16378_v7  ;;  %13552 = vmatmul.msk.f32.vlgmr.msrb.gmra.mxu1 %vm643_vm0, %v16378_v7 }
 0x7a9   : > { %2572 = vmatpush.msra.mxu2 %v13440_v21  ;;  %2592 = vmatpush.msra.mxu3 %v13444_v22 }
 0x7aa   : > { %2612 = vmatpush.msra.mxu0 %v13448_v23  ;;  %2852 = vmatpush.msra.mxu1 %v13496_v24  ;;  %v15008_v23 = vld [vmem:[%s20603_s5 + $0x28] ss:$0 sm:$0xff] }
 0x7ab   : > { %2629 = vmatpush.msrb.mxu2 %v13455_v25  ;;  %2649 = vmatpush.msrb.mxu3 %v13459_v26 }
 0x7ac   : > { %2669 = vmatpush.msrb.mxu0 %v13463_v27 }
 0x7ad   : > { %2630 = vmatpush.msrb.mxu2 %v13454_v28  ;;  %2650 = vmatpush.msrb.mxu3 %v13458_v29 }
 0x7ae   : > { %2670 = vmatpush.msrb.mxu0 %v13462_v30  ;;  %v15015_v30 = vld [vmem:[%s20603_s5 + $0x23] ss:$0 sm:$0xff] }
 0x7af   : > { %13542 = vmatmul.msk.f32.vlgmr.msra.gmra.mxu2 %vm643_vm0, %v16378_v7  ;;  %13543 = vmatmul.msk.f32.vlgmr.msra.gmra.mxu3 %vm643_vm0, %v16378_v7 }
 0x7b0   : > { %13544 = vmatmul.msk.f32.vlgmr.msra.gmra.mxu0 %vm643_vm0, %v16378_v7  ;;  %13556 = vmatmul.msk.f32.vlgmr.msra.gmra.mxu1 %vm643_vm0, %v16378_v7 }
 0x7b1   : > { %2631 = vmatpush.msrb.mxu2 %v13453_v31  ;;  %2651 = vmatpush.msrb.mxu3 %v13457_v60  ;;  %v15009_v31 = vld [vmem:[%s20603_s5 + $0x1b] ss:$0 sm:$0xff]  ;;  %v15010_v60 = vld [vmem:[%s20603_s5 + $0x1c] ss:$0 sm:$0xff] }
 0x7b2   : > { %2671 = vmatpush.msrb.mxu0 %v13461_v32 }
 0x7b3   : > { %2632 = vmatpush.msrb.mxu2 %v13452_v33  ;;  %2652 = vmatpush.msrb.mxu3 %v13456_v34  ;;  %v15012_v33 = vld [vmem:[%s20603_s5 + $0x2c] ss:$0 sm:$0xff] }
 0x7b4   : > { %2672 = vmatpush.msrb.mxu0 %v13460_v35 }
 0x7b5   : > { %2709 = vmatpush.msra.mxu2 %v13471_v36  ;;  %2729 = vmatpush.msra.mxu3 %v13475_v37  ;;  %v15016_v36 = vld [vmem:[%s20603_s5 + $0x21] ss:$0 sm:$0xff]  ;;  %v15017_v37 = vld [vmem:[%s20603_s5 + $0x22] ss:$0 sm:$0xff] }
 0x7b6   : > { %2749 = vmatpush.msra.mxu0 %v13479_v38 }
 0x7b7   : > { %2710 = vmatpush.msra.mxu2 %v13470_v39  ;;  %13546 = vmatmul.msk.f32.vlgmr.msrb.gmra.mxu3 %vm643_vm0, %v16378_v7 }
 0x7b8   : > { %13545 = vmatmul.msk.f32.vlgmr.msrb.gmra.mxu2 %vm643_vm0, %v16378_v7  ;;  %13547 = vmatmul.msk.f32.vlgmr.msrb.gmra.mxu0 %vm643_vm0, %v16378_v7 }
 0x7b9   : > { %2730 = vmatpush.msra.mxu3 %v13474_v40  ;;  %2750 = vmatpush.msra.mxu0 %v13478_v41  ;;  %v15006_v40 = vld [vmem:[%s20603_s5 + $0x19] ss:$0 sm:$0xff] }
 0x7ba   : > { %2711 = vmatpush.msra.mxu2 %v13469_v42 }
 0x7bb   : > { %2731 = vmatpush.msra.mxu3 %v13473_v43  ;;  %2751 = vmatpush.msra.mxu0 %v13477_v44  ;;  %v15018_v44 = vld [vmem:[%s20603_s5 + $0x27] ss:$0 sm:$0xff] }
 0x7bc   : > { %2712 = vmatpush.msra.mxu2 %v13468_v45  ;;  %v15003_v45 = vld [vmem:[%s20603_s5 + $0x1a] ss:$0 sm:$0xff] }
 0x7bd   : > { %2732 = vmatpush.msra.mxu3 %v13472_v46  ;;  %2752 = vmatpush.msra.mxu0 %v13476_v48  ;;  %v15014_v48 = vld [vmem:[%s20603_s5 + $0x1f] ss:$0 sm:$0xff] }
 0x7be   : > { %2789 = vmatpush.msrb.mxu2 %v13487_v47 }
 0x7bf   : > { %2809 = vmatpush.msrb.mxu3 %v13491_v49  ;;  %2829 = vmatpush.msrb.mxu0 %v13495_v50 }
 0x7c0   : > { %2790 = vmatpush.msrb.mxu2 %v13486_v51  ;;  %13550 = vmatmul.msk.f32.vlgmr.msra.gmra.mxu3 %vm643_vm0, %v16378_v7 }
 0x7c1   : > { %13549 = vmatmul.msk.f32.vlgmr.msra.gmra.mxu2 %vm643_vm0, %v16378_v7  ;;  %13551 = vmatmul.msk.f32.vlgmr.msra.gmra.mxu0 %vm643_vm0, %v16378_v7 }
 0x7c2   : > { %2810 = vmatpush.msrb.mxu3 %v13490_v52  ;;  %2830 = vmatpush.msrb.mxu0 %v13494_v53  ;;  %v15019_v53 = vld [vmem:[%s20603_s5 + $0x25] ss:$0 sm:$0xff] }
 0x7c3   : > { %2791 = vmatpush.msrb.mxu2 %v13485_v54  ;;  %v15020_v54 = vld [vmem:[%s20603_s5 + $0x26] ss:$0 sm:$0xff] }
 0x7c4   : > { %2811 = vmatpush.msrb.mxu3 %v13489_v55  ;;  %2831 = vmatpush.msrb.mxu0 %v13493_v56  ;;  %v15007_v56 = vld [vmem:[%s20603_s5 + $0x1d] ss:$0 sm:$0xff] }
 0x7c5   : > { %2792 = vmatpush.msrb.mxu2 %v13484_v57 }
 0x7c6   : > { %2812 = vmatpush.msrb.mxu3 %v13488_v58  ;;  %2832 = vmatpush.msrb.mxu0 %v13492_v61  ;;  %v15013_v61 = vld [vmem:[%s20603_s5 + $0x1e] ss:$0 sm:$0xff] }
 0x7c7   : > { %2869 = vmatpush.msra.mxu2 %v13503_v59  ;;  %v15021_v59 = vld [vmem:[%s20603_s5 + $0x2b] ss:$0 sm:$0xff] }
 0x7c8   : > { %2889 = vmatpush.msra.mxu3 %v13507_v62  ;;  %2909 = vmatpush.msra.mxu0 %v13511_v63 }
 0x7c9   : > { %2870 = vmatpush.msra.mxu2 %v13502_v0  ;;  %13554 = vmatmul.msk.f32.vlgmr.msrb.gmra.mxu3 %vm643_vm0, %v16378_v7 }
 0x7ca   : > { %13553 = vmatmul.msk.f32.vlgmr.msrb.gmra.mxu2 %vm643_vm0, %v16378_v7  ;;  %13555 = vmatmul.msk.f32.vlgmr.msrb.gmra.mxu0 %vm643_vm0, %v16378_v7 }
 0x7cb   : > { %2890 = vmatpush.msra.mxu3 %v13506_v1  ;;  %2910 = vmatpush.msra.mxu0 %v13510_v2 }
 0x7cc   : > { %2871 = vmatpush.msra.mxu2 %v13501_v3 }
 0x7cd   : > { %2891 = vmatpush.msra.mxu3 %v13505_v4  ;;  %2911 = vmatpush.msra.mxu0 %v13509_v5  ;;  %v15022_v4 = vld [vmem:[%s20603_s5 + $0x29] ss:$0 sm:$0xff]  ;;  %v15023_v5 = vld [vmem:[%s20603_s5 + $0x2a] ss:$0 sm:$0xff] }
 0x7ce   : > { %2872 = vmatpush.msra.mxu2 %v13500_v6 }
 0x7cf   : > { %2892 = vmatpush.msra.mxu3 %v13504_v9  ;;  %2912 = vmatpush.msra.mxu0 %v13508_v10  ;;  %v15024_v10 = vld [vmem:[%s20603_s5 + $0x2f] ss:$0 sm:$0xff] }
 0x7d1   : > { %13558 = vmatmul.msk.f32.vlgmr.msra.gmra.mxu3 %vm643_vm0, %v16378_v7 }
 0x7d2   : > { %13557 = vmatmul.msk.f32.vlgmr.msra.gmra.mxu2 %vm643_vm0, %v16378_v7  ;;  %13559 = vmatmul.msk.f32.vlgmr.msra.gmra.mxu0 %vm643_vm0, %v16378_v7 }
 0x81d   : > { %v2494_v11 = vpop.f32.mrf.mxu0  ;;  %v2694_v14 = vpop.f32.mrf.mxu1 }
 0x81e   : > { %v2695_v25 = vadd.f32 %v15004_v19, %v2694_v14  ;;  %v2495_v52 = vadd.f32 %v15003_v45, %v2494_v11 }
 0x822   : > { %v2454_v12 = vpop.f32.mrf.mxu2  ;;  %v2474_v13 = vpop.f32.mrf.mxu3 }
 0x823   : > { %v2455_v26 = vadd.f32 %v15005_v20, %v2454_v12  ;;  %v2475_v50 = vadd.f32 %v15006_v40, %v2474_v13 }
 0x825   : > { %v16620_v15 = vpop.f32.mrf.mxu0  ;;  %v2774_v21 = vpop.f32.mrf.mxu1 }
 0x826   : > { %v2775_v27 = vadd.f32 %v15008_v23, %v2774_v21  ;;  %v2555_v1 = vadd.f32 %v15007_v56, %v16620_v15  ;;  %v15025_v15 = vld [vmem:[%s20603_s5 + $0x2d] ss:$0 sm:$0xff] }
 0x82a   : > { %v2514_v16 = vpop.f32.mrf.mxu2  ;;  %v2534_v17 = vpop.f32.mrf.mxu3 }
 0x82b   : > { %v2515_v38 = vadd.f32 %v15009_v31, %v2514_v16  ;;  %v2535_v39 = vadd.f32 %v15010_v60, %v2534_v17  ;;  %v15026_v16 = vld [vmem:[%s20603_s5 + $0x2e] ss:$0 sm:$0xff] }
 0x82d   : > { %v2614_v22 = vpop.f32.mrf.mxu0  ;;  %v2854_v35 = vpop.f32.mrf.mxu1 }
 0x82e   : > { %v2615_v24 = vadd.f32 %v15011_v18, %v2614_v22  ;;  %v2855_v41 = vadd.f32 %v15012_v33, %v2854_v35 }
 0x830   : > { %13560 = vmatpush.xpose.msk.msrb.mxu1 %vm1356_vm5, %v2615_v24 }
 0x832   : > { %v2574_v28 = vpop.f32.mrf.mxu2  ;;  %v2594_v29 = vpop.f32.mrf.mxu3 }
 0x833   : > { %13561 = vmatmul.msk.f32.vlgmr.msrb.gmra.mxu1 %vm1356_vm5, %v2455_v26  ;;  %v2595_v55 = vadd.f32 %v15014_v48, %v2594_v29  ;;  %v2575_v3 = vadd.f32 %v15013_v61, %v2574_v28 }
 0x834   : > { %13568 = vmatpush.xpose.msk.msra.mxu1 %vm1356_vm5, %v2695_v25 }
 0x835   : > { %v2674_v32 = vpop.f32.mrf.mxu0 }
 0x836   : > { %v2675_v34 = vadd.f32 %v15015_v30, %v2674_v32 }
 0x838   : > { %3247 = vmatpush.msrb.mxu1 %v2775_v27  ;;  %13566 = vmatpush.xpose.msk.msrb.mxu0 %vm1356_vm5, %v2675_v34  ;;  %v15529_v27 = vld [vmem:[%s15659_s3] ss:$0 sm:$0xff] }
 0x83a   : > { %v2654_v43 = vpop.f32.mrf.mxu3 }
 0x83b   : > { %v2634_v42 = vpop.f32.mrf.mxu2  ;;  %v2655_v47 = vadd.f32 %v15017_v37, %v2654_v43  ;;  %13567 = vmatmul.msk.f32.vlgmr.msrb.gmra.mxu0 %vm1356_vm5, %v2515_v38  ;;  %13569 = vmatmul.msk.f32.vlgmr.msra.gmra.mxu1 %vm1356_vm5, %v2535_v39 }
 0x83c   : > { %v2635_v46 = vadd.f32 %v15016_v36, %v2634_v42  ;;  %3339 = vmatpush.msra.mxu1 %v2855_v41 }
 0x83d   : > { %13564 = vmatpush.xpose.msk.msrb.mxu3 %vm1356_vm5, %v2655_v47 }
 0x83e   : > { %v2754_v49 = vpop.f32.mrf.mxu0  ;;  %13562 = vmatpush.xpose.msk.msrb.mxu2 %vm1356_vm5, %v2635_v46 }
 0x83f   : > { %v2755_v51 = vadd.f32 %v15018_v44, %v2754_v49 }
 0x840   : > { %13565 = vmatmul.msk.f32.vlgmr.msrb.gmra.mxu3 %vm1356_vm5, %v2495_v52 }
 0x841   : > { %13574 = vmatpush.xpose.msk.msra.mxu0 %vm1356_vm5, %v2755_v51  ;;  %13563 = vmatmul.msk.f32.vlgmr.msrb.gmra.mxu2 %vm1356_vm5, %v2475_v50 }
 0x843   : > { %v2734_v58 = vpop.f32.mrf.mxu3 }
 0x844   : > { %v2714_v57 = vpop.f32.mrf.mxu2  ;;  %v2735_v63 = vadd.f32 %v15020_v54, %v2734_v58  ;;  %13575 = vmatmul.msk.f32.vlgmr.msra.gmra.mxu0 %vm1356_vm5, %v2595_v55 }
 0x845   : > { %v2715_v62 = vadd.f32 %v15019_v53, %v2714_v57 }
 0x846   : > { %13572 = vmatpush.xpose.msk.msra.mxu3 %vm1356_vm5, %v2735_v63 }
 0x847   : > { %v2834_v0 = vpop.f32.mrf.mxu0  ;;  %13570 = vmatpush.xpose.msk.msra.mxu2 %vm1356_vm5, %v2715_v62 }
 0x848   : > { %v2835_v2 = vadd.f32 %v15021_v59, %v2834_v0 }
 0x849   : > { %13573 = vmatmul.msk.f32.vlgmr.msra.gmra.mxu3 %vm1356_vm5, %v2575_v3 }
 0x84a   : > { %3316 = vmatpush.msrb.mxu0 %v2835_v2  ;;  %13571 = vmatmul.msk.f32.vlgmr.msra.gmra.mxu2 %vm1356_vm5, %v2555_v1 }
 0x84c   : > { %v2814_v9 = vpop.f32.mrf.mxu3 }
 0x84d   : > { %v2794_v6 = vpop.f32.mrf.mxu2  ;;  %v2815_v12 = vadd.f32 %v15023_v5, %v2814_v9 }
 0x84e   : > { %v2795_v11 = vadd.f32 %v15022_v4, %v2794_v6 }
 0x84f   : > { %v2914_v13 = vpop.f32.mrf.mxu0  ;;  %3293 = vmatpush.msrb.mxu3 %v2815_v12 }
 0x850   : > { %3270 = vmatpush.msrb.mxu2 %v2795_v11  ;;  %v2915_v14 = vadd.f32 %v15024_v10, %v2914_v13 }
 0x852   : > { %3408 = vmatpush.msra.mxu0 %v2915_v14 }
 0x854   : > { %v2894_v18 = vpop.f32.mrf.mxu3 }
 0x855   : > { %v2874_v17 = vpop.f32.mrf.mxu2  ;;  %v2895_v20 = vadd.f32 %v15026_v16, %v2894_v18 }
 0x856   : > { %v2875_v19 = vadd.f32 %v15025_v15, %v2874_v17 }
 0x857   : > { %3385 = vmatpush.msra.mxu3 %v2895_v20 }
 0x858   : > { %3362 = vmatpush.msra.mxu2 %v2875_v19 }
 0x8b0   : > { %v2940_v21 = vpop.f32.mrf.mxu1 }
 0x8b1   : > { %v3125_v30 = vmul.f32 0.5, %v2940_v21 }
 0x8b3   : > { %v3133_v35 = vadd.f32 %v15529_v27, %v3125_v30 }
 0x8b5   : > { %v3141_v44 = vsel %vm1584_vm6, %v3133_v35, -inf }
 0x8b8   : > { %v3018_v23 = vpop.f32.mrf.mxu0  ;;  %v3044_v36 = vpop.f32.mrf.mxu1 }
 0x8b9   : > { %v3128_v41 = vmul.f32 0.5, %v3018_v23  ;;  %v3129_v42 = vmul.f32 0.5, %v3044_v36 }
 0x8bb   : > { %v3136_v47 = vadd.f32 %v15529_v27, %v3128_v41  ;;  %v3137_v48 = vadd.f32 %v15529_v27, %v3129_v42 }
 0x8bd   : > { %v3150_v50 = vsel %vm1584_vm6, %v3136_v47, -inf  ;;  %v3153_v51 = vsel %vm1584_vm6, %v3137_v48, -inf }
 0x8c1   : > { %v3122_v38 = vpop.f32.mrf.mxu0 }
 0x8c2   : > { %v3132_v45 = vmul.f32 0.5, %v3122_v38 }
 0x8c3   : > { %v2992_v25 = vpop.f32.mrf.mxu3 }
 0x8c4   : > { %v2966_v22 = vpop.f32.mrf.mxu2  ;;  %v3127_v26 = vmul.f32 0.5, %v2992_v25  ;;  %v3140_v49 = vadd.f32 %v15529_v27, %v3132_v45 }
 0x8c5   : > { %v3126_v24 = vmul.f32 0.5, %v2966_v22 }
 0x8c6   : > { %v3135_v29 = vadd.f32 %v15529_v27, %v3127_v26  ;;  %v3162_v52 = vsel %vm1584_vm6, %v3140_v49, -inf }
 0x8c7   : > { %v3134_v28 = vadd.f32 %v15529_v27, %v3126_v24 }
 0x8c8   : > { %v3147_v60 = vsel %vm1584_vm6, %v3135_v29, -inf }
 0x8c9   : > { %v3144_v31 = vsel %vm1584_vm6, %v3134_v28, -inf  ;;  %3148 = vmax.xlane.f32.xlu2 %v3147_v60 }
 0x8ca   : > { %3145 = vmax.xlane.f32.xlu1 %v3144_v31 }
 0x8cc   : > { %v3096_v34 = vpop.f32.mrf.mxu3 }
 0x8cd   : > { %v3070_v32 = vpop.f32.mrf.mxu2  ;;  %v3131_v37 = vmul.f32 0.5, %v3096_v34 }
 0x8ce   : > { %v3130_v33 = vmul.f32 0.5, %v3070_v32 }
 0x8cf   : > { %v3139_v40 = vadd.f32 %v15529_v27, %v3131_v37  ;;  %v13585_v37 = vld [vmem:[%s20604_s6 + $0x24] sm:$0xf] }
 0x8d0   : > { %v3138_v39 = vadd.f32 %v15529_v27, %v3130_v33 }
 0x8d1   : > { %v3159_v46 = vsel %vm1584_vm6, %v3139_v40, -inf }
 0x8d2   : > { %v3156_v43 = vsel %vm1584_vm6, %v3138_v39, -inf  ;;  %3142 = vmax.xlane.f32.xlu1 %v3141_v44  ;;  %3160 = vmax.xlane.f32.xlu2 %v3159_v46 }
 0x8d3   : > { %3157 = vmax.xlane.f32.xlu0 %v3156_v43 }
 0x8da   : > { %3154 = vmax.xlane.f32.xlu1 %v3153_v51  ;;  %3163 = vmax.xlane.f32.xlu2 %v3162_v52 }
 0x8db   : > { %3151 = vmax.xlane.f32.xlu0 %v3150_v50 }
 0x93c   : > { %v3149_v54 = vpop.xlane.xlu2 %3148 }
 0x93d   : > { %v3146_v53 = vpop.xlane.xlu1 %3145  ;;  %v3167_v56 = vsub.f32 %v3135_v29, %v3149_v54 }
 0x93e   : > { %v3166_v55 = vsub.f32 %v3134_v28, %v3146_v53 }
 0x93f   : > { %v3177_v58 = vmul.f32 1.442695, %v3167_v56  ;;  %v13586_v56 = vld [vmem:[%s20604_s6 + $0x28] sm:$0xf] }
 0x940   : > { %v3175_v57 = vmul.f32 1.442695, %v3166_v55 }
 0x942   : > { %15263 = vpow2.f32 %v3175_v57  ;;  %v13584_v57 = vld [vmem:[%s20604_s6 + $0x20] sm:$0xf] }
 0x943   : > { %15265 = vpow2.f32 %v3177_v58  ;;  %v13589_v58 = vld [vmem:[%s20604_s6 + $0x34] sm:$0xf] }
 0x945   : > { %v3143_v61 = vpop.xlane.xlu1 %3142  ;;  %v3161_v63 = vpop.xlane.xlu2 %3160 }
 0x946   : > { %v3158_v59 = vpop.xlane.xlu0 %3157  ;;  %v3165_v0 = vsub.f32 %v3133_v35, %v3143_v61  ;;  %v3171_v1 = vsub.f32 %v3139_v40, %v3161_v63  ;;  %v13590_v61 = vld [vmem:[%s20604_s6 + $0x38] sm:$0xf]  ;;  %v13591_v63 = vld [vmem:[%s20604_s6 + $0x3c] sm:$0xf] }
 0x947   : > { %v3170_v62 = vsub.f32 %v3138_v39, %v3158_v59  ;;  %v13587_v59 = vld [vmem:[%s20604_s6 + $0x2c] sm:$0xf] }
 0x948   : > { %v15264_v2 = vpop.eup %15263  ;;  %v3173_v4 = vmul.f32 1.442695, %v3165_v0  ;;  %v3185_v6 = vmul.f32 1.442695, %v3171_v1 }
 0x949   : > { %v3183_v3 = vmul.f32 1.442695, %v3170_v62  ;;  %v15266_v5 = vpop.eup %15265  ;;  %v3192_v9 = vsel %vm1584_vm6, %v15264_v2, 0.0  ;;  %v13588_v62 = vld [vmem:[%s20604_s6 + $0x30] sm:$0xf] }
 0x94a   : > { %3193 = vadd.xlane.f32.xlu0 %v3192_v9  ;;  %v3195_v10 = vsel %vm1584_vm6, %v15266_v5, 0.0 }
 0x94b   : > { %15267 = vpow2.f32 %v3183_v3  ;;  %3196 = vadd.xlane.f32.xlu1 %v3195_v10 }
 0x94c   : > { %15269 = vpow2.f32 %v3185_v6 }
 0x94d   : > { %15271 = vpow2.f32 %v3173_v4  ;;  %v3155_v12 = vpop.xlane.xlu1 %3154  ;;  %v3164_v14 = vpop.xlane.xlu2 %3163 }
 0x94e   : > { %v3152_v11 = vpop.xlane.xlu0 %3151  ;;  %v3169_v15 = vsub.f32 %v3137_v48, %v3155_v12  ;;  %v3172_v16 = vsub.f32 %v3140_v49, %v3164_v14 }
 0x94f   : > { %v3168_v13 = vsub.f32 %v3136_v47, %v3152_v11 }
 0x950   : > { %v3181_v19 = vmul.f32 1.442695, %v3169_v15  ;;  %v3187_v21 = vmul.f32 1.442695, %v3172_v16 }
 0x951   : > { %v15268_v17 = vpop.eup %15267  ;;  %v3179_v18 = vmul.f32 1.442695, %v3168_v13 }
 0x952   : > { %v15270_v20 = vpop.eup %15269  ;;  %v3204_v22 = vsel %vm1584_vm6, %v15268_v17, 0.0 }
 0x953   : > { %v15272_v23 = vpop.eup %15271  ;;  %15273 = vpow2.f32 %v3179_v18  ;;  %3205 = vadd.xlane.f32.xlu2 %v3204_v22  ;;  %v3207_v24 = vsel %vm1584_vm6, %v15270_v20, 0.0 }
 0x954   : > { %15275 = vpow2.f32 %v3187_v21  ;;  %v3189_v25 = vsel %vm1584_vm6, %v15272_v23, 0.0  ;;  %3208 = vadd.xlane.f32.xlu1 %v3207_v24 }
 0x955   : > { %15277 = vpow2.f32 %v3181_v19  ;;  %3190 = vadd.xlane.f32.xlu0 %v3189_v25 }
 0x959   : > { %v15274_v26 = vpop.eup %15273 }
 0x95a   : > { %v15276_v27 = vpop.eup %15275  ;;  %v3198_v28 = vsel %vm1584_vm6, %v15274_v26, 0.0 }
 0x95b   : > { %v15278_v29 = vpop.eup %15277  ;;  %3199 = vadd.xlane.f32.xlu2 %v3198_v28  ;;  %v3210_v30 = vsel %vm1584_vm6, %v15276_v27, 0.0 }
 0x95c   : > { %3211 = vadd.xlane.f32.xlu1 %v3210_v30  ;;  %v3201_v31 = vsel %vm1584_vm6, %v15278_v29, 0.0 }
 0x95d   : > { %3202 = vadd.xlane.f32.xlu0 %v3201_v31  ;;  %v15027_v31 = vld [vmem:[%s20605_s7 + $0x1] ss:$0 sm:$0xff] }
 0x9bd   : > { %v3194_v60 = vpop.xlane.xlu0 %3193 }
 0x9be   : > { %15279 = vrcp.f32 %v3194_v60  ;;  %v3197_v32 = vpop.xlane.xlu1 %3196 }
 0x9bf   : > { %15281 = vrcp.f32 %v3197_v32 }
 0x9c4   : > { %v15280_v33 = vpop.eup %15279 }
 0x9c5   : > { %v15282_v34 = vpop.eup %15281  ;;  %v3222_v35 = vmul.f32 %v15280_v33, %v15264_v2 }
 0x9c6   : > { %v3206_v36 = vpop.xlane.xlu2 %3205  ;;  %v3223_v38 = vmul.f32 %v15282_v34, %v15266_v5 }
 0x9c7   : > { %15283 = vrcp.f32 %v3206_v36  ;;  %v3209_v39 = vpop.xlane.xlu1 %3208  ;;  %13577 = vmatmul.msk.f32.vlgmr.msrb.gmra.mxu2 %vm1584_vm6, %v3222_v35 }
 0x9c8   : > { %v3191_v40 = vpop.xlane.xlu0 %3190  ;;  %15285 = vrcp.f32 %v3209_v39  ;;  %13578 = vmatmul.msk.f32.vlgmr.msrb.gmra.mxu3 %vm1584_vm6, %v3223_v38  ;;  %13594 = vmatpush.msk.msrb.mxu2 %vm1868_vm7, %v13585_v37 }
 0x9c9   : > { %15287 = vrcp.f32 %v3191_v40  ;;  %13596 = vmatpush.msk.msrb.mxu3 %vm1868_vm7, %v13586_v56 }
 0x9cd   : > { %v15284_v41 = vpop.eup %15283 }
 0x9ce   : > { %v15286_v42 = vpop.eup %15285  ;;  %v3226_v43 = vmul.f32 %v15284_v41, %v15268_v17  ;;  %v3200_v44 = vpop.xlane.xlu2 %3199  ;;  %v13614_v41 = vld [vmem:[%s20608_s10 + $0x38] sm:$0xff] }
 0x9cf   : > { %v15288_v45 = vpop.eup %15287  ;;  %v3227_v46 = vmul.f32 %v15286_v42, %v15270_v20  ;;  %15289 = vrcp.f32 %v3200_v44  ;;  %v3212_v49 = vpop.xlane.xlu1 %3211  ;;  %v13612_v42 = vld [vmem:[%s20608_s10 + $0x28] sm:$0xff]  ;;  %v13632_v44 = vld [vmem:[%s20610_s12 + $0xf8] sm:$0xff] }
 0x9d0   : > { %v3221_v47 = vmul.f32 %v15288_v45, %v15272_v23  ;;  %v3203_v48 = vpop.xlane.xlu0 %3202  ;;  %13581 = vmatmul.msk.f32.vlgmr.msra.gmra.mxu2 %vm1584_vm6, %v3226_v43  ;;  %v13611_v43 = vld [vmem:[%s20608_s10 + $0x20] sm:$0xff]  ;;  %v13631_v45 = vld [vmem:[%s20610_s12 + $0xf0] sm:$0xff] }
 0x9d1   : > { %15291 = vrcp.f32 %v3203_v48  ;;  %13582 = vmatmul.msk.f32.vlgmr.msra.gmra.mxu3 %vm1584_vm6, %v3227_v46  ;;  %13602 = vmatpush.msk.msra.mxu2 %vm1868_vm7, %v13589_v58  ;;  %v13630_v46 = vld [vmem:[%s20610_s12 + $0xe8] sm:$0xff] }
 0x9d2   : > { %13576 = vmatmul.msk.f32.vlgmr.msrb.gmra.mxu1 %vm1584_vm6, %v3221_v47  ;;  %15293 = vrcp.f32 %v3212_v49  ;;  %13604 = vmatpush.msk.msra.mxu3 %vm1868_vm7, %v13590_v61  ;;  %v13629_v49 = vld [vmem:[%s20610_s12 + $0xe0] sm:$0xff] }
 0x9d3   : > { %13592 = vmatpush.msk.msrb.mxu1 %vm1868_vm7, %v13584_v57  ;;  %v15028_v57 = vld [vmem:[%s20606_s8 + $0x1] ss:$0 sm:$0xff] }
 0x9d4   : > { %v15029_v61 = vld [vmem:[%s20607_s9 + $0x1] ss:$0 sm:$0xff] }
 0x9d5   : > { %v15290_v50 = vpop.eup %15289 }
 0x9d6   : > { %v3224_v51 = vmul.f32 %v15290_v50, %v15274_v26 }
 0x9d7   : > { %v15292_v52 = vpop.eup %15291 }
 0x9d8   : > { %v3225_v53 = vmul.f32 %v15292_v52, %v15278_v29  ;;  %13579 = vmatmul.msk.f32.vlgmr.msrb.gmra.mxu0 %vm1584_vm6, %v3224_v51  ;;  %v15294_v54 = vpop.eup %15293 }
 0x9d9   : > { %v3228_v55 = vmul.f32 %v15294_v54, %v15276_v27  ;;  %13598 = vmatpush.msk.msrb.mxu0 %vm1868_vm7, %v13587_v59 }
 0x9da   : > { %13580 = vmatmul.msk.f32.vlgmr.msra.gmra.mxu1 %vm1584_vm6, %v3225_v53 }
 0x9db   : > { %13600 = vmatpush.msk.msra.mxu1 %vm1868_vm7, %v13588_v62 }
 0x9e0   : > { %13583 = vmatmul.msk.f32.vlgmr.msra.gmra.mxu0 %vm1584_vm6, %v3228_v55 }
 0x9e1   : > { %13606 = vmatpush.msk.msra.mxu0 %vm1868_vm7, %v13591_v63 }
 0xa4a   : > { %v3272_v0 = vpop.f32.mrf.mxu2 }
 0xa4b   : > { %v3295_v1 = vpop.f32.mrf.mxu3  ;;  %13595 = vmatmul.msk.f32.vlgmr.msrb.gmra.mxu2 %vm1356_vm5, %v3272_v0  ;;  %v13628_v0 = vld [vmem:[%s20610_s12 + $0xd8] sm:$0xff] }
 0xa4c   : > { %13597 = vmatmul.msk.f32.vlgmr.msrb.gmra.mxu3 %vm1356_vm5, %v3295_v1  ;;  %3750 = vmatpush.msrb.mxu2 %v13632_v44  ;;  %v13627_v1 = vld [vmem:[%s20610_s12 + $0xd0] sm:$0xff]  ;;  %v13645_v44 = vld [vmem:[%s20627_s0 + $0x648] sm:$0xff] }
 0xa4e   : > { %3751 = vmatpush.msrb.mxu2 %v13631_v45  ;;  %v13685_v45 = vld [vmem:[%s20627_s0 + $0x788] sm:$0xff] }
 0xa4f   : > { %v3249_v2 = vpop.f32.mrf.mxu1 }
 0xa50   : > { %13593 = vmatmul.msk.f32.vlgmr.msrb.gmra.mxu1 %vm1356_vm5, %v3249_v2  ;;  %3752 = vmatpush.msrb.mxu2 %v13630_v46  ;;  %v13626_v2 = vld [vmem:[%s20610_s12 + $0xc8] sm:$0xff]  ;;  %v13636_v46 = vld [vmem:[%s20627_s0 + $0x600] sm:$0xff] }
 0xa51   : > { %3711 = vmatpush.msrb.mxu1 %v13614_v41  ;;  %v13646_v41 = vld [vmem:[%s20627_s0 + $0x650] sm:$0xff] }
 0xa52   : > { %3753 = vmatpush.msrb.mxu2 %v13629_v49  ;;  %v13684_v49 = vld [vmem:[%s20627_s0 + $0x780] sm:$0xff] }
 0xa53   : > { %v3364_v3 = vpop.f32.mrf.mxu2 }
 0xa54   : > { %v3387_v4 = vpop.f32.mrf.mxu3  ;;  %13603 = vmatmul.msk.f32.vlgmr.msra.gmra.mxu2 %vm1356_vm5, %v3364_v3  ;;  %v13625_v3 = vld [vmem:[%s20610_s12 + $0xc0] sm:$0xff] }
 0xa55   : > { %13605 = vmatmul.msk.f32.vlgmr.msra.gmra.mxu3 %vm1356_vm5, %v3387_v4  ;;  %v3318_v5 = vpop.f32.mrf.mxu0  ;;  %3754 = vmatpush.msrb.mxu2 %v13628_v0  ;;  %v13624_v4 = vld [vmem:[%s20610_s12 + $0xb8] sm:$0xff]  ;;  %v13701_v0 = vld [vmem:[%s20627_s0 + $0x808] sm:$0xff] }
 0xa56   : > { %13599 = vmatmul.msk.f32.vlgmr.msrb.gmra.mxu0 %vm1356_vm5, %v3318_v5  ;;  %v13623_v5 = vld [vmem:[%s20610_s12 + $0xb0] sm:$0xff] }
 0xa57   : > { %v3341_v6 = vpop.f32.mrf.mxu1  ;;  %3755 = vmatpush.msrb.mxu2 %v13627_v1 }
 0xa58   : > { %13601 = vmatmul.msk.f32.vlgmr.msra.gmra.mxu1 %vm1356_vm5, %v3341_v6  ;;  %v13622_v6 = vld [vmem:[%s20610_s12 + $0xa8] sm:$0xff] }
 0xa59   : > { %3756 = vmatpush.msrb.mxu2 %v13626_v2  ;;  %v13648_v2 = vld [vmem:[%s20627_s0 + $0x660] sm:$0xff] }
 0xa5b   : > { %3757 = vmatpush.msrb.mxu2 %v13625_v3  ;;  %v13652_v3 = vld [vmem:[%s20627_s0 + $0x680] sm:$0xff] }
 0xa5d   : > { %v3410_v9 = vpop.f32.mrf.mxu0  ;;  %3758 = vmatpush.msrb.mxu2 %v13624_v4  ;;  %v13656_v4 = vld [vmem:[%s20627_s0 + $0x6a0] sm:$0xff] }
 0xa5e   : > { %13607 = vmatmul.msk.f32.vlgmr.msra.gmra.mxu0 %vm1356_vm5, %v3410_v9  ;;  %v13621_v9 = vld [vmem:[%s20610_s12 + $0xa0] sm:$0xff] }
 0xa5f   : > { %3759 = vmatpush.msrb.mxu2 %v13623_v5  ;;  %v13700_v5 = vld [vmem:[%s20627_s0 + $0x800] sm:$0xff] }
 0xa61   : > { %3760 = vmatpush.msrb.mxu2 %v13622_v6 }
 0xa63   : > { %3761 = vmatpush.msrb.mxu2 %v13621_v9 }
 0xacd   : > { %v3445_v10 = vpop.f32.mrf.mxu1 }
 0xace   : > { %v3471_v11 = vpop.f32.mrf.mxu2  ;;  %v3630_v12 = vsel %vm643_vm0, %v3445_v10, 0.0  ;;  %v13620_v10 = vld [vmem:[%s20610_s12 + $0x98] sm:$0xff] }
 0xacf   : > { %v3631_v13 = vsel %vm643_vm0, %v3471_v11, 0.0  ;;  %v3497_v14 = vpop.f32.mrf.mxu3  ;;  %v13619_v11 = vld [vmem:[%s20610_s12 + $0x90] sm:$0xff]  ;;  %3762 = vmatpush.msrb.mxu2 %v13620_v10 }
 0xad0   : > { %v3632_v15 = vadd.f32 %v3631_v13, %v3630_v12  ;;  %v3633_v16 = vsel %vm643_vm0, %v3497_v14, 0.0  ;;  %v13618_v12 = vld [vmem:[%s20610_s12 + $0x88] sm:$0xff]  ;;  %v13617_v13 = vld [vmem:[%s20610_s12 + $0x80] sm:$0xff] }
 0xad1   : > { %3763 = vmatpush.msrb.mxu2 %v13619_v11  ;;  %v15030_v14 = vld [vmem:[%s20609_s11 + $0x1] ss:$0 sm:$0xff] }
 0xad2   : > { %v3634_v17 = vadd.f32 %v3633_v16, %v3632_v15 }
 0xad3   : > { %v3523_v18 = vpop.f32.mrf.mxu0  ;;  %3764 = vmatpush.msrb.mxu2 %v13618_v12 }
 0xad4   : > { %v3635_v19 = vsel %vm643_vm0, %v3523_v18, 0.0 }
 0xad5   : > { %v3636_v20 = vadd.f32 %v3635_v19, %v3634_v17  ;;  %v3549_v21 = vpop.f32.mrf.mxu1  ;;  %3765 = vmatpush.msrb.mxu2 %v13617_v13 }
 0xad6   : > { %v3637_v22 = vsel %vm643_vm0, %v3549_v21, 0.0 }
 0xad7   : > { %v3638_v23 = vadd.f32 %v3637_v22, %v3636_v20  ;;  %v3575_v24 = vpop.f32.mrf.mxu2 }
 0xad8   : > { %v3639_v25 = vsel %vm643_vm0, %v3575_v24, 0.0  ;;  %v3601_v26 = vpop.f32.mrf.mxu3 }
 0xad9   : > { %v3640_v27 = vadd.f32 %v3639_v25, %v3638_v23  ;;  %v3641_v28 = vsel %vm643_vm0, %v3601_v26, 0.0  ;;  %v15031_v26 = vld [vmem:[%s20611_s13 + $0x1] ss:$0 sm:$0xff] }
 0xadb   : > { %v3642_v29 = vadd.f32 %v3641_v28, %v3640_v27  ;;  %v3627_v30 = vpop.f32.mrf.mxu0 }
 0xadc   : > { %v3643_v60 = vsel %vm643_vm0, %v3627_v30, 0.0 }
 0xadd   : > { %v3644_v32 = vadd.f32 %v3643_v60, %v3642_v29 }
 0xadf   : > { %v3650_v33 = vadd.f32 %v15027_v31, %v3644_v32 }
 0xae1   : > { %v3651_v34 = vadd.f32 %v3650_v33, %v16378_v7  ;;  %v13613_v7 = vld [vmem:[%s20608_s10 + $0x30] sm:$0xff] }
 0xae2   : > { %3712 = vmatpush.msrb.mxu1 %v13613_v7  ;;  %v13686_v7 = vld [vmem:[%s20627_s0 + $0x790] sm:$0xff] }
 0xae3   : > { %v3656_v35 = vsel %vm643_vm0, %v3651_v34, 0.0 }
 0xae4   : > { %3657 = vadd.xlane.f32.xlu2 %v3656_v35  ;;  %3713 = vmatpush.msrb.mxu1 %v13612_v42  ;;  %v13639_v35 = vld [vmem:[%s20627_s0 + $0x618] sm:$0xff]  ;;  %v13637_v42 = vld [vmem:[%s20627_s0 + $0x608] sm:$0xff] }
 0xae5   : > { %4014 = vmatpush.msrb.mxu3 %v13639_v35  ;;  %v13675_v35 = vld [vmem:[%s20627_s0 + $0x738] sm:$0xff] }
 0xae6   : > { %3714 = vmatpush.msrb.mxu1 %v13611_v43  ;;  %v13641_v43 = vld [vmem:[%s20627_s0 + $0x628] sm:$0xff] }
 0xb57   : > { %v3658_v36 = vpop.xlane.xlu2 %3657 }
 0xb58   : > { %v3659_v37 = vmul.f32 %v3658_v36, %v15667_v8  ;;  %v13643_v36 = vld [vmem:[%s20627_s0 + $0x638] sm:$0xff] }
 0xb59   : > { %4034 = vmatpush.msrb.mxu0 %v13643_v36  ;;  %v13679_v36 = vld [vmem:[%s20627_s0 + $0x758] sm:$0xff] }
 0xb5a   : > { %v3660_v38 = vsub.f32 %v3651_v34, %v3659_v37  ;;  %v13647_v37 = vld [vmem:[%s20627_s0 + $0x658] sm:$0xff] }
 0xb5b   : > { %4054 = vmatpush.msra.mxu1 %v13647_v37  ;;  %v13683_v37 = vld [vmem:[%s20627_s0 + $0x778] sm:$0xff] }
 0xb5c   : > { %v3661_v39 = vmul.f32 %v3660_v38, %v3660_v38 }
 0xb5d   : > { %4055 = vmatpush.msra.mxu1 %v13646_v41  ;;  %v13673_v41 = vld [vmem:[%s20627_s0 + $0x728] sm:$0xff] }
 0xb5e   : > { %v3662_v40 = vsel %vm643_vm0, %v3661_v39, 0.0  ;;  %v13638_v39 = vld [vmem:[%s20627_s0 + $0x610] sm:$0xff] }
 0xb5f   : > { %3663 = vadd.xlane.f32.xlu0 %v3662_v40  ;;  %v13642_v40 = vld [vmem:[%s20627_s0 + $0x630] sm:$0xff]  ;;  %4015 = vmatpush.msrb.mxu3 %v13638_v39 }
 0xb60   : > { %4035 = vmatpush.msrb.mxu0 %v13642_v40  ;;  %4056 = vmatpush.msra.mxu1 %v13645_v44  ;;  %v13678_v39 = vld [vmem:[%s20627_s0 + $0x750] sm:$0xff]  ;;  %v13676_v44 = vld [vmem:[%s20627_s0 + $0x740] sm:$0xff] }
 0xb61   : > { %4016 = vmatpush.msrb.mxu3 %v13637_v42  ;;  %v13682_v40 = vld [vmem:[%s20627_s0 + $0x770] sm:$0xff]  ;;  %v13681_v42 = vld [vmem:[%s20627_s0 + $0x768] sm:$0xff] }
 0xb62   : > { %4036 = vmatpush.msrb.mxu0 %v13641_v43  ;;  %v13672_v43 = vld [vmem:[%s20627_s0 + $0x720] sm:$0xff] }
 0xb63   : > { %4017 = vmatpush.msrb.mxu3 %v13636_v46  ;;  %v13691_v46 = vld [vmem:[%s20627_s0 + $0x7b8] sm:$0xff] }
 0xbd2   : > { %v3664_v47 = vpop.xlane.xlu0 %3663 }
 0xbd3   : > { %v3665_v48 = vmul.f32 %v3664_v47, %v15667_v8  ;;  %v13640_v47 = vld [vmem:[%s20627_s0 + $0x620] sm:$0xff] }
 0xbd4   : > { %4037 = vmatpush.msrb.mxu0 %v13640_v47  ;;  %v13695_v47 = vld [vmem:[%s20627_s0 + $0x7d8] sm:$0xff] }
 0xbd5   : > { %v3666_v50 = vadd.f32 1e-12, %v3665_v48  ;;  %v13644_v48 = vld [vmem:[%s20627_s0 + $0x640] sm:$0xff] }
 0xbd6   : > { %4057 = vmatpush.msra.mxu1 %v13644_v48  ;;  %v13699_v48 = vld [vmem:[%s20627_s0 + $0x7f8] sm:$0xff] }
 0xbd7   : > { %15295 = vrsqrt.f32 %v3666_v50  ;;  %vm3673_vm15 = vweird.f32 %v3666_v50 }
 0xbdd   : > { %v15296_v51 = vpop.eup %15295 }
 0xbde   : > { %v3668_v52 = vmul.f32 %v15296_v51, %v3666_v50  ;;  %vm3674_vm14 = vweird.f32 %v15296_v51  ;;  %v13651_v50 = vld [vmem:[%s20627_s0 + $0x678] sm:$0xff] }
 0xbdf   : > { %vm3675_vm1 = vmor %vm3673_vm15, %vm3674_vm14  ;;  %4074 = vmatpush.msra.mxu3 %v13651_v50  ;;  %v13694_v50 = vld [vmem:[%s20627_s0 + $0x7d0] sm:$0xff] }
 0xbe0   : > { %v3669_v53 = vmul.f32 %v15296_v51, %v3668_v52  ;;  %v13659_v52 = vld [vmem:[%s20627_s0 + $0x6b8] sm:$0xff] }
 0xbe2   : > { %v3670_v54 = vmul.f32 0.5, %v3669_v53  ;;  %v13703_v53 = vld [vmem:[%s20627_s0 + $0x818] sm:$0xff] }
 0xbe4   : > { %v3671_v55 = vsub.f32 1.5, %v3670_v54  ;;  %v13650_v54 = vld [vmem:[%s20627_s0 + $0x670] sm:$0xff] }
 0xbe5   : > { %4075 = vmatpush.msra.mxu3 %v13650_v54  ;;  %v13697_v54 = vld [vmem:[%s20627_s0 + $0x7e8] sm:$0xff] }
 0xbe6   : > { %v3672_v56 = vmul.f32 %v15296_v51, %v3671_v55  ;;  %v13654_v55 = vld [vmem:[%s20627_s0 + $0x690] sm:$0xff] }
 0xbe8   : > { %v3676_v58 = vsel %vm3675_vm1, %v15296_v51, %v3672_v56  ;;  %v13655_v51 = vld [vmem:[%s20627_s0 + $0x698] sm:$0xff] }
 0xbe9   : > { %v3677_v59 = vmul.f32 %v3676_v58, %v3660_v38  ;;  %v13687_v38 = vld [vmem:[%s20627_s0 + $0x798] sm:$0xff]  ;;  %4094 = vmatpush.msra.mxu0 %v13655_v51  ;;  %v13702_v58 = vld [vmem:[%s20627_s0 + $0x810] sm:$0xff] }
 0xbea   : > { %4254 = vmatpush.msra.mxu2 %v13687_v38  ;;  %v13674_v38 = vld [vmem:[%s20627_s0 + $0x730] sm:$0xff] }
 0xbeb   : > { %v3681_v62 = vmul.f32 %v15028_v57, %v3677_v59  ;;  %v13658_v57 = vld [vmem:[%s20627_s0 + $0x6b0] sm:$0xff]  ;;  %4095 = vmatpush.msra.mxu0 %v13654_v55  ;;  %v13688_v55 = vld [vmem:[%s20627_s0 + $0x7a0] sm:$0xff] }
 0xbec   : > { %4255 = vmatpush.msra.mxu2 %v13686_v7  ;;  %v13677_v7 = vld [vmem:[%s20627_s0 + $0x748] sm:$0xff]  ;;  %v13698_v51 = vld [vmem:[%s20627_s0 + $0x7f0] sm:$0xff] }
 0xbed   : > { %v3685_v63 = vadd.f32 %v15029_v61, %v3681_v62  ;;  %v13649_v61 = vld [vmem:[%s20627_s0 + $0x668] sm:$0xff] }
 0xbee   : > { %4256 = vmatpush.msra.mxu2 %v13685_v45  ;;  %v13653_v62 = vld [vmem:[%s20627_s0 + $0x688] sm:$0xff]  ;;  %4076 = vmatpush.msra.mxu3 %v13649_v61  ;;  %v13680_v45 = vld [vmem:[%s20627_s0 + $0x760] sm:$0xff]  ;;  %v13715_v61 = vld [vmem:[%s20627_s0 + $0x878] sm:$0xff] }
 0xbef   : > { %13616 = vmatmul.msk.f32.vlgmr.msrb.gmra.mxu1 %vm643_vm0, %v3685_v63  ;;  %4096 = vmatpush.msra.mxu0 %v13653_v62  ;;  %v13706_v62 = vld [vmem:[%s20627_s0 + $0x830] sm:$0xff] }
 0xbf0   : > { %4257 = vmatpush.msra.mxu2 %v13684_v49  ;;  %4114 = vmatpush.msrb.mxu1 %v13659_v52  ;;  %v13690_v49 = vld [vmem:[%s20627_s0 + $0x7b0] sm:$0xff]  ;;  %v13689_v52 = vld [vmem:[%s20627_s0 + $0x7a8] sm:$0xff] }
 0xbf1   : > { %4077 = vmatpush.msra.mxu3 %v13648_v2  ;;  %4097 = vmatpush.msra.mxu0 %v13652_v3  ;;  %v13709_v2 = vld [vmem:[%s20627_s0 + $0x848] sm:$0xff] }
 0xbf2   : > { %4115 = vmatpush.msrb.mxu1 %v13658_v57  ;;  %v13707_v57 = vld [vmem:[%s20627_s0 + $0x838] sm:$0xff]  ;;  %v13713_v3 = vld [vmem:[%s20627_s0 + $0x868] sm:$0xff] }
 0xc6c   : > { %v3716_v15 = vpop.f32.mrf.mxu1 }
 0xc6d   : > { %v3717_v16 = vadd.f32 %v15030_v14, %v3716_v15  ;;  %v15032_v14 = vld [vmem:[%s20612_s14 + $0x1] ss:$0 sm:$0xff] }
 0xc6f   : > { %v3720_v17 = vmul.f32 0.044715, %v3717_v16  ;;  %v3719_v23 = vmul.f32 0.5, %v3717_v16 }
 0xc71   : > { %v3721_v18 = vmul.f32 %v3720_v17, %v3717_v16 }
 0xc73   : > { %v3722_v19 = vmul.f32 %v3721_v18, %v3717_v16 }
 0xc75   : > { %v3723_v20 = vadd.f32 %v3722_v19, %v3717_v16  ;;  %v15033_v16 = vld [vmem:[%s20613_s15 + $0x1] ss:$0 sm:$0xff] }
 0xc77   : > { %v3724_v21 = vmul.f32 0.7978846, %v3723_v20  ;;  %v13663_v20 = vld [vmem:[%s20627_s0 + $0x6d8] sm:$0xff] }
 0xc79   : > { %15297 = vtanh.f32 %v3724_v21  ;;  %v13667_v21 = vld [vmem:[%s20627_s0 + $0x6f8] sm:$0xff] }
 0xc7f   : > { %v15298_v22 = vpop.eup %15297 }
 0xc80   : > { %v3726_v24 = vadd.f32 1.0, %v15298_v22  ;;  %v13671_v22 = vld [vmem:[%s20627_s0 + $0x718] sm:$0xff] }
 0xc82   : > { %v3727_v25 = vmul.f32 %v3726_v24, %v3719_v23  ;;  %v13719_v23 = vld [vmem:[%s20627_s0 + $0x898] sm:$0xff]  ;;  %v13662_v24 = vld [vmem:[%s20627_s0 + $0x6d0] sm:$0xff] }
 0xc84   : > { %3766 = vmatmul.f32.vlgmr.msrb.gmra.mxu2 %v3727_v25  ;;  %v13666_v25 = vld [vmem:[%s20627_s0 + $0x6f0] sm:$0xff] }
 0xc85   : > { %4334 = vmatpush.msrb.mxu2 %v13703_v53  ;;  %v13693_v53 = vld [vmem:[%s20627_s0 + $0x7c8] sm:$0xff] }
 0xc87   : > { %4335 = vmatpush.msrb.mxu2 %v13702_v58  ;;  %v13696_v58 = vld [vmem:[%s20627_s0 + $0x7e0] sm:$0xff] }
 0xc89   : > { %4336 = vmatpush.msrb.mxu2 %v13701_v0  ;;  %v13714_v0 = vld [vmem:[%s20627_s0 + $0x870] sm:$0xff] }
 0xc8b   : > { %4337 = vmatpush.msrb.mxu2 %v13700_v5  ;;  %v13708_v5 = vld [vmem:[%s20627_s0 + $0x840] sm:$0xff] }
 0xd07   : > { %v3767_v27 = vpop.f32.mrf.mxu2 }
 0xd08   : > { %v3768_v28 = vadd.f32 %v15031_v26, %v3767_v27  ;;  %v13670_v26 = vld [vmem:[%s20627_s0 + $0x710] sm:$0xff] }
 0xd09   : > { %v13718_v27 = vld [vmem:[%s20627_s0 + $0x890] sm:$0xff] }
 0xd0a   : > { %v3770_v29 = vadd.f32 %v3768_v28, %v3685_v63  ;;  %v13657_v63 = vld [vmem:[%s20627_s0 + $0x6a8] sm:$0xff] }
 0xd0b   : > { %4116 = vmatpush.msrb.mxu1 %v13657_v63  ;;  %v13661_v28 = vld [vmem:[%s20627_s0 + $0x6c8] sm:$0xff]  ;;  %v13710_v63 = vld [vmem:[%s20627_s0 + $0x850] sm:$0xff] }
 0xd0c   : > { %v3775_v30 = vsel %vm643_vm0, %v3770_v29, 0.0 }
 0xd0d   : > { %3776 = vadd.xlane.f32.xlu1 %v3775_v30  ;;  %4117 = vmatpush.msrb.mxu1 %v13656_v4  ;;  %v13669_v30 = vld [vmem:[%s20627_s0 + $0x708] sm:$0xff]  ;;  %v13704_v4 = vld [vmem:[%s20627_s0 + $0x820] sm:$0xff] }
 0xd80   : > { %v3777_v31 = vpop.xlane.xlu1 %3776 }
 0xd81   : > { %v3778_v60 = vmul.f32 %v3777_v31, %v15667_v8  ;;  %v13717_v31 = vld [vmem:[%s20627_s0 + $0x888] sm:$0xff] }
 0xd83   : > { %v16867_v32 = vsub.f32 %v3770_v29, %v3778_v60  ;;  %v13665_v29 = vld [vmem:[%s20627_s0 + $0x6e8] sm:$0xff]  ;;  %v13660_v60 = vld [vmem:[%s20627_s0 + $0x6c0] sm:$0xff] }
 0xd85   : > { %v3780_v33 = vmul.f32 %v16867_v32, %v16867_v32 }
 0xd87   : > { %v3781_v34 = vsel %vm643_vm0, %v3780_v33, 0.0  ;;  %v13668_v33 = vld [vmem:[%s20627_s0 + $0x700] sm:$0xff] }
 0xd88   : > { %3782 = vadd.xlane.f32.xlu2 %v3781_v34  ;;  %v13716_v34 = vld [vmem:[%s20627_s0 + $0x880] sm:$0xff] }
 0xdfb   : > { %v3783_v56 = vpop.xlane.xlu2 %3782 }
 0xdfc   : > { %v3784_v59 = vmul.f32 %v3783_v56, %v15667_v8  ;;  %v13692_v56 = vld [vmem:[%s20627_s0 + $0x7c0] sm:$0xff] }
 0xdfe   : > { %v3785_v1 = vadd.f32 1e-12, %v3784_v59  ;;  %v13711_v59 = vld [vmem:[%s20627_s0 + $0x858] sm:$0xff] }
 0xe00   : > { %15299 = vrsqrt.f32 %v3785_v1  ;;  %vm3792_vm3 = vweird.f32 %v3785_v1 }
 0xe06   : > { %v15300_v6 = vpop.eup %15299 }
 0xe07   : > { %v3787_v9 = vmul.f32 %v15300_v6, %v3785_v1  ;;  %vm3793_vm2 = vweird.f32 %v15300_v6  ;;  %v13705_v1 = vld [vmem:[%s20627_s0 + $0x828] sm:$0xff] }
 0xe08   : > { %vm3794_vm4 = vmor %vm3792_vm3, %vm3793_vm2 }
 0xe09   : > { %v3788_v10 = vmul.f32 %v15300_v6, %v3787_v9  ;;  %v13712_v9 = vld [vmem:[%s20627_s0 + $0x860] sm:$0xff] }
 0xe0b   : > { %v3789_v11 = vmul.f32 0.5, %v3788_v10  ;;  %v13727_v10 = vld [vmem:[%s20627_s0 + $0x8d8] sm:$0xff] }
 0xe0d   : > { %v3790_v12 = vsub.f32 1.5, %v3789_v11  ;;  %v13731_v11 = vld [vmem:[%s20627_s0 + $0x8f8] sm:$0xff] }
 0xe0f   : > { %v3791_v13 = vmul.f32 %v15300_v6, %v3790_v12  ;;  %v13722_v12 = vld [vmem:[%s20627_s0 + $0x8b0] sm:$0xff] }
 0xe11   : > { %v3795_v15 = vsel %vm3794_vm4, %v15300_v6, %v3791_v13  ;;  %v13723_v6 = vld [vmem:[%s20627_s0 + $0x8b8] sm:$0xff]  ;;  %v13726_v13 = vld [vmem:[%s20627_s0 + $0x8d0] sm:$0xff] }
 0xe12   : > { %v3796_v17 = vmul.f32 %v3795_v15, %v16867_v32  ;;  %v13664_v32 = vld [vmem:[%s20627_s0 + $0x6e0] sm:$0xff]  ;;  %v13721_v15 = vld [vmem:[%s20627_s0 + $0x8a8] sm:$0xff] }
 0xe14   : > { %v3800_v18 = vmul.f32 %v15032_v14, %v3796_v17  ;;  %v13730_v14 = vld [vmem:[%s20627_s0 + $0x8f0] sm:$0xff]  ;;  %v13729_v17 = vld [vmem:[%s20627_s0 + $0x8e8] sm:$0xff] }
 0xe16   : > { %v16976_v19 = vadd.f32 %v15033_v16, %v3800_v18  ;;  %v13725_v16 = vld [vmem:[%s20627_s0 + $0x8c8] sm:$0xff]  ;;  %v13720_v18 = vld [vmem:[%s20627_s0 + $0x8a0] sm:$0xff] }
 0xe18   : > { %13756 = vmatmul.msk.f32.vlgmr.msrb.gmra.mxu3 %vm643_vm0, %v16976_v19  ;;  %13757 = vmatmul.msk.f32.vlgmr.msrb.gmra.mxu0 %vm643_vm0, %v16976_v19 }
 0xe19   : > { %13758 = vmatmul.msk.f32.vlgmr.msra.gmra.mxu1 %vm643_vm0, %v16976_v19  ;;  %13768 = vmatmul.msk.f32.vlgmr.msra.gmra.mxu2 %vm643_vm0, %v16976_v19 }
 0xe1a   : > { %4134 = vmatpush.msrb.mxu3 %v13663_v20  ;;  %4154 = vmatpush.msrb.mxu0 %v13667_v21  ;;  %v13724_v20 = vld [vmem:[%s20627_s0 + $0x8c0] sm:$0xff] }
 0xe1b   : > { %4174 = vmatpush.msra.mxu1 %v13671_v22  ;;  %4414 = vmatpush.msra.mxu2 %v13719_v23  ;;  %v13728_v21 = vld [vmem:[%s20627_s0 + $0x8e0] sm:$0xff] }
 0xe1c   : > { %4135 = vmatpush.msrb.mxu3 %v13662_v24  ;;  %4155 = vmatpush.msrb.mxu0 %v13666_v25 }
 0xe1d   : > { %4175 = vmatpush.msra.mxu1 %v13670_v26  ;;  %4415 = vmatpush.msra.mxu2 %v13718_v27 }
 0xe1e   : > { %4136 = vmatpush.msrb.mxu3 %v13661_v28  ;;  %4156 = vmatpush.msrb.mxu0 %v13665_v29  ;;  %v15043_v29 = vld [vmem:[%s20603_s5 + $0x38] ss:$0 sm:$0xff] }
 0xe1f   : > { %4176 = vmatpush.msra.mxu1 %v13669_v30  ;;  %4416 = vmatpush.msra.mxu2 %v13717_v31  ;;  %v15037_v30 = vld [vmem:[%s20603_s5 + $0x3c] ss:$0 sm:$0xff] }
 0xe20   : > { %13759 = vmatmul.msk.f32.vlgmr.msra.gmra.mxu3 %vm643_vm0, %v16976_v19  ;;  %13760 = vmatmul.msk.f32.vlgmr.msra.gmra.mxu0 %vm643_vm0, %v16976_v19 }
 0xe21   : > { %13761 = vmatmul.msk.f32.vlgmr.msrb.gmra.mxu1 %vm643_vm0, %v16976_v19  ;;  %13772 = vmatmul.msk.f32.vlgmr.msrb.gmra.mxu2 %vm643_vm0, %v16976_v19 }
 0xe22   : > { %4137 = vmatpush.msrb.mxu3 %v13660_v60  ;;  %4157 = vmatpush.msrb.mxu0 %v13664_v32  ;;  %v15036_v60 = vld [vmem:[%s20603_s5 + $0x30] ss:$0 sm:$0xff] }
 0xe23   : > { %4177 = vmatpush.msra.mxu1 %v13668_v33  ;;  %4417 = vmatpush.msra.mxu2 %v13716_v34  ;;  %v15041_v34 = vld [vmem:[%s20603_s5 + $0x40] ss:$0 sm:$0xff] }
 0xe24   : > { %4194 = vmatpush.msra.mxu3 %v13675_v35  ;;  %4214 = vmatpush.msra.mxu0 %v13679_v36 }
 0xe25   : > { %4234 = vmatpush.msrb.mxu1 %v13683_v37 }
 0xe26   : > { %4195 = vmatpush.msra.mxu3 %v13674_v38  ;;  %4215 = vmatpush.msra.mxu0 %v13678_v39  ;;  %v15046_v38 = vld [vmem:[%s20603_s5 + $0x3a] ss:$0 sm:$0xff] }
 0xe27   : > { %4235 = vmatpush.msrb.mxu1 %v13682_v40 }
 0xe28   : > { %13762 = vmatmul.msk.f32.vlgmr.msrb.gmra.mxu3 %vm643_vm0, %v16976_v19  ;;  %13763 = vmatmul.msk.f32.vlgmr.msrb.gmra.mxu0 %vm643_vm0, %v16976_v19 }
 0xe29   : > { %13764 = vmatmul.msk.f32.vlgmr.msra.gmra.mxu1 %vm643_vm0, %v16976_v19  ;;  %13776 = vmatmul.msk.f32.vlgmr.msra.gmra.mxu2 %vm643_vm0, %v16976_v19 }
 0xe2a   : > { %4196 = vmatpush.msra.mxu3 %v13673_v41  ;;  %4216 = vmatpush.msra.mxu0 %v13677_v7  ;;  %v15047_v41 = vld [vmem:[%s20603_s5 + $0x3b] ss:$0 sm:$0xff]  ;;  %v15035_v7 = vld [vmem:[%s20603_s5 + $0x32] ss:$0 sm:$0xff] }
 0xe2b   : > { %4236 = vmatpush.msrb.mxu1 %v13681_v42 }
 0xe2c   : > { %4197 = vmatpush.msra.mxu3 %v13672_v43  ;;  %4217 = vmatpush.msra.mxu0 %v13676_v44  ;;  %v15038_v43 = vld [vmem:[%s20603_s5 + $0x34] ss:$0 sm:$0xff]  ;;  %v15040_v44 = vld [vmem:[%s20603_s5 + $0x33] ss:$0 sm:$0xff] }
 0xe2d   : > { %4237 = vmatpush.msrb.mxu1 %v13680_v45 }
 0xe2e   : > { %4274 = vmatpush.msrb.mxu3 %v13691_v46  ;;  %4294 = vmatpush.msrb.mxu0 %v13695_v47  ;;  %v15045_v47 = vld [vmem:[%s20603_s5 + $0x44] ss:$0 sm:$0xff] }
 0xe2f   : > { %4314 = vmatpush.msra.mxu1 %v13699_v48 }
 0xe30   : > { %4275 = vmatpush.msrb.mxu3 %v13690_v49  ;;  %13766 = vmatmul.msk.f32.vlgmr.msra.gmra.mxu0 %vm643_vm0, %v16976_v19 }
 0xe31   : > { %13765 = vmatmul.msk.f32.vlgmr.msra.gmra.mxu3 %vm643_vm0, %v16976_v19  ;;  %13767 = vmatmul.msk.f32.vlgmr.msrb.gmra.mxu1 %vm643_vm0, %v16976_v19 }
 0xe32   : > { %4295 = vmatpush.msrb.mxu0 %v13694_v50  ;;  %4315 = vmatpush.msra.mxu1 %v13698_v51  ;;  %v15048_v50 = vld [vmem:[%s20603_s5 + $0x39] ss:$0 sm:$0xff] }
 0xe33   : > { %4276 = vmatpush.msrb.mxu3 %v13689_v52 }
 0xe34   : > { %4296 = vmatpush.msrb.mxu0 %v13693_v53  ;;  %4316 = vmatpush.msra.mxu1 %v13697_v54  ;;  %v15049_v54 = vld [vmem:[%s20603_s5 + $0x3e] ss:$0 sm:$0xff] }
 0xe35   : > { %4277 = vmatpush.msrb.mxu3 %v13688_v55  ;;  %v15034_v55 = vld [vmem:[%s20603_s5 + $0x31] ss:$0 sm:$0xff] }
 0xe36   : > { %4297 = vmatpush.msrb.mxu0 %v13692_v56  ;;  %4317 = vmatpush.msra.mxu1 %v13696_v58  ;;  %v15050_v58 = vld [vmem:[%s20603_s5 + $0x3f] ss:$0 sm:$0xff] }
 0xe37   : > { %4354 = vmatpush.msra.mxu3 %v13707_v57 }
 0xe38   : > { %4374 = vmatpush.msra.mxu0 %v13711_v59  ;;  %4394 = vmatpush.msrb.mxu1 %v13715_v61  ;;  %v15044_v61 = vld [vmem:[%s20603_s5 + $0x36] ss:$0 sm:$0xff] }
 0xe39   : > { %4355 = vmatpush.msra.mxu3 %v13706_v62  ;;  %13770 = vmatmul.msk.f32.vlgmr.msrb.gmra.mxu0 %vm643_vm0, %v16976_v19 }
 0xe3a   : > { %13769 = vmatmul.msk.f32.vlgmr.msrb.gmra.mxu3 %vm643_vm0, %v16976_v19  ;;  %13771 = vmatmul.msk.f32.vlgmr.msra.gmra.mxu1 %vm643_vm0, %v16976_v19 }
 0xe3b   : > { %4375 = vmatpush.msra.mxu0 %v13710_v63  ;;  %4395 = vmatpush.msrb.mxu1 %v13714_v0  ;;  %v15042_v63 = vld [vmem:[%s20603_s5 + $0x37] ss:$0 sm:$0xff] }
 0xe3c   : > { %4356 = vmatpush.msra.mxu3 %v13705_v1 }
 0xe3d   : > { %4376 = vmatpush.msra.mxu0 %v13709_v2  ;;  %4396 = vmatpush.msrb.mxu1 %v13713_v3 }
 0xe3e   : > { %4357 = vmatpush.msra.mxu3 %v13704_v4  ;;  %v15051_v4 = vld [vmem:[%s20603_s5 + $0x3d] ss:$0 sm:$0xff] }
 0xe3f   : > { %4377 = vmatpush.msra.mxu0 %v13708_v5  ;;  %4397 = vmatpush.msrb.mxu1 %v13712_v9  ;;  %v15052_v9 = vld [vmem:[%s20603_s5 + $0x42] ss:$0 sm:$0xff] }
 0xe40   : > { %4434 = vmatpush.msrb.mxu3 %v13723_v6 }
 0xe41   : > { %4454 = vmatpush.msrb.mxu0 %v13727_v10  ;;  %4474 = vmatpush.msra.mxu1 %v13731_v11  ;;  %v15039_v10 = vld [vmem:[%s20603_s5 + $0x35] ss:$0 sm:$0xff] }
 0xe42   : > { %4435 = vmatpush.msrb.mxu3 %v13722_v12  ;;  %13774 = vmatmul.msk.f32.vlgmr.msra.gmra.mxu0 %vm643_vm0, %v16976_v19  ;;  %v15053_v12 = vld [vmem:[%s20603_s5 + $0x43] ss:$0 sm:$0xff] }
 0xe43   : > { %13773 = vmatmul.msk.f32.vlgmr.msra.gmra.mxu3 %vm643_vm0, %v16976_v19  ;;  %13775 = vmatmul.msk.f32.vlgmr.msrb.gmra.mxu1 %vm643_vm0, %v16976_v19 }
 0xe44   : > { %4455 = vmatpush.msrb.mxu0 %v13726_v13  ;;  %4475 = vmatpush.msra.mxu1 %v13730_v14 }
 0xe45   : > { %4436 = vmatpush.msrb.mxu3 %v13721_v15 }
 0xe46   : > { %4456 = vmatpush.msrb.mxu0 %v13725_v16  ;;  %4476 = vmatpush.msra.mxu1 %v13729_v17 }
 0xe47   : > { %4437 = vmatpush.msrb.mxu3 %v13720_v18 }
 0xe48   : > { %4457 = vmatpush.msrb.mxu0 %v13724_v20  ;;  %4477 = vmatpush.msra.mxu1 %v13728_v21  ;;  %v15054_v20 = vld [vmem:[%s20603_s5 + $0x41] ss:$0 sm:$0xff]  ;;  %v15055_v21 = vld [vmem:[%s20603_s5 + $0x46] ss:$0 sm:$0xff] }
 0xe4a   : > { %13778 = vmatmul.msk.f32.vlgmr.msrb.gmra.mxu0 %vm643_vm0, %v16976_v19 }
 0xe4b   : > { %13777 = vmatmul.msk.f32.vlgmr.msrb.gmra.mxu3 %vm643_vm0, %v16976_v19  ;;  %13779 = vmatmul.msk.f32.vlgmr.msra.gmra.mxu1 %vm643_vm0, %v16976_v19 }
 0xe95   : > { %v4039_v22 = vpop.f32.mrf.mxu0 }
 0xe96   : > { %v4059_v23 = vpop.f32.mrf.mxu1  ;;  %v4040_v2 = vadd.f32 %v15034_v55, %v4039_v22 }
 0xe97   : > { %v4060_v51 = vadd.f32 %v15035_v7, %v4059_v23  ;;  %v15056_v23 = vld [vmem:[%s20603_s5 + $0x47] ss:$0 sm:$0xff] }
 0xe9b   : > { %v4019_v24 = vpop.f32.mrf.mxu3 }
 0xe9c   : > { %v4259_v25 = vpop.f32.mrf.mxu2  ;;  %v4020_v37 = vadd.f32 %v15036_v60, %v4019_v24 }
 0xe9d   : > { %v4099_v26 = vpop.f32.mrf.mxu0  ;;  %v4260_v36 = vadd.f32 %v15037_v30, %v4259_v25 }
 0xe9e   : > { %v17218_v27 = vpop.f32.mrf.mxu1  ;;  %v4100_v52 = vadd.f32 %v15038_v43, %v4099_v26 }
 0xe9f   : > { %v4120_v17 = vadd.f32 %v15039_v10, %v17218_v27 }
 0xea3   : > { %v4079_v28 = vpop.f32.mrf.mxu3 }
 0xea4   : > { %v4339_v32 = vpop.f32.mrf.mxu2  ;;  %v4080_v53 = vadd.f32 %v15040_v44, %v4079_v28 }
 0xea5   : > { %v4159_v31 = vpop.f32.mrf.mxu0  ;;  %v4340_v39 = vadd.f32 %v15041_v34, %v4339_v32 }
 0xea6   : > { %v4179_v33 = vpop.f32.mrf.mxu1  ;;  %v4160_v6 = vadd.f32 %v15042_v63, %v4159_v31 }
 0xea7   : > { %v4180_v35 = vadd.f32 %v15043_v29, %v4179_v33  ;;  %v15057_v29 = vld [vmem:[%s20603_s5 + $0x45] ss:$0 sm:$0xff] }
 0xea9   : > { %13780 = vmatpush.xpose.msk.msrb.mxu2 %vm1356_vm5, %v4180_v35 }
 0xeab   : > { %v4139_v40 = vpop.f32.mrf.mxu3 }
 0xeac   : > { %13781 = vmatmul.msk.f32.vlgmr.msrb.gmra.mxu2 %vm1356_vm5, %v4020_v37  ;;  %v4419_v49 = vpop.f32.mrf.mxu2  ;;  %v4140_v5 = vadd.f32 %v15044_v61, %v4139_v40 }
 0xead   : > { %13788 = vmatpush.xpose.msk.msra.mxu2 %vm1356_vm5, %v4260_v36  ;;  %v4219_v42 = vpop.f32.mrf.mxu0  ;;  %v4420_v56 = vadd.f32 %v15045_v47, %v4419_v49 }
 0xeae   : > { %v4220_v45 = vadd.f32 %v15046_v38, %v4219_v42  ;;  %v4239_v46 = vpop.f32.mrf.mxu1 }
 0xeaf   : > { %v4240_v48 = vadd.f32 %v15047_v41, %v4239_v46 }
 0xeb0   : > { %13784 = vmatpush.xpose.msk.msra.mxu0 %vm1356_vm5, %v4220_v45 }
 0xeb1   : > { %4804 = vmatpush.msrb.mxu2 %v4340_v39  ;;  %13786 = vmatpush.xpose.msk.msrb.mxu1 %vm1356_vm5, %v4240_v48 }
 0xeb3   : > { %13785 = vmatmul.msk.f32.vlgmr.msra.gmra.mxu0 %vm1356_vm5, %v4060_v51 }
 0xeb4   : > { %v4199_v57 = vpop.f32.mrf.mxu3  ;;  %13787 = vmatmul.msk.f32.vlgmr.msrb.gmra.mxu1 %vm1356_vm5, %v4080_v53  ;;  %13789 = vmatmul.msk.f32.vlgmr.msra.gmra.mxu2 %vm1356_vm5, %v4100_v52 }
 0xeb5   : > { %v4200_v59 = vadd.f32 %v15048_v50, %v4199_v57  ;;  %4896 = vmatpush.msra.mxu2 %v4420_v56 }
 0xeb6   : > { %v4299_v62 = vpop.f32.mrf.mxu0 }
 0xeb7   : > { %v4300_v0 = vadd.f32 %v15049_v54, %v4299_v62  ;;  %v4319_v1 = vpop.f32.mrf.mxu1  ;;  %13782 = vmatpush.xpose.msk.msra.mxu3 %vm1356_vm5, %v4200_v59 }
 0xeb8   : > { %v4320_v3 = vadd.f32 %v15050_v58, %v4319_v1 }
 0xeb9   : > { %13792 = vmatpush.xpose.msk.msrb.mxu0 %vm1356_vm5, %v4300_v0 }
 0xeba   : > { %13794 = vmatpush.xpose.msk.msra.mxu1 %vm1356_vm5, %v4320_v3  ;;  %13783 = vmatmul.msk.f32.vlgmr.msra.gmra.mxu3 %vm1356_vm5, %v4040_v2 }
 0xebc   : > { %13793 = vmatmul.msk.f32.vlgmr.msrb.gmra.mxu0 %vm1356_vm5, %v4140_v5 }
 0xebd   : > { %v4279_v11 = vpop.f32.mrf.mxu3  ;;  %13795 = vmatmul.msk.f32.vlgmr.msra.gmra.mxu1 %vm1356_vm5, %v4160_v6 }
 0xebe   : > { %v4280_v13 = vadd.f32 %v15051_v4, %v4279_v11 }
 0xebf   : > { %v4379_v14 = vpop.f32.mrf.mxu0 }
 0xec0   : > { %v4380_v15 = vadd.f32 %v15052_v9, %v4379_v14  ;;  %v4399_v16 = vpop.f32.mrf.mxu1  ;;  %13790 = vmatpush.xpose.msk.msrb.mxu3 %vm1356_vm5, %v4280_v13 }
 0xec1   : > { %v4400_v18 = vadd.f32 %v15053_v12, %v4399_v16 }
 0xec2   : > { %4850 = vmatpush.msra.mxu0 %v4380_v15 }
 0xec3   : > { %4873 = vmatpush.msrb.mxu1 %v4400_v18  ;;  %13791 = vmatmul.msk.f32.vlgmr.msrb.gmra.mxu3 %vm1356_vm5, %v4120_v17 }
 0xec6   : > { %v4359_v22 = vpop.f32.mrf.mxu3 }
 0xec7   : > { %v4360_v24 = vadd.f32 %v15054_v20, %v4359_v22  ;;  %v4459_v25 = vpop.f32.mrf.mxu0 }
 0xec8   : > { %v4460_v26 = vadd.f32 %v15055_v21, %v4459_v25  ;;  %v4479_v27 = vpop.f32.mrf.mxu1 }
 0xec9   : > { %4827 = vmatpush.msra.mxu3 %v4360_v24  ;;  %v4480_v28 = vadd.f32 %v15056_v23, %v4479_v27 }
 0xeca   : > { %4942 = vmatpush.msrb.mxu0 %v4460_v26 }
 0xecb   : > { %4965 = vmatpush.msra.mxu1 %v4480_v28 }
 0xece   : > { %v4439_v30 = vpop.f32.mrf.mxu3 }
 0xecf   : > { %v4440_v31 = vadd.f32 %v15057_v29, %v4439_v30 }
 0xed1   : > { %4919 = vmatpush.msrb.mxu3 %v4440_v31 }
 0xf2f   : > { %v4505_v60 = vpop.f32.mrf.mxu2 }
 0xf30   : > { %v4690_v32 = vmul.f32 0.5, %v4505_v60  ;;  %v4557_v40 = vpop.f32.mrf.mxu0 }
 0xf31   : > { %v4583_v37 = vpop.f32.mrf.mxu1  ;;  %v4692_v43 = vmul.f32 0.5, %v4557_v40 }
 0xf32   : > { %v4698_v33 = vsel %vm1584_vm6, %v4690_v32, -inf  ;;  %v4693_v41 = vmul.f32 0.5, %v4583_v37 }
 0xf33   : > { %4699 = vmax.xlane.f32.xlu0 %v4698_v33  ;;  %v4704_v46 = vsel %vm1584_vm6, %v4692_v43, -inf }
 0xf34   : > { %v4707_v42 = vsel %vm1584_vm6, %v4693_v41, -inf }
 0xf37   : > { %v4609_v34 = vpop.f32.mrf.mxu2 }
 0xf38   : > { %v4694_v35 = vmul.f32 0.5, %v4609_v34 }
 0xf39   : > { %v4661_v48 = vpop.f32.mrf.mxu0 }
 0xf3a   : > { %v4710_v36 = vsel %vm1584_vm6, %v4694_v35, -inf  ;;  %v4687_v49 = vpop.f32.mrf.mxu1  ;;  %v4696_v50 = vmul.f32 0.5, %v4661_v48 }
 0xf3b   : > { %4711 = vmax.xlane.f32.xlu2 %v4710_v36  ;;  %v4697_v51 = vmul.f32 0.5, %v4687_v49 }
 0xf3c   : > { %v4716_v53 = vsel %vm1584_vm6, %v4696_v50, -inf }
 0xf3d   : > { %v4531_v38 = vpop.f32.mrf.mxu3  ;;  %v4719_v52 = vsel %vm1584_vm6, %v4697_v51, -inf }
 0xf3e   : > { %v4691_v39 = vmul.f32 0.5, %v4531_v38 }
 0xf40   : > { %v4701_v7 = vsel %vm1584_vm6, %v4691_v39, -inf }
 0xf41   : > { %4702 = vmax.xlane.f32.xlu1 %v4701_v7 }
 0xf43   : > { %4708 = vmax.xlane.f32.xlu2 %v4707_v42 }
 0xf46   : > { %v4635_v44 = vpop.f32.mrf.mxu3 }
 0xf47   : > { %v4695_v45 = vmul.f32 0.5, %v4635_v44 }
 0xf49   : > { %v4713_v47 = vsel %vm1584_vm6, %v4695_v45, -inf  ;;  %4705 = vmax.xlane.f32.xlu1 %v4704_v46 }
 0xf4a   : > { %4714 = vmax.xlane.f32.xlu0 %v4713_v47 }
 0xf51   : > { %4720 = vmax.xlane.f32.xlu1 %v4719_v52 }
 0xf52   : > { %4717 = vmax.xlane.f32.xlu0 %v4716_v53 }
 0xfa6   : > { %v4700_v54 = vpop.xlane.xlu0 %4699 }
 0xfa7   : > { %v4722_v55 = vsub.f32 %v4690_v32, %v4700_v54 }
 0xfa9   : > { %v4730_v56 = vmul.f32 1.442695, %v4722_v55 }
 0xfab   : > { %15301 = vpow2.f32 %v4730_v56  ;;  %v13804_v56 = vld [vmem:[%s20604_s6 + $0x40] sm:$0xf] }
 0xfae   : > { %v4712_v57 = vpop.xlane.xlu2 %4711 }
 0xfaf   : > { %v4726_v58 = vsub.f32 %v4694_v35, %v4712_v57  ;;  %v13808_v57 = vld [vmem:[%s20604_s6 + $0x50] sm:$0xf] }
 0xfb1   : > { %v15302_v59 = vpop.eup %15301  ;;  %v4738_v61 = vmul.f32 1.442695, %v4726_v58  ;;  %v13807_v58 = vld [vmem:[%s20604_s6 + $0x4c] sm:$0xf] }
 0xfb2   : > { %v4746_v62 = vsel %vm1584_vm6, %v15302_v59, 0.0 }
 0xfb3   : > { %15303 = vpow2.f32 %v4738_v61  ;;  %4747 = vadd.xlane.f32.xlu2 %v4746_v62  ;;  %v13806_v61 = vld [vmem:[%s20604_s6 + $0x48] sm:$0xf]  ;;  %v13809_v62 = vld [vmem:[%s20604_s6 + $0x54] sm:$0xf] }
 0xfb4   : > { %v4703_v63 = vpop.xlane.xlu1 %4702 }
 0xfb5   : > { %v4723_v0 = vsub.f32 %v4691_v39, %v4703_v63  ;;  %v13810_v63 = vld [vmem:[%s20604_s6 + $0x58] sm:$0xf] }
 0xfb6   : > { %v4709_v2 = vpop.xlane.xlu2 %4708 }
 0xfb7   : > { %v4732_v1 = vmul.f32 1.442695, %v4723_v0  ;;  %v4725_v3 = vsub.f32 %v4693_v41, %v4709_v2  ;;  %v13811_v0 = vld [vmem:[%s20604_s6 + $0x5c] sm:$0xf] }
 0xfb9   : > { %15305 = vpow2.f32 %v4732_v1  ;;  %v15304_v4 = vpop.eup %15303  ;;  %v4736_v5 = vmul.f32 1.442695, %v4725_v3 }
 0xfba   : > { %v4758_v6 = vsel %vm1584_vm6, %v15304_v4, 0.0 }
 0xfbb   : > { %15307 = vpow2.f32 %v4736_v5  ;;  %4759 = vadd.xlane.f32.xlu1 %v4758_v6 }
 0xfbc   : > { %v4706_v9 = vpop.xlane.xlu1 %4705 }
 0xfbd   : > { %v4715_v10 = vpop.xlane.xlu0 %4714  ;;  %v4724_v11 = vsub.f32 %v4692_v43, %v4706_v9 }
 0xfbe   : > { %v4727_v12 = vsub.f32 %v4695_v45, %v4715_v10 }
 0xfbf   : > { %v15306_v13 = vpop.eup %15305  ;;  %v4734_v14 = vmul.f32 1.442695, %v4724_v11 }
 0xfc0   : > { %v4740_v15 = vmul.f32 1.442695, %v4727_v12  ;;  %v4749_v16 = vsel %vm1584_vm6, %v15306_v13, 0.0 }
 0xfc1   : > { %15309 = vpow2.f32 %v4734_v14  ;;  %4750 = vadd.xlane.f32.xlu0 %v4749_v16  ;;  %v15308_v17 = vpop.eup %15307 }
 0xfc2   : > { %15311 = vpow2.f32 %v4740_v15  ;;  %v4755_v18 = vsel %vm1584_vm6, %v15308_v17, 0.0 }
 0xfc3   : > { %4756 = vadd.xlane.f32.xlu1 %v4755_v18 }
 0xfc4   : > { %v4721_v20 = vpop.xlane.xlu1 %4720 }
 0xfc5   : > { %v4718_v21 = vpop.xlane.xlu0 %4717  ;;  %v4729_v22 = vsub.f32 %v4697_v51, %v4721_v20 }
 0xfc6   : > { %v4728_v23 = vsub.f32 %v4696_v50, %v4718_v21 }
 0xfc7   : > { %v15310_v24 = vpop.eup %15309  ;;  %v4744_v25 = vmul.f32 1.442695, %v4729_v22 }
 0xfc8   : > { %v4742_v26 = vmul.f32 1.442695, %v4728_v23  ;;  %v15312_v27 = vpop.eup %15311  ;;  %v4752_v28 = vsel %vm1584_vm6, %v15310_v24, 0.0 }
 0xfc9   : > { %15313 = vpow2.f32 %v4744_v25  ;;  %4753 = vadd.xlane.f32.xlu0 %v4752_v28  ;;  %v4761_v29 = vsel %vm1584_vm6, %v15312_v27, 0.0 }
 0xfca   : > { %15315 = vpow2.f32 %v4742_v26  ;;  %4762 = vadd.xlane.f32.xlu2 %v4761_v29 }
 0xfcf   : > { %v15314_v30 = vpop.eup %15313 }
 0xfd0   : > { %v15316_v31 = vpop.eup %15315  ;;  %v4767_v60 = vsel %vm1584_vm6, %v15314_v30, 0.0 }
 0xfd1   : > { %4768 = vadd.xlane.f32.xlu0 %v4767_v60  ;;  %v4764_v32 = vsel %vm1584_vm6, %v15316_v31, 0.0 }
 0xfd2   : > { %4765 = vadd.xlane.f32.xlu2 %v4764_v32  ;;  %v15058_v32 = vld [vmem:[%s20605_s7 + $0x2] ss:$0 sm:$0xff] }
0x1026   : > { %v4748_v33 = vpop.xlane.xlu2 %4747 }
0x1027   : > { %15317 = vrcp.f32 %v4748_v33 }
0x102d   : > { %v15318_v34 = vpop.eup %15317 }
0x102e   : > { %v4778_v35 = vmul.f32 %v15318_v34, %v15302_v59  ;;  %v4760_v36 = vpop.xlane.xlu1 %4759  ;;  %v13805_v59 = vld [vmem:[%s20604_s6 + $0x44] sm:$0xf] }
0x102f   : > { %15319 = vrcp.f32 %v4760_v36 }
0x1030   : > { %13796 = vmatmul.msk.f32.vlgmr.msrb.gmra.mxu2 %vm1584_vm6, %v4778_v35 }
0x1031   : > { %13812 = vmatpush.msk.msrb.mxu2 %vm1868_vm7, %v13804_v56 }
0x1034   : > { %v4751_v37 = vpop.xlane.xlu0 %4750 }
0x1035   : > { %15321 = vrcp.f32 %v4751_v37  ;;  %v15320_v38 = vpop.eup %15319 }
0x1036   : > { %v4782_v39 = vmul.f32 %v15320_v38, %v15304_v4  ;;  %v4757_v40 = vpop.xlane.xlu1 %4756 }
0x1037   : > { %15323 = vrcp.f32 %v4757_v40 }
0x1038   : > { %13800 = vmatmul.msk.f32.vlgmr.msra.gmra.mxu2 %vm1584_vm6, %v4782_v39 }
0x1039   : > { %13820 = vmatpush.msk.msra.mxu2 %vm1868_vm7, %v13808_v57 }
0x103b   : > { %v15322_v41 = vpop.eup %15321 }
0x103c   : > { %v4779_v7 = vmul.f32 %v15322_v41, %v15306_v13  ;;  %v4754_v42 = vpop.xlane.xlu0 %4753 }
0x103d   : > { %15325 = vrcp.f32 %v4754_v42  ;;  %v4763_v43 = vpop.xlane.xlu2 %4762  ;;  %v15324_v44 = vpop.eup %15323  ;;  %v13834_v42 = vld [vmem:[%s20608_s10 + $0x58] sm:$0xff] }
0x103e   : > { %15327 = vrcp.f32 %v4763_v43  ;;  %13797 = vmatmul.msk.f32.vlgmr.msra.gmra.mxu3 %vm1584_vm6, %v4779_v7  ;;  %v4781_v45 = vmul.f32 %v15324_v44, %v15308_v17  ;;  %v13832_v43 = vld [vmem:[%s20608_s10 + $0x48] sm:$0xff]  ;;  %v13831_v44 = vld [vmem:[%s20608_s10 + $0x40] sm:$0xff] }
0x103f   : > { %13814 = vmatpush.msk.msra.mxu3 %vm1868_vm7, %v13805_v59 }
0x1040   : > { %13799 = vmatmul.msk.f32.vlgmr.msrb.gmra.mxu1 %vm1584_vm6, %v4781_v45  ;;  %v13852_v45 = vld [vmem:[%s20610_s12 + $0x178] sm:$0xff] }
0x1041   : > { %13818 = vmatpush.msk.msrb.mxu1 %vm1868_vm7, %v13807_v58  ;;  %v15059_v58 = vld [vmem:[%s20606_s8 + $0x2] ss:$0 sm:$0xff] }
0x1043   : > { %v15326_v46 = vpop.eup %15325 }
0x1044   : > { %v15328_v47 = vpop.eup %15327  ;;  %v4780_v48 = vmul.f32 %v15326_v46, %v15310_v24  ;;  %v4769_v49 = vpop.xlane.xlu0 %4768  ;;  %v13851_v46 = vld [vmem:[%s20610_s12 + $0x170] sm:$0xff] }
0x1045   : > { %v4783_v50 = vmul.f32 %v15328_v47, %v15312_v27  ;;  %15329 = vrcp.f32 %v4769_v49  ;;  %v4766_v51 = vpop.xlane.xlu2 %4765  ;;  %v13850_v47 = vld [vmem:[%s20610_s12 + $0x168] sm:$0xff] }
0x1046   : > { %15331 = vrcp.f32 %v4766_v51  ;;  %13798 = vmatmul.msk.f32.vlgmr.msra.gmra.mxu0 %vm1584_vm6, %v4780_v48 }
0x1047   : > { %13801 = vmatmul.msk.f32.vlgmr.msrb.gmra.mxu3 %vm1584_vm6, %v4783_v50  ;;  %13816 = vmatpush.msk.msra.mxu0 %vm1868_vm7, %v13806_v61  ;;  %v13849_v50 = vld [vmem:[%s20610_s12 + $0x160] sm:$0xff] }
0x1048   : > { %13822 = vmatpush.msk.msrb.mxu3 %vm1868_vm7, %v13809_v62  ;;  %v15060_v61 = vld [vmem:[%s20607_s9 + $0x2] ss:$0 sm:$0xff] }
0x104b   : > { %v15330_v52 = vpop.eup %15329 }
0x104c   : > { %v15332_v53 = vpop.eup %15331  ;;  %v4785_v54 = vmul.f32 %v15330_v52, %v15314_v30 }
0x104d   : > { %v4784_v55 = vmul.f32 %v15332_v53, %v15316_v31 }
0x104e   : > { %13803 = vmatmul.msk.f32.vlgmr.msra.gmra.mxu1 %vm1584_vm6, %v4785_v54 }
0x104f   : > { %13802 = vmatmul.msk.f32.vlgmr.msrb.gmra.mxu0 %vm1584_vm6, %v4784_v55  ;;  %13826 = vmatpush.msk.msra.mxu1 %vm1868_vm7, %v13811_v0 }
0x1050   : > { %13824 = vmatpush.msk.msrb.mxu0 %vm1868_vm7, %v13810_v63 }
0x10b3   : > { %v4806_v1 = vpop.f32.mrf.mxu2 }
0x10b4   : > { %13813 = vmatmul.msk.f32.vlgmr.msrb.gmra.mxu2 %vm1356_vm5, %v4806_v1  ;;  %v13848_v1 = vld [vmem:[%s20610_s12 + $0x158] sm:$0xff] }
0x10b5   : > { %5268 = vmatpush.msrb.mxu2 %v13834_v42  ;;  %v13866_v42 = vld [vmem:[%s20627_s0 + $0x950] sm:$0xff] }
0x10bb   : > { %v4898_v2 = vpop.f32.mrf.mxu2 }
0x10bc   : > { %13821 = vmatmul.msk.f32.vlgmr.msra.gmra.mxu2 %vm1356_vm5, %v4898_v2  ;;  %v13847_v2 = vld [vmem:[%s20610_s12 + $0x150] sm:$0xff] }
0x10bd   : > { %v4875_v3 = vpop.f32.mrf.mxu1 }
0x10be   : > { %13819 = vmatmul.msk.f32.vlgmr.msrb.gmra.mxu1 %vm1356_vm5, %v4875_v3  ;;  %v13846_v3 = vld [vmem:[%s20610_s12 + $0x148] sm:$0xff] }
0x10c1   : > { %v4829_v4 = vpop.f32.mrf.mxu3 }
0x10c2   : > { %13815 = vmatmul.msk.f32.vlgmr.msra.gmra.mxu3 %vm1356_vm5, %v4829_v4  ;;  %v13845_v4 = vld [vmem:[%s20610_s12 + $0x140] sm:$0xff] }
0x10c3   : > { %v4852_v5 = vpop.f32.mrf.mxu0  ;;  %5307 = vmatpush.msra.mxu3 %v13852_v45  ;;  %v13865_v45 = vld [vmem:[%s20627_s0 + $0x948] sm:$0xff] }
0x10c4   : > { %13817 = vmatmul.msk.f32.vlgmr.msra.gmra.mxu0 %vm1356_vm5, %v4852_v5  ;;  %v13844_v5 = vld [vmem:[%s20610_s12 + $0x138] sm:$0xff] }
0x10c5   : > { %5308 = vmatpush.msra.mxu3 %v13851_v46  ;;  %v13905_v46 = vld [vmem:[%s20627_s0 + $0xa88] sm:$0xff] }
0x10c7   : > { %5309 = vmatpush.msra.mxu3 %v13850_v47  ;;  %v13856_v47 = vld [vmem:[%s20627_s0 + $0x900] sm:$0xff] }
0x10c9   : > { %5310 = vmatpush.msra.mxu3 %v13849_v50  ;;  %v13904_v50 = vld [vmem:[%s20627_s0 + $0xa80] sm:$0xff] }
0x10ca   : > { %v4921_v6 = vpop.f32.mrf.mxu3 }
0x10cb   : > { %13823 = vmatmul.msk.f32.vlgmr.msrb.gmra.mxu3 %vm1356_vm5, %v4921_v6  ;;  %v4967_v9 = vpop.f32.mrf.mxu1  ;;  %v13843_v6 = vld [vmem:[%s20610_s12 + $0x130] sm:$0xff] }
0x10cc   : > { %v4944_v10 = vpop.f32.mrf.mxu0  ;;  %13827 = vmatmul.msk.f32.vlgmr.msra.gmra.mxu1 %vm1356_vm5, %v4967_v9  ;;  %5311 = vmatpush.msra.mxu3 %v13848_v1  ;;  %v13842_v9 = vld [vmem:[%s20610_s12 + $0x128] sm:$0xff] }
0x10cd   : > { %13825 = vmatmul.msk.f32.vlgmr.msrb.gmra.mxu0 %vm1356_vm5, %v4944_v10  ;;  %v13841_v10 = vld [vmem:[%s20610_s12 + $0x120] sm:$0xff]  ;;  %v13921_v1 = vld [vmem:[%s20627_s0 + $0xb08] sm:$0xff] }
0x10ce   : > { %5312 = vmatpush.msra.mxu3 %v13847_v2  ;;  %v13868_v2 = vld [vmem:[%s20627_s0 + $0x960] sm:$0xff] }
0x10d0   : > { %5313 = vmatpush.msra.mxu3 %v13846_v3  ;;  %v13872_v3 = vld [vmem:[%s20627_s0 + $0x980] sm:$0xff] }
0x10d2   : > { %5314 = vmatpush.msra.mxu3 %v13845_v4 }
0x10d4   : > { %5315 = vmatpush.msra.mxu3 %v13844_v5  ;;  %v13876_v5 = vld [vmem:[%s20627_s0 + $0x9a0] sm:$0xff] }
0x10d6   : > { %5316 = vmatpush.msra.mxu3 %v13843_v6  ;;  %v13920_v6 = vld [vmem:[%s20627_s0 + $0xb00] sm:$0xff] }
0x10d8   : > { %5317 = vmatpush.msra.mxu3 %v13842_v9 }
0x10da   : > { %5318 = vmatpush.msra.mxu3 %v13841_v10 }
0x1137   : > { %v5002_v11 = vpop.f32.mrf.mxu2 }
0x1138   : > { %v5187_v14 = vsel %vm643_vm0, %v5002_v11, 0.0  ;;  %v13840_v11 = vld [vmem:[%s20610_s12 + $0x118] sm:$0xff] }
0x1139   : > { %5319 = vmatpush.msra.mxu3 %v13840_v11 }
0x113b   : > { %v5080_v16 = vpop.f32.mrf.mxu1 }
0x113c   : > { %v5192_v22 = vsel %vm643_vm0, %v5080_v16, 0.0 }
0x113f   : > { %v5106_v20 = vpop.f32.mrf.mxu2 }
0x1140   : > { %v5194_v24 = vsel %vm643_vm0, %v5106_v20, 0.0 }
0x1141   : > { %v5054_v12 = vpop.f32.mrf.mxu0 }
0x1142   : > { %v5190_v18 = vsel %vm643_vm0, %v5054_v12, 0.0  ;;  %v13839_v12 = vld [vmem:[%s20610_s12 + $0x110] sm:$0xff] }
0x1143   : > { %5320 = vmatpush.msra.mxu3 %v13839_v12 }
0x1145   : > { %v5028_v13 = vpop.f32.mrf.mxu3 }
0x1146   : > { %v5188_v15 = vsel %vm643_vm0, %v5028_v13, 0.0  ;;  %v13838_v13 = vld [vmem:[%s20610_s12 + $0x108] sm:$0xff] }
0x1147   : > { %v5189_v17 = vadd.f32 %v5188_v15, %v5187_v14  ;;  %v13837_v14 = vld [vmem:[%s20610_s12 + $0x100] sm:$0xff]  ;;  %5321 = vmatpush.msra.mxu3 %v13838_v13 }
0x1148   : > { %v15061_v15 = vld [vmem:[%s20609_s11 + $0x2] ss:$0 sm:$0xff] }
0x1149   : > { %v5191_v21 = vadd.f32 %v5190_v18, %v5189_v17  ;;  %v5184_v29 = vpop.f32.mrf.mxu1  ;;  %5322 = vmatpush.msra.mxu3 %v13837_v14 }
0x114a   : > { %v5158_v26 = vpop.f32.mrf.mxu0  ;;  %v5200_v33 = vsel %vm643_vm0, %v5184_v29, 0.0 }
0x114b   : > { %v5193_v23 = vadd.f32 %v5192_v22, %v5191_v21  ;;  %v5198_v31 = vsel %vm643_vm0, %v5158_v26, 0.0 }
0x114d   : > { %v5195_v25 = vadd.f32 %v5194_v24, %v5193_v23 }
0x114e   : > { %v5132_v27 = vpop.f32.mrf.mxu3 }
0x114f   : > { %v5196_v28 = vsel %vm643_vm0, %v5132_v27, 0.0 }
0x1150   : > { %v5197_v30 = vadd.f32 %v5196_v28, %v5195_v25  ;;  %v15062_v28 = vld [vmem:[%s20611_s13 + $0x2] ss:$0 sm:$0xff] }
0x1152   : > { %v5199_v60 = vadd.f32 %v5198_v31, %v5197_v30 }
0x1154   : > { %v5201_v34 = vadd.f32 %v5200_v33, %v5199_v60 }
0x1156   : > { %v5207_v35 = vadd.f32 %v15058_v32, %v5201_v34 }
0x1158   : > { %v5208_v36 = vadd.f32 %v5207_v35, %v16976_v19  ;;  %v13833_v19 = vld [vmem:[%s20608_s10 + $0x50] sm:$0xff] }
0x1159   : > { %5269 = vmatpush.msrb.mxu2 %v13833_v19  ;;  %v13906_v19 = vld [vmem:[%s20627_s0 + $0xa90] sm:$0xff] }
0x115a   : > { %v5213_v37 = vsel %vm643_vm0, %v5208_v36, 0.0 }
0x115b   : > { %5214 = vadd.xlane.f32.xlu1 %v5213_v37  ;;  %5270 = vmatpush.msrb.mxu2 %v13832_v43  ;;  %v13859_v37 = vld [vmem:[%s20627_s0 + $0x918] sm:$0xff]  ;;  %v13857_v43 = vld [vmem:[%s20627_s0 + $0x908] sm:$0xff] }
0x115c   : > { %5571 = vmatpush.msra.mxu0 %v13859_v37  ;;  %v13895_v37 = vld [vmem:[%s20627_s0 + $0xa38] sm:$0xff] }
0x115d   : > { %5271 = vmatpush.msrb.mxu2 %v13831_v44  ;;  %v13861_v44 = vld [vmem:[%s20627_s0 + $0x928] sm:$0xff] }
0x11ce   : > { %v5215_v38 = vpop.xlane.xlu1 %5214 }
0x11cf   : > { %v5216_v39 = vmul.f32 %v5215_v38, %v15667_v8  ;;  %v13863_v38 = vld [vmem:[%s20627_s0 + $0x938] sm:$0xff] }
0x11d0   : > { %5591 = vmatpush.msrb.mxu1 %v13863_v38  ;;  %v13899_v38 = vld [vmem:[%s20627_s0 + $0xa58] sm:$0xff] }
0x11d1   : > { %v5217_v40 = vsub.f32 %v5208_v36, %v5216_v39  ;;  %v13867_v39 = vld [vmem:[%s20627_s0 + $0x958] sm:$0xff] }
0x11d2   : > { %5611 = vmatpush.msra.mxu2 %v13867_v39  ;;  %v13903_v39 = vld [vmem:[%s20627_s0 + $0xa78] sm:$0xff] }
0x11d3   : > { %v5218_v41 = vmul.f32 %v5217_v40, %v5217_v40 }
0x11d4   : > { %5612 = vmatpush.msra.mxu2 %v13866_v42  ;;  %v13893_v42 = vld [vmem:[%s20627_s0 + $0xa28] sm:$0xff] }
0x11d5   : > { %v5219_v7 = vsel %vm643_vm0, %v5218_v41, 0.0  ;;  %v13858_v41 = vld [vmem:[%s20627_s0 + $0x910] sm:$0xff] }
0x11d6   : > { %5220 = vadd.xlane.f32.xlu2 %v5219_v7  ;;  %v13862_v7 = vld [vmem:[%s20627_s0 + $0x930] sm:$0xff]  ;;  %5572 = vmatpush.msra.mxu0 %v13858_v41 }
0x11d7   : > { %5592 = vmatpush.msrb.mxu1 %v13862_v7  ;;  %5613 = vmatpush.msra.mxu2 %v13865_v45  ;;  %v13898_v41 = vld [vmem:[%s20627_s0 + $0xa50] sm:$0xff]  ;;  %v13896_v45 = vld [vmem:[%s20627_s0 + $0xa40] sm:$0xff] }
0x11d8   : > { %5573 = vmatpush.msra.mxu0 %v13857_v43  ;;  %v13902_v7 = vld [vmem:[%s20627_s0 + $0xa70] sm:$0xff]  ;;  %v13901_v43 = vld [vmem:[%s20627_s0 + $0xa68] sm:$0xff] }
0x11d9   : > { %5593 = vmatpush.msrb.mxu1 %v13861_v44  ;;  %v13892_v44 = vld [vmem:[%s20627_s0 + $0xa20] sm:$0xff] }
0x11da   : > { %5574 = vmatpush.msra.mxu0 %v13856_v47  ;;  %v13911_v47 = vld [vmem:[%s20627_s0 + $0xab8] sm:$0xff] }
0x1249   : > { %v5221_v48 = vpop.xlane.xlu2 %5220 }
0x124a   : > { %v5222_v49 = vmul.f32 %v5221_v48, %v15667_v8  ;;  %v13860_v48 = vld [vmem:[%s20627_s0 + $0x920] sm:$0xff] }
0x124b   : > { %5594 = vmatpush.msrb.mxu1 %v13860_v48  ;;  %v13915_v48 = vld [vmem:[%s20627_s0 + $0xad8] sm:$0xff] }
0x124c   : > { %v5223_v51 = vadd.f32 1e-05, %v5222_v49  ;;  %v13864_v49 = vld [vmem:[%s20627_s0 + $0x940] sm:$0xff] }
0x124d   : > { %5614 = vmatpush.msra.mxu2 %v13864_v49  ;;  %v13919_v49 = vld [vmem:[%s20627_s0 + $0xaf8] sm:$0xff] }
0x124e   : > { %15333 = vrsqrt.f32 %v5223_v51  ;;  %vm5230_vm9 = vweird.f32 %v5223_v51 }
0x1254   : > { %v15334_v52 = vpop.eup %15333 }
0x1255   : > { %v5225_v53 = vmul.f32 %v15334_v52, %v5223_v51  ;;  %vm5231_vm8 = vweird.f32 %v15334_v52  ;;  %v13871_v51 = vld [vmem:[%s20627_s0 + $0x978] sm:$0xff] }
0x1256   : > { %vm5232_vm10 = vmor %vm5230_vm9, %vm5231_vm8  ;;  %5631 = vmatpush.msrb.mxu0 %v13871_v51  ;;  %v13914_v51 = vld [vmem:[%s20627_s0 + $0xad0] sm:$0xff] }
0x1257   : > { %v5226_v54 = vmul.f32 %v15334_v52, %v5225_v53  ;;  %v13879_v53 = vld [vmem:[%s20627_s0 + $0x9b8] sm:$0xff] }
0x1259   : > { %v5227_v55 = vmul.f32 0.5, %v5226_v54  ;;  %v13923_v54 = vld [vmem:[%s20627_s0 + $0xb18] sm:$0xff] }
0x125b   : > { %v5228_v56 = vsub.f32 1.5, %v5227_v55  ;;  %v13870_v55 = vld [vmem:[%s20627_s0 + $0x970] sm:$0xff] }
0x125c   : > { %5632 = vmatpush.msrb.mxu0 %v13870_v55  ;;  %v13917_v55 = vld [vmem:[%s20627_s0 + $0xae8] sm:$0xff] }
0x125d   : > { %v5229_v57 = vmul.f32 %v15334_v52, %v5228_v56  ;;  %v13874_v56 = vld [vmem:[%s20627_s0 + $0x990] sm:$0xff] }
0x125f   : > { %v5233_v59 = vsel %vm5232_vm10, %v15334_v52, %v5229_v57  ;;  %v13875_v52 = vld [vmem:[%s20627_s0 + $0x998] sm:$0xff] }
0x1260   : > { %v5234_v62 = vmul.f32 %v5233_v59, %v5217_v40  ;;  %v13907_v40 = vld [vmem:[%s20627_s0 + $0xa98] sm:$0xff]  ;;  %5651 = vmatpush.msra.mxu1 %v13875_v52  ;;  %v13922_v59 = vld [vmem:[%s20627_s0 + $0xb10] sm:$0xff] }
0x1261   : > { %5811 = vmatpush.msrb.mxu3 %v13907_v40  ;;  %v13894_v40 = vld [vmem:[%s20627_s0 + $0xa30] sm:$0xff] }
0x1262   : > { %v5238_v63 = vmul.f32 %v15059_v58, %v5234_v62  ;;  %v13878_v58 = vld [vmem:[%s20627_s0 + $0x9b0] sm:$0xff]  ;;  %5652 = vmatpush.msra.mxu1 %v13874_v56  ;;  %v13908_v56 = vld [vmem:[%s20627_s0 + $0xaa0] sm:$0xff] }
0x1263   : > { %5812 = vmatpush.msrb.mxu3 %v13906_v19  ;;  %v13897_v19 = vld [vmem:[%s20627_s0 + $0xa48] sm:$0xff]  ;;  %v13918_v52 = vld [vmem:[%s20627_s0 + $0xaf0] sm:$0xff] }
0x1264   : > { %v5242_v0 = vadd.f32 %v15060_v61, %v5238_v63  ;;  %v13869_v61 = vld [vmem:[%s20627_s0 + $0x968] sm:$0xff] }
0x1265   : > { %5813 = vmatpush.msrb.mxu3 %v13905_v46  ;;  %v13873_v63 = vld [vmem:[%s20627_s0 + $0x988] sm:$0xff]  ;;  %5633 = vmatpush.msrb.mxu0 %v13869_v61  ;;  %v13900_v46 = vld [vmem:[%s20627_s0 + $0xa60] sm:$0xff]  ;;  %v13931_v61 = vld [vmem:[%s20627_s0 + $0xb58] sm:$0xff] }
0x1266   : > { %13836 = vmatmul.msk.f32.vlgmr.msrb.gmra.mxu2 %vm643_vm0, %v5242_v0  ;;  %5653 = vmatpush.msra.mxu1 %v13873_v63  ;;  %v13926_v63 = vld [vmem:[%s20627_s0 + $0xb30] sm:$0xff] }
0x1267   : > { %5814 = vmatpush.msrb.mxu3 %v13904_v50  ;;  %5671 = vmatpush.msrb.mxu2 %v13879_v53  ;;  %v13910_v50 = vld [vmem:[%s20627_s0 + $0xab0] sm:$0xff]  ;;  %v13909_v53 = vld [vmem:[%s20627_s0 + $0xaa8] sm:$0xff] }
0x1268   : > { %5634 = vmatpush.msrb.mxu0 %v13868_v2  ;;  %5654 = vmatpush.msra.mxu1 %v13872_v3  ;;  %v13925_v2 = vld [vmem:[%s20627_s0 + $0xb28] sm:$0xff] }
0x1269   : > { %5672 = vmatpush.msrb.mxu2 %v13878_v58  ;;  %v13927_v58 = vld [vmem:[%s20627_s0 + $0xb38] sm:$0xff]  ;;  %v13929_v3 = vld [vmem:[%s20627_s0 + $0xb48] sm:$0xff] }
0x12e9   : > { %v5273_v16 = vpop.f32.mrf.mxu2 }
0x12ea   : > { %v5274_v17 = vadd.f32 %v15061_v15, %v5273_v16  ;;  %v15063_v15 = vld [vmem:[%s20612_s14 + $0x2] ss:$0 sm:$0xff] }
0x12ec   : > { %v5277_v18 = vmul.f32 0.044715, %v5274_v17  ;;  %v5276_v25 = vmul.f32 0.5, %v5274_v17 }
0x12ee   : > { %v5278_v20 = vmul.f32 %v5277_v18, %v5274_v17 }
0x12f0   : > { %v5279_v21 = vmul.f32 %v5278_v20, %v5274_v17 }
0x12f2   : > { %v5280_v22 = vadd.f32 %v5279_v21, %v5274_v17  ;;  %v15064_v17 = vld [vmem:[%s20613_s15 + $0x2] ss:$0 sm:$0xff] }
0x12f4   : > { %v5281_v23 = vmul.f32 0.7978846, %v5280_v22  ;;  %v13883_v22 = vld [vmem:[%s20627_s0 + $0x9d8] sm:$0xff] }
0x12f6   : > { %15335 = vtanh.f32 %v5281_v23  ;;  %v13887_v23 = vld [vmem:[%s20627_s0 + $0x9f8] sm:$0xff] }
0x12fc   : > { %v15336_v24 = vpop.eup %15335 }
0x12fd   : > { %v5283_v26 = vadd.f32 1.0, %v15336_v24  ;;  %v13891_v24 = vld [vmem:[%s20627_s0 + $0xa18] sm:$0xff] }
0x12ff   : > { %v5284_v27 = vmul.f32 %v5283_v26, %v5276_v25  ;;  %v13939_v25 = vld [vmem:[%s20627_s0 + $0xb98] sm:$0xff]  ;;  %v13882_v26 = vld [vmem:[%s20627_s0 + $0x9d0] sm:$0xff] }
0x1301   : > { %5323 = vmatmul.f32.vlgmr.msra.gmra.mxu3 %v5284_v27  ;;  %v13886_v27 = vld [vmem:[%s20627_s0 + $0x9f0] sm:$0xff] }
0x1302   : > { %5891 = vmatpush.msra.mxu3 %v13923_v54  ;;  %v13913_v54 = vld [vmem:[%s20627_s0 + $0xac8] sm:$0xff] }
0x1304   : > { %5892 = vmatpush.msra.mxu3 %v13922_v59  ;;  %v13916_v59 = vld [vmem:[%s20627_s0 + $0xae0] sm:$0xff] }
0x1306   : > { %5893 = vmatpush.msra.mxu3 %v13921_v1  ;;  %v13934_v1 = vld [vmem:[%s20627_s0 + $0xb70] sm:$0xff] }
0x1308   : > { %5894 = vmatpush.msra.mxu3 %v13920_v6  ;;  %v13928_v6 = vld [vmem:[%s20627_s0 + $0xb40] sm:$0xff] }
0x1384   : > { %v5324_v29 = vpop.f32.mrf.mxu3 }
0x1385   : > { %v5325_v30 = vadd.f32 %v15062_v28, %v5324_v29  ;;  %v13890_v28 = vld [vmem:[%s20627_s0 + $0xa10] sm:$0xff] }
0x1386   : > { %v13938_v29 = vld [vmem:[%s20627_s0 + $0xb90] sm:$0xff] }
0x1387   : > { %v5327_v31 = vadd.f32 %v5325_v30, %v5242_v0  ;;  %v13877_v0 = vld [vmem:[%s20627_s0 + $0x9a8] sm:$0xff] }
0x1388   : > { %5673 = vmatpush.msrb.mxu2 %v13877_v0  ;;  %v13881_v30 = vld [vmem:[%s20627_s0 + $0x9c8] sm:$0xff]  ;;  %v13930_v0 = vld [vmem:[%s20627_s0 + $0xb50] sm:$0xff] }
0x1389   : > { %v5332_v60 = vsel %vm643_vm0, %v5327_v31, 0.0 }
0x138a   : > { %5333 = vadd.xlane.f32.xlu0 %v5332_v60  ;;  %5674 = vmatpush.msrb.mxu2 %v13876_v5  ;;  %v13889_v60 = vld [vmem:[%s20627_s0 + $0xa08] sm:$0xff]  ;;  %v13924_v5 = vld [vmem:[%s20627_s0 + $0xb20] sm:$0xff] }
0x13fd   : > { %v5334_v32 = vpop.xlane.xlu0 %5333 }
0x13fe   : > { %v5335_v33 = vmul.f32 %v5334_v32, %v15667_v8  ;;  %v13937_v32 = vld [vmem:[%s20627_s0 + $0xb88] sm:$0xff] }
0x1400   : > { %v17464_v34 = vsub.f32 %v5327_v31, %v5335_v33  ;;  %v13885_v31 = vld [vmem:[%s20627_s0 + $0x9e8] sm:$0xff]  ;;  %v13880_v33 = vld [vmem:[%s20627_s0 + $0x9c0] sm:$0xff] }
0x1402   : > { %v5337_v35 = vmul.f32 %v17464_v34, %v17464_v34 }
0x1404   : > { %v5338_v36 = vsel %vm643_vm0, %v5337_v35, 0.0  ;;  %v13888_v35 = vld [vmem:[%s20627_s0 + $0xa00] sm:$0xff] }
0x1405   : > { %5339 = vadd.xlane.f32.xlu1 %v5338_v36  ;;  %v13936_v36 = vld [vmem:[%s20627_s0 + $0xb80] sm:$0xff] }
0x1478   : > { %v5340_v57 = vpop.xlane.xlu1 %5339 }
0x1479   : > { %v5341_v62 = vmul.f32 %v5340_v57, %v15667_v8  ;;  %v13912_v57 = vld [vmem:[%s20627_s0 + $0xac0] sm:$0xff] }
0x147b   : > { %v5342_v4 = vadd.f32 1e-05, %v5341_v62  ;;  %v13935_v62 = vld [vmem:[%s20627_s0 + $0xb78] sm:$0xff] }
0x147d   : > { %15337 = vrsqrt.f32 %v5342_v4  ;;  %vm5349_vm12 = vweird.f32 %v5342_v4 }
0x1483   : > { %v15338_v9 = vpop.eup %15337 }
0x1484   : > { %v5344_v10 = vmul.f32 %v15338_v9, %v5342_v4  ;;  %vm5350_vm11 = vweird.f32 %v15338_v9  ;;  %v13933_v4 = vld [vmem:[%s20627_s0 + $0xb68] sm:$0xff] }
0x1485   : > { %vm5351_vm13 = vmor %vm5349_vm12, %vm5350_vm11 }
0x1486   : > { %v5345_v11 = vmul.f32 %v15338_v9, %v5344_v10  ;;  %v13932_v10 = vld [vmem:[%s20627_s0 + $0xb60] sm:$0xff] }
0x1488   : > { %v5346_v12 = vmul.f32 0.5, %v5345_v11  ;;  %v13947_v11 = vld [vmem:[%s20627_s0 + $0xbd8] sm:$0xff] }
0x148a   : > { %v5347_v13 = vsub.f32 1.5, %v5346_v12  ;;  %v13951_v12 = vld [vmem:[%s20627_s0 + $0xbf8] sm:$0xff] }
0x148c   : > { %v5348_v14 = vmul.f32 %v15338_v9, %v5347_v13  ;;  %v13942_v13 = vld [vmem:[%s20627_s0 + $0xbb0] sm:$0xff] }
0x148e   : > { %v5352_v16 = vsel %vm5351_vm13, %v15338_v9, %v5348_v14  ;;  %v13943_v9 = vld [vmem:[%s20627_s0 + $0xbb8] sm:$0xff]  ;;  %v13946_v14 = vld [vmem:[%s20627_s0 + $0xbd0] sm:$0xff] }
0x148f   : > { %v5353_v18 = vmul.f32 %v5352_v16, %v17464_v34  ;;  %v13884_v34 = vld [vmem:[%s20627_s0 + $0x9e0] sm:$0xff]  ;;  %v13941_v16 = vld [vmem:[%s20627_s0 + $0xba8] sm:$0xff] }
0x1491   : > { %v5357_v20 = vmul.f32 %v15063_v15, %v5353_v18  ;;  %v13950_v15 = vld [vmem:[%s20627_s0 + $0xbf0] sm:$0xff]  ;;  %v13949_v18 = vld [vmem:[%s20627_s0 + $0xbe8] sm:$0xff] }
0x1493   : > { %v17573_v21 = vadd.f32 %v15064_v17, %v5357_v20  ;;  %v13945_v17 = vld [vmem:[%s20627_s0 + $0xbc8] sm:$0xff]  ;;  %v13940_v20 = vld [vmem:[%s20627_s0 + $0xba0] sm:$0xff] }
0x1495   : > { %13976 = vmatmul.msk.f32.vlgmr.msra.gmra.mxu0 %vm643_vm0, %v17573_v21  ;;  %13977 = vmatmul.msk.f32.vlgmr.msrb.gmra.mxu1 %vm643_vm0, %v17573_v21 }
0x1496   : > { %13978 = vmatmul.msk.f32.vlgmr.msra.gmra.mxu2 %vm643_vm0, %v17573_v21  ;;  %13988 = vmatmul.msk.f32.vlgmr.msrb.gmra.mxu3 %vm643_vm0, %v17573_v21 }
0x1497   : > { %5691 = vmatpush.msra.mxu0 %v13883_v22  ;;  %5711 = vmatpush.msrb.mxu1 %v13887_v23  ;;  %v13944_v22 = vld [vmem:[%s20627_s0 + $0xbc0] sm:$0xff] }
0x1498   : > { %5731 = vmatpush.msra.mxu2 %v13891_v24  ;;  %5971 = vmatpush.msrb.mxu3 %v13939_v25  ;;  %v13948_v23 = vld [vmem:[%s20627_s0 + $0xbe0] sm:$0xff] }
0x1499   : > { %5692 = vmatpush.msra.mxu0 %v13882_v26  ;;  %5712 = vmatpush.msrb.mxu1 %v13886_v27 }
0x149a   : > { %5732 = vmatpush.msra.mxu2 %v13890_v28  ;;  %5972 = vmatpush.msrb.mxu3 %v13938_v29 }
0x149b   : > { %5693 = vmatpush.msra.mxu0 %v13881_v30  ;;  %5713 = vmatpush.msrb.mxu1 %v13885_v31 }
0x149c   : > { %5733 = vmatpush.msra.mxu2 %v13889_v60  ;;  %5973 = vmatpush.msrb.mxu3 %v13937_v32  ;;  %v15075_v32 = vld [vmem:[%s20603_s5 + $0x50] ss:$0 sm:$0xff] }
0x149d   : > { %13979 = vmatmul.msk.f32.vlgmr.msrb.gmra.mxu0 %vm643_vm0, %v17573_v21  ;;  %13980 = vmatmul.msk.f32.vlgmr.msra.gmra.mxu1 %vm643_vm0, %v17573_v21 }
0x149e   : > { %13981 = vmatmul.msk.f32.vlgmr.msrb.gmra.mxu2 %vm643_vm0, %v17573_v21  ;;  %13992 = vmatmul.msk.f32.vlgmr.msra.gmra.mxu3 %vm643_vm0, %v17573_v21 }
0x149f   : > { %5694 = vmatpush.msra.mxu0 %v13880_v33  ;;  %5714 = vmatpush.msrb.mxu1 %v13884_v34  ;;  %v15068_v33 = vld [vmem:[%s20603_s5 + $0x54] ss:$0 sm:$0xff]  ;;  %v15077_v34 = vld [vmem:[%s20603_s5 + $0x51] ss:$0 sm:$0xff] }
0x14a0   : > { %5734 = vmatpush.msra.mxu2 %v13888_v35  ;;  %5974 = vmatpush.msrb.mxu3 %v13936_v36  ;;  %v15078_v35 = vld [vmem:[%s20603_s5 + $0x52] ss:$0 sm:$0xff]  ;;  %v15065_v36 = vld [vmem:[%s20603_s5 + $0x48] ss:$0 sm:$0xff] }
0x14a1   : > { %5751 = vmatpush.msrb.mxu0 %v13895_v37  ;;  %5771 = vmatpush.msra.mxu1 %v13899_v38 }
0x14a2   : > { %5791 = vmatpush.msrb.mxu2 %v13903_v39  ;;  %v15066_v39 = vld [vmem:[%s20603_s5 + $0x49] ss:$0 sm:$0xff] }
0x14a3   : > { %5752 = vmatpush.msrb.mxu0 %v13894_v40  ;;  %5772 = vmatpush.msra.mxu1 %v13898_v41  ;;  %v15072_v40 = vld [vmem:[%s20603_s5 + $0x58] ss:$0 sm:$0xff] }
0x14a4   : > { %5792 = vmatpush.msrb.mxu2 %v13902_v7 }
0x14a5   : > { %13982 = vmatmul.msk.f32.vlgmr.msra.gmra.mxu0 %vm643_vm0, %v17573_v21  ;;  %13983 = vmatmul.msk.f32.vlgmr.msrb.gmra.mxu1 %vm643_vm0, %v17573_v21 }
0x14a6   : > { %13984 = vmatmul.msk.f32.vlgmr.msra.gmra.mxu2 %vm643_vm0, %v17573_v21  ;;  %13996 = vmatmul.msk.f32.vlgmr.msrb.gmra.mxu3 %vm643_vm0, %v17573_v21 }
0x14a7   : > { %5753 = vmatpush.msrb.mxu0 %v13893_v42  ;;  %5773 = vmatpush.msra.mxu1 %v13897_v19  ;;  %v15067_v19 = vld [vmem:[%s20603_s5 + $0x4a] ss:$0 sm:$0xff] }
0x14a8   : > { %5793 = vmatpush.msrb.mxu2 %v13901_v43 }
0x14a9   : > { %5754 = vmatpush.msrb.mxu0 %v13892_v44  ;;  %5774 = vmatpush.msra.mxu1 %v13896_v45 }
0x14aa   : > { %5794 = vmatpush.msrb.mxu2 %v13900_v46 }
0x14ab   : > { %5831 = vmatpush.msra.mxu0 %v13911_v47  ;;  %5851 = vmatpush.msrb.mxu1 %v13915_v48 }
0x14ac   : > { %5871 = vmatpush.msra.mxu2 %v13919_v49  ;;  %v15079_v49 = vld [vmem:[%s20603_s5 + $0x53] ss:$0 sm:$0xff] }
0x14ad   : > { %5832 = vmatpush.msra.mxu0 %v13910_v50  ;;  %13986 = vmatmul.msk.f32.vlgmr.msra.gmra.mxu1 %vm643_vm0, %v17573_v21 }
0x14ae   : > { %13985 = vmatmul.msk.f32.vlgmr.msrb.gmra.mxu0 %vm643_vm0, %v17573_v21  ;;  %13987 = vmatmul.msk.f32.vlgmr.msrb.gmra.mxu2 %vm643_vm0, %v17573_v21 }
0x14af   : > { %5852 = vmatpush.msrb.mxu1 %v13914_v51  ;;  %5872 = vmatpush.msra.mxu2 %v13918_v52  ;;  %v15080_v51 = vld [vmem:[%s20603_s5 + $0x55] ss:$0 sm:$0xff]  ;;  %v15081_v52 = vld [vmem:[%s20603_s5 + $0x56] ss:$0 sm:$0xff] }
0x14b0   : > { %5833 = vmatpush.msra.mxu0 %v13909_v53  ;;  %v15069_v53 = vld [vmem:[%s20603_s5 + $0x4b] ss:$0 sm:$0xff] }
0x14b1   : > { %5853 = vmatpush.msrb.mxu1 %v13913_v54  ;;  %5873 = vmatpush.msra.mxu2 %v13917_v55  ;;  %v15070_v54 = vld [vmem:[%s20603_s5 + $0x4c] ss:$0 sm:$0xff] }
0x14b2   : > { %5834 = vmatpush.msra.mxu0 %v13908_v56  ;;  %v15071_v56 = vld [vmem:[%s20603_s5 + $0x4d] ss:$0 sm:$0xff] }
0x14b3   : > { %5854 = vmatpush.msrb.mxu1 %v13912_v57  ;;  %5874 = vmatpush.msra.mxu2 %v13916_v59  ;;  %v15076_v57 = vld [vmem:[%s20603_s5 + $0x5c] ss:$0 sm:$0xff] }
0x14b4   : > { %5911 = vmatpush.msrb.mxu0 %v13927_v58 }
0x14b5   : > { %5931 = vmatpush.msra.mxu1 %v13931_v61  ;;  %5951 = vmatpush.msrb.mxu2 %v13935_v62  ;;  %v15073_v62 = vld [vmem:[%s20603_s5 + $0x4e] ss:$0 sm:$0xff] }
0x14b6   : > { %5912 = vmatpush.msrb.mxu0 %v13926_v63  ;;  %13990 = vmatmul.msk.f32.vlgmr.msrb.gmra.mxu1 %vm643_vm0, %v17573_v21 }
0x14b7   : > { %13989 = vmatmul.msk.f32.vlgmr.msra.gmra.mxu0 %vm643_vm0, %v17573_v21  ;;  %13991 = vmatmul.msk.f32.vlgmr.msra.gmra.mxu2 %vm643_vm0, %v17573_v21 }
0x14b8   : > { %5932 = vmatpush.msra.mxu1 %v13930_v0  ;;  %5952 = vmatpush.msrb.mxu2 %v13934_v1 }
0x14b9   : > { %5913 = vmatpush.msrb.mxu0 %v13925_v2 }
0x14ba   : > { %5933 = vmatpush.msra.mxu1 %v13929_v3  ;;  %5953 = vmatpush.msrb.mxu2 %v13933_v4 }
0x14bb   : > { %5914 = vmatpush.msrb.mxu0 %v13924_v5 }
0x14bc   : > { %5934 = vmatpush.msra.mxu1 %v13928_v6  ;;  %5954 = vmatpush.msrb.mxu2 %v13932_v10  ;;  %v15082_v6 = vld [vmem:[%s20603_s5 + $0x57] ss:$0 sm:$0xff]  ;;  %v15083_v10 = vld [vmem:[%s20603_s5 + $0x59] ss:$0 sm:$0xff] }
0x14bd   : > { %5991 = vmatpush.msra.mxu0 %v13943_v9 }
0x14be   : > { %6011 = vmatpush.msrb.mxu1 %v13947_v11  ;;  %6031 = vmatpush.msra.mxu2 %v13951_v12  ;;  %v15084_v11 = vld [vmem:[%s20603_s5 + $0x5a] ss:$0 sm:$0xff]  ;;  %v15074_v12 = vld [vmem:[%s20603_s5 + $0x4f] ss:$0 sm:$0xff] }
0x14bf   : > { %5992 = vmatpush.msra.mxu0 %v13942_v13  ;;  %13994 = vmatmul.msk.f32.vlgmr.msra.gmra.mxu1 %vm643_vm0, %v17573_v21 }
0x14c0   : > { %13993 = vmatmul.msk.f32.vlgmr.msrb.gmra.mxu0 %vm643_vm0, %v17573_v21  ;;  %13995 = vmatmul.msk.f32.vlgmr.msrb.gmra.mxu2 %vm643_vm0, %v17573_v21 }
0x14c1   : > { %6012 = vmatpush.msrb.mxu1 %v13946_v14  ;;  %6032 = vmatpush.msra.mxu2 %v13950_v15 }
0x14c2   : > { %5993 = vmatpush.msra.mxu0 %v13941_v16 }
0x14c3   : > { %6013 = vmatpush.msrb.mxu1 %v13945_v17  ;;  %6033 = vmatpush.msra.mxu2 %v13949_v18 }
0x14c4   : > { %5994 = vmatpush.msra.mxu0 %v13940_v20 }
0x14c5   : > { %6014 = vmatpush.msrb.mxu1 %v13944_v22  ;;  %6034 = vmatpush.msra.mxu2 %v13948_v23  ;;  %v15085_v22 = vld [vmem:[%s20603_s5 + $0x5b] ss:$0 sm:$0xff]  ;;  %v15086_v23 = vld [vmem:[%s20603_s5 + $0x5d] ss:$0 sm:$0xff] }
0x14c7   : > { %13998 = vmatmul.msk.f32.vlgmr.msrb.gmra.mxu1 %vm643_vm0, %v17573_v21 }
0x14c8   : > { %13997 = vmatmul.msk.f32.vlgmr.msra.gmra.mxu0 %vm643_vm0, %v17573_v21  ;;  %13999 = vmatmul.msk.f32.vlgmr.msra.gmra.mxu2 %vm643_vm0, %v17573_v21 }
0x1512   : > { %v5576_v24 = vpop.f32.mrf.mxu0  ;;  %v5596_v25 = vpop.f32.mrf.mxu1 }
0x1513   : > { %v5577_v46 = vadd.f32 %v15065_v36, %v5576_v24  ;;  %v5597_v47 = vadd.f32 %v15066_v39, %v5596_v25  ;;  %v15087_v24 = vld [vmem:[%s20603_s5 + $0x5e] ss:$0 sm:$0xff] }
0x1519   : > { %v5616_v26 = vpop.f32.mrf.mxu2  ;;  %v5816_v29 = vpop.f32.mrf.mxu3 }
0x151a   : > { %v5636_v27 = vpop.f32.mrf.mxu0  ;;  %v5656_v28 = vpop.f32.mrf.mxu1  ;;  %v5817_v43 = vadd.f32 %v15068_v33, %v5816_v29  ;;  %v5617_v50 = vadd.f32 %v15067_v19, %v5616_v26 }
0x151b   : > { %v5637_v2 = vadd.f32 %v15069_v53, %v5636_v27  ;;  %v5657_v3 = vadd.f32 %v15070_v54, %v5656_v28 }
0x1521   : > { %v5676_v30 = vpop.f32.mrf.mxu2  ;;  %v5896_v37 = vpop.f32.mrf.mxu3 }
0x1522   : > { %v5696_v31 = vpop.f32.mrf.mxu0  ;;  %v17815_v60 = vpop.f32.mrf.mxu1  ;;  %v5897_v48 = vadd.f32 %v15072_v40, %v5896_v37  ;;  %v5677_v4 = vadd.f32 %v15071_v56, %v5676_v30 }
0x1523   : > { %v5697_v9 = vadd.f32 %v15073_v62, %v5696_v31  ;;  %v5717_v20 = vadd.f32 %v15074_v12, %v17815_v60  ;;  %v15088_v31 = vld [vmem:[%s20603_s5 + $0x5f] ss:$0 sm:$0xff] }
0x1529   : > { %v5736_v38 = vpop.f32.mrf.mxu2  ;;  %v5976_v63 = vpop.f32.mrf.mxu3 }
0x152a   : > { %v5737_v41 = vadd.f32 %v15075_v32, %v5736_v38  ;;  %v5776_v42 = vpop.f32.mrf.mxu1  ;;  %v5977_v5 = vadd.f32 %v15076_v57, %v5976_v63 }
0x152b   : > { %v5756_v7 = vpop.f32.mrf.mxu0  ;;  %v5777_v45 = vadd.f32 %v15078_v35, %v5776_v42 }
0x152c   : > { %v5757_v44 = vadd.f32 %v15077_v34, %v5756_v7  ;;  %14000 = vmatpush.xpose.msk.msra.mxu3 %vm1356_vm5, %v5737_v41 }
0x152d   : > { %14004 = vmatpush.xpose.msk.msra.mxu1 %vm1356_vm5, %v5777_v45 }
0x152e   : > { %14002 = vmatpush.xpose.msk.msrb.mxu0 %vm1356_vm5, %v5757_v44 }
0x152f   : > { %14001 = vmatmul.msk.f32.vlgmr.msra.gmra.mxu3 %vm1356_vm5, %v5577_v46 }
0x1530   : > { %14008 = vmatpush.xpose.msk.msrb.mxu3 %vm1356_vm5, %v5817_v43  ;;  %14005 = vmatmul.msk.f32.vlgmr.msra.gmra.mxu1 %vm1356_vm5, %v5617_v50 }
0x1531   : > { %14003 = vmatmul.msk.f32.vlgmr.msrb.gmra.mxu0 %vm1356_vm5, %v5597_v47  ;;  %v5796_v55 = vpop.f32.mrf.mxu2 }
0x1532   : > { %v5797_v58 = vadd.f32 %v15079_v49, %v5796_v55 }
0x1533   : > { %v5856_v61 = vpop.f32.mrf.mxu1 }
0x1534   : > { %6361 = vmatpush.msra.mxu3 %v5897_v48  ;;  %v5836_v59 = vpop.f32.mrf.mxu0  ;;  %v5857_v1 = vadd.f32 %v15081_v52, %v5856_v61  ;;  %14006 = vmatpush.xpose.msk.msrb.mxu2 %vm1356_vm5, %v5797_v58 }
0x1535   : > { %v5837_v0 = vadd.f32 %v15080_v51, %v5836_v59 }
0x1536   : > { %14012 = vmatpush.xpose.msk.msrb.mxu1 %vm1356_vm5, %v5857_v1 }
0x1537   : > { %14010 = vmatpush.xpose.msk.msra.mxu0 %vm1356_vm5, %v5837_v0  ;;  %14007 = vmatmul.msk.f32.vlgmr.msrb.gmra.mxu2 %vm1356_vm5, %v5637_v2 }
0x1538   : > { %14009 = vmatmul.msk.f32.vlgmr.msrb.gmra.mxu3 %vm1356_vm5, %v5657_v3 }
0x1539   : > { %6453 = vmatpush.msrb.mxu3 %v5977_v5  ;;  %14013 = vmatmul.msk.f32.vlgmr.msrb.gmra.mxu1 %vm1356_vm5, %v5697_v9 }
0x153a   : > { %14011 = vmatmul.msk.f32.vlgmr.msra.gmra.mxu0 %vm1356_vm5, %v5677_v4  ;;  %v5876_v13 = vpop.f32.mrf.mxu2 }
0x153b   : > { %v5877_v14 = vadd.f32 %v15082_v6, %v5876_v13 }
0x153c   : > { %v5936_v16 = vpop.f32.mrf.mxu1 }
0x153d   : > { %v5916_v15 = vpop.f32.mrf.mxu0  ;;  %v5937_v18 = vadd.f32 %v15084_v11, %v5936_v16  ;;  %14014 = vmatpush.xpose.msk.msra.mxu2 %vm1356_vm5, %v5877_v14 }
0x153e   : > { %v5917_v17 = vadd.f32 %v15083_v10, %v5916_v15 }
0x153f   : > { %6407 = vmatpush.msra.mxu1 %v5937_v18 }
0x1540   : > { %6384 = vmatpush.msrb.mxu0 %v5917_v17  ;;  %14015 = vmatmul.msk.f32.vlgmr.msra.gmra.mxu2 %vm1356_vm5, %v5717_v20 }
0x1543   : > { %v5956_v25 = vpop.f32.mrf.mxu2 }
0x1544   : > { %v5957_v26 = vadd.f32 %v15085_v22, %v5956_v25  ;;  %v6016_v28 = vpop.f32.mrf.mxu1 }
0x1545   : > { %v5996_v27 = vpop.f32.mrf.mxu0  ;;  %v6017_v30 = vadd.f32 %v15087_v24, %v6016_v28 }
0x1546   : > { %v5997_v29 = vadd.f32 %v15086_v23, %v5996_v27  ;;  %6430 = vmatpush.msrb.mxu2 %v5957_v26 }
0x1547   : > { %6499 = vmatpush.msrb.mxu1 %v6017_v30 }
0x1548   : > { %6476 = vmatpush.msra.mxu0 %v5997_v29 }
0x154b   : > { %v6036_v60 = vpop.f32.mrf.mxu2 }
0x154c   : > { %v6037_v32 = vadd.f32 %v15088_v31, %v6036_v60 }
0x154e   : > { %6522 = vmatpush.msra.mxu2 %v6037_v32 }
0x15ad   : > { %v6114_v7 = vpop.f32.mrf.mxu1 }
0x15ae   : > { %v6088_v35 = vpop.f32.mrf.mxu0  ;;  %v6249_v46 = vmul.f32 0.5, %v6114_v7 }
0x15af   : > { %v6248_v37 = vmul.f32 0.5, %v6088_v35 }
0x15b0   : > { %v6261_v52 = vsel %vm1584_vm6, %v6249_v46, -inf }
0x15b1   : > { %v6258_v19 = vsel %vm1584_vm6, %v6248_v37, -inf }
0x15b2   : > { %v6062_v33 = vpop.f32.mrf.mxu3 }
0x15b3   : > { %v6247_v34 = vmul.f32 0.5, %v6062_v33 }
0x15b5   : > { %v6255_v36 = vsel %vm1584_vm6, %v6247_v34, -inf }
0x15b6   : > { %6256 = vmax.xlane.f32.xlu2 %v6255_v36  ;;  %v6218_v51 = vpop.f32.mrf.mxu1 }
0x15b7   : > { %v6192_v44 = vpop.f32.mrf.mxu0  ;;  %v6253_v53 = vmul.f32 0.5, %v6218_v51 }
0x15b8   : > { %v6252_v45 = vmul.f32 0.5, %v6192_v44 }
0x15b9   : > { %v6273_v54 = vsel %vm1584_vm6, %v6253_v53, -inf }
0x15ba   : > { %v6140_v38 = vpop.f32.mrf.mxu2  ;;  %v6270_v50 = vsel %vm1584_vm6, %v6252_v45, -inf }
0x15bb   : > { %v6166_v39 = vpop.f32.mrf.mxu3  ;;  %v6250_v40 = vmul.f32 0.5, %v6140_v38 }
0x15bc   : > { %v6251_v41 = vmul.f32 0.5, %v6166_v39 }
0x15bd   : > { %v6264_v42 = vsel %vm1584_vm6, %v6250_v40, -inf }
0x15be   : > { %v6267_v43 = vsel %vm1584_vm6, %v6251_v41, -inf  ;;  %6265 = vmax.xlane.f32.xlu0 %v6264_v42  ;;  %6259 = vmax.xlane.f32.xlu2 %v6258_v19 }
0x15bf   : > { %6268 = vmax.xlane.f32.xlu1 %v6267_v43 }
0x15c3   : > { %v6244_v47 = vpop.f32.mrf.mxu2 }
0x15c4   : > { %v6254_v48 = vmul.f32 0.5, %v6244_v47 }
0x15c6   : > { %v6276_v49 = vsel %vm1584_vm6, %v6254_v48, -inf  ;;  %6271 = vmax.xlane.f32.xlu2 %v6270_v50 }
0x15c7   : > { %6277 = vmax.xlane.f32.xlu0 %v6276_v49  ;;  %6262 = vmax.xlane.f32.xlu1 %v6261_v52 }
0x15cf   : > { %6274 = vmax.xlane.f32.xlu0 %v6273_v54 }
0x1629   : > { %v6257_v55 = vpop.xlane.xlu2 %6256 }
0x162a   : > { %v6279_v56 = vsub.f32 %v6247_v34, %v6257_v55 }
0x162c   : > { %v6287_v57 = vmul.f32 1.442695, %v6279_v56 }
0x162e   : > { %15339 = vpow2.f32 %v6287_v57  ;;  %v14024_v57 = vld [vmem:[%s20604_s6 + $0x60] sm:$0xf] }
0x1631   : > { %v6266_v58 = vpop.xlane.xlu0 %6265  ;;  %v6260_v59 = vpop.xlane.xlu2 %6259 }
0x1632   : > { %v6282_v61 = vsub.f32 %v6250_v40, %v6266_v58  ;;  %v6280_v62 = vsub.f32 %v6248_v37, %v6260_v59  ;;  %v6269_v63 = vpop.xlane.xlu1 %6268  ;;  %v14025_v58 = vld [vmem:[%s20604_s6 + $0x64] sm:$0xf]  ;;  %v14027_v59 = vld [vmem:[%s20604_s6 + $0x6c] sm:$0xf] }
0x1633   : > { %v6283_v0 = vsub.f32 %v6251_v41, %v6269_v63  ;;  %v14029_v63 = vld [vmem:[%s20604_s6 + $0x74] sm:$0xf] }
0x1634   : > { %v15340_v1 = vpop.eup %15339  ;;  %v6293_v2 = vmul.f32 1.442695, %v6282_v61  ;;  %v6289_v3 = vmul.f32 1.442695, %v6280_v62  ;;  %v14028_v61 = vld [vmem:[%s20604_s6 + $0x70] sm:$0xf] }
0x1635   : > { %v6295_v4 = vmul.f32 1.442695, %v6283_v0  ;;  %v6303_v5 = vsel %vm1584_vm6, %v15340_v1, 0.0  ;;  %v14026_v62 = vld [vmem:[%s20604_s6 + $0x68] sm:$0xf] }
0x1636   : > { %15341 = vpow2.f32 %v6293_v2  ;;  %6304 = vadd.xlane.f32.xlu1 %v6303_v5  ;;  %v14031_v0 = vld [vmem:[%s20604_s6 + $0x7c] sm:$0xf] }
0x1637   : > { %15343 = vpow2.f32 %v6289_v3 }
0x1638   : > { %15345 = vpow2.f32 %v6295_v4 }
0x1639   : > { %v6272_v9 = vpop.xlane.xlu2 %6271 }
0x163a   : > { %v6278_v6 = vpop.xlane.xlu0 %6277  ;;  %v6284_v11 = vsub.f32 %v6252_v45, %v6272_v9  ;;  %v6263_v12 = vpop.xlane.xlu1 %6262 }
0x163b   : > { %v6286_v10 = vsub.f32 %v6254_v48, %v6278_v6  ;;  %v6281_v13 = vsub.f32 %v6249_v46, %v6263_v12 }
0x163c   : > { %v15342_v14 = vpop.eup %15341  ;;  %v6297_v16 = vmul.f32 1.442695, %v6284_v11 }
0x163d   : > { %v6301_v15 = vmul.f32 1.442695, %v6286_v10  ;;  %v15344_v17 = vpop.eup %15343  ;;  %v6291_v18 = vmul.f32 1.442695, %v6281_v13  ;;  %v6312_v20 = vsel %vm1584_vm6, %v15342_v14, 0.0 }
0x163e   : > { %v15346_v22 = vpop.eup %15345  ;;  %6313 = vadd.xlane.f32.xlu2 %v6312_v20  ;;  %v6306_v23 = vsel %vm1584_vm6, %v15344_v17, 0.0 }
0x163f   : > { %15347 = vpow2.f32 %v6301_v15  ;;  %6307 = vadd.xlane.f32.xlu1 %v6306_v23  ;;  %v6315_v24 = vsel %vm1584_vm6, %v15346_v22, 0.0 }
0x1640   : > { %15349 = vpow2.f32 %v6297_v16  ;;  %6316 = vadd.xlane.f32.xlu0 %v6315_v24 }
0x1641   : > { %15351 = vpow2.f32 %v6291_v18 }
0x1642   : > { %v6275_v25 = vpop.xlane.xlu0 %6274 }
0x1643   : > { %v6285_v26 = vsub.f32 %v6253_v53, %v6275_v25 }
0x1645   : > { %v15348_v27 = vpop.eup %15347  ;;  %v6299_v28 = vmul.f32 1.442695, %v6285_v26 }
0x1646   : > { %v15350_v29 = vpop.eup %15349  ;;  %v6324_v30 = vsel %vm1584_vm6, %v15348_v27, 0.0 }
0x1647   : > { %v15352_v31 = vpop.eup %15351  ;;  %15353 = vpow2.f32 %v6299_v28  ;;  %6325 = vadd.xlane.f32.xlu2 %v6324_v30  ;;  %v6318_v60 = vsel %vm1584_vm6, %v15350_v29, 0.0 }
0x1648   : > { %6319 = vadd.xlane.f32.xlu1 %v6318_v60  ;;  %v6309_v32 = vsel %vm1584_vm6, %v15352_v31, 0.0 }
0x1649   : > { %6310 = vadd.xlane.f32.xlu0 %v6309_v32 }
0x164d   : > { %v15354_v33 = vpop.eup %15353 }
0x164e   : > { %v6321_v34 = vsel %vm1584_vm6, %v15354_v33, 0.0 }
0x164f   : > { %6322 = vadd.xlane.f32.xlu2 %v6321_v34  ;;  %v15089_v34 = vld [vmem:[%s20605_s7 + $0x3] ss:$0 sm:$0xff] }
0x16a9   : > { %v6305_v35 = vpop.xlane.xlu1 %6304 }
0x16aa   : > { %15355 = vrcp.f32 %v6305_v35 }
0x16b0   : > { %v15356_v36 = vpop.eup %15355 }
0x16b1   : > { %v6335_v37 = vmul.f32 %v15356_v36, %v15340_v1  ;;  %v6314_v38 = vpop.xlane.xlu2 %6313  ;;  %v14030_v1 = vld [vmem:[%s20604_s6 + $0x78] sm:$0xf] }
0x16b2   : > { %15357 = vrcp.f32 %v6314_v38  ;;  %v6308_v39 = vpop.xlane.xlu1 %6307 }
0x16b3   : > { %v6317_v40 = vpop.xlane.xlu0 %6316  ;;  %15359 = vrcp.f32 %v6308_v39  ;;  %14016 = vmatmul.msk.f32.vlgmr.msra.gmra.mxu3 %vm1584_vm6, %v6335_v37 }
0x16b4   : > { %15361 = vrcp.f32 %v6317_v40  ;;  %14032 = vmatpush.msk.msra.mxu3 %vm1868_vm7, %v14024_v57 }
0x16b8   : > { %v15358_v41 = vpop.eup %15357 }
0x16b9   : > { %v15360_v7 = vpop.eup %15359  ;;  %v6338_v42 = vmul.f32 %v15358_v41, %v15342_v14 }
0x16ba   : > { %v6326_v19 = vpop.xlane.xlu2 %6325  ;;  %v15362_v43 = vpop.eup %15361  ;;  %v6336_v44 = vmul.f32 %v15360_v7, %v15344_v17 }
0x16bb   : > { %15363 = vrcp.f32 %v6326_v19  ;;  %v6320_v45 = vpop.xlane.xlu1 %6319  ;;  %v6339_v46 = vmul.f32 %v15362_v43, %v15346_v22  ;;  %14019 = vmatmul.msk.f32.vlgmr.msrb.gmra.mxu2 %vm1584_vm6, %v6338_v42  ;;  %v14054_v43 = vld [vmem:[%s20608_s10 + $0x78] sm:$0xff] }
0x16bc   : > { %v6311_v47 = vpop.xlane.xlu0 %6310  ;;  %15365 = vrcp.f32 %v6320_v45  ;;  %14017 = vmatmul.msk.f32.vlgmr.msrb.gmra.mxu0 %vm1584_vm6, %v6336_v44  ;;  %14038 = vmatpush.msk.msrb.mxu2 %vm1868_vm7, %v14027_v59  ;;  %v14052_v44 = vld [vmem:[%s20608_s10 + $0x68] sm:$0xff]  ;;  %v14051_v45 = vld [vmem:[%s20608_s10 + $0x60] sm:$0xff] }
0x16bd   : > { %15367 = vrcp.f32 %v6311_v47  ;;  %14020 = vmatmul.msk.f32.vlgmr.msrb.gmra.mxu3 %vm1584_vm6, %v6339_v46  ;;  %14034 = vmatpush.msk.msrb.mxu0 %vm1868_vm7, %v14025_v58  ;;  %v14072_v46 = vld [vmem:[%s20610_s12 + $0x1f8] sm:$0xff]  ;;  %v14071_v47 = vld [vmem:[%s20610_s12 + $0x1f0] sm:$0xff]  ;;  %v15090_v59 = vld [vmem:[%s20606_s8 + $0x3] ss:$0 sm:$0xff] }
0x16be   : > { %14040 = vmatpush.msk.msrb.mxu3 %vm1868_vm7, %v14028_v61 }
0x16c1   : > { %v15364_v48 = vpop.eup %15363 }
0x16c2   : > { %v15366_v49 = vpop.eup %15365  ;;  %v6342_v50 = vmul.f32 %v15364_v48, %v15348_v27  ;;  %v6323_v51 = vpop.xlane.xlu2 %6322  ;;  %v14070_v48 = vld [vmem:[%s20610_s12 + $0x1e8] sm:$0xff] }
0x16c3   : > { %v15368_v52 = vpop.eup %15367  ;;  %v6340_v53 = vmul.f32 %v15366_v49, %v15350_v29  ;;  %15369 = vrcp.f32 %v6323_v51  ;;  %v14069_v51 = vld [vmem:[%s20610_s12 + $0x1e0] sm:$0xff] }
0x16c4   : > { %v6337_v54 = vmul.f32 %v15368_v52, %v15352_v31  ;;  %14023 = vmatmul.msk.f32.vlgmr.msra.gmra.mxu2 %vm1584_vm6, %v6342_v50 }
0x16c5   : > { %14021 = vmatmul.msk.f32.vlgmr.msra.gmra.mxu0 %vm1584_vm6, %v6340_v53  ;;  %14046 = vmatpush.msk.msra.mxu2 %vm1868_vm7, %v14031_v0 }
0x16c6   : > { %14018 = vmatmul.msk.f32.vlgmr.msra.gmra.mxu1 %vm1584_vm6, %v6337_v54  ;;  %14042 = vmatpush.msk.msra.mxu0 %vm1868_vm7, %v14029_v63 }
0x16c7   : > { %14036 = vmatpush.msk.msra.mxu1 %vm1868_vm7, %v14026_v62  ;;  %v15091_v62 = vld [vmem:[%s20607_s9 + $0x3] ss:$0 sm:$0xff] }
0x16c9   : > { %v15370_v55 = vpop.eup %15369 }
0x16ca   : > { %v6341_v56 = vmul.f32 %v15370_v55, %v15354_v33 }
0x16ce   : > { %14022 = vmatmul.msk.f32.vlgmr.msrb.gmra.mxu1 %vm1584_vm6, %v6341_v56 }
0x16cf   : > { %14044 = vmatpush.msk.msrb.mxu1 %vm1868_vm7, %v14030_v1 }
0x1736   : > { %v6363_v2 = vpop.f32.mrf.mxu3 }
0x1737   : > { %14033 = vmatmul.msk.f32.vlgmr.msra.gmra.mxu3 %vm1356_vm5, %v6363_v2  ;;  %v14068_v2 = vld [vmem:[%s20610_s12 + $0x1d8] sm:$0xff] }
0x1738   : > { %6825 = vmatpush.msra.mxu3 %v14054_v43  ;;  %v14086_v43 = vld [vmem:[%s20627_s0 + $0xc50] sm:$0xff] }
0x1739   : > { %v6386_v3 = vpop.f32.mrf.mxu0 }
0x173a   : > { %14035 = vmatmul.msk.f32.vlgmr.msrb.gmra.mxu0 %vm1356_vm5, %v6386_v3  ;;  %v14067_v3 = vld [vmem:[%s20610_s12 + $0x1d0] sm:$0xff] }
0x173b   : > { %6864 = vmatpush.msrb.mxu0 %v14072_v46  ;;  %v14085_v46 = vld [vmem:[%s20627_s0 + $0xc48] sm:$0xff] }
0x173d   : > { %6865 = vmatpush.msrb.mxu0 %v14071_v47  ;;  %v14125_v47 = vld [vmem:[%s20627_s0 + $0xd88] sm:$0xff] }
0x173e   : > { %v6432_v4 = vpop.f32.mrf.mxu2 }
0x173f   : > { %14039 = vmatmul.msk.f32.vlgmr.msrb.gmra.mxu2 %vm1356_vm5, %v6432_v4  ;;  %6866 = vmatpush.msrb.mxu0 %v14070_v48  ;;  %v14066_v4 = vld [vmem:[%s20610_s12 + $0x1c8] sm:$0xff]  ;;  %v14076_v48 = vld [vmem:[%s20627_s0 + $0xc00] sm:$0xff] }
0x1740   : > { %v6455_v5 = vpop.f32.mrf.mxu3 }
0x1741   : > { %14041 = vmatmul.msk.f32.vlgmr.msrb.gmra.mxu3 %vm1356_vm5, %v6455_v5  ;;  %6867 = vmatpush.msrb.mxu0 %v14069_v51  ;;  %v14065_v5 = vld [vmem:[%s20610_s12 + $0x1c0] sm:$0xff] }
0x1742   : > { %v6478_v6 = vpop.f32.mrf.mxu0  ;;  %v14124_v51 = vld [vmem:[%s20627_s0 + $0xd80] sm:$0xff] }
0x1743   : > { %v6409_v9 = vpop.f32.mrf.mxu1  ;;  %14043 = vmatmul.msk.f32.vlgmr.msra.gmra.mxu0 %vm1356_vm5, %v6478_v6  ;;  %v14064_v6 = vld [vmem:[%s20610_s12 + $0x1b8] sm:$0xff] }
0x1744   : > { %14037 = vmatmul.msk.f32.vlgmr.msra.gmra.mxu1 %vm1356_vm5, %v6409_v9  ;;  %6868 = vmatpush.msrb.mxu0 %v14068_v2  ;;  %v14063_v9 = vld [vmem:[%s20610_s12 + $0x1b0] sm:$0xff]  ;;  %v14141_v2 = vld [vmem:[%s20627_s0 + $0xe08] sm:$0xff] }
0x1746   : > { %6869 = vmatpush.msrb.mxu0 %v14067_v3 }
0x1747   : > { %v6524_v10 = vpop.f32.mrf.mxu2 }
0x1748   : > { %14047 = vmatmul.msk.f32.vlgmr.msra.gmra.mxu2 %vm1356_vm5, %v6524_v10  ;;  %6870 = vmatpush.msrb.mxu0 %v14066_v4  ;;  %v14062_v10 = vld [vmem:[%s20610_s12 + $0x1a8] sm:$0xff]  ;;  %v14088_v4 = vld [vmem:[%s20627_s0 + $0xc60] sm:$0xff] }
0x174a   : > { %6871 = vmatpush.msrb.mxu0 %v14065_v5  ;;  %v14092_v5 = vld [vmem:[%s20627_s0 + $0xc80] sm:$0xff] }
0x174b   : > { %v6501_v11 = vpop.f32.mrf.mxu1 }
0x174c   : > { %14045 = vmatmul.msk.f32.vlgmr.msrb.gmra.mxu1 %vm1356_vm5, %v6501_v11  ;;  %6872 = vmatpush.msrb.mxu0 %v14064_v6  ;;  %v14061_v11 = vld [vmem:[%s20610_s12 + $0x1a0] sm:$0xff] }
0x174d   : > { %v14096_v6 = vld [vmem:[%s20627_s0 + $0xca0] sm:$0xff] }
0x174e   : > { %6873 = vmatpush.msrb.mxu0 %v14063_v9  ;;  %v14140_v9 = vld [vmem:[%s20627_s0 + $0xe00] sm:$0xff] }
0x1750   : > { %6874 = vmatpush.msrb.mxu0 %v14062_v10 }
0x1752   : > { %6875 = vmatpush.msrb.mxu0 %v14061_v11 }
0x17b7   : > { %v6585_v12 = vpop.f32.mrf.mxu0 }
0x17b8   : > { %v6745_v15 = vsel %vm643_vm0, %v6585_v12, 0.0  ;;  %v14060_v12 = vld [vmem:[%s20610_s12 + $0x198] sm:$0xff] }
0x17b9   : > { %6876 = vmatpush.msrb.mxu0 %v14060_v12 }
0x17ba   : > { %v6559_v13 = vpop.f32.mrf.mxu3 }
0x17bb   : > { %v6744_v14 = vsel %vm643_vm0, %v6559_v13, 0.0  ;;  %v14059_v13 = vld [vmem:[%s20610_s12 + $0x190] sm:$0xff] }
0x17bc   : > { %v6746_v16 = vadd.f32 %v6745_v15, %v6744_v14  ;;  %v14058_v14 = vld [vmem:[%s20610_s12 + $0x188] sm:$0xff]  ;;  %6877 = vmatpush.msrb.mxu0 %v14059_v13  ;;  %v14057_v15 = vld [vmem:[%s20610_s12 + $0x180] sm:$0xff] }
0x17be   : > { %6878 = vmatpush.msrb.mxu0 %v14058_v14 }
0x17c0   : > { %v6689_v24 = vpop.f32.mrf.mxu0  ;;  %6879 = vmatpush.msrb.mxu0 %v14057_v15 }
0x17c1   : > { %v6611_v17 = vpop.f32.mrf.mxu1  ;;  %v6753_v29 = vsel %vm643_vm0, %v6689_v24, 0.0 }
0x17c2   : > { %v6747_v18 = vsel %vm643_vm0, %v6611_v17, 0.0  ;;  %v6637_v22 = vpop.f32.mrf.mxu2 }
0x17c3   : > { %v6748_v20 = vadd.f32 %v6747_v18, %v6746_v16  ;;  %v6749_v23 = vsel %vm643_vm0, %v6637_v22, 0.0  ;;  %v15092_v16 = vld [vmem:[%s20609_s11 + $0x3] ss:$0 sm:$0xff] }
0x17c4   : > { %v6663_v26 = vpop.f32.mrf.mxu3 }
0x17c5   : > { %v6750_v25 = vadd.f32 %v6749_v23, %v6748_v20  ;;  %v6751_v27 = vsel %vm643_vm0, %v6663_v26, 0.0 }
0x17c7   : > { %v6752_v28 = vadd.f32 %v6751_v27, %v6750_v25 }
0x17c9   : > { %v6715_v30 = vpop.f32.mrf.mxu1  ;;  %v6754_v31 = vadd.f32 %v6753_v29, %v6752_v28 }
0x17ca   : > { %v6755_v60 = vsel %vm643_vm0, %v6715_v30, 0.0  ;;  %v15093_v30 = vld [vmem:[%s20611_s13 + $0x3] ss:$0 sm:$0xff] }
0x17cb   : > { %v6756_v32 = vadd.f32 %v6755_v60, %v6754_v31  ;;  %v6741_v33 = vpop.f32.mrf.mxu2 }
0x17cc   : > { %v6757_v35 = vsel %vm643_vm0, %v6741_v33, 0.0 }
0x17cd   : > { %v6758_v36 = vadd.f32 %v6757_v35, %v6756_v32 }
0x17cf   : > { %v6764_v37 = vadd.f32 %v15089_v34, %v6758_v36 }
0x17d1   : > { %v6765_v38 = vadd.f32 %v6764_v37, %v17573_v21  ;;  %v14053_v21 = vld [vmem:[%s20608_s10 + $0x70] sm:$0xff] }
0x17d2   : > { %6826 = vmatpush.msra.mxu3 %v14053_v21  ;;  %v14126_v21 = vld [vmem:[%s20627_s0 + $0xd90] sm:$0xff] }
0x17d3   : > { %v6770_v39 = vsel %vm643_vm0, %v6765_v38, 0.0 }
0x17d4   : > { %6771 = vadd.xlane.f32.xlu0 %v6770_v39  ;;  %6827 = vmatpush.msra.mxu3 %v14052_v44  ;;  %v14079_v39 = vld [vmem:[%s20627_s0 + $0xc18] sm:$0xff]  ;;  %v14077_v44 = vld [vmem:[%s20627_s0 + $0xc08] sm:$0xff] }
0x17d5   : > { %7128 = vmatpush.msra.mxu1 %v14079_v39  ;;  %v14115_v39 = vld [vmem:[%s20627_s0 + $0xd38] sm:$0xff] }
0x17d6   : > { %6828 = vmatpush.msra.mxu3 %v14051_v45  ;;  %v14081_v45 = vld [vmem:[%s20627_s0 + $0xc28] sm:$0xff] }
0x1847   : > { %v6772_v40 = vpop.xlane.xlu0 %6771 }
0x1848   : > { %v6773_v41 = vmul.f32 %v6772_v40, %v15667_v8  ;;  %v14083_v40 = vld [vmem:[%s20627_s0 + $0xc38] sm:$0xff] }
0x1849   : > { %7148 = vmatpush.msrb.mxu2 %v14083_v40  ;;  %v14119_v40 = vld [vmem:[%s20627_s0 + $0xd58] sm:$0xff] }
0x184a   : > { %v6774_v7 = vsub.f32 %v6765_v38, %v6773_v41  ;;  %v14087_v41 = vld [vmem:[%s20627_s0 + $0xc58] sm:$0xff] }
0x184b   : > { %7168 = vmatpush.msrb.mxu3 %v14087_v41  ;;  %v14123_v41 = vld [vmem:[%s20627_s0 + $0xd78] sm:$0xff] }
0x184c   : > { %v6775_v42 = vmul.f32 %v6774_v7, %v6774_v7 }
0x184d   : > { %7169 = vmatpush.msrb.mxu3 %v14086_v43  ;;  %v14113_v43 = vld [vmem:[%s20627_s0 + $0xd28] sm:$0xff] }
0x184e   : > { %v6776_v19 = vsel %vm643_vm0, %v6775_v42, 0.0  ;;  %v14078_v42 = vld [vmem:[%s20627_s0 + $0xc10] sm:$0xff] }
0x184f   : > { %6777 = vadd.xlane.f32.xlu1 %v6776_v19  ;;  %v14082_v19 = vld [vmem:[%s20627_s0 + $0xc30] sm:$0xff]  ;;  %7129 = vmatpush.msra.mxu1 %v14078_v42 }
0x1850   : > { %7149 = vmatpush.msrb.mxu2 %v14082_v19  ;;  %7170 = vmatpush.msrb.mxu3 %v14085_v46  ;;  %v14118_v42 = vld [vmem:[%s20627_s0 + $0xd50] sm:$0xff]  ;;  %v14116_v46 = vld [vmem:[%s20627_s0 + $0xd40] sm:$0xff] }
0x1851   : > { %7130 = vmatpush.msra.mxu1 %v14077_v44  ;;  %v14122_v19 = vld [vmem:[%s20627_s0 + $0xd70] sm:$0xff]  ;;  %v14121_v44 = vld [vmem:[%s20627_s0 + $0xd68] sm:$0xff] }
0x1852   : > { %7150 = vmatpush.msrb.mxu2 %v14081_v45  ;;  %v14112_v45 = vld [vmem:[%s20627_s0 + $0xd20] sm:$0xff] }
0x1853   : > { %7131 = vmatpush.msra.mxu1 %v14076_v48  ;;  %v14131_v48 = vld [vmem:[%s20627_s0 + $0xdb8] sm:$0xff] }
0x18c2   : > { %v6778_v49 = vpop.xlane.xlu1 %6777 }
0x18c3   : > { %v6779_v50 = vmul.f32 %v6778_v49, %v15667_v8  ;;  %v14080_v49 = vld [vmem:[%s20627_s0 + $0xc20] sm:$0xff] }
0x18c4   : > { %7151 = vmatpush.msrb.mxu2 %v14080_v49  ;;  %v14135_v49 = vld [vmem:[%s20627_s0 + $0xdd8] sm:$0xff] }
0x18c5   : > { %v6780_v52 = vadd.f32 1e-05, %v6779_v50  ;;  %v14084_v50 = vld [vmem:[%s20627_s0 + $0xc40] sm:$0xff] }
0x18c6   : > { %7171 = vmatpush.msrb.mxu3 %v14084_v50  ;;  %v14139_v50 = vld [vmem:[%s20627_s0 + $0xdf8] sm:$0xff] }
0x18c7   : > { %15371 = vrsqrt.f32 %v6780_v52  ;;  %vm6787_vm15 = vweird.f32 %v6780_v52 }
0x18cd   : > { %v15372_v53 = vpop.eup %15371 }
0x18ce   : > { %v6782_v54 = vmul.f32 %v15372_v53, %v6780_v52  ;;  %vm6788_vm14 = vweird.f32 %v15372_v53  ;;  %v14091_v52 = vld [vmem:[%s20627_s0 + $0xc78] sm:$0xff] }
0x18cf   : > { %vm6789_vm1 = vmor %vm6787_vm15, %vm6788_vm14  ;;  %7188 = vmatpush.msrb.mxu1 %v14091_v52  ;;  %v14134_v52 = vld [vmem:[%s20627_s0 + $0xdd0] sm:$0xff] }
0x18d0   : > { %v6783_v55 = vmul.f32 %v15372_v53, %v6782_v54  ;;  %v14099_v54 = vld [vmem:[%s20627_s0 + $0xcb8] sm:$0xff] }
0x18d2   : > { %v6784_v56 = vmul.f32 0.5, %v6783_v55  ;;  %v14143_v55 = vld [vmem:[%s20627_s0 + $0xe18] sm:$0xff] }
0x18d4   : > { %v6785_v57 = vsub.f32 1.5, %v6784_v56  ;;  %v14090_v56 = vld [vmem:[%s20627_s0 + $0xc70] sm:$0xff] }
0x18d5   : > { %7189 = vmatpush.msrb.mxu1 %v14090_v56  ;;  %v14137_v56 = vld [vmem:[%s20627_s0 + $0xde8] sm:$0xff] }
0x18d6   : > { %v6786_v58 = vmul.f32 %v15372_v53, %v6785_v57  ;;  %v14094_v57 = vld [vmem:[%s20627_s0 + $0xc90] sm:$0xff] }
0x18d8   : > { %v6790_v61 = vsel %vm6789_vm1, %v15372_v53, %v6786_v58  ;;  %v14095_v53 = vld [vmem:[%s20627_s0 + $0xc98] sm:$0xff] }
0x18d9   : > { %v6791_v63 = vmul.f32 %v6790_v61, %v6774_v7  ;;  %v14127_v7 = vld [vmem:[%s20627_s0 + $0xd98] sm:$0xff]  ;;  %7208 = vmatpush.msra.mxu2 %v14095_v53  ;;  %v14142_v61 = vld [vmem:[%s20627_s0 + $0xe10] sm:$0xff] }
0x18da   : > { %7368 = vmatpush.msra.mxu0 %v14127_v7  ;;  %v14114_v7 = vld [vmem:[%s20627_s0 + $0xd30] sm:$0xff] }
0x18db   : > { %v6795_v0 = vmul.f32 %v15090_v59, %v6791_v63  ;;  %v14098_v59 = vld [vmem:[%s20627_s0 + $0xcb0] sm:$0xff]  ;;  %v14089_v63 = vld [vmem:[%s20627_s0 + $0xc68] sm:$0xff]  ;;  %7209 = vmatpush.msra.mxu2 %v14094_v57  ;;  %v14128_v57 = vld [vmem:[%s20627_s0 + $0xda0] sm:$0xff] }
0x18dc   : > { %7369 = vmatpush.msra.mxu0 %v14126_v21  ;;  %7190 = vmatpush.msrb.mxu1 %v14089_v63  ;;  %v14117_v21 = vld [vmem:[%s20627_s0 + $0xd48] sm:$0xff]  ;;  %v14138_v53 = vld [vmem:[%s20627_s0 + $0xdf0] sm:$0xff]  ;;  %v14155_v63 = vld [vmem:[%s20627_s0 + $0xe78] sm:$0xff] }
0x18dd   : > { %v6799_v1 = vadd.f32 %v15091_v62, %v6795_v0  ;;  %v14093_v0 = vld [vmem:[%s20627_s0 + $0xc88] sm:$0xff] }
0x18de   : > { %7370 = vmatpush.msra.mxu0 %v14125_v47  ;;  %7210 = vmatpush.msra.mxu2 %v14093_v0  ;;  %v14120_v47 = vld [vmem:[%s20627_s0 + $0xd60] sm:$0xff]  ;;  %v14146_v0 = vld [vmem:[%s20627_s0 + $0xe30] sm:$0xff] }
0x18df   : > { %14056 = vmatmul.msk.f32.vlgmr.msra.gmra.mxu3 %vm643_vm0, %v6799_v1  ;;  %7191 = vmatpush.msrb.mxu1 %v14088_v4  ;;  %v14149_v4 = vld [vmem:[%s20627_s0 + $0xe48] sm:$0xff] }
0x18e0   : > { %7371 = vmatpush.msra.mxu0 %v14124_v51  ;;  %7228 = vmatpush.msra.mxu3 %v14099_v54  ;;  %v14130_v51 = vld [vmem:[%s20627_s0 + $0xdb0] sm:$0xff]  ;;  %v14129_v54 = vld [vmem:[%s20627_s0 + $0xda8] sm:$0xff] }
0x18e1   : > { %7211 = vmatpush.msra.mxu2 %v14092_v5  ;;  %v14153_v5 = vld [vmem:[%s20627_s0 + $0xe68] sm:$0xff] }
0x18e2   : > { %7229 = vmatpush.msra.mxu3 %v14098_v59  ;;  %v14147_v59 = vld [vmem:[%s20627_s0 + $0xe38] sm:$0xff] }
0x1962   : > { %v6830_v17 = vpop.f32.mrf.mxu3 }
0x1963   : > { %v6831_v18 = vadd.f32 %v15092_v16, %v6830_v17  ;;  %v15094_v16 = vld [vmem:[%s20612_s14 + $0x3] ss:$0 sm:$0xff] }
0x1965   : > { %v6834_v20 = vmul.f32 0.044715, %v6831_v18  ;;  %v6833_v27 = vmul.f32 0.5, %v6831_v18 }
0x1967   : > { %v6835_v22 = vmul.f32 %v6834_v20, %v6831_v18 }
0x1969   : > { %v6836_v23 = vmul.f32 %v6835_v22, %v6831_v18 }
0x196b   : > { %v6837_v24 = vadd.f32 %v6836_v23, %v6831_v18  ;;  %v15095_v18 = vld [vmem:[%s20613_s15 + $0x3] ss:$0 sm:$0xff] }
0x196d   : > { %v6838_v25 = vmul.f32 0.7978846, %v6837_v24  ;;  %v14103_v24 = vld [vmem:[%s20627_s0 + $0xcd8] sm:$0xff] }
0x196f   : > { %15373 = vtanh.f32 %v6838_v25  ;;  %v14107_v25 = vld [vmem:[%s20627_s0 + $0xcf8] sm:$0xff] }
0x1975   : > { %v15374_v26 = vpop.eup %15373 }
0x1976   : > { %v6840_v28 = vadd.f32 1.0, %v15374_v26  ;;  %v14111_v26 = vld [vmem:[%s20627_s0 + $0xd18] sm:$0xff] }
0x1978   : > { %v6841_v29 = vmul.f32 %v6840_v28, %v6833_v27  ;;  %v14159_v27 = vld [vmem:[%s20627_s0 + $0xe98] sm:$0xff]  ;;  %v14102_v28 = vld [vmem:[%s20627_s0 + $0xcd0] sm:$0xff] }
0x197a   : > { %6880 = vmatmul.f32.vlgmr.msrb.gmra.mxu0 %v6841_v29  ;;  %v14106_v29 = vld [vmem:[%s20627_s0 + $0xcf0] sm:$0xff] }
0x197b   : > { %7448 = vmatpush.msrb.mxu0 %v14143_v55  ;;  %v14133_v55 = vld [vmem:[%s20627_s0 + $0xdc8] sm:$0xff] }
0x197d   : > { %7449 = vmatpush.msrb.mxu0 %v14142_v61  ;;  %v14136_v61 = vld [vmem:[%s20627_s0 + $0xde0] sm:$0xff] }
0x197f   : > { %7450 = vmatpush.msrb.mxu0 %v14141_v2  ;;  %v14154_v2 = vld [vmem:[%s20627_s0 + $0xe70] sm:$0xff] }
0x1981   : > { %7451 = vmatpush.msrb.mxu0 %v14140_v9  ;;  %v14148_v9 = vld [vmem:[%s20627_s0 + $0xe40] sm:$0xff] }
0x19f7   : > { %v6881_v31 = vpop.f32.mrf.mxu0 }
0x19f8   : > { %v6882_v60 = vadd.f32 %v15093_v30, %v6881_v31  ;;  %v14110_v30 = vld [vmem:[%s20627_s0 + $0xd10] sm:$0xff] }
0x19f9   : > { %v14158_v31 = vld [vmem:[%s20627_s0 + $0xe90] sm:$0xff] }
0x19fa   : > { %v6884_v32 = vadd.f32 %v6882_v60, %v6799_v1  ;;  %v14097_v1 = vld [vmem:[%s20627_s0 + $0xca8] sm:$0xff] }
0x19fb   : > { %7230 = vmatpush.msra.mxu3 %v14097_v1  ;;  %v14101_v60 = vld [vmem:[%s20627_s0 + $0xcc8] sm:$0xff]  ;;  %v14150_v1 = vld [vmem:[%s20627_s0 + $0xe50] sm:$0xff] }
0x19fc   : > { %v6889_v33 = vsel %vm643_vm0, %v6884_v32, 0.0 }
0x19fd   : > { %6890 = vadd.xlane.f32.xlu2 %v6889_v33  ;;  %7231 = vmatpush.msra.mxu3 %v14096_v6  ;;  %v14109_v33 = vld [vmem:[%s20627_s0 + $0xd08] sm:$0xff]  ;;  %v14144_v6 = vld [vmem:[%s20627_s0 + $0xe20] sm:$0xff] }
0x1a70   : > { %v6891_v34 = vpop.xlane.xlu2 %6890 }
0x1a71   : > { %v6892_v35 = vmul.f32 %v6891_v34, %v15667_v8  ;;  %v14157_v34 = vld [vmem:[%s20627_s0 + $0xe88] sm:$0xff] }
0x1a73   : > { %v18061_v36 = vsub.f32 %v6884_v32, %v6892_v35  ;;  %v14105_v32 = vld [vmem:[%s20627_s0 + $0xce8] sm:$0xff]  ;;  %v14100_v35 = vld [vmem:[%s20627_s0 + $0xcc0] sm:$0xff] }
0x1a75   : > { %v6894_v37 = vmul.f32 %v18061_v36, %v18061_v36 }
0x1a77   : > { %v6895_v38 = vsel %vm643_vm0, %v6894_v37, 0.0  ;;  %v14108_v37 = vld [vmem:[%s20627_s0 + $0xd00] sm:$0xff] }
0x1a78   : > { %6896 = vadd.xlane.f32.xlu0 %v6895_v38  ;;  %v14156_v38 = vld [vmem:[%s20627_s0 + $0xe80] sm:$0xff] }
0x1aeb   : > { %v6897_v58 = vpop.xlane.xlu0 %6896 }
0x1aec   : > { %v6898_v62 = vmul.f32 %v6897_v58, %v15667_v8  ;;  %v14132_v58 = vld [vmem:[%s20627_s0 + $0xdc0] sm:$0xff] }
0x1aee   : > { %v6899_v3 = vadd.f32 1e-05, %v6898_v62  ;;  %v14151_v62 = vld [vmem:[%s20627_s0 + $0xe58] sm:$0xff] }
0x1af0   : > { %15375 = vrsqrt.f32 %v6899_v3  ;;  %vm6906_vm3 = vweird.f32 %v6899_v3 }
0x1af6   : > { %v15376_v10 = vpop.eup %15375 }
0x1af7   : > { %v6901_v11 = vmul.f32 %v15376_v10, %v6899_v3  ;;  %vm6907_vm2 = vweird.f32 %v15376_v10  ;;  %v14145_v3 = vld [vmem:[%s20627_s0 + $0xe28] sm:$0xff] }
0x1af8   : > { %vm6908_vm4 = vmor %vm6906_vm3, %vm6907_vm2 }
0x1af9   : > { %v6902_v12 = vmul.f32 %v15376_v10, %v6901_v11  ;;  %v14152_v11 = vld [vmem:[%s20627_s0 + $0xe60] sm:$0xff] }
0x1afb   : > { %v6903_v13 = vmul.f32 0.5, %v6902_v12  ;;  %v14167_v12 = vld [vmem:[%s20627_s0 + $0xed8] sm:$0xff] }
0x1afd   : > { %v6904_v14 = vsub.f32 1.5, %v6903_v13  ;;  %v14171_v13 = vld [vmem:[%s20627_s0 + $0xef8] sm:$0xff] }
0x1aff   : > { %v6905_v15 = vmul.f32 %v15376_v10, %v6904_v14  ;;  %v14162_v14 = vld [vmem:[%s20627_s0 + $0xeb0] sm:$0xff] }
0x1b01   : > { %v6909_v17 = vsel %vm6908_vm4, %v15376_v10, %v6905_v15  ;;  %v14163_v10 = vld [vmem:[%s20627_s0 + $0xeb8] sm:$0xff]  ;;  %v14166_v15 = vld [vmem:[%s20627_s0 + $0xed0] sm:$0xff] }
0x1b02   : > { %v6910_v20 = vmul.f32 %v6909_v17, %v18061_v36  ;;  %v14104_v36 = vld [vmem:[%s20627_s0 + $0xce0] sm:$0xff]  ;;  %v14161_v17 = vld [vmem:[%s20627_s0 + $0xea8] sm:$0xff] }
0x1b04   : > { %v6914_v22 = vmul.f32 %v15094_v16, %v6910_v20  ;;  %v14170_v16 = vld [vmem:[%s20627_s0 + $0xef0] sm:$0xff]  ;;  %v14169_v20 = vld [vmem:[%s20627_s0 + $0xee8] sm:$0xff] }
0x1b06   : > { %v18170_v23 = vadd.f32 %v15095_v18, %v6914_v22  ;;  %v14165_v18 = vld [vmem:[%s20627_s0 + $0xec8] sm:$0xff]  ;;  %v14160_v22 = vld [vmem:[%s20627_s0 + $0xea0] sm:$0xff] }
0x1b08   : > { %14196 = vmatmul.msk.f32.vlgmr.msra.gmra.mxu1 %vm643_vm0, %v18170_v23  ;;  %14197 = vmatmul.msk.f32.vlgmr.msrb.gmra.mxu2 %vm643_vm0, %v18170_v23 }
0x1b09   : > { %14198 = vmatmul.msk.f32.vlgmr.msrb.gmra.mxu3 %vm643_vm0, %v18170_v23  ;;  %14208 = vmatmul.msk.f32.vlgmr.msra.gmra.mxu0 %vm643_vm0, %v18170_v23 }
0x1b0a   : > { %7248 = vmatpush.msra.mxu1 %v14103_v24  ;;  %7268 = vmatpush.msrb.mxu2 %v14107_v25  ;;  %v14164_v24 = vld [vmem:[%s20627_s0 + $0xec0] sm:$0xff] }
0x1b0b   : > { %7288 = vmatpush.msrb.mxu3 %v14111_v26  ;;  %7528 = vmatpush.msra.mxu0 %v14159_v27  ;;  %v14168_v25 = vld [vmem:[%s20627_s0 + $0xee0] sm:$0xff] }
0x1b0c   : > { %7249 = vmatpush.msra.mxu1 %v14102_v28  ;;  %7269 = vmatpush.msrb.mxu2 %v14106_v29 }
0x1b0d   : > { %7289 = vmatpush.msrb.mxu3 %v14110_v30  ;;  %7529 = vmatpush.msra.mxu0 %v14158_v31 }
0x1b0e   : > { %7250 = vmatpush.msra.mxu1 %v14101_v60  ;;  %7270 = vmatpush.msrb.mxu2 %v14105_v32 }
0x1b0f   : > { %7290 = vmatpush.msrb.mxu3 %v14109_v33  ;;  %7530 = vmatpush.msra.mxu0 %v14157_v34  ;;  %v15107_v33 = vld [vmem:[%s20603_s5 + $0x68] ss:$0 sm:$0xff]  ;;  %v15097_v34 = vld [vmem:[%s20603_s5 + $0x6c] ss:$0 sm:$0xff] }
0x1b10   : > { %14199 = vmatmul.msk.f32.vlgmr.msrb.gmra.mxu1 %vm643_vm0, %v18170_v23  ;;  %14200 = vmatmul.msk.f32.vlgmr.msra.gmra.mxu2 %vm643_vm0, %v18170_v23 }
0x1b11   : > { %14201 = vmatmul.msk.f32.vlgmr.msra.gmra.mxu3 %vm643_vm0, %v18170_v23  ;;  %14212 = vmatmul.msk.f32.vlgmr.msrb.gmra.mxu0 %vm643_vm0, %v18170_v23 }
0x1b12   : > { %7251 = vmatpush.msra.mxu1 %v14100_v35  ;;  %7271 = vmatpush.msrb.mxu2 %v14104_v36  ;;  %v15108_v35 = vld [vmem:[%s20603_s5 + $0x69] ss:$0 sm:$0xff] }
0x1b13   : > { %7291 = vmatpush.msrb.mxu3 %v14108_v37  ;;  %7531 = vmatpush.msra.mxu0 %v14156_v38  ;;  %v15096_v37 = vld [vmem:[%s20603_s5 + $0x60] ss:$0 sm:$0xff] }
0x1b14   : > { %7308 = vmatpush.msrb.mxu1 %v14115_v39  ;;  %7328 = vmatpush.msra.mxu2 %v14119_v40  ;;  %v15098_v40 = vld [vmem:[%s20603_s5 + $0x61] ss:$0 sm:$0xff] }
0x1b15   : > { %7348 = vmatpush.msra.mxu3 %v14123_v41  ;;  %v15101_v41 = vld [vmem:[%s20603_s5 + $0x70] ss:$0 sm:$0xff] }
0x1b16   : > { %7309 = vmatpush.msrb.mxu1 %v14114_v7  ;;  %7329 = vmatpush.msra.mxu2 %v14118_v42 }
0x1b17   : > { %7349 = vmatpush.msra.mxu3 %v14122_v19 }
0x1b18   : > { %14202 = vmatmul.msk.f32.vlgmr.msra.gmra.mxu1 %vm643_vm0, %v18170_v23  ;;  %14203 = vmatmul.msk.f32.vlgmr.msrb.gmra.mxu2 %vm643_vm0, %v18170_v23 }
0x1b19   : > { %14204 = vmatmul.msk.f32.vlgmr.msrb.gmra.mxu3 %vm643_vm0, %v18170_v23  ;;  %14216 = vmatmul.msk.f32.vlgmr.msra.gmra.mxu0 %vm643_vm0, %v18170_v23 }
0x1b1a   : > { %7310 = vmatpush.msrb.mxu1 %v14113_v43  ;;  %7330 = vmatpush.msra.mxu2 %v14117_v21 }
0x1b1b   : > { %7350 = vmatpush.msra.mxu3 %v14121_v44  ;;  %v15109_v44 = vld [vmem:[%s20603_s5 + $0x6a] ss:$0 sm:$0xff] }
0x1b1c   : > { %7311 = vmatpush.msrb.mxu1 %v14112_v45  ;;  %7331 = vmatpush.msra.mxu2 %v14116_v46 }
0x1b1d   : > { %7351 = vmatpush.msra.mxu3 %v14120_v47  ;;  %v15110_v47 = vld [vmem:[%s20603_s5 + $0x6b] ss:$0 sm:$0xff] }
0x1b1e   : > { %7388 = vmatpush.msra.mxu1 %v14131_v48  ;;  %7408 = vmatpush.msrb.mxu2 %v14135_v49  ;;  %v15111_v48 = vld [vmem:[%s20603_s5 + $0x6d] ss:$0 sm:$0xff]  ;;  %v15099_v49 = vld [vmem:[%s20603_s5 + $0x62] ss:$0 sm:$0xff] }
0x1b1f   : > { %7428 = vmatpush.msrb.mxu3 %v14139_v50 }
0x1b20   : > { %7389 = vmatpush.msra.mxu1 %v14130_v51  ;;  %14206 = vmatmul.msk.f32.vlgmr.msra.gmra.mxu2 %vm643_vm0, %v18170_v23  ;;  %v15100_v51 = vld [vmem:[%s20603_s5 + $0x63] ss:$0 sm:$0xff] }
0x1b21   : > { %14205 = vmatmul.msk.f32.vlgmr.msrb.gmra.mxu1 %vm643_vm0, %v18170_v23  ;;  %14207 = vmatmul.msk.f32.vlgmr.msra.gmra.mxu3 %vm643_vm0, %v18170_v23 }
0x1b22   : > { %7409 = vmatpush.msrb.mxu2 %v14134_v52  ;;  %7429 = vmatpush.msrb.mxu3 %v14138_v53  ;;  %v15102_v52 = vld [vmem:[%s20603_s5 + $0x64] ss:$0 sm:$0xff] }
0x1b23   : > { %7390 = vmatpush.msra.mxu1 %v14129_v54 }
0x1b24   : > { %7410 = vmatpush.msrb.mxu2 %v14133_v55  ;;  %7430 = vmatpush.msrb.mxu3 %v14137_v56  ;;  %v15103_v55 = vld [vmem:[%s20603_s5 + $0x65] ss:$0 sm:$0xff]  ;;  %v15105_v56 = vld [vmem:[%s20603_s5 + $0x74] ss:$0 sm:$0xff] }
0x1b25   : > { %7391 = vmatpush.msra.mxu1 %v14128_v57 }
0x1b26   : > { %7411 = vmatpush.msrb.mxu2 %v14132_v58  ;;  %7431 = vmatpush.msrb.mxu3 %v14136_v61 }
0x1b27   : > { %7468 = vmatpush.msrb.mxu1 %v14147_v59 }
0x1b28   : > { %7488 = vmatpush.msra.mxu2 %v14151_v62  ;;  %7508 = vmatpush.msra.mxu3 %v14155_v63 }
0x1b29   : > { %7469 = vmatpush.msrb.mxu1 %v14146_v0  ;;  %14210 = vmatmul.msk.f32.vlgmr.msrb.gmra.mxu2 %vm643_vm0, %v18170_v23 }
0x1b2a   : > { %14209 = vmatmul.msk.f32.vlgmr.msra.gmra.mxu1 %vm643_vm0, %v18170_v23  ;;  %14211 = vmatmul.msk.f32.vlgmr.msrb.gmra.mxu3 %vm643_vm0, %v18170_v23 }
0x1b2b   : > { %7489 = vmatpush.msra.mxu2 %v14150_v1  ;;  %7509 = vmatpush.msra.mxu3 %v14154_v2  ;;  %v15112_v1 = vld [vmem:[%s20603_s5 + $0x6e] ss:$0 sm:$0xff] }
0x1b2c   : > { %7470 = vmatpush.msrb.mxu1 %v14145_v3 }
0x1b2d   : > { %7490 = vmatpush.msra.mxu2 %v14149_v4  ;;  %7510 = vmatpush.msra.mxu3 %v14153_v5  ;;  %v15113_v4 = vld [vmem:[%s20603_s5 + $0x6f] ss:$0 sm:$0xff]  ;;  %v15114_v5 = vld [vmem:[%s20603_s5 + $0x71] ss:$0 sm:$0xff] }
0x1b2e   : > { %7471 = vmatpush.msrb.mxu1 %v14144_v6  ;;  %v15104_v6 = vld [vmem:[%s20603_s5 + $0x66] ss:$0 sm:$0xff] }
0x1b2f   : > { %7491 = vmatpush.msra.mxu2 %v14148_v9  ;;  %7511 = vmatpush.msra.mxu3 %v14152_v11 }
0x1b30   : > { %7548 = vmatpush.msra.mxu1 %v14163_v10  ;;  %v15106_v10 = vld [vmem:[%s20603_s5 + $0x67] ss:$0 sm:$0xff] }
0x1b31   : > { %7568 = vmatpush.msrb.mxu2 %v14167_v12  ;;  %7588 = vmatpush.msrb.mxu3 %v14171_v13 }
0x1b32   : > { %7549 = vmatpush.msra.mxu1 %v14162_v14  ;;  %14214 = vmatmul.msk.f32.vlgmr.msra.gmra.mxu2 %vm643_vm0, %v18170_v23 }
0x1b33   : > { %14213 = vmatmul.msk.f32.vlgmr.msrb.gmra.mxu1 %vm643_vm0, %v18170_v23  ;;  %14215 = vmatmul.msk.f32.vlgmr.msra.gmra.mxu3 %vm643_vm0, %v18170_v23 }
0x1b34   : > { %7569 = vmatpush.msrb.mxu2 %v14166_v15  ;;  %7589 = vmatpush.msrb.mxu3 %v14170_v16 }
0x1b35   : > { %7550 = vmatpush.msra.mxu1 %v14161_v17 }
0x1b36   : > { %7570 = vmatpush.msrb.mxu2 %v14165_v18  ;;  %7590 = vmatpush.msrb.mxu3 %v14169_v20  ;;  %v15115_v18 = vld [vmem:[%s20603_s5 + $0x72] ss:$0 sm:$0xff]  ;;  %v15116_v20 = vld [vmem:[%s20603_s5 + $0x73] ss:$0 sm:$0xff] }
0x1b37   : > { %7551 = vmatpush.msra.mxu1 %v14160_v22  ;;  %v15117_v22 = vld [vmem:[%s20603_s5 + $0x75] ss:$0 sm:$0xff] }
0x1b38   : > { %7571 = vmatpush.msrb.mxu2 %v14164_v24  ;;  %7591 = vmatpush.msrb.mxu3 %v14168_v25 }
0x1b3a   : > { %14218 = vmatmul.msk.f32.vlgmr.msrb.gmra.mxu2 %vm643_vm0, %v18170_v23 }
0x1b3b   : > { %14217 = vmatmul.msk.f32.vlgmr.msra.gmra.mxu1 %vm643_vm0, %v18170_v23  ;;  %14219 = vmatmul.msk.f32.vlgmr.msrb.gmra.mxu3 %vm643_vm0, %v18170_v23 }
0x1b85   : > { %v7133_v26 = vpop.f32.mrf.mxu1 }
0x1b86   : > { %v7373_v30 = vpop.f32.mrf.mxu0  ;;  %v7134_v21 = vadd.f32 %v15096_v37, %v7133_v26 }
0x1b87   : > { %v7374_v19 = vadd.f32 %v15097_v34, %v7373_v30  ;;  %v15118_v30 = vld [vmem:[%s20603_s5 + $0x76] ss:$0 sm:$0xff] }
0x1b8b   : > { %v7153_v27 = vpop.f32.mrf.mxu2 }
0x1b8c   : > { %v7173_v28 = vpop.f32.mrf.mxu3  ;;  %v7154_v45 = vadd.f32 %v15098_v40, %v7153_v27 }
0x1b8d   : > { %v7193_v29 = vpop.f32.mrf.mxu1  ;;  %v7174_v62 = vadd.f32 %v15099_v49, %v7173_v28 }
0x1b8e   : > { %v7453_v38 = vpop.f32.mrf.mxu0  ;;  %v7194_v63 = vadd.f32 %v15100_v51, %v7193_v29 }
0x1b8f   : > { %v7454_v46 = vadd.f32 %v15101_v41, %v7453_v38 }
0x1b93   : > { %v7213_v31 = vpop.f32.mrf.mxu2 }
0x1b94   : > { %v7233_v60 = vpop.f32.mrf.mxu3  ;;  %v7214_v0 = vadd.f32 %v15102_v52, %v7213_v31  ;;  %v15119_v31 = vld [vmem:[%s20603_s5 + $0x77] ss:$0 sm:$0xff] }
0x1b95   : > { %v18412_v32 = vpop.f32.mrf.mxu1  ;;  %v7234_v2 = vadd.f32 %v15103_v55, %v7233_v60 }
0x1b96   : > { %v7533_v59 = vpop.f32.mrf.mxu0  ;;  %v7254_v16 = vadd.f32 %v15104_v6, %v18412_v32 }
0x1b97   : > { %v7534_v3 = vadd.f32 %v15105_v56, %v7533_v59 }
0x1b9b   : > { %v7273_v36 = vpop.f32.mrf.mxu2 }
0x1b9c   : > { %v7293_v39 = vpop.f32.mrf.mxu3  ;;  %v7274_v17 = vadd.f32 %v15106_v10, %v7273_v36 }
0x1b9d   : > { %v7294_v7 = vadd.f32 %v15107_v33, %v7293_v39 }
0x1b9e   : > { %v7313_v42 = vpop.f32.mrf.mxu1 }
0x1b9f   : > { %v7314_v43 = vadd.f32 %v15108_v35, %v7313_v42  ;;  %14220 = vmatpush.xpose.msk.msrb.mxu0 %vm1356_vm5, %v7294_v7 }
0x1ba1   : > { %14222 = vmatpush.xpose.msk.msrb.mxu1 %vm1356_vm5, %v7314_v43 }
0x1ba2   : > { %14221 = vmatmul.msk.f32.vlgmr.msrb.gmra.mxu0 %vm1356_vm5, %v7134_v21 }
0x1ba3   : > { %14228 = vmatpush.xpose.msk.msra.mxu0 %vm1356_vm5, %v7374_v19  ;;  %v7333_v50 = vpop.f32.mrf.mxu2 }
0x1ba4   : > { %14223 = vmatmul.msk.f32.vlgmr.msrb.gmra.mxu1 %vm1356_vm5, %v7154_v45  ;;  %v7334_v53 = vadd.f32 %v15109_v44, %v7333_v50  ;;  %v7353_v54 = vpop.f32.mrf.mxu3 }
0x1ba5   : > { %v7354_v57 = vadd.f32 %v15110_v47, %v7353_v54 }
0x1ba6   : > { %14224 = vmatpush.xpose.msk.msra.mxu2 %vm1356_vm5, %v7334_v53 }
0x1ba7   : > { %7918 = vmatpush.msrb.mxu0 %v7454_v46  ;;  %v7393_v58 = vpop.f32.mrf.mxu1  ;;  %14226 = vmatpush.xpose.msk.msra.mxu3 %vm1356_vm5, %v7354_v57 }
0x1ba8   : > { %v7394_v61 = vadd.f32 %v15111_v48, %v7393_v58 }
0x1ba9   : > { %14225 = vmatmul.msk.f32.vlgmr.msra.gmra.mxu2 %vm1356_vm5, %v7174_v62 }
0x1baa   : > { %14230 = vmatpush.xpose.msk.msra.mxu1 %vm1356_vm5, %v7394_v61  ;;  %14227 = vmatmul.msk.f32.vlgmr.msra.gmra.mxu3 %vm1356_vm5, %v7194_v63 }
0x1bab   : > { %14229 = vmatmul.msk.f32.vlgmr.msra.gmra.mxu0 %vm1356_vm5, %v7214_v0 }
0x1bac   : > { %8010 = vmatpush.msra.mxu0 %v7534_v3  ;;  %v7413_v9 = vpop.f32.mrf.mxu2 }
0x1bad   : > { %14231 = vmatmul.msk.f32.vlgmr.msra.gmra.mxu1 %vm1356_vm5, %v7234_v2  ;;  %v7414_v11 = vadd.f32 %v15112_v1, %v7413_v9  ;;  %v7433_v12 = vpop.f32.mrf.mxu3 }
0x1bae   : > { %v7434_v13 = vadd.f32 %v15113_v4, %v7433_v12 }
0x1baf   : > { %14232 = vmatpush.xpose.msk.msrb.mxu2 %vm1356_vm5, %v7414_v11 }
0x1bb0   : > { %v7473_v14 = vpop.f32.mrf.mxu1  ;;  %14234 = vmatpush.xpose.msk.msrb.mxu3 %vm1356_vm5, %v7434_v13 }
0x1bb1   : > { %v7474_v15 = vadd.f32 %v15114_v5, %v7473_v14 }
0x1bb2   : > { %14233 = vmatmul.msk.f32.vlgmr.msrb.gmra.mxu2 %vm1356_vm5, %v7254_v16 }
0x1bb3   : > { %7941 = vmatpush.msrb.mxu1 %v7474_v15  ;;  %14235 = vmatmul.msk.f32.vlgmr.msrb.gmra.mxu3 %vm1356_vm5, %v7274_v17 }
0x1bb5   : > { %v7493_v24 = vpop.f32.mrf.mxu2 }
0x1bb6   : > { %v7494_v25 = vadd.f32 %v15115_v18, %v7493_v24  ;;  %v7513_v26 = vpop.f32.mrf.mxu3 }
0x1bb7   : > { %v7514_v27 = vadd.f32 %v15116_v20, %v7513_v26 }
0x1bb8   : > { %v7553_v28 = vpop.f32.mrf.mxu1  ;;  %7964 = vmatpush.msra.mxu2 %v7494_v25 }
0x1bb9   : > { %v7554_v29 = vadd.f32 %v15117_v22, %v7553_v28  ;;  %7987 = vmatpush.msra.mxu3 %v7514_v27 }
0x1bbb   : > { %8033 = vmatpush.msra.mxu1 %v7554_v29 }
0x1bbd   : > { %v7573_v60 = vpop.f32.mrf.mxu2 }
0x1bbe   : > { %v7574_v32 = vadd.f32 %v15118_v30, %v7573_v60  ;;  %v7593_v33 = vpop.f32.mrf.mxu3 }
0x1bbf   : > { %v7594_v34 = vadd.f32 %v15119_v31, %v7593_v33 }
0x1bc0   : > { %8056 = vmatpush.msrb.mxu2 %v7574_v32 }
0x1bc1   : > { %8079 = vmatpush.msrb.mxu3 %v7594_v34 }
0x1c1f   : > { %v7619_v35 = vpop.f32.mrf.mxu0 }
0x1c20   : > { %v7804_v36 = vmul.f32 0.5, %v7619_v35 }
0x1c21   : > { %v7645_v7 = vpop.f32.mrf.mxu1 }
0x1c22   : > { %v7812_v37 = vsel %vm1584_vm6, %v7804_v36, -inf  ;;  %v7805_v43 = vmul.f32 0.5, %v7645_v7 }
0x1c23   : > { %7813 = vmax.xlane.f32.xlu0 %v7812_v37 }
0x1c24   : > { %v7815_v49 = vsel %vm1584_vm6, %v7805_v43, -inf }
0x1c28   : > { %v7723_v48 = vpop.f32.mrf.mxu0 }
0x1c29   : > { %v7808_v52 = vmul.f32 0.5, %v7723_v48 }
0x1c2a   : > { %v7749_v51 = vpop.f32.mrf.mxu1 }
0x1c2b   : > { %v7809_v53 = vmul.f32 0.5, %v7749_v51  ;;  %v7824_v54 = vsel %vm1584_vm6, %v7808_v52, -inf }
0x1c2c   : > { %v7671_v38 = vpop.f32.mrf.mxu2 }
0x1c2d   : > { %v7806_v39 = vmul.f32 0.5, %v7671_v38  ;;  %v7697_v40 = vpop.f32.mrf.mxu3  ;;  %v7827_v55 = vsel %vm1584_vm6, %v7809_v53, -inf }
0x1c2e   : > { %v7807_v41 = vmul.f32 0.5, %v7697_v40 }
0x1c2f   : > { %v7818_v42 = vsel %vm1584_vm6, %v7806_v39, -inf }
0x1c30   : > { %7819 = vmax.xlane.f32.xlu1 %v7818_v42  ;;  %v7821_v19 = vsel %vm1584_vm6, %v7807_v41, -inf }
0x1c31   : > { %7822 = vmax.xlane.f32.xlu2 %v7821_v19 }
0x1c35   : > { %v7775_v21 = vpop.f32.mrf.mxu2 }
0x1c36   : > { %v7810_v44 = vmul.f32 0.5, %v7775_v21  ;;  %v7801_v45 = vpop.f32.mrf.mxu3 }
0x1c37   : > { %v7811_v46 = vmul.f32 0.5, %v7801_v45 }
0x1c38   : > { %v7830_v47 = vsel %vm1584_vm6, %v7810_v44, -inf }
0x1c39   : > { %7831 = vmax.xlane.f32.xlu1 %v7830_v47  ;;  %v7833_v50 = vsel %vm1584_vm6, %v7811_v46, -inf  ;;  %7816 = vmax.xlane.f32.xlu2 %v7815_v49 }
0x1c3a   : > { %7834 = vmax.xlane.f32.xlu0 %v7833_v50 }
0x1c41   : > { %7825 = vmax.xlane.f32.xlu1 %v7824_v54  ;;  %7828 = vmax.xlane.f32.xlu2 %v7827_v55 }
0x1c96   : > { %v7814_v56 = vpop.xlane.xlu0 %7813 }
0x1c97   : > { %v7836_v57 = vsub.f32 %v7804_v36, %v7814_v56 }
0x1c99   : > { %v7844_v58 = vmul.f32 1.442695, %v7836_v57 }
0x1c9b   : > { %15377 = vpow2.f32 %v7844_v58  ;;  %v14244_v58 = vld [vmem:[%s20604_s6 + $0x80] sm:$0xf] }
0x1ca1   : > { %v15378_v59 = vpop.eup %15377 }
0x1ca2   : > { %v7860_v61 = vsel %vm1584_vm6, %v15378_v59, 0.0 }
0x1ca3   : > { %7861 = vadd.xlane.f32.xlu2 %v7860_v61  ;;  %v7820_v62 = vpop.xlane.xlu1 %7819  ;;  %v14247_v61 = vld [vmem:[%s20604_s6 + $0x8c] sm:$0xf] }
0x1ca4   : > { %v7838_v63 = vsub.f32 %v7806_v39, %v7820_v62  ;;  %v7823_v0 = vpop.xlane.xlu2 %7822  ;;  %v14245_v62 = vld [vmem:[%s20604_s6 + $0x84] sm:$0xf] }
0x1ca5   : > { %v7839_v1 = vsub.f32 %v7807_v41, %v7823_v0  ;;  %v14251_v0 = vld [vmem:[%s20604_s6 + $0x9c] sm:$0xf] }
0x1ca6   : > { %v7848_v2 = vmul.f32 1.442695, %v7838_v63  ;;  %v14250_v63 = vld [vmem:[%s20604_s6 + $0x98] sm:$0xf] }
0x1ca7   : > { %v7850_v3 = vmul.f32 1.442695, %v7839_v1  ;;  %v14248_v1 = vld [vmem:[%s20604_s6 + $0x90] sm:$0xf] }
0x1ca8   : > { %15379 = vpow2.f32 %v7848_v2  ;;  %v14249_v2 = vld [vmem:[%s20604_s6 + $0x94] sm:$0xf] }
0x1ca9   : > { %15381 = vpow2.f32 %v7850_v3 }
0x1cac   : > { %v7832_v4 = vpop.xlane.xlu1 %7831  ;;  %v7817_v6 = vpop.xlane.xlu2 %7816 }
0x1cad   : > { %v7842_v5 = vsub.f32 %v7810_v44, %v7832_v4  ;;  %v7835_v9 = vpop.xlane.xlu0 %7834  ;;  %v7837_v10 = vsub.f32 %v7805_v43, %v7817_v6 }
0x1cae   : > { %v7843_v11 = vsub.f32 %v7811_v46, %v7835_v9  ;;  %v15380_v12 = vpop.eup %15379 }
0x1caf   : > { %v7856_v13 = vmul.f32 1.442695, %v7842_v5  ;;  %v15382_v14 = vpop.eup %15381  ;;  %v7846_v15 = vmul.f32 1.442695, %v7837_v10  ;;  %v7866_v17 = vsel %vm1584_vm6, %v15380_v12, 0.0 }
0x1cb0   : > { %v7858_v16 = vmul.f32 1.442695, %v7843_v11  ;;  %7867 = vadd.xlane.f32.xlu0 %v7866_v17  ;;  %v7869_v18 = vsel %vm1584_vm6, %v15382_v14, 0.0 }
0x1cb1   : > { %15383 = vpow2.f32 %v7856_v13  ;;  %7870 = vadd.xlane.f32.xlu1 %v7869_v18 }
0x1cb2   : > { %15385 = vpow2.f32 %v7846_v15 }
0x1cb3   : > { %15387 = vpow2.f32 %v7858_v16 }
0x1cb4   : > { %v7826_v20 = vpop.xlane.xlu1 %7825  ;;  %v7829_v22 = vpop.xlane.xlu2 %7828 }
0x1cb5   : > { %v7840_v24 = vsub.f32 %v7808_v52, %v7826_v20  ;;  %v7841_v25 = vsub.f32 %v7809_v53, %v7829_v22 }
0x1cb7   : > { %v15384_v26 = vpop.eup %15383  ;;  %v7852_v27 = vmul.f32 1.442695, %v7840_v24  ;;  %v7854_v29 = vmul.f32 1.442695, %v7841_v25 }
0x1cb8   : > { %v15386_v28 = vpop.eup %15385  ;;  %v7878_v30 = vsel %vm1584_vm6, %v15384_v26, 0.0 }
0x1cb9   : > { %v15388_v31 = vpop.eup %15387  ;;  %15389 = vpow2.f32 %v7852_v27  ;;  %7879 = vadd.xlane.f32.xlu0 %v7878_v30  ;;  %v7863_v60 = vsel %vm1584_vm6, %v15386_v28, 0.0 }
0x1cba   : > { %15391 = vpow2.f32 %v7854_v29  ;;  %v7881_v32 = vsel %vm1584_vm6, %v15388_v31, 0.0  ;;  %7864 = vadd.xlane.f32.xlu1 %v7863_v60 }
0x1cbb   : > { %7882 = vadd.xlane.f32.xlu2 %v7881_v32 }
0x1cbf   : > { %v15390_v33 = vpop.eup %15389 }
0x1cc0   : > { %v15392_v34 = vpop.eup %15391  ;;  %v7872_v35 = vsel %vm1584_vm6, %v15390_v33, 0.0 }
0x1cc1   : > { %v7875_v36 = vsel %vm1584_vm6, %v15392_v34, 0.0  ;;  %7873 = vadd.xlane.f32.xlu0 %v7872_v35 }
0x1cc2   : > { %7876 = vadd.xlane.f32.xlu1 %v7875_v36  ;;  %v15120_v36 = vld [vmem:[%s20605_s7 + $0x4] ss:$0 sm:$0xff] }
0x1d16   : > { %v7862_v37 = vpop.xlane.xlu2 %7861 }
0x1d17   : > { %15393 = vrcp.f32 %v7862_v37 }
0x1d1d   : > { %v15394_v38 = vpop.eup %15393 }
0x1d1e   : > { %v7892_v39 = vmul.f32 %v15394_v38, %v15378_v59  ;;  %v14246_v59 = vld [vmem:[%s20604_s6 + $0x88] sm:$0xf] }
0x1d20   : > { %14236 = vmatmul.msk.f32.vlgmr.msrb.gmra.mxu0 %vm1584_vm6, %v7892_v39 }
0x1d21   : > { %14252 = vmatpush.msk.msrb.mxu0 %vm1868_vm7, %v14244_v58 }
0x1d23   : > { %v7868_v40 = vpop.xlane.xlu0 %7867 }
0x1d24   : > { %15395 = vrcp.f32 %v7868_v40  ;;  %v7871_v41 = vpop.xlane.xlu1 %7870 }
0x1d25   : > { %15397 = vrcp.f32 %v7871_v41 }
0x1d2a   : > { %v15396_v7 = vpop.eup %15395 }
0x1d2b   : > { %v15398_v42 = vpop.eup %15397  ;;  %v7894_v19 = vmul.f32 %v15396_v7, %v15380_v12 }
0x1d2c   : > { %v7880_v43 = vpop.xlane.xlu0 %7879  ;;  %v7895_v21 = vmul.f32 %v15398_v42, %v15382_v14 }
0x1d2d   : > { %15399 = vrcp.f32 %v7880_v43  ;;  %v7865_v44 = vpop.xlane.xlu1 %7864  ;;  %14238 = vmatmul.msk.f32.vlgmr.msra.gmra.mxu2 %vm1584_vm6, %v7894_v19 }
0x1d2e   : > { %v7883_v45 = vpop.xlane.xlu2 %7882  ;;  %15401 = vrcp.f32 %v7865_v44  ;;  %14239 = vmatmul.msk.f32.vlgmr.msra.gmra.mxu3 %vm1584_vm6, %v7895_v21  ;;  %14256 = vmatpush.msk.msra.mxu2 %vm1868_vm7, %v14246_v59  ;;  %v14274_v44 = vld [vmem:[%s20608_s10 + $0x98] sm:$0xff] }
0x1d2f   : > { %15403 = vrcp.f32 %v7883_v45  ;;  %14258 = vmatpush.msk.msra.mxu3 %vm1868_vm7, %v14247_v61  ;;  %v14272_v45 = vld [vmem:[%s20608_s10 + $0x88] sm:$0xff]  ;;  %v15121_v61 = vld [vmem:[%s20606_s8 + $0x4] ss:$0 sm:$0xff] }
0x1d33   : > { %v15400_v46 = vpop.eup %15399 }
0x1d34   : > { %v15402_v47 = vpop.eup %15401  ;;  %v7898_v48 = vmul.f32 %v15400_v46, %v15384_v26  ;;  %v7874_v49 = vpop.xlane.xlu0 %7873  ;;  %v14271_v46 = vld [vmem:[%s20608_s10 + $0x80] sm:$0xff] }
0x1d35   : > { %v15404_v50 = vpop.eup %15403  ;;  %v7893_v51 = vmul.f32 %v15402_v47, %v15386_v28  ;;  %15405 = vrcp.f32 %v7874_v49  ;;  %v7877_v52 = vpop.xlane.xlu1 %7876  ;;  %v14292_v47 = vld [vmem:[%s20610_s12 + $0x278] sm:$0xff]  ;;  %v14290_v49 = vld [vmem:[%s20610_s12 + $0x268] sm:$0xff] }
0x1d36   : > { %v7899_v53 = vmul.f32 %v15404_v50, %v15388_v31  ;;  %15407 = vrcp.f32 %v7877_v52  ;;  %14242 = vmatmul.msk.f32.vlgmr.msrb.gmra.mxu2 %vm1584_vm6, %v7898_v48  ;;  %v14291_v48 = vld [vmem:[%s20610_s12 + $0x270] sm:$0xff]  ;;  %v14289_v52 = vld [vmem:[%s20610_s12 + $0x260] sm:$0xff] }
0x1d37   : > { %14237 = vmatmul.msk.f32.vlgmr.msrb.gmra.mxu1 %vm1584_vm6, %v7893_v51  ;;  %14264 = vmatpush.msk.msrb.mxu2 %vm1868_vm7, %v14250_v63  ;;  %v15122_v63 = vld [vmem:[%s20607_s9 + $0x4] ss:$0 sm:$0xff] }
0x1d38   : > { %14243 = vmatmul.msk.f32.vlgmr.msrb.gmra.mxu3 %vm1584_vm6, %v7899_v53  ;;  %14254 = vmatpush.msk.msrb.mxu1 %vm1868_vm7, %v14245_v62 }
0x1d39   : > { %14266 = vmatpush.msk.msrb.mxu3 %vm1868_vm7, %v14251_v0 }
0x1d3b   : > { %v15406_v54 = vpop.eup %15405 }
0x1d3c   : > { %v15408_v55 = vpop.eup %15407  ;;  %v7896_v56 = vmul.f32 %v15406_v54, %v15390_v33 }
0x1d3d   : > { %v7897_v57 = vmul.f32 %v15408_v55, %v15392_v34 }
0x1d3e   : > { %14240 = vmatmul.msk.f32.vlgmr.msra.gmra.mxu0 %vm1584_vm6, %v7896_v56 }
0x1d3f   : > { %14241 = vmatmul.msk.f32.vlgmr.msra.gmra.mxu1 %vm1584_vm6, %v7897_v57  ;;  %14260 = vmatpush.msk.msra.mxu0 %vm1868_vm7, %v14248_v1 }
0x1d40   : > { %14262 = vmatpush.msk.msra.mxu1 %vm1868_vm7, %v14249_v2 }
0x1d9d   : > { %v7920_v3 = vpop.f32.mrf.mxu0 }
0x1d9e   : > { %14253 = vmatmul.msk.f32.vlgmr.msrb.gmra.mxu0 %vm1356_vm5, %v7920_v3  ;;  %v14288_v3 = vld [vmem:[%s20610_s12 + $0x258] sm:$0xff] }
0x1d9f   : > { %8382 = vmatpush.msrb.mxu0 %v14274_v44  ;;  %v14306_v44 = vld [vmem:[%s20627_s0 + $0xf50] sm:$0xff] }
0x1db0   : > { %v7966_v4 = vpop.f32.mrf.mxu2 }
0x1db1   : > { %v7989_v5 = vpop.f32.mrf.mxu3  ;;  %14257 = vmatmul.msk.f32.vlgmr.msra.gmra.mxu2 %vm1356_vm5, %v7966_v4  ;;  %v14287_v4 = vld [vmem:[%s20610_s12 + $0x250] sm:$0xff] }
0x1db2   : > { %14259 = vmatmul.msk.f32.vlgmr.msra.gmra.mxu3 %vm1356_vm5, %v7989_v5  ;;  %v14286_v5 = vld [vmem:[%s20610_s12 + $0x248] sm:$0xff] }
0x1db4   : > { %v7943_v6 = vpop.f32.mrf.mxu1 }
0x1db5   : > { %14255 = vmatmul.msk.f32.vlgmr.msrb.gmra.mxu1 %vm1356_vm5, %v7943_v6  ;;  %v14285_v6 = vld [vmem:[%s20610_s12 + $0x240] sm:$0xff] }
0x1db6   : > { %8421 = vmatpush.msrb.mxu1 %v14292_v47  ;;  %v14305_v47 = vld [vmem:[%s20627_s0 + $0xf48] sm:$0xff] }
0x1db8   : > { %8422 = vmatpush.msrb.mxu1 %v14291_v48  ;;  %v14345_v48 = vld [vmem:[%s20627_s0 + $0x1088] sm:$0xff] }
0x1db9   : > { %v8058_v9 = vpop.f32.mrf.mxu2 }
0x1dba   : > { %14265 = vmatmul.msk.f32.vlgmr.msrb.gmra.mxu2 %vm1356_vm5, %v8058_v9  ;;  %8423 = vmatpush.msrb.mxu1 %v14290_v49  ;;  %v14284_v9 = vld [vmem:[%s20610_s12 + $0x238] sm:$0xff]  ;;  %v14296_v49 = vld [vmem:[%s20627_s0 + $0xf00] sm:$0xff] }
0x1dbb   : > { %v8081_v10 = vpop.f32.mrf.mxu3  ;;  %v8012_v11 = vpop.f32.mrf.mxu0 }
0x1dbc   : > { %14267 = vmatmul.msk.f32.vlgmr.msrb.gmra.mxu3 %vm1356_vm5, %v8081_v10  ;;  %v8035_v12 = vpop.f32.mrf.mxu1  ;;  %14261 = vmatmul.msk.f32.vlgmr.msra.gmra.mxu0 %vm1356_vm5, %v8012_v11  ;;  %v14283_v10 = vld [vmem:[%s20610_s12 + $0x230] sm:$0xff]  ;;  %v14282_v11 = vld [vmem:[%s20610_s12 + $0x228] sm:$0xff] }
0x1dbd   : > { %14263 = vmatmul.msk.f32.vlgmr.msra.gmra.mxu1 %vm1356_vm5, %v8035_v12  ;;  %v14281_v12 = vld [vmem:[%s20610_s12 + $0x220] sm:$0xff] }
0x1dbe   : > { %8424 = vmatpush.msrb.mxu1 %v14289_v52  ;;  %v14344_v52 = vld [vmem:[%s20627_s0 + $0x1080] sm:$0xff] }
0x1dc0   : > { %8425 = vmatpush.msrb.mxu1 %v14288_v3  ;;  %v14361_v3 = vld [vmem:[%s20627_s0 + $0x1108] sm:$0xff] }
0x1dc2   : > { %8426 = vmatpush.msrb.mxu1 %v14287_v4 }
0x1dc4   : > { %8427 = vmatpush.msrb.mxu1 %v14286_v5  ;;  %v14308_v5 = vld [vmem:[%s20627_s0 + $0xf60] sm:$0xff] }
0x1dc6   : > { %8428 = vmatpush.msrb.mxu1 %v14285_v6  ;;  %v14312_v6 = vld [vmem:[%s20627_s0 + $0xf80] sm:$0xff] }
0x1dc8   : > { %8429 = vmatpush.msrb.mxu1 %v14284_v9  ;;  %v14316_v9 = vld [vmem:[%s20627_s0 + $0xfa0] sm:$0xff] }
0x1dca   : > { %8430 = vmatpush.msrb.mxu1 %v14283_v10  ;;  %v14360_v10 = vld [vmem:[%s20627_s0 + $0x1100] sm:$0xff] }
0x1dcc   : > { %8431 = vmatpush.msrb.mxu1 %v14282_v11 }
0x1dce   : > { %8432 = vmatpush.msrb.mxu1 %v14281_v12 }
0x1e1b   : > { %v8116_v13 = vpop.f32.mrf.mxu0 }
0x1e1c   : > { %v8301_v16 = vsel %vm643_vm0, %v8116_v13, 0.0  ;;  %v14280_v13 = vld [vmem:[%s20610_s12 + $0x218] sm:$0xff] }
0x1e1d   : > { %8433 = vmatpush.msrb.mxu1 %v14280_v13 }
0x1e32   : > { %v8142_v14 = vpop.f32.mrf.mxu1 }
0x1e33   : > { %v8302_v15 = vsel %vm643_vm0, %v8142_v14, 0.0  ;;  %v14279_v14 = vld [vmem:[%s20610_s12 + $0x210] sm:$0xff] }
0x1e34   : > { %v8303_v17 = vadd.f32 %v8302_v15, %v8301_v16  ;;  %v8168_v18 = vpop.f32.mrf.mxu2  ;;  %v14278_v15 = vld [vmem:[%s20610_s12 + $0x208] sm:$0xff]  ;;  %8434 = vmatpush.msrb.mxu1 %v14279_v14  ;;  %v14277_v16 = vld [vmem:[%s20610_s12 + $0x200] sm:$0xff] }
0x1e35   : > { %v8304_v20 = vsel %vm643_vm0, %v8168_v18, 0.0  ;;  %v8194_v22 = vpop.f32.mrf.mxu3 }
0x1e36   : > { %v8305_v24 = vadd.f32 %v8304_v20, %v8303_v17  ;;  %v8306_v25 = vsel %vm643_vm0, %v8194_v22, 0.0  ;;  %8435 = vmatpush.msrb.mxu1 %v14278_v15  ;;  %v15123_v17 = vld [vmem:[%s20609_s11 + $0x4] ss:$0 sm:$0xff] }
0x1e38   : > { %v8307_v26 = vadd.f32 %v8306_v25, %v8305_v24  ;;  %8436 = vmatpush.msrb.mxu1 %v14277_v16 }
0x1e39   : > { %v8220_v27 = vpop.f32.mrf.mxu0 }
0x1e3a   : > { %v8308_v28 = vsel %vm643_vm0, %v8220_v27, 0.0  ;;  %v8246_v29 = vpop.f32.mrf.mxu1 }
0x1e3b   : > { %v8309_v30 = vadd.f32 %v8308_v28, %v8307_v26  ;;  %v8310_v31 = vsel %vm643_vm0, %v8246_v29, 0.0 }
0x1e3d   : > { %v8311_v60 = vadd.f32 %v8310_v31, %v8309_v30  ;;  %v8272_v32 = vpop.f32.mrf.mxu2 }
0x1e3e   : > { %v8312_v33 = vsel %vm643_vm0, %v8272_v32, 0.0 }
0x1e3f   : > { %v8313_v34 = vadd.f32 %v8312_v33, %v8311_v60  ;;  %v8298_v35 = vpop.f32.mrf.mxu3  ;;  %v15124_v60 = vld [vmem:[%s20611_s13 + $0x4] ss:$0 sm:$0xff] }
0x1e40   : > { %v8314_v37 = vsel %vm643_vm0, %v8298_v35, 0.0 }
0x1e41   : > { %v8315_v38 = vadd.f32 %v8314_v37, %v8313_v34 }
0x1e43   : > { %v8321_v39 = vadd.f32 %v15120_v36, %v8315_v38 }
0x1e45   : > { %v8322_v40 = vadd.f32 %v8321_v39, %v18170_v23  ;;  %v14273_v23 = vld [vmem:[%s20608_s10 + $0x90] sm:$0xff] }
0x1e46   : > { %8383 = vmatpush.msrb.mxu0 %v14273_v23  ;;  %v14346_v23 = vld [vmem:[%s20627_s0 + $0x1090] sm:$0xff] }
0x1e47   : > { %v8327_v41 = vsel %vm643_vm0, %v8322_v40, 0.0 }
0x1e48   : > { %8328 = vadd.xlane.f32.xlu2 %v8327_v41  ;;  %8384 = vmatpush.msrb.mxu0 %v14272_v45  ;;  %v14299_v41 = vld [vmem:[%s20627_s0 + $0xf18] sm:$0xff]  ;;  %v14297_v45 = vld [vmem:[%s20627_s0 + $0xf08] sm:$0xff] }
0x1e49   : > { %8685 = vmatpush.msra.mxu2 %v14299_v41  ;;  %v14335_v41 = vld [vmem:[%s20627_s0 + $0x1038] sm:$0xff] }
0x1e4a   : > { %8385 = vmatpush.msrb.mxu0 %v14271_v46  ;;  %v14301_v46 = vld [vmem:[%s20627_s0 + $0xf28] sm:$0xff] }
0x1ebb   : > { %v8329_v7 = vpop.xlane.xlu2 %8328 }
0x1ebc   : > { %v8330_v42 = vmul.f32 %v8329_v7, %v15667_v8  ;;  %v14303_v7 = vld [vmem:[%s20627_s0 + $0xf38] sm:$0xff] }
0x1ebd   : > { %8705 = vmatpush.msra.mxu3 %v14303_v7  ;;  %v14339_v7 = vld [vmem:[%s20627_s0 + $0x1058] sm:$0xff] }
0x1ebe   : > { %v8331_v19 = vsub.f32 %v8322_v40, %v8330_v42  ;;  %v14307_v42 = vld [vmem:[%s20627_s0 + $0xf58] sm:$0xff] }
0x1ebf   : > { %8725 = vmatpush.msra.mxu0 %v14307_v42  ;;  %v14343_v42 = vld [vmem:[%s20627_s0 + $0x1078] sm:$0xff] }
0x1ec0   : > { %v8332_v43 = vmul.f32 %v8331_v19, %v8331_v19 }
0x1ec1   : > { %8726 = vmatpush.msra.mxu0 %v14306_v44  ;;  %v14333_v44 = vld [vmem:[%s20627_s0 + $0x1028] sm:$0xff] }
0x1ec2   : > { %v8333_v21 = vsel %vm643_vm0, %v8332_v43, 0.0  ;;  %v14298_v43 = vld [vmem:[%s20627_s0 + $0xf10] sm:$0xff] }
0x1ec3   : > { %8334 = vadd.xlane.f32.xlu0 %v8333_v21  ;;  %v14302_v21 = vld [vmem:[%s20627_s0 + $0xf30] sm:$0xff]  ;;  %8686 = vmatpush.msra.mxu2 %v14298_v43 }
0x1ec4   : > { %8706 = vmatpush.msra.mxu3 %v14302_v21  ;;  %8727 = vmatpush.msra.mxu0 %v14305_v47  ;;  %v14338_v43 = vld [vmem:[%s20627_s0 + $0x1050] sm:$0xff]  ;;  %v14336_v47 = vld [vmem:[%s20627_s0 + $0x1040] sm:$0xff] }
0x1ec5   : > { %8687 = vmatpush.msra.mxu2 %v14297_v45  ;;  %v14342_v21 = vld [vmem:[%s20627_s0 + $0x1070] sm:$0xff]  ;;  %v14341_v45 = vld [vmem:[%s20627_s0 + $0x1068] sm:$0xff] }
0x1ec6   : > { %8707 = vmatpush.msra.mxu3 %v14301_v46  ;;  %v14332_v46 = vld [vmem:[%s20627_s0 + $0x1020] sm:$0xff] }
0x1ec7   : > { %8688 = vmatpush.msra.mxu2 %v14296_v49  ;;  %v14351_v49 = vld [vmem:[%s20627_s0 + $0x10b8] sm:$0xff] }
0x1f36   : > { %v8335_v50 = vpop.xlane.xlu0 %8334 }
0x1f37   : > { %v8336_v51 = vmul.f32 %v8335_v50, %v15667_v8  ;;  %v14300_v50 = vld [vmem:[%s20627_s0 + $0xf20] sm:$0xff] }
0x1f38   : > { %8708 = vmatpush.msra.mxu3 %v14300_v50  ;;  %v14355_v50 = vld [vmem:[%s20627_s0 + $0x10d8] sm:$0xff] }
0x1f39   : > { %v8337_v53 = vadd.f32 1e-05, %v8336_v51  ;;  %v14304_v51 = vld [vmem:[%s20627_s0 + $0xf40] sm:$0xff] }
0x1f3a   : > { %8728 = vmatpush.msra.mxu0 %v14304_v51  ;;  %v14359_v51 = vld [vmem:[%s20627_s0 + $0x10f8] sm:$0xff] }
0x1f3b   : > { %15409 = vrsqrt.f32 %v8337_v53  ;;  %vm8344_vm9 = vweird.f32 %v8337_v53 }
0x1f41   : > { %v15410_v54 = vpop.eup %15409 }
0x1f42   : > { %v8339_v55 = vmul.f32 %v15410_v54, %v8337_v53  ;;  %vm8345_vm8 = vweird.f32 %v15410_v54  ;;  %v14311_v53 = vld [vmem:[%s20627_s0 + $0xf78] sm:$0xff] }
0x1f43   : > { %vm8346_vm10 = vmor %vm8344_vm9, %vm8345_vm8  ;;  %8745 = vmatpush.msrb.mxu2 %v14311_v53  ;;  %v14354_v53 = vld [vmem:[%s20627_s0 + $0x10d0] sm:$0xff] }
0x1f44   : > { %v8340_v56 = vmul.f32 %v15410_v54, %v8339_v55  ;;  %v14319_v55 = vld [vmem:[%s20627_s0 + $0xfb8] sm:$0xff] }
0x1f46   : > { %v8341_v57 = vmul.f32 0.5, %v8340_v56  ;;  %v14363_v56 = vld [vmem:[%s20627_s0 + $0x1118] sm:$0xff] }
0x1f48   : > { %v8342_v58 = vsub.f32 1.5, %v8341_v57  ;;  %v14310_v57 = vld [vmem:[%s20627_s0 + $0xf70] sm:$0xff] }
0x1f49   : > { %8746 = vmatpush.msrb.mxu2 %v14310_v57  ;;  %v14357_v57 = vld [vmem:[%s20627_s0 + $0x10e8] sm:$0xff] }
0x1f4a   : > { %v8343_v59 = vmul.f32 %v15410_v54, %v8342_v58  ;;  %v14314_v58 = vld [vmem:[%s20627_s0 + $0xf90] sm:$0xff] }
0x1f4c   : > { %v8347_v62 = vsel %vm8346_vm10, %v15410_v54, %v8343_v59  ;;  %v14315_v54 = vld [vmem:[%s20627_s0 + $0xf98] sm:$0xff] }
0x1f4d   : > { %v8348_v0 = vmul.f32 %v8347_v62, %v8331_v19  ;;  %v14347_v19 = vld [vmem:[%s20627_s0 + $0x1098] sm:$0xff]  ;;  %8765 = vmatpush.msrb.mxu3 %v14315_v54  ;;  %v14362_v62 = vld [vmem:[%s20627_s0 + $0x1110] sm:$0xff] }
0x1f4e   : > { %8925 = vmatpush.msra.mxu1 %v14347_v19  ;;  %v14334_v19 = vld [vmem:[%s20627_s0 + $0x1030] sm:$0xff] }
0x1f4f   : > { %v8352_v1 = vmul.f32 %v15121_v61, %v8348_v0  ;;  %v14318_v61 = vld [vmem:[%s20627_s0 + $0xfb0] sm:$0xff]  ;;  %v14309_v0 = vld [vmem:[%s20627_s0 + $0xf68] sm:$0xff]  ;;  %8766 = vmatpush.msrb.mxu3 %v14314_v58  ;;  %v14348_v58 = vld [vmem:[%s20627_s0 + $0x10a0] sm:$0xff] }
0x1f50   : > { %8926 = vmatpush.msra.mxu1 %v14346_v23  ;;  %8747 = vmatpush.msrb.mxu2 %v14309_v0  ;;  %v14337_v23 = vld [vmem:[%s20627_s0 + $0x1048] sm:$0xff]  ;;  %v14358_v54 = vld [vmem:[%s20627_s0 + $0x10f0] sm:$0xff]  ;;  %v14375_v0 = vld [vmem:[%s20627_s0 + $0x1178] sm:$0xff] }
0x1f51   : > { %v8356_v2 = vadd.f32 %v15122_v63, %v8352_v1  ;;  %v14313_v1 = vld [vmem:[%s20627_s0 + $0xf88] sm:$0xff] }
0x1f52   : > { %8927 = vmatpush.msra.mxu1 %v14345_v48  ;;  %8767 = vmatpush.msrb.mxu3 %v14313_v1  ;;  %v14340_v48 = vld [vmem:[%s20627_s0 + $0x1060] sm:$0xff]  ;;  %v14366_v1 = vld [vmem:[%s20627_s0 + $0x1130] sm:$0xff] }
0x1f53   : > { %14276 = vmatmul.msk.f32.vlgmr.msrb.gmra.mxu0 %vm643_vm0, %v8356_v2  ;;  %8748 = vmatpush.msrb.mxu2 %v14308_v5  ;;  %v14369_v5 = vld [vmem:[%s20627_s0 + $0x1148] sm:$0xff] }
0x1f54   : > { %8928 = vmatpush.msra.mxu1 %v14344_v52  ;;  %8785 = vmatpush.msrb.mxu0 %v14319_v55  ;;  %v14350_v52 = vld [vmem:[%s20627_s0 + $0x10b0] sm:$0xff]  ;;  %v14349_v55 = vld [vmem:[%s20627_s0 + $0x10a8] sm:$0xff] }
0x1f55   : > { %8768 = vmatpush.msrb.mxu3 %v14312_v6  ;;  %v14373_v6 = vld [vmem:[%s20627_s0 + $0x1168] sm:$0xff] }
0x1f56   : > { %8786 = vmatpush.msrb.mxu0 %v14318_v61  ;;  %v14367_v61 = vld [vmem:[%s20627_s0 + $0x1138] sm:$0xff] }
0x1fd0   : > { %v8387_v18 = vpop.f32.mrf.mxu0 }
0x1fd1   : > { %v8388_v20 = vadd.f32 %v15123_v17, %v8387_v18  ;;  %v15125_v17 = vld [vmem:[%s20612_s14 + $0x4] ss:$0 sm:$0xff] }
0x1fd3   : > { %v8391_v22 = vmul.f32 0.044715, %v8388_v20  ;;  %v8390_v29 = vmul.f32 0.5, %v8388_v20 }
0x1fd5   : > { %v8392_v24 = vmul.f32 %v8391_v22, %v8388_v20 }
0x1fd7   : > { %v8393_v25 = vmul.f32 %v8392_v24, %v8388_v20 }
0x1fd9   : > { %v8394_v26 = vadd.f32 %v8393_v25, %v8388_v20  ;;  %v15126_v20 = vld [vmem:[%s20613_s15 + $0x4] ss:$0 sm:$0xff] }
0x1fdb   : > { %v8395_v27 = vmul.f32 0.7978846, %v8394_v26  ;;  %v14323_v26 = vld [vmem:[%s20627_s0 + $0xfd8] sm:$0xff] }
0x1fdd   : > { %15411 = vtanh.f32 %v8395_v27  ;;  %v14327_v27 = vld [vmem:[%s20627_s0 + $0xff8] sm:$0xff] }
0x1fe3   : > { %v15412_v28 = vpop.eup %15411 }
0x1fe4   : > { %v8397_v30 = vadd.f32 1.0, %v15412_v28  ;;  %v14331_v28 = vld [vmem:[%s20627_s0 + $0x1018] sm:$0xff] }
0x1fe6   : > { %v8398_v31 = vmul.f32 %v8397_v30, %v8390_v29  ;;  %v14379_v29 = vld [vmem:[%s20627_s0 + $0x1198] sm:$0xff]  ;;  %v14322_v30 = vld [vmem:[%s20627_s0 + $0xfd0] sm:$0xff] }
0x1fe8   : > { %8437 = vmatmul.f32.vlgmr.msrb.gmra.mxu1 %v8398_v31  ;;  %v14326_v31 = vld [vmem:[%s20627_s0 + $0xff0] sm:$0xff] }
0x1fe9   : > { %9005 = vmatpush.msrb.mxu1 %v14363_v56  ;;  %v14353_v56 = vld [vmem:[%s20627_s0 + $0x10c8] sm:$0xff] }
0x1feb   : > { %9006 = vmatpush.msrb.mxu1 %v14362_v62  ;;  %v14356_v62 = vld [vmem:[%s20627_s0 + $0x10e0] sm:$0xff] }
0x1fed   : > { %9007 = vmatpush.msrb.mxu1 %v14361_v3  ;;  %v14374_v3 = vld [vmem:[%s20627_s0 + $0x1170] sm:$0xff] }
0x1fef   : > { %9008 = vmatpush.msrb.mxu1 %v14360_v10  ;;  %v14368_v10 = vld [vmem:[%s20627_s0 + $0x1140] sm:$0xff] }
0x2065   : > { %v8438_v32 = vpop.f32.mrf.mxu1 }
0x2066   : > { %v8439_v33 = vadd.f32 %v15124_v60, %v8438_v32  ;;  %v14330_v60 = vld [vmem:[%s20627_s0 + $0x1010] sm:$0xff] }
0x2067   : > { %v14378_v32 = vld [vmem:[%s20627_s0 + $0x1190] sm:$0xff] }
0x2068   : > { %v8441_v34 = vadd.f32 %v8439_v33, %v8356_v2  ;;  %v14317_v2 = vld [vmem:[%s20627_s0 + $0xfa8] sm:$0xff] }
0x2069   : > { %8787 = vmatpush.msrb.mxu0 %v14317_v2  ;;  %v14321_v33 = vld [vmem:[%s20627_s0 + $0xfc8] sm:$0xff]  ;;  %v14370_v2 = vld [vmem:[%s20627_s0 + $0x1150] sm:$0xff] }
0x206a   : > { %v8446_v35 = vsel %vm643_vm0, %v8441_v34, 0.0 }
0x206b   : > { %8447 = vadd.xlane.f32.xlu1 %v8446_v35  ;;  %8788 = vmatpush.msrb.mxu0 %v14316_v9  ;;  %v14329_v35 = vld [vmem:[%s20627_s0 + $0x1008] sm:$0xff]  ;;  %v14364_v9 = vld [vmem:[%s20627_s0 + $0x1120] sm:$0xff] }
0x20de   : > { %v8448_v36 = vpop.xlane.xlu1 %8447 }
0x20df   : > { %v8449_v37 = vmul.f32 %v8448_v36, %v15667_v8  ;;  %v14377_v36 = vld [vmem:[%s20627_s0 + $0x1188] sm:$0xff] }
0x20e1   : > { %v18658_v38 = vsub.f32 %v8441_v34, %v8449_v37  ;;  %v14325_v34 = vld [vmem:[%s20627_s0 + $0xfe8] sm:$0xff]  ;;  %v14320_v37 = vld [vmem:[%s20627_s0 + $0xfc0] sm:$0xff] }
0x20e3   : > { %v8451_v39 = vmul.f32 %v18658_v38, %v18658_v38 }
0x20e5   : > { %v8452_v40 = vsel %vm643_vm0, %v8451_v39, 0.0  ;;  %v14328_v39 = vld [vmem:[%s20627_s0 + $0x1000] sm:$0xff] }
0x20e6   : > { %8453 = vadd.xlane.f32.xlu2 %v8452_v40  ;;  %v14376_v40 = vld [vmem:[%s20627_s0 + $0x1180] sm:$0xff] }
0x2159   : > { %v8454_v59 = vpop.xlane.xlu2 %8453 }
0x215a   : > { %v8455_v63 = vmul.f32 %v8454_v59, %v15667_v8  ;;  %v14352_v59 = vld [vmem:[%s20627_s0 + $0x10c0] sm:$0xff] }
0x215c   : > { %v8456_v4 = vadd.f32 1e-05, %v8455_v63  ;;  %v14371_v63 = vld [vmem:[%s20627_s0 + $0x1158] sm:$0xff] }
0x215e   : > { %15413 = vrsqrt.f32 %v8456_v4  ;;  %vm8463_vm12 = vweird.f32 %v8456_v4 }
0x2164   : > { %v15414_v11 = vpop.eup %15413 }
0x2165   : > { %v8458_v12 = vmul.f32 %v15414_v11, %v8456_v4  ;;  %vm8464_vm11 = vweird.f32 %v15414_v11  ;;  %v14365_v4 = vld [vmem:[%s20627_s0 + $0x1128] sm:$0xff] }
0x2166   : > { %vm8465_vm13 = vmor %vm8463_vm12, %vm8464_vm11 }
0x2167   : > { %v8459_v13 = vmul.f32 %v15414_v11, %v8458_v12  ;;  %v14372_v12 = vld [vmem:[%s20627_s0 + $0x1160] sm:$0xff] }
0x2169   : > { %v8460_v14 = vmul.f32 0.5, %v8459_v13  ;;  %v14387_v13 = vld [vmem:[%s20627_s0 + $0x11d8] sm:$0xff] }
0x216b   : > { %v8461_v15 = vsub.f32 1.5, %v8460_v14  ;;  %v14391_v14 = vld [vmem:[%s20627_s0 + $0x11f8] sm:$0xff] }
0x216d   : > { %v8462_v16 = vmul.f32 %v15414_v11, %v8461_v15  ;;  %v14382_v15 = vld [vmem:[%s20627_s0 + $0x11b0] sm:$0xff] }
0x216f   : > { %v8466_v18 = vsel %vm8465_vm13, %v15414_v11, %v8462_v16  ;;  %v14383_v11 = vld [vmem:[%s20627_s0 + $0x11b8] sm:$0xff]  ;;  %v14386_v16 = vld [vmem:[%s20627_s0 + $0x11d0] sm:$0xff] }
0x2170   : > { %v8467_v22 = vmul.f32 %v8466_v18, %v18658_v38  ;;  %v14324_v38 = vld [vmem:[%s20627_s0 + $0xfe0] sm:$0xff]  ;;  %v14381_v18 = vld [vmem:[%s20627_s0 + $0x11a8] sm:$0xff] }
0x2172   : > { %v8471_v24 = vmul.f32 %v15125_v17, %v8467_v22  ;;  %v14390_v17 = vld [vmem:[%s20627_s0 + $0x11f0] sm:$0xff]  ;;  %v14389_v22 = vld [vmem:[%s20627_s0 + $0x11e8] sm:$0xff] }
0x2174   : > { %v18767_v25 = vadd.f32 %v15126_v20, %v8471_v24  ;;  %v14385_v20 = vld [vmem:[%s20627_s0 + $0x11c8] sm:$0xff]  ;;  %v14380_v24 = vld [vmem:[%s20627_s0 + $0x11a0] sm:$0xff] }
0x2176   : > { %14416 = vmatmul.msk.f32.vlgmr.msra.gmra.mxu2 %vm643_vm0, %v18767_v25  ;;  %14417 = vmatmul.msk.f32.vlgmr.msra.gmra.mxu3 %vm643_vm0, %v18767_v25 }
0x2177   : > { %14418 = vmatmul.msk.f32.vlgmr.msra.gmra.mxu0 %vm643_vm0, %v18767_v25  ;;  %14428 = vmatmul.msk.f32.vlgmr.msra.gmra.mxu1 %vm643_vm0, %v18767_v25 }
0x2178   : > { %8805 = vmatpush.msra.mxu2 %v14323_v26  ;;  %8825 = vmatpush.msra.mxu3 %v14327_v27  ;;  %v14384_v26 = vld [vmem:[%s20627_s0 + $0x11c0] sm:$0xff] }
0x2179   : > { %8845 = vmatpush.msra.mxu0 %v14331_v28  ;;  %9085 = vmatpush.msra.mxu1 %v14379_v29  ;;  %v14388_v27 = vld [vmem:[%s20627_s0 + $0x11e0] sm:$0xff] }
0x217a   : > { %8806 = vmatpush.msra.mxu2 %v14322_v30  ;;  %8826 = vmatpush.msra.mxu3 %v14326_v31 }
0x217b   : > { %8846 = vmatpush.msra.mxu0 %v14330_v60  ;;  %9086 = vmatpush.msra.mxu1 %v14378_v32 }
0x217c   : > { %8807 = vmatpush.msra.mxu2 %v14321_v33  ;;  %8827 = vmatpush.msra.mxu3 %v14325_v34  ;;  %v15135_v34 = vld [vmem:[%s20603_s5 + $0x80] ss:$0 sm:$0xff] }
0x217d   : > { %8847 = vmatpush.msra.mxu0 %v14329_v35  ;;  %9087 = vmatpush.msra.mxu1 %v14377_v36  ;;  %v15128_v35 = vld [vmem:[%s20603_s5 + $0x84] ss:$0 sm:$0xff]  ;;  %v15129_v36 = vld [vmem:[%s20603_s5 + $0x78] ss:$0 sm:$0xff] }
0x217e   : > { %14419 = vmatmul.msk.f32.vlgmr.msrb.gmra.mxu2 %vm643_vm0, %v18767_v25  ;;  %14420 = vmatmul.msk.f32.vlgmr.msrb.gmra.mxu3 %vm643_vm0, %v18767_v25 }
0x217f   : > { %14421 = vmatmul.msk.f32.vlgmr.msrb.gmra.mxu0 %vm643_vm0, %v18767_v25  ;;  %14432 = vmatmul.msk.f32.vlgmr.msrb.gmra.mxu1 %vm643_vm0, %v18767_v25 }
0x2180   : > { %8808 = vmatpush.msra.mxu2 %v14320_v37  ;;  %8828 = vmatpush.msra.mxu3 %v14324_v38 }
0x2181   : > { %8848 = vmatpush.msra.mxu0 %v14328_v39  ;;  %9088 = vmatpush.msra.mxu1 %v14376_v40  ;;  %v15132_v39 = vld [vmem:[%s20603_s5 + $0x88] ss:$0 sm:$0xff] }
0x2182   : > { %8865 = vmatpush.msrb.mxu2 %v14335_v41  ;;  %8885 = vmatpush.msrb.mxu3 %v14339_v7 }
0x2183   : > { %8905 = vmatpush.msrb.mxu0 %v14343_v42 }
0x2184   : > { %8866 = vmatpush.msrb.mxu2 %v14334_v19  ;;  %8886 = vmatpush.msrb.mxu3 %v14338_v43 }
0x2185   : > { %8906 = vmatpush.msrb.mxu0 %v14342_v21  ;;  %v15139_v21 = vld [vmem:[%s20603_s5 + $0x83] ss:$0 sm:$0xff] }
0x2186   : > { %14422 = vmatmul.msk.f32.vlgmr.msra.gmra.mxu2 %vm643_vm0, %v18767_v25  ;;  %14423 = vmatmul.msk.f32.vlgmr.msra.gmra.mxu3 %vm643_vm0, %v18767_v25 }
0x2187   : > { %14424 = vmatmul.msk.f32.vlgmr.msra.gmra.mxu0 %vm643_vm0, %v18767_v25  ;;  %14436 = vmatmul.msk.f32.vlgmr.msra.gmra.mxu1 %vm643_vm0, %v18767_v25 }
0x2188   : > { %8867 = vmatpush.msrb.mxu2 %v14333_v44  ;;  %8887 = vmatpush.msrb.mxu3 %v14337_v23  ;;  %v15133_v44 = vld [vmem:[%s20603_s5 + $0x7b] ss:$0 sm:$0xff]  ;;  %v15134_v23 = vld [vmem:[%s20603_s5 + $0x7c] ss:$0 sm:$0xff] }
0x2189   : > { %8907 = vmatpush.msrb.mxu0 %v14341_v45 }
0x218a   : > { %8868 = vmatpush.msrb.mxu2 %v14332_v46  ;;  %8888 = vmatpush.msrb.mxu3 %v14336_v47  ;;  %v15136_v46 = vld [vmem:[%s20603_s5 + $0x8c] ss:$0 sm:$0xff] }
0x218b   : > { %8908 = vmatpush.msrb.mxu0 %v14340_v48 }
0x218c   : > { %8945 = vmatpush.msra.mxu2 %v14351_v49  ;;  %8965 = vmatpush.msra.mxu3 %v14355_v50  ;;  %v15140_v49 = vld [vmem:[%s20603_s5 + $0x81] ss:$0 sm:$0xff]  ;;  %v15141_v50 = vld [vmem:[%s20603_s5 + $0x82] ss:$0 sm:$0xff] }
0x218d   : > { %8985 = vmatpush.msra.mxu0 %v14359_v51 }
0x218e   : > { %8946 = vmatpush.msra.mxu2 %v14350_v52  ;;  %14426 = vmatmul.msk.f32.vlgmr.msrb.gmra.mxu3 %vm643_vm0, %v18767_v25 }
0x218f   : > { %14425 = vmatmul.msk.f32.vlgmr.msrb.gmra.mxu2 %vm643_vm0, %v18767_v25  ;;  %14427 = vmatmul.msk.f32.vlgmr.msrb.gmra.mxu0 %vm643_vm0, %v18767_v25 }
0x2190   : > { %8966 = vmatpush.msra.mxu3 %v14354_v53  ;;  %8986 = vmatpush.msra.mxu0 %v14358_v54  ;;  %v15130_v53 = vld [vmem:[%s20603_s5 + $0x79] ss:$0 sm:$0xff] }
0x2191   : > { %8947 = vmatpush.msra.mxu2 %v14349_v55 }
0x2192   : > { %8967 = vmatpush.msra.mxu3 %v14353_v56  ;;  %8987 = vmatpush.msra.mxu0 %v14357_v57  ;;  %v15142_v57 = vld [vmem:[%s20603_s5 + $0x87] ss:$0 sm:$0xff] }
0x2193   : > { %8948 = vmatpush.msra.mxu2 %v14348_v58  ;;  %v15127_v58 = vld [vmem:[%s20603_s5 + $0x7a] ss:$0 sm:$0xff] }
0x2194   : > { %8968 = vmatpush.msra.mxu3 %v14352_v59  ;;  %8988 = vmatpush.msra.mxu0 %v14356_v62  ;;  %v15138_v62 = vld [vmem:[%s20603_s5 + $0x7f] ss:$0 sm:$0xff] }
0x2195   : > { %9025 = vmatpush.msrb.mxu2 %v14367_v61 }
0x2196   : > { %9045 = vmatpush.msrb.mxu3 %v14371_v63  ;;  %9065 = vmatpush.msrb.mxu0 %v14375_v0 }
0x2197   : > { %9026 = vmatpush.msrb.mxu2 %v14366_v1  ;;  %14430 = vmatmul.msk.f32.vlgmr.msra.gmra.mxu3 %vm643_vm0, %v18767_v25 }
0x2198   : > { %14429 = vmatmul.msk.f32.vlgmr.msra.gmra.mxu2 %vm643_vm0, %v18767_v25  ;;  %14431 = vmatmul.msk.f32.vlgmr.msra.gmra.mxu0 %vm643_vm0, %v18767_v25 }
0x2199   : > { %9046 = vmatpush.msrb.mxu3 %v14370_v2  ;;  %9066 = vmatpush.msrb.mxu0 %v14374_v3  ;;  %v15143_v3 = vld [vmem:[%s20603_s5 + $0x85] ss:$0 sm:$0xff] }
0x219a   : > { %9027 = vmatpush.msrb.mxu2 %v14365_v4  ;;  %v15144_v4 = vld [vmem:[%s20603_s5 + $0x86] ss:$0 sm:$0xff] }
0x219b   : > { %9047 = vmatpush.msrb.mxu3 %v14369_v5  ;;  %9067 = vmatpush.msrb.mxu0 %v14373_v6  ;;  %v15131_v6 = vld [vmem:[%s20603_s5 + $0x7d] ss:$0 sm:$0xff] }
0x219c   : > { %9028 = vmatpush.msrb.mxu2 %v14364_v9 }
0x219d   : > { %9048 = vmatpush.msrb.mxu3 %v14368_v10  ;;  %9068 = vmatpush.msrb.mxu0 %v14372_v12  ;;  %v15137_v12 = vld [vmem:[%s20603_s5 + $0x7e] ss:$0 sm:$0xff] }
0x219e   : > { %9105 = vmatpush.msra.mxu2 %v14383_v11  ;;  %v15145_v11 = vld [vmem:[%s20603_s5 + $0x8b] ss:$0 sm:$0xff] }
0x219f   : > { %9125 = vmatpush.msra.mxu3 %v14387_v13  ;;  %9145 = vmatpush.msra.mxu0 %v14391_v14 }
0x21a0   : > { %9106 = vmatpush.msra.mxu2 %v14382_v15  ;;  %14434 = vmatmul.msk.f32.vlgmr.msrb.gmra.mxu3 %vm643_vm0, %v18767_v25 }
0x21a1   : > { %14433 = vmatmul.msk.f32.vlgmr.msrb.gmra.mxu2 %vm643_vm0, %v18767_v25  ;;  %14435 = vmatmul.msk.f32.vlgmr.msrb.gmra.mxu0 %vm643_vm0, %v18767_v25 }
0x21a2   : > { %9126 = vmatpush.msra.mxu3 %v14386_v16  ;;  %9146 = vmatpush.msra.mxu0 %v14390_v17 }
0x21a3   : > { %9107 = vmatpush.msra.mxu2 %v14381_v18 }
0x21a4   : > { %9127 = vmatpush.msra.mxu3 %v14385_v20  ;;  %9147 = vmatpush.msra.mxu0 %v14389_v22  ;;  %v15146_v20 = vld [vmem:[%s20603_s5 + $0x89] ss:$0 sm:$0xff]  ;;  %v15147_v22 = vld [vmem:[%s20603_s5 + $0x8a] ss:$0 sm:$0xff] }
0x21a5   : > { %9108 = vmatpush.msra.mxu2 %v14380_v24 }
0x21a6   : > { %9128 = vmatpush.msra.mxu3 %v14384_v26  ;;  %9148 = vmatpush.msra.mxu0 %v14388_v27  ;;  %v15148_v27 = vld [vmem:[%s20603_s5 + $0x8f] ss:$0 sm:$0xff] }
0x21a8   : > { %14438 = vmatmul.msk.f32.vlgmr.msra.gmra.mxu3 %vm643_vm0, %v18767_v25 }
0x21a9   : > { %14437 = vmatmul.msk.f32.vlgmr.msra.gmra.mxu2 %vm643_vm0, %v18767_v25  ;;  %14439 = vmatmul.msk.f32.vlgmr.msra.gmra.mxu0 %vm643_vm0, %v18767_v25 }
0x21f4   : > { %v8730_v28 = vpop.f32.mrf.mxu0  ;;  %v8930_v31 = vpop.f32.mrf.mxu1 }
0x21f5   : > { %v8931_v41 = vadd.f32 %v15128_v35, %v8930_v31  ;;  %v8731_v2 = vadd.f32 %v15127_v58, %v8730_v28 }
0x21f9   : > { %v8690_v29 = vpop.f32.mrf.mxu2  ;;  %v8710_v30 = vpop.f32.mrf.mxu3 }
0x21fa   : > { %v8691_v7 = vadd.f32 %v15129_v36, %v8690_v29  ;;  %v8711_v0 = vadd.f32 %v15130_v53, %v8710_v30 }
0x21fc   : > { %v19009_v60 = vpop.f32.mrf.mxu0  ;;  %v9010_v37 = vpop.f32.mrf.mxu1 }
0x21fd   : > { %v9011_v42 = vadd.f32 %v15132_v39, %v9010_v37  ;;  %v8791_v16 = vadd.f32 %v15131_v6, %v19009_v60  ;;  %v15149_v60 = vld [vmem:[%s20603_s5 + $0x8d] ss:$0 sm:$0xff] }
0x2201   : > { %v8750_v32 = vpop.f32.mrf.mxu2  ;;  %v8770_v33 = vpop.f32.mrf.mxu3 }
0x2202   : > { %v8751_v51 = vadd.f32 %v15133_v44, %v8750_v32  ;;  %v8771_v52 = vadd.f32 %v15134_v23, %v8770_v33  ;;  %v15150_v32 = vld [vmem:[%s20603_s5 + $0x8e] ss:$0 sm:$0xff] }
0x2204   : > { %v8850_v38 = vpop.f32.mrf.mxu0  ;;  %v9090_v48 = vpop.f32.mrf.mxu1 }
0x2205   : > { %v8851_v40 = vadd.f32 %v15135_v34, %v8850_v38  ;;  %v9091_v54 = vadd.f32 %v15136_v46, %v9090_v48 }
0x2207   : > { %14440 = vmatpush.xpose.msk.msrb.mxu1 %vm1356_vm5, %v8851_v40 }
0x2209   : > { %v8810_v19 = vpop.f32.mrf.mxu2  ;;  %v8830_v43 = vpop.f32.mrf.mxu3 }
0x220a   : > { %14441 = vmatmul.msk.f32.vlgmr.msrb.gmra.mxu1 %vm1356_vm5, %v8691_v7  ;;  %v8831_v5 = vadd.f32 %v15138_v62, %v8830_v43  ;;  %v8811_v18 = vadd.f32 %v15137_v12, %v8810_v19 }
0x220b   : > { %14448 = vmatpush.xpose.msk.msra.mxu1 %vm1356_vm5, %v8931_v41 }
0x220c   : > { %v8910_v45 = vpop.f32.mrf.mxu0 }
0x220d   : > { %v8911_v47 = vadd.f32 %v15139_v21, %v8910_v45 }
0x220f   : > { %9475 = vmatpush.msrb.mxu1 %v9011_v42  ;;  %14446 = vmatpush.xpose.msk.msrb.mxu0 %vm1356_vm5, %v8911_v47 }
0x2211   : > { %v8890_v56 = vpop.f32.mrf.mxu3 }
0x2212   : > { %v8870_v55 = vpop.f32.mrf.mxu2  ;;  %v8891_v61 = vadd.f32 %v15141_v50, %v8890_v56  ;;  %14447 = vmatmul.msk.f32.vlgmr.msrb.gmra.mxu0 %vm1356_vm5, %v8751_v51  ;;  %14449 = vmatmul.msk.f32.vlgmr.msra.gmra.mxu1 %vm1356_vm5, %v8771_v52 }
0x2213   : > { %v8871_v59 = vadd.f32 %v15140_v49, %v8870_v55  ;;  %9567 = vmatpush.msra.mxu1 %v9091_v54 }
0x2214   : > { %14444 = vmatpush.xpose.msk.msrb.mxu3 %vm1356_vm5, %v8891_v61 }
0x2215   : > { %v8990_v63 = vpop.f32.mrf.mxu0  ;;  %14442 = vmatpush.xpose.msk.msrb.mxu2 %vm1356_vm5, %v8871_v59 }
0x2216   : > { %v8991_v1 = vadd.f32 %v15142_v57, %v8990_v63 }
0x2217   : > { %14445 = vmatmul.msk.f32.vlgmr.msrb.gmra.mxu3 %vm1356_vm5, %v8731_v2 }
0x2218   : > { %14454 = vmatpush.xpose.msk.msra.mxu0 %vm1356_vm5, %v8991_v1  ;;  %14443 = vmatmul.msk.f32.vlgmr.msrb.gmra.mxu2 %vm1356_vm5, %v8711_v0 }
0x221a   : > { %v8970_v10 = vpop.f32.mrf.mxu3 }
0x221b   : > { %v8950_v9 = vpop.f32.mrf.mxu2  ;;  %v8971_v14 = vadd.f32 %v15144_v4, %v8970_v10  ;;  %14455 = vmatmul.msk.f32.vlgmr.msra.gmra.mxu0 %vm1356_vm5, %v8831_v5 }
0x221c   : > { %v8951_v13 = vadd.f32 %v15143_v3, %v8950_v9 }
0x221d   : > { %14452 = vmatpush.xpose.msk.msra.mxu3 %vm1356_vm5, %v8971_v14 }
0x221e   : > { %v9070_v15 = vpop.f32.mrf.mxu0  ;;  %14450 = vmatpush.xpose.msk.msra.mxu2 %vm1356_vm5, %v8951_v13 }
0x221f   : > { %v9071_v17 = vadd.f32 %v15145_v11, %v9070_v15 }
0x2220   : > { %14453 = vmatmul.msk.f32.vlgmr.msra.gmra.mxu3 %vm1356_vm5, %v8811_v18 }
0x2221   : > { %9544 = vmatpush.msrb.mxu0 %v9071_v17  ;;  %14451 = vmatmul.msk.f32.vlgmr.msra.gmra.mxu2 %vm1356_vm5, %v8791_v16 }
0x2223   : > { %v9050_v26 = vpop.f32.mrf.mxu3 }
0x2224   : > { %v9030_v24 = vpop.f32.mrf.mxu2  ;;  %v9051_v29 = vadd.f32 %v15147_v22, %v9050_v26 }
0x2225   : > { %v9031_v28 = vadd.f32 %v15146_v20, %v9030_v24 }
0x2226   : > { %v9150_v30 = vpop.f32.mrf.mxu0  ;;  %9521 = vmatpush.msrb.mxu3 %v9051_v29 }
0x2227   : > { %9498 = vmatpush.msrb.mxu2 %v9031_v28  ;;  %v9151_v31 = vadd.f32 %v15148_v27, %v9150_v30 }
0x2229   : > { %9636 = vmatpush.msra.mxu0 %v9151_v31 }
0x222b   : > { %v9130_v34 = vpop.f32.mrf.mxu3 }
0x222c   : > { %v9110_v33 = vpop.f32.mrf.mxu2  ;;  %v9131_v36 = vadd.f32 %v15150_v32, %v9130_v34 }
0x222d   : > { %v9111_v35 = vadd.f32 %v15149_v60, %v9110_v33 }
0x222e   : > { %9613 = vmatpush.msra.mxu3 %v9131_v36 }
0x222f   : > { %9590 = vmatpush.msra.mxu2 %v9111_v35 }
0x2287   : > { %v9176_v40 = vpop.f32.mrf.mxu1 }
0x2288   : > { %v9361_v43 = vmul.f32 0.5, %v9176_v40 }
0x228a   : > { %v9369_v47 = vsel %vm1584_vm6, %v9361_v43, -inf }
0x228f   : > { %v9254_v7 = vpop.f32.mrf.mxu0  ;;  %v9280_v48 = vpop.f32.mrf.mxu1 }
0x2290   : > { %v9364_v51 = vmul.f32 0.5, %v9254_v7  ;;  %v9365_v52 = vmul.f32 0.5, %v9280_v48 }
0x2292   : > { %v9378_v54 = vsel %vm1584_vm6, %v9364_v51, -inf  ;;  %v9381_v55 = vsel %vm1584_vm6, %v9365_v52, -inf }
0x2298   : > { %v9358_v50 = vpop.f32.mrf.mxu0 }
0x2299   : > { %v9368_v53 = vmul.f32 0.5, %v9358_v50 }
0x229a   : > { %v9228_v39 = vpop.f32.mrf.mxu3 }
0x229b   : > { %v9202_v37 = vpop.f32.mrf.mxu2  ;;  %v9363_v41 = vmul.f32 0.5, %v9228_v39  ;;  %v9390_v56 = vsel %vm1584_vm6, %v9368_v53, -inf }
0x229c   : > { %v9362_v38 = vmul.f32 0.5, %v9202_v37 }
0x229d   : > { %v9375_v19 = vsel %vm1584_vm6, %v9363_v41, -inf }
0x229e   : > { %v9372_v42 = vsel %vm1584_vm6, %v9362_v38, -inf  ;;  %9376 = vmax.xlane.f32.xlu1 %v9375_v19 }
0x229f   : > { %9373 = vmax.xlane.f32.xlu0 %v9372_v42 }
0x22a3   : > { %v9332_v23 = vpop.f32.mrf.mxu3 }
0x22a4   : > { %v9306_v21 = vpop.f32.mrf.mxu2  ;;  %v9367_v45 = vmul.f32 0.5, %v9332_v23 }
0x22a5   : > { %v9366_v44 = vmul.f32 0.5, %v9306_v21 }
0x22a6   : > { %v9387_v49 = vsel %vm1584_vm6, %v9367_v45, -inf }
0x22a7   : > { %v9384_v46 = vsel %vm1584_vm6, %v9366_v44, -inf  ;;  %9370 = vmax.xlane.f32.xlu0 %v9369_v47  ;;  %9388 = vmax.xlane.f32.xlu1 %v9387_v49 }
0x22a8   : > { %9385 = vmax.xlane.f32.xlu2 %v9384_v46 }
0x22af   : > { %9382 = vmax.xlane.f32.xlu0 %v9381_v55  ;;  %9391 = vmax.xlane.f32.xlu1 %v9390_v56 }
0x22b0   : > { %9379 = vmax.xlane.f32.xlu2 %v9378_v54 }
0x2311   : > { %v9377_v58 = vpop.xlane.xlu1 %9376 }
0x2312   : > { %v9374_v57 = vpop.xlane.xlu0 %9373  ;;  %v9395_v61 = vsub.f32 %v9363_v41, %v9377_v58 }
0x2313   : > { %v9394_v59 = vsub.f32 %v9362_v38, %v9374_v57 }
0x2314   : > { %v9405_v63 = vmul.f32 1.442695, %v9395_v61  ;;  %v14466_v61 = vld [vmem:[%s20604_s6 + $0xa8] sm:$0xf] }
0x2315   : > { %v9403_v62 = vmul.f32 1.442695, %v9394_v59 }
0x2317   : > { %15415 = vpow2.f32 %v9403_v62  ;;  %v14464_v62 = vld [vmem:[%s20604_s6 + $0xa0] sm:$0xf] }
0x2318   : > { %15417 = vpow2.f32 %v9405_v63  ;;  %v14469_v63 = vld [vmem:[%s20604_s6 + $0xb4] sm:$0xf] }
0x231a   : > { %v9371_v1 = vpop.xlane.xlu0 %9370  ;;  %v9389_v3 = vpop.xlane.xlu1 %9388 }
0x231b   : > { %v9386_v0 = vpop.xlane.xlu2 %9385  ;;  %v9393_v4 = vsub.f32 %v9361_v43, %v9371_v1  ;;  %v9399_v5 = vsub.f32 %v9367_v45, %v9389_v3  ;;  %v14465_v43 = vld [vmem:[%s20604_s6 + $0xa4] sm:$0xf]  ;;  %v14470_v1 = vld [vmem:[%s20604_s6 + $0xb8] sm:$0xf]  ;;  %v14471_v3 = vld [vmem:[%s20604_s6 + $0xbc] sm:$0xf] }
0x231c   : > { %v9398_v2 = vsub.f32 %v9366_v44, %v9386_v0  ;;  %v14467_v0 = vld [vmem:[%s20604_s6 + $0xac] sm:$0xf] }
0x231d   : > { %v15416_v6 = vpop.eup %15415  ;;  %v9401_v10 = vmul.f32 1.442695, %v9393_v4  ;;  %v9413_v12 = vmul.f32 1.442695, %v9399_v5 }
0x231e   : > { %v9411_v9 = vmul.f32 1.442695, %v9398_v2  ;;  %v15418_v11 = vpop.eup %15417  ;;  %v9420_v13 = vsel %vm1584_vm6, %v15416_v6, 0.0  ;;  %v14468_v2 = vld [vmem:[%s20604_s6 + $0xb0] sm:$0xf] }
0x231f   : > { %9421 = vadd.xlane.f32.xlu2 %v9420_v13  ;;  %v9423_v14 = vsel %vm1584_vm6, %v15418_v11, 0.0 }
0x2320   : > { %15419 = vpow2.f32 %v9411_v9  ;;  %9424 = vadd.xlane.f32.xlu0 %v9423_v14 }
0x2321   : > { %15421 = vpow2.f32 %v9413_v12 }
0x2322   : > { %15423 = vpow2.f32 %v9401_v10  ;;  %v9383_v16 = vpop.xlane.xlu0 %9382  ;;  %v9392_v18 = vpop.xlane.xlu1 %9391 }
0x2323   : > { %v9380_v15 = vpop.xlane.xlu2 %9379  ;;  %v9397_v20 = vsub.f32 %v9365_v52, %v9383_v16  ;;  %v9400_v22 = vsub.f32 %v9368_v53, %v9392_v18 }
0x2324   : > { %v9396_v17 = vsub.f32 %v9364_v51, %v9380_v15 }
0x2325   : > { %v9409_v27 = vmul.f32 1.442695, %v9397_v20  ;;  %v9415_v29 = vmul.f32 1.442695, %v9400_v22 }
0x2326   : > { %v15420_v24 = vpop.eup %15419  ;;  %v9407_v26 = vmul.f32 1.442695, %v9396_v17 }
0x2327   : > { %v15422_v28 = vpop.eup %15421  ;;  %v9432_v30 = vsel %vm1584_vm6, %v15420_v24, 0.0 }
0x2328   : > { %v15424_v31 = vpop.eup %15423  ;;  %15425 = vpow2.f32 %v9407_v26  ;;  %9433 = vadd.xlane.f32.xlu1 %v9432_v30  ;;  %v9435_v60 = vsel %vm1584_vm6, %v15422_v28, 0.0 }
0x2329   : > { %15427 = vpow2.f32 %v9415_v29  ;;  %v9417_v32 = vsel %vm1584_vm6, %v15424_v31, 0.0  ;;  %9436 = vadd.xlane.f32.xlu0 %v9435_v60 }
0x232a   : > { %15429 = vpow2.f32 %v9409_v27  ;;  %9418 = vadd.xlane.f32.xlu2 %v9417_v32 }
0x232e   : > { %v15426_v33 = vpop.eup %15425 }
0x232f   : > { %v15428_v34 = vpop.eup %15427  ;;  %v9426_v35 = vsel %vm1584_vm6, %v15426_v33, 0.0 }
0x2330   : > { %v15430_v36 = vpop.eup %15429  ;;  %9427 = vadd.xlane.f32.xlu1 %v9426_v35  ;;  %v9438_v37 = vsel %vm1584_vm6, %v15428_v34, 0.0 }
0x2331   : > { %9439 = vadd.xlane.f32.xlu0 %v9438_v37  ;;  %v9429_v38 = vsel %vm1584_vm6, %v15430_v36, 0.0 }
0x2332   : > { %9430 = vadd.xlane.f32.xlu2 %v9429_v38  ;;  %v15151_v38 = vld [vmem:[%s20605_s7 + $0x5] ss:$0 sm:$0xff] }
0x2392   : > { %v9422_v39 = vpop.xlane.xlu2 %9421 }
0x2393   : > { %15431 = vrcp.f32 %v9422_v39  ;;  %v9425_v40 = vpop.xlane.xlu0 %9424 }
0x2394   : > { %15433 = vrcp.f32 %v9425_v40 }
0x2399   : > { %v15432_v41 = vpop.eup %15431 }
0x239a   : > { %v15434_v7 = vpop.eup %15433  ;;  %v9450_v42 = vmul.f32 %v15432_v41, %v15416_v6 }
0x239b   : > { %v9434_v19 = vpop.xlane.xlu1 %9433  ;;  %v9451_v21 = vmul.f32 %v15434_v7, %v15418_v11 }
0x239c   : > { %15435 = vrcp.f32 %v9434_v19  ;;  %v9437_v44 = vpop.xlane.xlu0 %9436  ;;  %14457 = vmatmul.msk.f32.vlgmr.msrb.gmra.mxu2 %vm1584_vm6, %v9450_v42 }
0x239d   : > { %v9419_v23 = vpop.xlane.xlu2 %9418  ;;  %15437 = vrcp.f32 %v9437_v44  ;;  %14458 = vmatmul.msk.f32.vlgmr.msrb.gmra.mxu3 %vm1584_vm6, %v9451_v21  ;;  %14474 = vmatpush.msk.msrb.mxu2 %vm1868_vm7, %v14465_v43 }
0x239e   : > { %15439 = vrcp.f32 %v9419_v23  ;;  %14476 = vmatpush.msk.msrb.mxu3 %vm1868_vm7, %v14466_v61 }
0x23a2   : > { %v15436_v45 = vpop.eup %15435 }
0x23a3   : > { %v15438_v46 = vpop.eup %15437  ;;  %v9454_v47 = vmul.f32 %v15436_v45, %v15420_v24  ;;  %v9428_v48 = vpop.xlane.xlu1 %9427  ;;  %v14494_v45 = vld [vmem:[%s20608_s10 + $0xb8] sm:$0xff] }
0x23a4   : > { %v15440_v49 = vpop.eup %15439  ;;  %v9455_v50 = vmul.f32 %v15438_v46, %v15422_v28  ;;  %15441 = vrcp.f32 %v9428_v48  ;;  %v9440_v53 = vpop.xlane.xlu0 %9439  ;;  %v14492_v46 = vld [vmem:[%s20608_s10 + $0xa8] sm:$0xff]  ;;  %v14512_v48 = vld [vmem:[%s20610_s12 + $0x2f8] sm:$0xff] }
0x23a5   : > { %v9449_v51 = vmul.f32 %v15440_v49, %v15424_v31  ;;  %v9431_v52 = vpop.xlane.xlu2 %9430  ;;  %14461 = vmatmul.msk.f32.vlgmr.msra.gmra.mxu2 %vm1584_vm6, %v9454_v47  ;;  %v14491_v47 = vld [vmem:[%s20608_s10 + $0xa0] sm:$0xff]  ;;  %v14511_v49 = vld [vmem:[%s20610_s12 + $0x2f0] sm:$0xff] }
0x23a6   : > { %15443 = vrcp.f32 %v9431_v52  ;;  %14462 = vmatmul.msk.f32.vlgmr.msra.gmra.mxu3 %vm1584_vm6, %v9455_v50  ;;  %14482 = vmatpush.msk.msra.mxu2 %vm1868_vm7, %v14469_v63  ;;  %v14510_v50 = vld [vmem:[%s20610_s12 + $0x2e8] sm:$0xff] }
0x23a7   : > { %14456 = vmatmul.msk.f32.vlgmr.msrb.gmra.mxu1 %vm1584_vm6, %v9449_v51  ;;  %15445 = vrcp.f32 %v9440_v53  ;;  %14484 = vmatpush.msk.msra.mxu3 %vm1868_vm7, %v14470_v1  ;;  %v14509_v53 = vld [vmem:[%s20610_s12 + $0x2e0] sm:$0xff] }
0x23a8   : > { %14472 = vmatpush.msk.msrb.mxu1 %vm1868_vm7, %v14464_v62  ;;  %v15152_v62 = vld [vmem:[%s20606_s8 + $0x5] ss:$0 sm:$0xff] }
0x23aa   : > { %v15442_v54 = vpop.eup %15441 }
0x23ab   : > { %v9452_v55 = vmul.f32 %v15442_v54, %v15426_v33 }
0x23ac   : > { %v15444_v56 = vpop.eup %15443 }
0x23ad   : > { %v9453_v57 = vmul.f32 %v15444_v56, %v15430_v36  ;;  %14459 = vmatmul.msk.f32.vlgmr.msrb.gmra.mxu0 %vm1584_vm6, %v9452_v55  ;;  %v15446_v58 = vpop.eup %15445 }
0x23ae   : > { %v9456_v59 = vmul.f32 %v15446_v58, %v15428_v34  ;;  %14478 = vmatpush.msk.msrb.mxu0 %vm1868_vm7, %v14467_v0  ;;  %v15153_v0 = vld [vmem:[%s20607_s9 + $0x5] ss:$0 sm:$0xff] }
0x23af   : > { %14460 = vmatmul.msk.f32.vlgmr.msra.gmra.mxu1 %vm1584_vm6, %v9453_v57 }
0x23b0   : > { %14480 = vmatpush.msk.msra.mxu1 %vm1868_vm7, %v14468_v2 }
0x23b5   : > { %14463 = vmatmul.msk.f32.vlgmr.msra.gmra.mxu0 %vm1584_vm6, %v9456_v59 }
0x23b6   : > { %14486 = vmatpush.msk.msra.mxu0 %vm1868_vm7, %v14471_v3 }
0x241f   : > { %v9500_v4 = vpop.f32.mrf.mxu2 }
0x2420   : > { %v9523_v5 = vpop.f32.mrf.mxu3  ;;  %14475 = vmatmul.msk.f32.vlgmr.msrb.gmra.mxu2 %vm1356_vm5, %v9500_v4  ;;  %v14508_v4 = vld [vmem:[%s20610_s12 + $0x2d8] sm:$0xff] }
0x2421   : > { %14477 = vmatmul.msk.f32.vlgmr.msrb.gmra.mxu3 %vm1356_vm5, %v9523_v5  ;;  %9978 = vmatpush.msrb.mxu2 %v14512_v48  ;;  %v14507_v5 = vld [vmem:[%s20610_s12 + $0x2d0] sm:$0xff]  ;;  %v14525_v48 = vld [vmem:[%s20627_s0 + $0x1248] sm:$0xff] }
0x2423   : > { %9979 = vmatpush.msrb.mxu2 %v14511_v49  ;;  %v14565_v49 = vld [vmem:[%s20627_s0 + $0x1388] sm:$0xff] }
0x2424   : > { %v9477_v6 = vpop.f32.mrf.mxu1 }
0x2425   : > { %14473 = vmatmul.msk.f32.vlgmr.msrb.gmra.mxu1 %vm1356_vm5, %v9477_v6  ;;  %9980 = vmatpush.msrb.mxu2 %v14510_v50  ;;  %v14506_v6 = vld [vmem:[%s20610_s12 + $0x2c8] sm:$0xff]  ;;  %v14516_v50 = vld [vmem:[%s20627_s0 + $0x1200] sm:$0xff] }
0x2426   : > { %9939 = vmatpush.msrb.mxu1 %v14494_v45  ;;  %v14526_v45 = vld [vmem:[%s20627_s0 + $0x1250] sm:$0xff] }
0x2427   : > { %9981 = vmatpush.msrb.mxu2 %v14509_v53  ;;  %v14564_v53 = vld [vmem:[%s20627_s0 + $0x1380] sm:$0xff] }
0x2428   : > { %v9592_v9 = vpop.f32.mrf.mxu2 }
0x2429   : > { %v9615_v10 = vpop.f32.mrf.mxu3  ;;  %14483 = vmatmul.msk.f32.vlgmr.msra.gmra.mxu2 %vm1356_vm5, %v9592_v9  ;;  %v14505_v9 = vld [vmem:[%s20610_s12 + $0x2c0] sm:$0xff] }
0x242a   : > { %14485 = vmatmul.msk.f32.vlgmr.msra.gmra.mxu3 %vm1356_vm5, %v9615_v10  ;;  %v9546_v11 = vpop.f32.mrf.mxu0  ;;  %9982 = vmatpush.msrb.mxu2 %v14508_v4  ;;  %v14504_v10 = vld [vmem:[%s20610_s12 + $0x2b8] sm:$0xff]  ;;  %v14581_v4 = vld [vmem:[%s20627_s0 + $0x1408] sm:$0xff] }
0x242b   : > { %14479 = vmatmul.msk.f32.vlgmr.msrb.gmra.mxu0 %vm1356_vm5, %v9546_v11  ;;  %v14503_v11 = vld [vmem:[%s20610_s12 + $0x2b0] sm:$0xff] }
0x242c   : > { %v9569_v12 = vpop.f32.mrf.mxu1  ;;  %9983 = vmatpush.msrb.mxu2 %v14507_v5 }
0x242d   : > { %14481 = vmatmul.msk.f32.vlgmr.msra.gmra.mxu1 %vm1356_vm5, %v9569_v12  ;;  %v14502_v12 = vld [vmem:[%s20610_s12 + $0x2a8] sm:$0xff] }
0x242e   : > { %9984 = vmatpush.msrb.mxu2 %v14506_v6  ;;  %v14528_v6 = vld [vmem:[%s20627_s0 + $0x1260] sm:$0xff] }
0x2430   : > { %9985 = vmatpush.msrb.mxu2 %v14505_v9  ;;  %v14532_v9 = vld [vmem:[%s20627_s0 + $0x1280] sm:$0xff] }
0x2432   : > { %v9638_v13 = vpop.f32.mrf.mxu0  ;;  %9986 = vmatpush.msrb.mxu2 %v14504_v10  ;;  %v14536_v10 = vld [vmem:[%s20627_s0 + $0x12a0] sm:$0xff] }
0x2433   : > { %14487 = vmatmul.msk.f32.vlgmr.msra.gmra.mxu0 %vm1356_vm5, %v9638_v13  ;;  %v14501_v13 = vld [vmem:[%s20610_s12 + $0x2a0] sm:$0xff] }
0x2434   : > { %9987 = vmatpush.msrb.mxu2 %v14503_v11  ;;  %v14580_v11 = vld [vmem:[%s20627_s0 + $0x1400] sm:$0xff] }
0x2436   : > { %9988 = vmatpush.msrb.mxu2 %v14502_v12 }
0x2438   : > { %9989 = vmatpush.msrb.mxu2 %v14501_v13 }
0x24a2   : > { %v9673_v14 = vpop.f32.mrf.mxu1 }
0x24a3   : > { %v9699_v15 = vpop.f32.mrf.mxu2  ;;  %v9858_v16 = vsel %vm643_vm0, %v9673_v14, 0.0  ;;  %v14500_v14 = vld [vmem:[%s20610_s12 + $0x298] sm:$0xff] }
0x24a4   : > { %v9859_v17 = vsel %vm643_vm0, %v9699_v15, 0.0  ;;  %v9725_v18 = vpop.f32.mrf.mxu3  ;;  %v14499_v15 = vld [vmem:[%s20610_s12 + $0x290] sm:$0xff]  ;;  %9990 = vmatpush.msrb.mxu2 %v14500_v14 }
0x24a5   : > { %v9860_v20 = vadd.f32 %v9859_v17, %v9858_v16  ;;  %v9861_v22 = vsel %vm643_vm0, %v9725_v18, 0.0  ;;  %v14498_v16 = vld [vmem:[%s20610_s12 + $0x288] sm:$0xff]  ;;  %v14497_v17 = vld [vmem:[%s20610_s12 + $0x280] sm:$0xff] }
0x24a6   : > { %9991 = vmatpush.msrb.mxu2 %v14499_v15  ;;  %v15154_v18 = vld [vmem:[%s20609_s11 + $0x5] ss:$0 sm:$0xff] }
0x24a7   : > { %v9862_v24 = vadd.f32 %v9861_v22, %v9860_v20 }
0x24a8   : > { %v9751_v26 = vpop.f32.mrf.mxu0  ;;  %9992 = vmatpush.msrb.mxu2 %v14498_v16 }
0x24a9   : > { %v9863_v27 = vsel %vm643_vm0, %v9751_v26, 0.0 }
0x24aa   : > { %v9864_v28 = vadd.f32 %v9863_v27, %v9862_v24  ;;  %v9777_v29 = vpop.f32.mrf.mxu1  ;;  %9993 = vmatpush.msrb.mxu2 %v14497_v17 }
0x24ab   : > { %v9865_v30 = vsel %vm643_vm0, %v9777_v29, 0.0 }
0x24ac   : > { %v9866_v31 = vadd.f32 %v9865_v30, %v9864_v28  ;;  %v9803_v60 = vpop.f32.mrf.mxu2 }
0x24ad   : > { %v9867_v32 = vsel %vm643_vm0, %v9803_v60, 0.0  ;;  %v9829_v33 = vpop.f32.mrf.mxu3 }
0x24ae   : > { %v9868_v34 = vadd.f32 %v9867_v32, %v9866_v31  ;;  %v9869_v35 = vsel %vm643_vm0, %v9829_v33, 0.0  ;;  %v15155_v33 = vld [vmem:[%s20611_s13 + $0x5] ss:$0 sm:$0xff] }
0x24b0   : > { %v9870_v36 = vadd.f32 %v9869_v35, %v9868_v34  ;;  %v9855_v37 = vpop.f32.mrf.mxu0 }
0x24b1   : > { %v9871_v39 = vsel %vm643_vm0, %v9855_v37, 0.0 }
0x24b2   : > { %v9872_v40 = vadd.f32 %v9871_v39, %v9870_v36 }
0x24b4   : > { %v9878_v41 = vadd.f32 %v15151_v38, %v9872_v40 }
0x24b6   : > { %v9879_v7 = vadd.f32 %v9878_v41, %v18767_v25  ;;  %v14493_v25 = vld [vmem:[%s20608_s10 + $0xb0] sm:$0xff] }
0x24b7   : > { %9940 = vmatpush.msrb.mxu1 %v14493_v25  ;;  %v14566_v25 = vld [vmem:[%s20627_s0 + $0x1390] sm:$0xff] }
0x24b8   : > { %v9884_v42 = vsel %vm643_vm0, %v9879_v7, 0.0 }
0x24b9   : > { %9885 = vadd.xlane.f32.xlu1 %v9884_v42  ;;  %9941 = vmatpush.msrb.mxu1 %v14492_v46  ;;  %v14519_v42 = vld [vmem:[%s20627_s0 + $0x1218] sm:$0xff]  ;;  %v14517_v46 = vld [vmem:[%s20627_s0 + $0x1208] sm:$0xff] }
0x24ba   : > { %10242 = vmatpush.msrb.mxu3 %v14519_v42  ;;  %v14555_v42 = vld [vmem:[%s20627_s0 + $0x1338] sm:$0xff] }
0x24bb   : > { %9942 = vmatpush.msrb.mxu1 %v14491_v47  ;;  %v14521_v47 = vld [vmem:[%s20627_s0 + $0x1228] sm:$0xff] }
0x252c   : > { %v9886_v19 = vpop.xlane.xlu1 %9885 }
0x252d   : > { %v9887_v43 = vmul.f32 %v9886_v19, %v15667_v8  ;;  %v14523_v19 = vld [vmem:[%s20627_s0 + $0x1238] sm:$0xff] }
0x252e   : > { %10262 = vmatpush.msrb.mxu0 %v14523_v19  ;;  %v14559_v19 = vld [vmem:[%s20627_s0 + $0x1358] sm:$0xff] }
0x252f   : > { %v9888_v21 = vsub.f32 %v9879_v7, %v9887_v43  ;;  %v14527_v43 = vld [vmem:[%s20627_s0 + $0x1258] sm:$0xff] }
0x2530   : > { %10282 = vmatpush.msra.mxu1 %v14527_v43  ;;  %v14563_v43 = vld [vmem:[%s20627_s0 + $0x1378] sm:$0xff] }
0x2531   : > { %v9889_v44 = vmul.f32 %v9888_v21, %v9888_v21 }
0x2532   : > { %10283 = vmatpush.msra.mxu1 %v14526_v45  ;;  %v14553_v45 = vld [vmem:[%s20627_s0 + $0x1328] sm:$0xff] }
0x2533   : > { %v9890_v23 = vsel %vm643_vm0, %v9889_v44, 0.0  ;;  %v14518_v44 = vld [vmem:[%s20627_s0 + $0x1210] sm:$0xff] }
0x2534   : > { %9891 = vadd.xlane.f32.xlu2 %v9890_v23  ;;  %v14522_v23 = vld [vmem:[%s20627_s0 + $0x1230] sm:$0xff]  ;;  %10243 = vmatpush.msrb.mxu3 %v14518_v44 }
0x2535   : > { %10263 = vmatpush.msrb.mxu0 %v14522_v23  ;;  %10284 = vmatpush.msra.mxu1 %v14525_v48  ;;  %v14558_v44 = vld [vmem:[%s20627_s0 + $0x1350] sm:$0xff]  ;;  %v14556_v48 = vld [vmem:[%s20627_s0 + $0x1340] sm:$0xff] }
0x2536   : > { %10244 = vmatpush.msrb.mxu3 %v14517_v46  ;;  %v14562_v23 = vld [vmem:[%s20627_s0 + $0x1370] sm:$0xff]  ;;  %v14561_v46 = vld [vmem:[%s20627_s0 + $0x1368] sm:$0xff] }
0x2537   : > { %10264 = vmatpush.msrb.mxu0 %v14521_v47  ;;  %v14552_v47 = vld [vmem:[%s20627_s0 + $0x1320] sm:$0xff] }
0x2538   : > { %10245 = vmatpush.msrb.mxu3 %v14516_v50  ;;  %v14571_v50 = vld [vmem:[%s20627_s0 + $0x13b8] sm:$0xff] }
0x25a7   : > { %v9892_v51 = vpop.xlane.xlu2 %9891 }
0x25a8   : > { %v9893_v52 = vmul.f32 %v9892_v51, %v15667_v8  ;;  %v14520_v51 = vld [vmem:[%s20627_s0 + $0x1220] sm:$0xff] }
0x25a9   : > { %10265 = vmatpush.msrb.mxu0 %v14520_v51  ;;  %v14575_v51 = vld [vmem:[%s20627_s0 + $0x13d8] sm:$0xff] }
0x25aa   : > { %v9894_v54 = vadd.f32 1e-05, %v9893_v52  ;;  %v14524_v52 = vld [vmem:[%s20627_s0 + $0x1240] sm:$0xff] }
0x25ab   : > { %10285 = vmatpush.msra.mxu1 %v14524_v52  ;;  %v14579_v52 = vld [vmem:[%s20627_s0 + $0x13f8] sm:$0xff] }
0x25ac   : > { %15447 = vrsqrt.f32 %v9894_v54  ;;  %vm9901_vm15 = vweird.f32 %v9894_v54 }
0x25b2   : > { %v15448_v55 = vpop.eup %15447 }
0x25b3   : > { %v9896_v56 = vmul.f32 %v15448_v55, %v9894_v54  ;;  %vm9902_vm14 = vweird.f32 %v15448_v55  ;;  %v14531_v54 = vld [vmem:[%s20627_s0 + $0x1278] sm:$0xff] }
0x25b4   : > { %vm9903_vm1 = vmor %vm9901_vm15, %vm9902_vm14  ;;  %10302 = vmatpush.msra.mxu3 %v14531_v54  ;;  %v14574_v54 = vld [vmem:[%s20627_s0 + $0x13d0] sm:$0xff] }
0x25b5   : > { %v9897_v57 = vmul.f32 %v15448_v55, %v9896_v56  ;;  %v14539_v56 = vld [vmem:[%s20627_s0 + $0x12b8] sm:$0xff] }
0x25b7   : > { %v9898_v58 = vmul.f32 0.5, %v9897_v57  ;;  %v14583_v57 = vld [vmem:[%s20627_s0 + $0x1418] sm:$0xff] }
0x25b9   : > { %v9899_v59 = vsub.f32 1.5, %v9898_v58  ;;  %v14530_v58 = vld [vmem:[%s20627_s0 + $0x1270] sm:$0xff] }
0x25ba   : > { %10303 = vmatpush.msra.mxu3 %v14530_v58  ;;  %v14577_v58 = vld [vmem:[%s20627_s0 + $0x13e8] sm:$0xff] }
0x25bb   : > { %v9900_v61 = vmul.f32 %v15448_v55, %v9899_v59  ;;  %v14534_v59 = vld [vmem:[%s20627_s0 + $0x1290] sm:$0xff] }
0x25bd   : > { %v9904_v63 = vsel %vm9903_vm1, %v15448_v55, %v9900_v61  ;;  %v14535_v55 = vld [vmem:[%s20627_s0 + $0x1298] sm:$0xff] }
0x25be   : > { %v9905_v1 = vmul.f32 %v9904_v63, %v9888_v21  ;;  %v14567_v21 = vld [vmem:[%s20627_s0 + $0x1398] sm:$0xff]  ;;  %10322 = vmatpush.msra.mxu0 %v14535_v55  ;;  %v14582_v63 = vld [vmem:[%s20627_s0 + $0x1410] sm:$0xff] }
0x25bf   : > { %10482 = vmatpush.msra.mxu2 %v14567_v21  ;;  %v14554_v21 = vld [vmem:[%s20627_s0 + $0x1330] sm:$0xff] }
0x25c0   : > { %v9909_v2 = vmul.f32 %v15152_v62, %v9905_v1  ;;  %v14538_v62 = vld [vmem:[%s20627_s0 + $0x12b0] sm:$0xff]  ;;  %v14529_v1 = vld [vmem:[%s20627_s0 + $0x1268] sm:$0xff]  ;;  %10323 = vmatpush.msra.mxu0 %v14534_v59  ;;  %v14568_v59 = vld [vmem:[%s20627_s0 + $0x13a0] sm:$0xff] }
0x25c1   : > { %10483 = vmatpush.msra.mxu2 %v14566_v25  ;;  %10304 = vmatpush.msra.mxu3 %v14529_v1  ;;  %v14557_v25 = vld [vmem:[%s20627_s0 + $0x1348] sm:$0xff]  ;;  %v14578_v55 = vld [vmem:[%s20627_s0 + $0x13f0] sm:$0xff]  ;;  %v14595_v1 = vld [vmem:[%s20627_s0 + $0x1478] sm:$0xff] }
0x25c2   : > { %v9913_v3 = vadd.f32 %v15153_v0, %v9909_v2  ;;  %v14533_v2 = vld [vmem:[%s20627_s0 + $0x1288] sm:$0xff] }
0x25c3   : > { %10484 = vmatpush.msra.mxu2 %v14565_v49  ;;  %10324 = vmatpush.msra.mxu0 %v14533_v2  ;;  %v14560_v49 = vld [vmem:[%s20627_s0 + $0x1360] sm:$0xff]  ;;  %v14586_v2 = vld [vmem:[%s20627_s0 + $0x1430] sm:$0xff] }
0x25c4   : > { %14496 = vmatmul.msk.f32.vlgmr.msrb.gmra.mxu1 %vm643_vm0, %v9913_v3  ;;  %10305 = vmatpush.msra.mxu3 %v14528_v6  ;;  %v14589_v6 = vld [vmem:[%s20627_s0 + $0x1448] sm:$0xff] }
0x25c5   : > { %10485 = vmatpush.msra.mxu2 %v14564_v53  ;;  %10342 = vmatpush.msrb.mxu1 %v14539_v56  ;;  %v14570_v53 = vld [vmem:[%s20627_s0 + $0x13b0] sm:$0xff]  ;;  %v14569_v56 = vld [vmem:[%s20627_s0 + $0x13a8] sm:$0xff] }
0x25c6   : > { %10325 = vmatpush.msra.mxu0 %v14532_v9  ;;  %v14593_v9 = vld [vmem:[%s20627_s0 + $0x1468] sm:$0xff] }
0x25c7   : > { %10343 = vmatpush.msrb.mxu1 %v14538_v62  ;;  %v14587_v62 = vld [vmem:[%s20627_s0 + $0x1438] sm:$0xff] }
0x2641   : > { %v9944_v20 = vpop.f32.mrf.mxu1 }
0x2642   : > { %v9945_v22 = vadd.f32 %v15154_v18, %v9944_v20  ;;  %v15156_v18 = vld [vmem:[%s20612_s14 + $0x5] ss:$0 sm:$0xff] }
0x2644   : > { %v9948_v24 = vmul.f32 0.044715, %v9945_v22  ;;  %v9947_v31 = vmul.f32 0.5, %v9945_v22 }
0x2646   : > { %v9949_v26 = vmul.f32 %v9948_v24, %v9945_v22 }
0x2648   : > { %v9950_v27 = vmul.f32 %v9949_v26, %v9945_v22 }
0x264a   : > { %v9951_v28 = vadd.f32 %v9950_v27, %v9945_v22  ;;  %v15157_v22 = vld [vmem:[%s20613_s15 + $0x5] ss:$0 sm:$0xff] }
0x264c   : > { %v9952_v29 = vmul.f32 0.7978846, %v9951_v28  ;;  %v14543_v28 = vld [vmem:[%s20627_s0 + $0x12d8] sm:$0xff] }
0x264e   : > { %15449 = vtanh.f32 %v9952_v29  ;;  %v14547_v29 = vld [vmem:[%s20627_s0 + $0x12f8] sm:$0xff] }
0x2654   : > { %v15450_v30 = vpop.eup %15449 }
0x2655   : > { %v9954_v60 = vadd.f32 1.0, %v15450_v30  ;;  %v14551_v30 = vld [vmem:[%s20627_s0 + $0x1318] sm:$0xff] }
0x2657   : > { %v9955_v32 = vmul.f32 %v9954_v60, %v9947_v31  ;;  %v14599_v31 = vld [vmem:[%s20627_s0 + $0x1498] sm:$0xff]  ;;  %v14542_v60 = vld [vmem:[%s20627_s0 + $0x12d0] sm:$0xff] }
0x2659   : > { %9994 = vmatmul.f32.vlgmr.msrb.gmra.mxu2 %v9955_v32  ;;  %v14546_v32 = vld [vmem:[%s20627_s0 + $0x12f0] sm:$0xff] }
0x265a   : > { %10562 = vmatpush.msrb.mxu2 %v14583_v57  ;;  %v14573_v57 = vld [vmem:[%s20627_s0 + $0x13c8] sm:$0xff] }
0x265c   : > { %10563 = vmatpush.msrb.mxu2 %v14582_v63  ;;  %v14576_v63 = vld [vmem:[%s20627_s0 + $0x13e0] sm:$0xff] }
0x265e   : > { %10564 = vmatpush.msrb.mxu2 %v14581_v4  ;;  %v14594_v4 = vld [vmem:[%s20627_s0 + $0x1470] sm:$0xff] }
0x2660   : > { %10565 = vmatpush.msrb.mxu2 %v14580_v11  ;;  %v14588_v11 = vld [vmem:[%s20627_s0 + $0x1440] sm:$0xff] }
0x26dc   : > { %v9995_v34 = vpop.f32.mrf.mxu2 }
0x26dd   : > { %v9996_v35 = vadd.f32 %v15155_v33, %v9995_v34  ;;  %v14550_v33 = vld [vmem:[%s20627_s0 + $0x1310] sm:$0xff] }
0x26de   : > { %v14598_v34 = vld [vmem:[%s20627_s0 + $0x1490] sm:$0xff] }
0x26df   : > { %v9998_v36 = vadd.f32 %v9996_v35, %v9913_v3  ;;  %v14537_v3 = vld [vmem:[%s20627_s0 + $0x12a8] sm:$0xff] }
0x26e0   : > { %10344 = vmatpush.msrb.mxu1 %v14537_v3  ;;  %v14541_v35 = vld [vmem:[%s20627_s0 + $0x12c8] sm:$0xff]  ;;  %v14590_v3 = vld [vmem:[%s20627_s0 + $0x1450] sm:$0xff] }
0x26e1   : > { %v10003_v37 = vsel %vm643_vm0, %v9998_v36, 0.0 }
0x26e2   : > { %10004 = vadd.xlane.f32.xlu0 %v10003_v37  ;;  %10345 = vmatpush.msrb.mxu1 %v14536_v10  ;;  %v14549_v37 = vld [vmem:[%s20627_s0 + $0x1308] sm:$0xff]  ;;  %v14584_v10 = vld [vmem:[%s20627_s0 + $0x1420] sm:$0xff] }
0x2755   : > { %v10005_v38 = vpop.xlane.xlu0 %10004 }
0x2756   : > { %v10006_v39 = vmul.f32 %v10005_v38, %v15667_v8  ;;  %v14597_v38 = vld [vmem:[%s20627_s0 + $0x1488] sm:$0xff] }
0x2758   : > { %v19255_v40 = vsub.f32 %v9998_v36, %v10006_v39  ;;  %v14545_v36 = vld [vmem:[%s20627_s0 + $0x12e8] sm:$0xff]  ;;  %v14540_v39 = vld [vmem:[%s20627_s0 + $0x12c0] sm:$0xff] }
0x275a   : > { %v10008_v41 = vmul.f32 %v19255_v40, %v19255_v40 }
0x275c   : > { %v10009_v7 = vsel %vm643_vm0, %v10008_v41, 0.0  ;;  %v14548_v41 = vld [vmem:[%s20627_s0 + $0x1300] sm:$0xff] }
0x275d   : > { %10010 = vadd.xlane.f32.xlu1 %v10009_v7  ;;  %v14596_v7 = vld [vmem:[%s20627_s0 + $0x1480] sm:$0xff] }
0x27d0   : > { %v10011_v61 = vpop.xlane.xlu1 %10010 }
0x27d1   : > { %v10012_v0 = vmul.f32 %v10011_v61, %v15667_v8  ;;  %v14572_v61 = vld [vmem:[%s20627_s0 + $0x13c0] sm:$0xff] }
0x27d3   : > { %v10013_v5 = vadd.f32 1e-05, %v10012_v0  ;;  %v14591_v0 = vld [vmem:[%s20627_s0 + $0x1458] sm:$0xff] }
0x27d5   : > { %15451 = vrsqrt.f32 %v10013_v5  ;;  %vm10020_vm3 = vweird.f32 %v10013_v5 }
0x27db   : > { %v15452_v12 = vpop.eup %15451 }
0x27dc   : > { %v10015_v13 = vmul.f32 %v15452_v12, %v10013_v5  ;;  %vm10021_vm2 = vweird.f32 %v15452_v12  ;;  %v14585_v5 = vld [vmem:[%s20627_s0 + $0x1428] sm:$0xff] }
0x27dd   : > { %vm10022_vm4 = vmor %vm10020_vm3, %vm10021_vm2 }
0x27de   : > { %v10016_v14 = vmul.f32 %v15452_v12, %v10015_v13  ;;  %v14592_v13 = vld [vmem:[%s20627_s0 + $0x1460] sm:$0xff] }
0x27e0   : > { %v10017_v15 = vmul.f32 0.5, %v10016_v14  ;;  %v14607_v14 = vld [vmem:[%s20627_s0 + $0x14d8] sm:$0xff] }
0x27e2   : > { %v10018_v16 = vsub.f32 1.5, %v10017_v15  ;;  %v14611_v15 = vld [vmem:[%s20627_s0 + $0x14f8] sm:$0xff] }
0x27e4   : > { %v10019_v17 = vmul.f32 %v15452_v12, %v10018_v16  ;;  %v14602_v16 = vld [vmem:[%s20627_s0 + $0x14b0] sm:$0xff] }
0x27e6   : > { %v10023_v20 = vsel %vm10022_vm4, %v15452_v12, %v10019_v17  ;;  %v14603_v12 = vld [vmem:[%s20627_s0 + $0x14b8] sm:$0xff]  ;;  %v14606_v17 = vld [vmem:[%s20627_s0 + $0x14d0] sm:$0xff] }
0x27e7   : > { %v10024_v24 = vmul.f32 %v10023_v20, %v19255_v40  ;;  %v14544_v40 = vld [vmem:[%s20627_s0 + $0x12e0] sm:$0xff]  ;;  %v14601_v20 = vld [vmem:[%s20627_s0 + $0x14a8] sm:$0xff] }
0x27e9   : > { %v10028_v26 = vmul.f32 %v15156_v18, %v10024_v24  ;;  %v14610_v18 = vld [vmem:[%s20627_s0 + $0x14f0] sm:$0xff]  ;;  %v14609_v24 = vld [vmem:[%s20627_s0 + $0x14e8] sm:$0xff] }
0x27eb   : > { %v19364_v27 = vadd.f32 %v15157_v22, %v10028_v26  ;;  %v14605_v22 = vld [vmem:[%s20627_s0 + $0x14c8] sm:$0xff]  ;;  %v14600_v26 = vld [vmem:[%s20627_s0 + $0x14a0] sm:$0xff] }
0x27ed   : > { %14636 = vmatmul.msk.f32.vlgmr.msrb.gmra.mxu3 %vm643_vm0, %v19364_v27  ;;  %14637 = vmatmul.msk.f32.vlgmr.msrb.gmra.mxu0 %vm643_vm0, %v19364_v27 }
0x27ee   : > { %14638 = vmatmul.msk.f32.vlgmr.msra.gmra.mxu1 %vm643_vm0, %v19364_v27  ;;  %14648 = vmatmul.msk.f32.vlgmr.msra.gmra.mxu2 %vm643_vm0, %v19364_v27 }
0x27ef   : > { %10362 = vmatpush.msrb.mxu3 %v14543_v28  ;;  %10382 = vmatpush.msrb.mxu0 %v14547_v29  ;;  %v14604_v28 = vld [vmem:[%s20627_s0 + $0x14c0] sm:$0xff] }
0x27f0   : > { %10402 = vmatpush.msra.mxu1 %v14551_v30  ;;  %10642 = vmatpush.msra.mxu2 %v14599_v31  ;;  %v14608_v29 = vld [vmem:[%s20627_s0 + $0x14e0] sm:$0xff] }
0x27f1   : > { %10363 = vmatpush.msrb.mxu3 %v14542_v60  ;;  %10383 = vmatpush.msrb.mxu0 %v14546_v32 }
0x27f2   : > { %10403 = vmatpush.msra.mxu1 %v14550_v33  ;;  %10643 = vmatpush.msra.mxu2 %v14598_v34 }
0x27f3   : > { %10364 = vmatpush.msrb.mxu3 %v14541_v35  ;;  %10384 = vmatpush.msrb.mxu0 %v14545_v36  ;;  %v15167_v36 = vld [vmem:[%s20603_s5 + $0x98] ss:$0 sm:$0xff] }
0x27f4   : > { %10404 = vmatpush.msra.mxu1 %v14549_v37  ;;  %10644 = vmatpush.msra.mxu2 %v14597_v38  ;;  %v15161_v37 = vld [vmem:[%s20603_s5 + $0x9c] ss:$0 sm:$0xff] }
0x27f5   : > { %14639 = vmatmul.msk.f32.vlgmr.msra.gmra.mxu3 %vm643_vm0, %v19364_v27  ;;  %14640 = vmatmul.msk.f32.vlgmr.msra.gmra.mxu0 %vm643_vm0, %v19364_v27 }
0x27f6   : > { %14641 = vmatmul.msk.f32.vlgmr.msrb.gmra.mxu1 %vm643_vm0, %v19364_v27  ;;  %14652 = vmatmul.msk.f32.vlgmr.msrb.gmra.mxu2 %vm643_vm0, %v19364_v27 }
0x27f7   : > { %10365 = vmatpush.msrb.mxu3 %v14540_v39  ;;  %10385 = vmatpush.msrb.mxu0 %v14544_v40  ;;  %v15160_v39 = vld [vmem:[%s20603_s5 + $0x90] ss:$0 sm:$0xff] }
0x27f8   : > { %10405 = vmatpush.msra.mxu1 %v14548_v41  ;;  %10645 = vmatpush.msra.mxu2 %v14596_v7  ;;  %v15165_v7 = vld [vmem:[%s20603_s5 + $0xa0] ss:$0 sm:$0xff] }
0x27f9   : > { %10422 = vmatpush.msra.mxu3 %v14555_v42  ;;  %10442 = vmatpush.msra.mxu0 %v14559_v19 }
0x27fa   : > { %10462 = vmatpush.msrb.mxu1 %v14563_v43 }
0x27fb   : > { %10423 = vmatpush.msra.mxu3 %v14554_v21  ;;  %10443 = vmatpush.msra.mxu0 %v14558_v44  ;;  %v15170_v21 = vld [vmem:[%s20603_s5 + $0x9a] ss:$0 sm:$0xff] }
0x27fc   : > { %10463 = vmatpush.msrb.mxu1 %v14562_v23 }
0x27fd   : > { %14642 = vmatmul.msk.f32.vlgmr.msrb.gmra.mxu3 %vm643_vm0, %v19364_v27  ;;  %14643 = vmatmul.msk.f32.vlgmr.msrb.gmra.mxu0 %vm643_vm0, %v19364_v27 }
0x27fe   : > { %14644 = vmatmul.msk.f32.vlgmr.msra.gmra.mxu1 %vm643_vm0, %v19364_v27  ;;  %14656 = vmatmul.msk.f32.vlgmr.msra.gmra.mxu2 %vm643_vm0, %v19364_v27 }
0x27ff   : > { %10424 = vmatpush.msra.mxu3 %v14553_v45  ;;  %10444 = vmatpush.msra.mxu0 %v14557_v25  ;;  %v15171_v45 = vld [vmem:[%s20603_s5 + $0x9b] ss:$0 sm:$0xff]  ;;  %v15159_v25 = vld [vmem:[%s20603_s5 + $0x92] ss:$0 sm:$0xff] }
0x2800   : > { %10464 = vmatpush.msrb.mxu1 %v14561_v46 }
0x2801   : > { %10425 = vmatpush.msra.mxu3 %v14552_v47  ;;  %10445 = vmatpush.msra.mxu0 %v14556_v48  ;;  %v15162_v47 = vld [vmem:[%s20603_s5 + $0x94] ss:$0 sm:$0xff]  ;;  %v15164_v48 = vld [vmem:[%s20603_s5 + $0x93] ss:$0 sm:$0xff] }
0x2802   : > { %10465 = vmatpush.msrb.mxu1 %v14560_v49 }
0x2803   : > { %10502 = vmatpush.msrb.mxu3 %v14571_v50  ;;  %10522 = vmatpush.msrb.mxu0 %v14575_v51  ;;  %v15169_v51 = vld [vmem:[%s20603_s5 + $0xa4] ss:$0 sm:$0xff] }
0x2804   : > { %10542 = vmatpush.msra.mxu1 %v14579_v52 }
0x2805   : > { %10503 = vmatpush.msrb.mxu3 %v14570_v53  ;;  %14646 = vmatmul.msk.f32.vlgmr.msra.gmra.mxu0 %vm643_vm0, %v19364_v27 }
0x2806   : > { %14645 = vmatmul.msk.f32.vlgmr.msra.gmra.mxu3 %vm643_vm0, %v19364_v27  ;;  %14647 = vmatmul.msk.f32.vlgmr.msrb.gmra.mxu1 %vm643_vm0, %v19364_v27 }
0x2807   : > { %10523 = vmatpush.msrb.mxu0 %v14574_v54  ;;  %10543 = vmatpush.msra.mxu1 %v14578_v55  ;;  %v15172_v54 = vld [vmem:[%s20603_s5 + $0x99] ss:$0 sm:$0xff] }
0x2808   : > { %10504 = vmatpush.msrb.mxu3 %v14569_v56 }
0x2809   : > { %10524 = vmatpush.msrb.mxu0 %v14573_v57  ;;  %10544 = vmatpush.msra.mxu1 %v14577_v58  ;;  %v15173_v58 = vld [vmem:[%s20603_s5 + $0x9e] ss:$0 sm:$0xff] }
0x280a   : > { %10505 = vmatpush.msrb.mxu3 %v14568_v59  ;;  %v15158_v59 = vld [vmem:[%s20603_s5 + $0x91] ss:$0 sm:$0xff] }
0x280b   : > { %10525 = vmatpush.msrb.mxu0 %v14572_v61  ;;  %10545 = vmatpush.msra.mxu1 %v14576_v63  ;;  %v15174_v63 = vld [vmem:[%s20603_s5 + $0x9f] ss:$0 sm:$0xff] }
0x280c   : > { %10582 = vmatpush.msra.mxu3 %v14587_v62 }
0x280d   : > { %10602 = vmatpush.msra.mxu0 %v14591_v0  ;;  %10622 = vmatpush.msrb.mxu1 %v14595_v1  ;;  %v15168_v1 = vld [vmem:[%s20603_s5 + $0x96] ss:$0 sm:$0xff] }
0x280e   : > { %10583 = vmatpush.msra.mxu3 %v14586_v2  ;;  %14650 = vmatmul.msk.f32.vlgmr.msrb.gmra.mxu0 %vm643_vm0, %v19364_v27 }
0x280f   : > { %14649 = vmatmul.msk.f32.vlgmr.msrb.gmra.mxu3 %vm643_vm0, %v19364_v27  ;;  %14651 = vmatmul.msk.f32.vlgmr.msra.gmra.mxu1 %vm643_vm0, %v19364_v27 }
0x2810   : > { %10603 = vmatpush.msra.mxu0 %v14590_v3  ;;  %10623 = vmatpush.msrb.mxu1 %v14594_v4  ;;  %v15166_v3 = vld [vmem:[%s20603_s5 + $0x97] ss:$0 sm:$0xff] }
0x2811   : > { %10584 = vmatpush.msra.mxu3 %v14585_v5 }
0x2812   : > { %10604 = vmatpush.msra.mxu0 %v14589_v6  ;;  %10624 = vmatpush.msrb.mxu1 %v14593_v9 }
0x2813   : > { %10585 = vmatpush.msra.mxu3 %v14584_v10  ;;  %v15175_v10 = vld [vmem:[%s20603_s5 + $0x9d] ss:$0 sm:$0xff] }
0x2814   : > { %10605 = vmatpush.msra.mxu0 %v14588_v11  ;;  %10625 = vmatpush.msrb.mxu1 %v14592_v13  ;;  %v15176_v13 = vld [vmem:[%s20603_s5 + $0xa2] ss:$0 sm:$0xff] }
0x2815   : > { %10662 = vmatpush.msrb.mxu3 %v14603_v12 }
0x2816   : > { %10682 = vmatpush.msrb.mxu0 %v14607_v14  ;;  %10702 = vmatpush.msra.mxu1 %v14611_v15  ;;  %v15163_v14 = vld [vmem:[%s20603_s5 + $0x95] ss:$0 sm:$0xff] }
0x2817   : > { %10663 = vmatpush.msrb.mxu3 %v14602_v16  ;;  %14654 = vmatmul.msk.f32.vlgmr.msra.gmra.mxu0 %vm643_vm0, %v19364_v27  ;;  %v15177_v16 = vld [vmem:[%s20603_s5 + $0xa3] ss:$0 sm:$0xff] }
0x2818   : > { %14653 = vmatmul.msk.f32.vlgmr.msra.gmra.mxu3 %vm643_vm0, %v19364_v27  ;;  %14655 = vmatmul.msk.f32.vlgmr.msrb.gmra.mxu1 %vm643_vm0, %v19364_v27 }
0x2819   : > { %10683 = vmatpush.msrb.mxu0 %v14606_v17  ;;  %10703 = vmatpush.msra.mxu1 %v14610_v18 }
0x281a   : > { %10664 = vmatpush.msrb.mxu3 %v14601_v20 }
0x281b   : > { %10684 = vmatpush.msrb.mxu0 %v14605_v22  ;;  %10704 = vmatpush.msra.mxu1 %v14609_v24 }
0x281c   : > { %10665 = vmatpush.msrb.mxu3 %v14600_v26 }
0x281d   : > { %10685 = vmatpush.msrb.mxu0 %v14604_v28  ;;  %10705 = vmatpush.msra.mxu1 %v14608_v29  ;;  %v15178_v28 = vld [vmem:[%s20603_s5 + $0xa1] ss:$0 sm:$0xff]  ;;  %v15179_v29 = vld [vmem:[%s20603_s5 + $0xa6] ss:$0 sm:$0xff] }
0x281f   : > { %14658 = vmatmul.msk.f32.vlgmr.msrb.gmra.mxu0 %vm643_vm0, %v19364_v27 }
0x2820   : > { %14657 = vmatmul.msk.f32.vlgmr.msrb.gmra.mxu3 %vm643_vm0, %v19364_v27  ;;  %14659 = vmatmul.msk.f32.vlgmr.msra.gmra.mxu1 %vm643_vm0, %v19364_v27 }
0x286a   : > { %v10267_v30 = vpop.f32.mrf.mxu0 }
0x286b   : > { %v10287_v31 = vpop.f32.mrf.mxu1  ;;  %v10268_v6 = vadd.f32 %v15158_v59, %v10267_v30 }
0x286c   : > { %v10288_v55 = vadd.f32 %v15159_v25, %v10287_v31  ;;  %v15180_v31 = vld [vmem:[%s20603_s5 + $0xa7] ss:$0 sm:$0xff] }
0x2870   : > { %v10247_v60 = vpop.f32.mrf.mxu3 }
0x2871   : > { %v10487_v32 = vpop.f32.mrf.mxu2  ;;  %v10248_v43 = vadd.f32 %v15160_v39, %v10247_v60 }
0x2872   : > { %v10327_v33 = vpop.f32.mrf.mxu0  ;;  %v10488_v19 = vadd.f32 %v15161_v37, %v10487_v32 }
0x2873   : > { %v19606_v34 = vpop.f32.mrf.mxu1  ;;  %v10328_v56 = vadd.f32 %v15162_v47, %v10327_v33 }
0x2874   : > { %v10348_v24 = vadd.f32 %v15163_v14, %v19606_v34 }
0x2878   : > { %v10307_v35 = vpop.f32.mrf.mxu3 }
0x2879   : > { %v10567_v40 = vpop.f32.mrf.mxu2  ;;  %v10308_v57 = vadd.f32 %v15164_v48, %v10307_v35 }
0x287a   : > { %v10387_v38 = vpop.f32.mrf.mxu0  ;;  %v10568_v44 = vadd.f32 %v15165_v7, %v10567_v40 }
0x287b   : > { %v10407_v41 = vpop.f32.mrf.mxu1  ;;  %v10388_v12 = vadd.f32 %v15166_v3, %v10387_v38 }
0x287c   : > { %v10408_v42 = vadd.f32 %v15167_v36, %v10407_v41  ;;  %v15181_v36 = vld [vmem:[%s20603_s5 + $0xa5] ss:$0 sm:$0xff] }
0x287e   : > { %14660 = vmatpush.xpose.msk.msrb.mxu2 %vm1356_vm5, %v10408_v42 }
0x2880   : > { %v10367_v23 = vpop.f32.mrf.mxu3 }
0x2881   : > { %14661 = vmatmul.msk.f32.vlgmr.msrb.gmra.mxu2 %vm1356_vm5, %v10248_v43  ;;  %v10647_v53 = vpop.f32.mrf.mxu2  ;;  %v10368_v11 = vadd.f32 %v15168_v1, %v10367_v23 }
0x2882   : > { %14668 = vmatpush.xpose.msk.msra.mxu2 %vm1356_vm5, %v10488_v19  ;;  %v10447_v46 = vpop.f32.mrf.mxu0  ;;  %v10648_v61 = vadd.f32 %v15169_v51, %v10647_v53 }
0x2883   : > { %v10448_v49 = vadd.f32 %v15170_v21, %v10447_v46  ;;  %v10467_v50 = vpop.f32.mrf.mxu1 }
0x2884   : > { %v10468_v52 = vadd.f32 %v15171_v45, %v10467_v50 }
0x2885   : > { %14664 = vmatpush.xpose.msk.msra.mxu0 %vm1356_vm5, %v10448_v49 }
0x2886   : > { %11032 = vmatpush.msrb.mxu2 %v10568_v44  ;;  %14666 = vmatpush.xpose.msk.msrb.mxu1 %vm1356_vm5, %v10468_v52 }
0x2888   : > { %14665 = vmatmul.msk.f32.vlgmr.msra.gmra.mxu0 %vm1356_vm5, %v10288_v55 }
0x2889   : > { %v10427_v62 = vpop.f32.mrf.mxu3  ;;  %14667 = vmatmul.msk.f32.vlgmr.msrb.gmra.mxu1 %vm1356_vm5, %v10308_v57  ;;  %14669 = vmatmul.msk.f32.vlgmr.msra.gmra.mxu2 %vm1356_vm5, %v10328_v56 }
0x288a   : > { %v10428_v0 = vadd.f32 %v15172_v54, %v10427_v62  ;;  %11124 = vmatpush.msra.mxu2 %v10648_v61 }
0x288b   : > { %v10527_v2 = vpop.f32.mrf.mxu0 }
0x288c   : > { %v10528_v4 = vadd.f32 %v15173_v58, %v10527_v2  ;;  %v10547_v5 = vpop.f32.mrf.mxu1  ;;  %14662 = vmatpush.xpose.msk.msra.mxu3 %vm1356_vm5, %v10428_v0 }
0x288d   : > { %v10548_v9 = vadd.f32 %v15174_v63, %v10547_v5 }
0x288e   : > { %14672 = vmatpush.xpose.msk.msrb.mxu0 %vm1356_vm5, %v10528_v4 }
0x288f   : > { %14674 = vmatpush.xpose.msk.msra.mxu1 %vm1356_vm5, %v10548_v9  ;;  %14663 = vmatmul.msk.f32.vlgmr.msra.gmra.mxu3 %vm1356_vm5, %v10268_v6 }
0x2891   : > { %14673 = vmatmul.msk.f32.vlgmr.msrb.gmra.mxu0 %vm1356_vm5, %v10368_v11 }
0x2892   : > { %v10507_v15 = vpop.f32.mrf.mxu3  ;;  %14675 = vmatmul.msk.f32.vlgmr.msra.gmra.mxu1 %vm1356_vm5, %v10388_v12 }
0x2893   : > { %v10508_v17 = vadd.f32 %v15175_v10, %v10507_v15 }
0x2894   : > { %v10607_v18 = vpop.f32.mrf.mxu0 }
0x2895   : > { %v10608_v20 = vadd.f32 %v15176_v13, %v10607_v18  ;;  %v10627_v22 = vpop.f32.mrf.mxu1  ;;  %14670 = vmatpush.xpose.msk.msrb.mxu3 %vm1356_vm5, %v10508_v17 }
0x2896   : > { %v10628_v26 = vadd.f32 %v15177_v16, %v10627_v22 }
0x2897   : > { %11078 = vmatpush.msra.mxu0 %v10608_v20 }
0x2898   : > { %11101 = vmatpush.msrb.mxu1 %v10628_v26  ;;  %14671 = vmatmul.msk.f32.vlgmr.msrb.gmra.mxu3 %vm1356_vm5, %v10348_v24 }
0x289b   : > { %v10587_v30 = vpop.f32.mrf.mxu3 }
0x289c   : > { %v10588_v60 = vadd.f32 %v15178_v28, %v10587_v30  ;;  %v10687_v32 = vpop.f32.mrf.mxu0 }
0x289d   : > { %v10688_v33 = vadd.f32 %v15179_v29, %v10687_v32  ;;  %v10707_v34 = vpop.f32.mrf.mxu1 }
0x289e   : > { %11055 = vmatpush.msra.mxu3 %v10588_v60  ;;  %v10708_v35 = vadd.f32 %v15180_v31, %v10707_v34 }
0x289f   : > { %11170 = vmatpush.msrb.mxu0 %v10688_v33 }
0x28a0   : > { %11193 = vmatpush.msra.mxu1 %v10708_v35 }
0x28a3   : > { %v10667_v37 = vpop.f32.mrf.mxu3 }
0x28a4   : > { %v10668_v38 = vadd.f32 %v15181_v36, %v10667_v37 }
0x28a6   : > { %11147 = vmatpush.msrb.mxu3 %v10668_v38 }
0x2904   : > { %v10733_v39 = vpop.f32.mrf.mxu2 }
0x2905   : > { %v10918_v40 = vmul.f32 0.5, %v10733_v39  ;;  %v10785_v23 = vpop.f32.mrf.mxu0 }
0x2906   : > { %v10811_v43 = vpop.f32.mrf.mxu1  ;;  %v10920_v47 = vmul.f32 0.5, %v10785_v23 }
0x2907   : > { %v10926_v41 = vsel %vm1584_vm6, %v10918_v40, -inf  ;;  %v10921_v45 = vmul.f32 0.5, %v10811_v43 }
0x2908   : > { %10927 = vmax.xlane.f32.xlu2 %v10926_v41  ;;  %v10932_v50 = vsel %vm1584_vm6, %v10920_v47, -inf }
0x2909   : > { %v10935_v46 = vsel %vm1584_vm6, %v10921_v45, -inf }
0x290c   : > { %v10837_v7 = vpop.f32.mrf.mxu2 }
0x290d   : > { %v10922_v42 = vmul.f32 0.5, %v10837_v7 }
0x290e   : > { %v10889_v52 = vpop.f32.mrf.mxu0 }
0x290f   : > { %v10938_v19 = vsel %vm1584_vm6, %v10922_v42, -inf  ;;  %v10915_v53 = vpop.f32.mrf.mxu1  ;;  %v10924_v54 = vmul.f32 0.5, %v10889_v52 }
0x2910   : > { %10939 = vmax.xlane.f32.xlu1 %v10938_v19  ;;  %v10925_v55 = vmul.f32 0.5, %v10915_v53 }
0x2911   : > { %v10944_v57 = vsel %vm1584_vm6, %v10924_v54, -inf }
0x2912   : > { %v10759_v21 = vpop.f32.mrf.mxu3  ;;  %v10947_v56 = vsel %vm1584_vm6, %v10925_v55, -inf }
0x2913   : > { %v10919_v44 = vmul.f32 0.5, %v10759_v21 }
0x2915   : > { %v10929_v25 = vsel %vm1584_vm6, %v10919_v44, -inf }
0x2916   : > { %10930 = vmax.xlane.f32.xlu0 %v10929_v25 }
0x2918   : > { %10936 = vmax.xlane.f32.xlu1 %v10935_v46 }
0x291b   : > { %v10863_v48 = vpop.f32.mrf.mxu3 }
0x291c   : > { %v10923_v49 = vmul.f32 0.5, %v10863_v48 }
0x291e   : > { %v10941_v51 = vsel %vm1584_vm6, %v10923_v49, -inf  ;;  %10933 = vmax.xlane.f32.xlu0 %v10932_v50 }
0x291f   : > { %10942 = vmax.xlane.f32.xlu2 %v10941_v51 }
0x2926   : > { %10948 = vmax.xlane.f32.xlu0 %v10947_v56 }
0x2927   : > { %10945 = vmax.xlane.f32.xlu2 %v10944_v57 }
0x297b   : > { %v10928_v58 = vpop.xlane.xlu2 %10927 }
0x297c   : > { %v10950_v59 = vsub.f32 %v10918_v40, %v10928_v58 }
0x297e   : > { %v10958_v61 = vmul.f32 1.442695, %v10950_v59 }
0x2980   : > { %15453 = vpow2.f32 %v10958_v61  ;;  %v14684_v61 = vld [vmem:[%s20604_s6 + $0xc0] sm:$0xf] }
0x2983   : > { %v10940_v62 = vpop.xlane.xlu1 %10939 }
0x2984   : > { %v10954_v63 = vsub.f32 %v10922_v42, %v10940_v62  ;;  %v14688_v62 = vld [vmem:[%s20604_s6 + $0xd0] sm:$0xf] }
0x2986   : > { %v15454_v0 = vpop.eup %15453  ;;  %v10966_v1 = vmul.f32 1.442695, %v10954_v63  ;;  %v14687_v63 = vld [vmem:[%s20604_s6 + $0xcc] sm:$0xf] }
0x2987   : > { %v10974_v2 = vsel %vm1584_vm6, %v15454_v0, 0.0 }
0x2988   : > { %15455 = vpow2.f32 %v10966_v1  ;;  %10975 = vadd.xlane.f32.xlu1 %v10974_v2  ;;  %v14686_v1 = vld [vmem:[%s20604_s6 + $0xc8] sm:$0xf]  ;;  %v14689_v2 = vld [vmem:[%s20604_s6 + $0xd4] sm:$0xf] }
0x2989   : > { %v10931_v3 = vpop.xlane.xlu0 %10930 }
0x298a   : > { %v10951_v4 = vsub.f32 %v10919_v44, %v10931_v3  ;;  %v14690_v3 = vld [vmem:[%s20604_s6 + $0xd8] sm:$0xf] }
0x298b   : > { %v10937_v6 = vpop.xlane.xlu1 %10936 }
0x298c   : > { %v10960_v5 = vmul.f32 1.442695, %v10951_v4  ;;  %v10953_v9 = vsub.f32 %v10921_v45, %v10937_v6  ;;  %v14691_v4 = vld [vmem:[%s20604_s6 + $0xdc] sm:$0xf] }
0x298e   : > { %15457 = vpow2.f32 %v10960_v5  ;;  %v15456_v10 = vpop.eup %15455  ;;  %v10964_v11 = vmul.f32 1.442695, %v10953_v9 }
0x298f   : > { %v10986_v12 = vsel %vm1584_vm6, %v15456_v10, 0.0 }
0x2990   : > { %15459 = vpow2.f32 %v10964_v11  ;;  %10987 = vadd.xlane.f32.xlu0 %v10986_v12 }
0x2991   : > { %v10934_v13 = vpop.xlane.xlu0 %10933 }
0x2992   : > { %v10943_v14 = vpop.xlane.xlu2 %10942  ;;  %v10952_v15 = vsub.f32 %v10920_v47, %v10934_v13 }
0x2993   : > { %v10955_v16 = vsub.f32 %v10923_v49, %v10943_v14 }
0x2994   : > { %v15458_v17 = vpop.eup %15457  ;;  %v10962_v18 = vmul.f32 1.442695, %v10952_v15 }
0x2995   : > { %v10968_v20 = vmul.f32 1.442695, %v10955_v16  ;;  %v10977_v22 = vsel %vm1584_vm6, %v15458_v17, 0.0 }
0x2996   : > { %15461 = vpow2.f32 %v10962_v18  ;;  %10978 = vadd.xlane.f32.xlu2 %v10977_v22  ;;  %v15460_v24 = vpop.eup %15459 }
0x2997   : > { %15463 = vpow2.f32 %v10968_v20  ;;  %v10983_v26 = vsel %vm1584_vm6, %v15460_v24, 0.0 }
0x2998   : > { %10984 = vadd.xlane.f32.xlu0 %v10983_v26 }
0x2999   : > { %v10949_v28 = vpop.xlane.xlu0 %10948 }
0x299a   : > { %v10946_v29 = vpop.xlane.xlu2 %10945  ;;  %v10957_v30 = vsub.f32 %v10925_v55, %v10949_v28 }
0x299b   : > { %v10956_v31 = vsub.f32 %v10924_v54, %v10946_v29 }
0x299c   : > { %v15462_v60 = vpop.eup %15461  ;;  %v10972_v32 = vmul.f32 1.442695, %v10957_v30 }
0x299d   : > { %v10970_v33 = vmul.f32 1.442695, %v10956_v31  ;;  %v15464_v34 = vpop.eup %15463  ;;  %v10980_v35 = vsel %vm1584_vm6, %v15462_v60, 0.0 }
0x299e   : > { %15465 = vpow2.f32 %v10972_v32  ;;  %10981 = vadd.xlane.f32.xlu2 %v10980_v35  ;;  %v10989_v36 = vsel %vm1584_vm6, %v15464_v34, 0.0 }
0x299f   : > { %15467 = vpow2.f32 %v10970_v33  ;;  %10990 = vadd.xlane.f32.xlu1 %v10989_v36 }
0x29a4   : > { %v15466_v37 = vpop.eup %15465 }
0x29a5   : > { %v15468_v38 = vpop.eup %15467  ;;  %v10995_v39 = vsel %vm1584_vm6, %v15466_v37, 0.0 }
0x29a6   : > { %10996 = vadd.xlane.f32.xlu2 %v10995_v39  ;;  %v10992_v40 = vsel %vm1584_vm6, %v15468_v38, 0.0 }
0x29a7   : > { %10993 = vadd.xlane.f32.xlu1 %v10992_v40  ;;  %v15182_v40 = vld [vmem:[%s20605_s7 + $0x6] ss:$0 sm:$0xff] }
0x29fb   : > { %v10976_v41 = vpop.xlane.xlu1 %10975 }
0x29fc   : > { %15469 = vrcp.f32 %v10976_v41 }
0x2a02   : > { %v15470_v7 = vpop.eup %15469 }
0x2a03   : > { %v11006_v42 = vmul.f32 %v15470_v7, %v15454_v0  ;;  %v10988_v19 = vpop.xlane.xlu0 %10987  ;;  %v14685_v0 = vld [vmem:[%s20604_s6 + $0xc4] sm:$0xf] }
0x2a04   : > { %15471 = vrcp.f32 %v10988_v19 }
0x2a05   : > { %14676 = vmatmul.msk.f32.vlgmr.msrb.gmra.mxu2 %vm1584_vm6, %v11006_v42 }
0x2a06   : > { %14692 = vmatpush.msk.msrb.mxu2 %vm1868_vm7, %v14684_v61 }
0x2a09   : > { %v10979_v43 = vpop.xlane.xlu2 %10978 }
0x2a0a   : > { %15473 = vrcp.f32 %v10979_v43  ;;  %v15472_v21 = vpop.eup %15471 }
0x2a0b   : > { %v11010_v44 = vmul.f32 %v15472_v21, %v15456_v10  ;;  %v10985_v23 = vpop.xlane.xlu0 %10984 }
0x2a0c   : > { %15475 = vrcp.f32 %v10985_v23 }
0x2a0d   : > { %14680 = vmatmul.msk.f32.vlgmr.msra.gmra.mxu2 %vm1584_vm6, %v11010_v44 }
0x2a0e   : > { %14700 = vmatpush.msk.msra.mxu2 %vm1868_vm7, %v14688_v62 }
0x2a10   : > { %v15474_v45 = vpop.eup %15473 }
0x2a11   : > { %v11007_v25 = vmul.f32 %v15474_v45, %v15458_v17  ;;  %v10982_v46 = vpop.xlane.xlu2 %10981 }
0x2a12   : > { %15477 = vrcp.f32 %v10982_v46  ;;  %v10991_v47 = vpop.xlane.xlu1 %10990  ;;  %v15476_v48 = vpop.eup %15475  ;;  %v14714_v46 = vld [vmem:[%s20608_s10 + $0xd8] sm:$0xff] }
0x2a13   : > { %15479 = vrcp.f32 %v10991_v47  ;;  %14677 = vmatmul.msk.f32.vlgmr.msra.gmra.mxu3 %vm1584_vm6, %v11007_v25  ;;  %v11009_v49 = vmul.f32 %v15476_v48, %v15460_v24  ;;  %v14712_v47 = vld [vmem:[%s20608_s10 + $0xc8] sm:$0xff]  ;;  %v14711_v48 = vld [vmem:[%s20608_s10 + $0xc0] sm:$0xff] }
0x2a14   : > { %14694 = vmatpush.msk.msra.mxu3 %vm1868_vm7, %v14685_v0 }
0x2a15   : > { %14679 = vmatmul.msk.f32.vlgmr.msrb.gmra.mxu1 %vm1584_vm6, %v11009_v49  ;;  %v14732_v49 = vld [vmem:[%s20610_s12 + $0x378] sm:$0xff] }
0x2a16   : > { %14698 = vmatpush.msk.msrb.mxu1 %vm1868_vm7, %v14687_v63  ;;  %v15183_v63 = vld [vmem:[%s20606_s8 + $0x6] ss:$0 sm:$0xff] }
0x2a18   : > { %v15478_v50 = vpop.eup %15477 }
0x2a19   : > { %v15480_v51 = vpop.eup %15479  ;;  %v11008_v52 = vmul.f32 %v15478_v50, %v15462_v60  ;;  %v10997_v53 = vpop.xlane.xlu2 %10996  ;;  %v14731_v50 = vld [vmem:[%s20610_s12 + $0x370] sm:$0xff] }
0x2a1a   : > { %v11011_v54 = vmul.f32 %v15480_v51, %v15464_v34  ;;  %15481 = vrcp.f32 %v10997_v53  ;;  %v10994_v55 = vpop.xlane.xlu1 %10993  ;;  %v14730_v51 = vld [vmem:[%s20610_s12 + $0x368] sm:$0xff] }
0x2a1b   : > { %15483 = vrcp.f32 %v10994_v55  ;;  %14678 = vmatmul.msk.f32.vlgmr.msra.gmra.mxu0 %vm1584_vm6, %v11008_v52 }
0x2a1c   : > { %14681 = vmatmul.msk.f32.vlgmr.msrb.gmra.mxu3 %vm1584_vm6, %v11011_v54  ;;  %14696 = vmatpush.msk.msra.mxu0 %vm1868_vm7, %v14686_v1  ;;  %v14729_v54 = vld [vmem:[%s20610_s12 + $0x360] sm:$0xff] }
0x2a1d   : > { %14702 = vmatpush.msk.msrb.mxu3 %vm1868_vm7, %v14689_v2  ;;  %v15184_v1 = vld [vmem:[%s20607_s9 + $0x6] ss:$0 sm:$0xff] }
0x2a20   : > { %v15482_v56 = vpop.eup %15481 }
0x2a21   : > { %v15484_v57 = vpop.eup %15483  ;;  %v11013_v58 = vmul.f32 %v15482_v56, %v15466_v37 }
0x2a22   : > { %v11012_v59 = vmul.f32 %v15484_v57, %v15468_v38 }
0x2a23   : > { %14683 = vmatmul.msk.f32.vlgmr.msra.gmra.mxu1 %vm1584_vm6, %v11013_v58 }
0x2a24   : > { %14682 = vmatmul.msk.f32.vlgmr.msrb.gmra.mxu0 %vm1584_vm6, %v11012_v59  ;;  %14706 = vmatpush.msk.msra.mxu1 %vm1868_vm7, %v14691_v4 }
0x2a25   : > { %14704 = vmatpush.msk.msrb.mxu0 %vm1868_vm7, %v14690_v3 }
0x2a88   : > { %v11034_v5 = vpop.f32.mrf.mxu2 }
0x2a89   : > { %14693 = vmatmul.msk.f32.vlgmr.msrb.gmra.mxu2 %vm1356_vm5, %v11034_v5  ;;  %v14728_v5 = vld [vmem:[%s20610_s12 + $0x358] sm:$0xff] }
0x2a8a   : > { %11496 = vmatpush.msrb.mxu2 %v14714_v46  ;;  %v14746_v46 = vld [vmem:[%s20627_s0 + $0x1550] sm:$0xff] }
0x2a90   : > { %v11126_v6 = vpop.f32.mrf.mxu2 }
0x2a91   : > { %14701 = vmatmul.msk.f32.vlgmr.msra.gmra.mxu2 %vm1356_vm5, %v11126_v6  ;;  %v14727_v6 = vld [vmem:[%s20610_s12 + $0x350] sm:$0xff] }
0x2a92   : > { %v11103_v9 = vpop.f32.mrf.mxu1 }
0x2a93   : > { %14699 = vmatmul.msk.f32.vlgmr.msrb.gmra.mxu1 %vm1356_vm5, %v11103_v9  ;;  %v14726_v9 = vld [vmem:[%s20610_s12 + $0x348] sm:$0xff] }
0x2a96   : > { %v11057_v10 = vpop.f32.mrf.mxu3 }
0x2a97   : > { %14695 = vmatmul.msk.f32.vlgmr.msra.gmra.mxu3 %vm1356_vm5, %v11057_v10  ;;  %v14725_v10 = vld [vmem:[%s20610_s12 + $0x340] sm:$0xff] }
0x2a98   : > { %v11080_v11 = vpop.f32.mrf.mxu0  ;;  %11535 = vmatpush.msra.mxu3 %v14732_v49  ;;  %v14745_v49 = vld [vmem:[%s20627_s0 + $0x1548] sm:$0xff] }
0x2a99   : > { %14697 = vmatmul.msk.f32.vlgmr.msra.gmra.mxu0 %vm1356_vm5, %v11080_v11  ;;  %v14724_v11 = vld [vmem:[%s20610_s12 + $0x338] sm:$0xff] }
0x2a9a   : > { %11536 = vmatpush.msra.mxu3 %v14731_v50  ;;  %v14785_v50 = vld [vmem:[%s20627_s0 + $0x1688] sm:$0xff] }
0x2a9c   : > { %11537 = vmatpush.msra.mxu3 %v14730_v51  ;;  %v14736_v51 = vld [vmem:[%s20627_s0 + $0x1500] sm:$0xff] }
0x2a9e   : > { %11538 = vmatpush.msra.mxu3 %v14729_v54  ;;  %v14784_v54 = vld [vmem:[%s20627_s0 + $0x1680] sm:$0xff] }
0x2a9f   : > { %v11149_v12 = vpop.f32.mrf.mxu3 }
0x2aa0   : > { %14703 = vmatmul.msk.f32.vlgmr.msrb.gmra.mxu3 %vm1356_vm5, %v11149_v12  ;;  %v11195_v13 = vpop.f32.mrf.mxu1  ;;  %v14723_v12 = vld [vmem:[%s20610_s12 + $0x330] sm:$0xff] }
0x2aa1   : > { %v11172_v14 = vpop.f32.mrf.mxu0  ;;  %14707 = vmatmul.msk.f32.vlgmr.msra.gmra.mxu1 %vm1356_vm5, %v11195_v13  ;;  %11539 = vmatpush.msra.mxu3 %v14728_v5  ;;  %v14722_v13 = vld [vmem:[%s20610_s12 + $0x328] sm:$0xff] }
0x2aa2   : > { %14705 = vmatmul.msk.f32.vlgmr.msrb.gmra.mxu0 %vm1356_vm5, %v11172_v14  ;;  %v14721_v14 = vld [vmem:[%s20610_s12 + $0x320] sm:$0xff]  ;;  %v14801_v5 = vld [vmem:[%s20627_s0 + $0x1708] sm:$0xff] }
0x2aa3   : > { %11540 = vmatpush.msra.mxu3 %v14727_v6  ;;  %v14748_v6 = vld [vmem:[%s20627_s0 + $0x1560] sm:$0xff] }
0x2aa5   : > { %11541 = vmatpush.msra.mxu3 %v14726_v9  ;;  %v14752_v9 = vld [vmem:[%s20627_s0 + $0x1580] sm:$0xff] }
0x2aa7   : > { %11542 = vmatpush.msra.mxu3 %v14725_v10 }
0x2aa9   : > { %11543 = vmatpush.msra.mxu3 %v14724_v11  ;;  %v14756_v11 = vld [vmem:[%s20627_s0 + $0x15a0] sm:$0xff] }
0x2aab   : > { %11544 = vmatpush.msra.mxu3 %v14723_v12  ;;  %v14800_v12 = vld [vmem:[%s20627_s0 + $0x1700] sm:$0xff] }
0x2aad   : > { %11545 = vmatpush.msra.mxu3 %v14722_v13 }
0x2aaf   : > { %11546 = vmatpush.msra.mxu3 %v14721_v14 }
0x2b0c   : > { %v11230_v15 = vpop.f32.mrf.mxu2 }
0x2b0d   : > { %v11415_v18 = vsel %vm643_vm0, %v11230_v15, 0.0  ;;  %v14720_v15 = vld [vmem:[%s20610_s12 + $0x318] sm:$0xff] }
0x2b0e   : > { %11547 = vmatpush.msra.mxu3 %v14720_v15 }
0x2b10   : > { %v11308_v22 = vpop.f32.mrf.mxu1 }
0x2b11   : > { %v11420_v30 = vsel %vm643_vm0, %v11308_v22, 0.0 }
0x2b14   : > { %v11334_v28 = vpop.f32.mrf.mxu2 }
0x2b15   : > { %v11422_v60 = vsel %vm643_vm0, %v11334_v28, 0.0 }
0x2b16   : > { %v11282_v16 = vpop.f32.mrf.mxu0 }
0x2b17   : > { %v11418_v26 = vsel %vm643_vm0, %v11282_v16, 0.0  ;;  %v14719_v16 = vld [vmem:[%s20610_s12 + $0x310] sm:$0xff] }
0x2b18   : > { %11548 = vmatpush.msra.mxu3 %v14719_v16 }
0x2b1a   : > { %v11256_v17 = vpop.f32.mrf.mxu3 }
0x2b1b   : > { %v11416_v20 = vsel %vm643_vm0, %v11256_v17, 0.0  ;;  %v14718_v17 = vld [vmem:[%s20610_s12 + $0x308] sm:$0xff] }
0x2b1c   : > { %v11417_v24 = vadd.f32 %v11416_v20, %v11415_v18  ;;  %v14717_v18 = vld [vmem:[%s20610_s12 + $0x300] sm:$0xff]  ;;  %11549 = vmatpush.msra.mxu3 %v14718_v17 }
0x2b1d   : > { %v15185_v20 = vld [vmem:[%s20609_s11 + $0x6] ss:$0 sm:$0xff] }
0x2b1e   : > { %v11419_v29 = vadd.f32 %v11418_v26, %v11417_v24  ;;  %v11412_v36 = vpop.f32.mrf.mxu1  ;;  %11550 = vmatpush.msra.mxu3 %v14717_v18 }
0x2b1f   : > { %v11386_v33 = vpop.f32.mrf.mxu0  ;;  %v11428_v41 = vsel %vm643_vm0, %v11412_v36, 0.0 }
0x2b20   : > { %v11421_v31 = vadd.f32 %v11420_v30, %v11419_v29  ;;  %v11426_v38 = vsel %vm643_vm0, %v11386_v33, 0.0 }
0x2b22   : > { %v11423_v32 = vadd.f32 %v11422_v60, %v11421_v31 }
0x2b23   : > { %v11360_v34 = vpop.f32.mrf.mxu3 }
0x2b24   : > { %v11424_v35 = vsel %vm643_vm0, %v11360_v34, 0.0 }
0x2b25   : > { %v11425_v37 = vadd.f32 %v11424_v35, %v11423_v32  ;;  %v15186_v35 = vld [vmem:[%s20611_s13 + $0x6] ss:$0 sm:$0xff] }
0x2b27   : > { %v11427_v39 = vadd.f32 %v11426_v38, %v11425_v37 }
0x2b29   : > { %v11429_v7 = vadd.f32 %v11428_v41, %v11427_v39 }
0x2b2b   : > { %v11435_v42 = vadd.f32 %v15182_v40, %v11429_v7 }
0x2b2d   : > { %v11436_v19 = vadd.f32 %v11435_v42, %v19364_v27  ;;  %v14713_v27 = vld [vmem:[%s20608_s10 + $0xd0] sm:$0xff] }
0x2b2e   : > { %11497 = vmatpush.msrb.mxu2 %v14713_v27  ;;  %v14786_v27 = vld [vmem:[%s20627_s0 + $0x1690] sm:$0xff] }
0x2b2f   : > { %v11441_v43 = vsel %vm643_vm0, %v11436_v19, 0.0 }
0x2b30   : > { %11442 = vadd.xlane.f32.xlu0 %v11441_v43  ;;  %11498 = vmatpush.msrb.mxu2 %v14712_v47  ;;  %v14739_v43 = vld [vmem:[%s20627_s0 + $0x1518] sm:$0xff]  ;;  %v14737_v47 = vld [vmem:[%s20627_s0 + $0x1508] sm:$0xff] }
0x2b31   : > { %11799 = vmatpush.msra.mxu0 %v14739_v43  ;;  %v14775_v43 = vld [vmem:[%s20627_s0 + $0x1638] sm:$0xff] }
0x2b32   : > { %11499 = vmatpush.msrb.mxu2 %v14711_v48  ;;  %v14741_v48 = vld [vmem:[%s20627_s0 + $0x1528] sm:$0xff] }
0x2ba3   : > { %v11443_v21 = vpop.xlane.xlu0 %11442 }
0x2ba4   : > { %v11444_v44 = vmul.f32 %v11443_v21, %v15667_v8  ;;  %v14743_v21 = vld [vmem:[%s20627_s0 + $0x1538] sm:$0xff] }
0x2ba5   : > { %11819 = vmatpush.msrb.mxu1 %v14743_v21  ;;  %v14779_v21 = vld [vmem:[%s20627_s0 + $0x1658] sm:$0xff] }
0x2ba6   : > { %v11445_v23 = vsub.f32 %v11436_v19, %v11444_v44  ;;  %v14747_v44 = vld [vmem:[%s20627_s0 + $0x1558] sm:$0xff] }
0x2ba7   : > { %11839 = vmatpush.msra.mxu2 %v14747_v44  ;;  %v14783_v44 = vld [vmem:[%s20627_s0 + $0x1678] sm:$0xff] }
0x2ba8   : > { %v11446_v45 = vmul.f32 %v11445_v23, %v11445_v23 }
0x2ba9   : > { %11840 = vmatpush.msra.mxu2 %v14746_v46  ;;  %v14773_v46 = vld [vmem:[%s20627_s0 + $0x1628] sm:$0xff] }
0x2baa   : > { %v11447_v25 = vsel %vm643_vm0, %v11446_v45, 0.0  ;;  %v14738_v45 = vld [vmem:[%s20627_s0 + $0x1510] sm:$0xff] }
0x2bab   : > { %11448 = vadd.xlane.f32.xlu1 %v11447_v25  ;;  %v14742_v25 = vld [vmem:[%s20627_s0 + $0x1530] sm:$0xff]  ;;  %11800 = vmatpush.msra.mxu0 %v14738_v45 }
0x2bac   : > { %11820 = vmatpush.msrb.mxu1 %v14742_v25  ;;  %11841 = vmatpush.msra.mxu2 %v14745_v49  ;;  %v14778_v45 = vld [vmem:[%s20627_s0 + $0x1650] sm:$0xff]  ;;  %v14776_v49 = vld [vmem:[%s20627_s0 + $0x1640] sm:$0xff] }
0x2bad   : > { %11801 = vmatpush.msra.mxu0 %v14737_v47  ;;  %v14782_v25 = vld [vmem:[%s20627_s0 + $0x1670] sm:$0xff]  ;;  %v14781_v47 = vld [vmem:[%s20627_s0 + $0x1668] sm:$0xff] }
0x2bae   : > { %11821 = vmatpush.msrb.mxu1 %v14741_v48  ;;  %v14772_v48 = vld [vmem:[%s20627_s0 + $0x1620] sm:$0xff] }
0x2baf   : > { %11802 = vmatpush.msra.mxu0 %v14736_v51  ;;  %v14791_v51 = vld [vmem:[%s20627_s0 + $0x16b8] sm:$0xff] }
0x2c1e   : > { %v11449_v52 = vpop.xlane.xlu1 %11448 }
0x2c1f   : > { %v11450_v53 = vmul.f32 %v11449_v52, %v15667_v8  ;;  %v14740_v52 = vld [vmem:[%s20627_s0 + $0x1520] sm:$0xff] }
0x2c20   : > { %11822 = vmatpush.msrb.mxu1 %v14740_v52  ;;  %v14795_v52 = vld [vmem:[%s20627_s0 + $0x16d8] sm:$0xff] }
0x2c21   : > { %v11451_v55 = vadd.f32 1e-05, %v11450_v53  ;;  %v14744_v53 = vld [vmem:[%s20627_s0 + $0x1540] sm:$0xff] }
0x2c22   : > { %11842 = vmatpush.msra.mxu2 %v14744_v53  ;;  %v14799_v53 = vld [vmem:[%s20627_s0 + $0x16f8] sm:$0xff] }
0x2c23   : > { %15485 = vrsqrt.f32 %v11451_v55  ;;  %vm11458_vm9 = vweird.f32 %v11451_v55 }
0x2c29   : > { %v15486_v56 = vpop.eup %15485 }
0x2c2a   : > { %v11453_v57 = vmul.f32 %v15486_v56, %v11451_v55  ;;  %vm11459_vm8 = vweird.f32 %v15486_v56  ;;  %v14751_v55 = vld [vmem:[%s20627_s0 + $0x1578] sm:$0xff] }
0x2c2b   : > { %vm11460_vm10 = vmor %vm11458_vm9, %vm11459_vm8  ;;  %11859 = vmatpush.msrb.mxu0 %v14751_v55  ;;  %v14794_v55 = vld [vmem:[%s20627_s0 + $0x16d0] sm:$0xff] }
0x2c2c   : > { %v11454_v58 = vmul.f32 %v15486_v56, %v11453_v57  ;;  %v14759_v57 = vld [vmem:[%s20627_s0 + $0x15b8] sm:$0xff] }
0x2c2e   : > { %v11455_v59 = vmul.f32 0.5, %v11454_v58  ;;  %v14803_v58 = vld [vmem:[%s20627_s0 + $0x1718] sm:$0xff] }
0x2c30   : > { %v11456_v61 = vsub.f32 1.5, %v11455_v59  ;;  %v14750_v59 = vld [vmem:[%s20627_s0 + $0x1570] sm:$0xff] }
0x2c31   : > { %11860 = vmatpush.msrb.mxu0 %v14750_v59  ;;  %v14797_v59 = vld [vmem:[%s20627_s0 + $0x16e8] sm:$0xff] }
0x2c32   : > { %v11457_v62 = vmul.f32 %v15486_v56, %v11456_v61  ;;  %v14754_v61 = vld [vmem:[%s20627_s0 + $0x1590] sm:$0xff] }
0x2c34   : > { %v11461_v0 = vsel %vm11460_vm10, %v15486_v56, %v11457_v62  ;;  %v14755_v56 = vld [vmem:[%s20627_s0 + $0x1598] sm:$0xff] }
0x2c35   : > { %v11462_v2 = vmul.f32 %v11461_v0, %v11445_v23  ;;  %v14787_v23 = vld [vmem:[%s20627_s0 + $0x1698] sm:$0xff]  ;;  %11879 = vmatpush.msra.mxu1 %v14755_v56  ;;  %v14802_v0 = vld [vmem:[%s20627_s0 + $0x1710] sm:$0xff] }
0x2c36   : > { %12039 = vmatpush.msrb.mxu3 %v14787_v23  ;;  %v14774_v23 = vld [vmem:[%s20627_s0 + $0x1630] sm:$0xff] }
0x2c37   : > { %v11466_v3 = vmul.f32 %v15183_v63, %v11462_v2  ;;  %v14758_v63 = vld [vmem:[%s20627_s0 + $0x15b0] sm:$0xff]  ;;  %11880 = vmatpush.msra.mxu1 %v14754_v61  ;;  %v14788_v61 = vld [vmem:[%s20627_s0 + $0x16a0] sm:$0xff] }
0x2c38   : > { %12040 = vmatpush.msrb.mxu3 %v14786_v27  ;;  %v14777_v27 = vld [vmem:[%s20627_s0 + $0x1648] sm:$0xff]  ;;  %v14798_v56 = vld [vmem:[%s20627_s0 + $0x16f0] sm:$0xff] }
0x2c39   : > { %v11470_v4 = vadd.f32 %v15184_v1, %v11466_v3  ;;  %v14749_v1 = vld [vmem:[%s20627_s0 + $0x1568] sm:$0xff] }
0x2c3a   : > { %12041 = vmatpush.msrb.mxu3 %v14785_v50  ;;  %v14753_v3 = vld [vmem:[%s20627_s0 + $0x1588] sm:$0xff]  ;;  %11861 = vmatpush.msrb.mxu0 %v14749_v1  ;;  %v14780_v50 = vld [vmem:[%s20627_s0 + $0x1660] sm:$0xff]  ;;  %v14811_v1 = vld [vmem:[%s20627_s0 + $0x1758] sm:$0xff] }
0x2c3b   : > { %14716 = vmatmul.msk.f32.vlgmr.msrb.gmra.mxu2 %vm643_vm0, %v11470_v4  ;;  %11881 = vmatpush.msra.mxu1 %v14753_v3  ;;  %v14806_v3 = vld [vmem:[%s20627_s0 + $0x1730] sm:$0xff] }
0x2c3c   : > { %12042 = vmatpush.msrb.mxu3 %v14784_v54  ;;  %11899 = vmatpush.msrb.mxu2 %v14759_v57  ;;  %v14790_v54 = vld [vmem:[%s20627_s0 + $0x16b0] sm:$0xff]  ;;  %v14789_v57 = vld [vmem:[%s20627_s0 + $0x16a8] sm:$0xff] }
0x2c3d   : > { %11862 = vmatpush.msrb.mxu0 %v14748_v6  ;;  %11882 = vmatpush.msra.mxu1 %v14752_v9  ;;  %v14805_v6 = vld [vmem:[%s20627_s0 + $0x1728] sm:$0xff] }
0x2c3e   : > { %11900 = vmatpush.msrb.mxu2 %v14758_v63  ;;  %v14807_v63 = vld [vmem:[%s20627_s0 + $0x1738] sm:$0xff]  ;;  %v14809_v9 = vld [vmem:[%s20627_s0 + $0x1748] sm:$0xff] }
0x2cbe   : > { %v11501_v22 = vpop.f32.mrf.mxu2 }
0x2cbf   : > { %v11502_v24 = vadd.f32 %v15185_v20, %v11501_v22  ;;  %v15187_v20 = vld [vmem:[%s20612_s14 + $0x6] ss:$0 sm:$0xff] }
0x2cc1   : > { %v11505_v26 = vmul.f32 0.044715, %v11502_v24  ;;  %v11504_v32 = vmul.f32 0.5, %v11502_v24 }
0x2cc3   : > { %v11506_v28 = vmul.f32 %v11505_v26, %v11502_v24 }
0x2cc5   : > { %v11507_v29 = vmul.f32 %v11506_v28, %v11502_v24 }
0x2cc7   : > { %v11508_v30 = vadd.f32 %v11507_v29, %v11502_v24  ;;  %v15188_v24 = vld [vmem:[%s20613_s15 + $0x6] ss:$0 sm:$0xff] }
0x2cc9   : > { %v11509_v31 = vmul.f32 0.7978846, %v11508_v30  ;;  %v14763_v30 = vld [vmem:[%s20627_s0 + $0x15d8] sm:$0xff] }
0x2ccb   : > { %15487 = vtanh.f32 %v11509_v31  ;;  %v14767_v31 = vld [vmem:[%s20627_s0 + $0x15f8] sm:$0xff] }
0x2cd1   : > { %v15488_v60 = vpop.eup %15487 }
0x2cd2   : > { %v11511_v33 = vadd.f32 1.0, %v15488_v60  ;;  %v14771_v60 = vld [vmem:[%s20627_s0 + $0x1618] sm:$0xff] }
0x2cd4   : > { %v11512_v34 = vmul.f32 %v11511_v33, %v11504_v32  ;;  %v14819_v32 = vld [vmem:[%s20627_s0 + $0x1798] sm:$0xff]  ;;  %v14762_v33 = vld [vmem:[%s20627_s0 + $0x15d0] sm:$0xff] }
0x2cd6   : > { %11551 = vmatmul.f32.vlgmr.msra.gmra.mxu3 %v11512_v34  ;;  %v14766_v34 = vld [vmem:[%s20627_s0 + $0x15f0] sm:$0xff] }
0x2cd7   : > { %12119 = vmatpush.msra.mxu3 %v14803_v58  ;;  %v14793_v58 = vld [vmem:[%s20627_s0 + $0x16c8] sm:$0xff] }
0x2cd9   : > { %12120 = vmatpush.msra.mxu3 %v14802_v0  ;;  %v14796_v0 = vld [vmem:[%s20627_s0 + $0x16e0] sm:$0xff] }
0x2cdb   : > { %12121 = vmatpush.msra.mxu3 %v14801_v5  ;;  %v14814_v5 = vld [vmem:[%s20627_s0 + $0x1770] sm:$0xff] }
0x2cdd   : > { %12122 = vmatpush.msra.mxu3 %v14800_v12  ;;  %v14808_v12 = vld [vmem:[%s20627_s0 + $0x1740] sm:$0xff] }
0x2d59   : > { %v11552_v36 = vpop.f32.mrf.mxu3 }
0x2d5a   : > { %v11553_v37 = vadd.f32 %v15186_v35, %v11552_v36  ;;  %v14770_v35 = vld [vmem:[%s20627_s0 + $0x1610] sm:$0xff] }
0x2d5b   : > { %v14818_v36 = vld [vmem:[%s20627_s0 + $0x1790] sm:$0xff] }
0x2d5c   : > { %v11555_v38 = vadd.f32 %v11553_v37, %v11470_v4  ;;  %v14757_v4 = vld [vmem:[%s20627_s0 + $0x15a8] sm:$0xff] }
0x2d5d   : > { %11901 = vmatpush.msrb.mxu2 %v14757_v4  ;;  %v14761_v37 = vld [vmem:[%s20627_s0 + $0x15c8] sm:$0xff]  ;;  %v14810_v4 = vld [vmem:[%s20627_s0 + $0x1750] sm:$0xff] }
0x2d5e   : > { %v11560_v39 = vsel %vm643_vm0, %v11555_v38, 0.0 }
0x2d5f   : > { %11561 = vadd.xlane.f32.xlu2 %v11560_v39  ;;  %11902 = vmatpush.msrb.mxu2 %v14756_v11  ;;  %v14769_v39 = vld [vmem:[%s20627_s0 + $0x1608] sm:$0xff]  ;;  %v14804_v11 = vld [vmem:[%s20627_s0 + $0x1720] sm:$0xff] }
0x2dd2   : > { %v11562_v40 = vpop.xlane.xlu2 %11561 }
0x2dd3   : > { %v11563_v41 = vmul.f32 %v11562_v40, %v15667_v8  ;;  %v14817_v40 = vld [vmem:[%s20627_s0 + $0x1788] sm:$0xff] }
0x2dd5   : > { %v19852_v7 = vsub.f32 %v11555_v38, %v11563_v41  ;;  %v14765_v38 = vld [vmem:[%s20627_s0 + $0x15e8] sm:$0xff]  ;;  %v14760_v41 = vld [vmem:[%s20627_s0 + $0x15c0] sm:$0xff] }
0x2dd7   : > { %v11565_v42 = vmul.f32 %v19852_v7, %v19852_v7 }
0x2dd9   : > { %v11566_v19 = vsel %vm643_vm0, %v11565_v42, 0.0  ;;  %v14768_v42 = vld [vmem:[%s20627_s0 + $0x1600] sm:$0xff] }
0x2dda   : > { %11567 = vadd.xlane.f32.xlu0 %v11566_v19  ;;  %v14816_v19 = vld [vmem:[%s20627_s0 + $0x1780] sm:$0xff] }
0x2e4d   : > { %v11568_v62 = vpop.xlane.xlu0 %11567 }
0x2e4e   : > { %v11569_v2 = vmul.f32 %v11568_v62, %v15667_v8  ;;  %v14792_v62 = vld [vmem:[%s20627_s0 + $0x16c0] sm:$0xff] }
0x2e50   : > { %v11570_v10 = vadd.f32 1e-05, %v11569_v2  ;;  %v14815_v2 = vld [vmem:[%s20627_s0 + $0x1778] sm:$0xff] }
0x2e52   : > { %15489 = vrsqrt.f32 %v11570_v10  ;;  %vm11577_vm12 = vweird.f32 %v11570_v10 }
0x2e58   : > { %v15490_v13 = vpop.eup %15489 }
0x2e59   : > { %v11572_v14 = vmul.f32 %v15490_v13, %v11570_v10  ;;  %vm11578_vm11 = vweird.f32 %v15490_v13  ;;  %v14813_v10 = vld [vmem:[%s20627_s0 + $0x1768] sm:$0xff] }
0x2e5a   : > { %vm11579_vm13 = vmor %vm11577_vm12, %vm11578_vm11 }
0x2e5b   : > { %v11573_v15 = vmul.f32 %v15490_v13, %v11572_v14  ;;  %v14812_v14 = vld [vmem:[%s20627_s0 + $0x1760] sm:$0xff] }
0x2e5d   : > { %v11574_v16 = vmul.f32 0.5, %v11573_v15  ;;  %v14827_v15 = vld [vmem:[%s20627_s0 + $0x17d8] sm:$0xff] }
0x2e5f   : > { %v11575_v17 = vsub.f32 1.5, %v11574_v16  ;;  %v14831_v16 = vld [vmem:[%s20627_s0 + $0x17f8] sm:$0xff] }
0x2e61   : > { %v11576_v18 = vmul.f32 %v15490_v13, %v11575_v17  ;;  %v14822_v17 = vld [vmem:[%s20627_s0 + $0x17b0] sm:$0xff] }
0x2e63   : > { %v11580_v22 = vsel %vm11579_vm13, %v15490_v13, %v11576_v18  ;;  %v14823_v13 = vld [vmem:[%s20627_s0 + $0x17b8] sm:$0xff]  ;;  %v14826_v18 = vld [vmem:[%s20627_s0 + $0x17d0] sm:$0xff] }
0x2e64   : > { %v11581_v26 = vmul.f32 %v11580_v22, %v19852_v7  ;;  %v14764_v7 = vld [vmem:[%s20627_s0 + $0x15e0] sm:$0xff]  ;;  %v14821_v22 = vld [vmem:[%s20627_s0 + $0x17a8] sm:$0xff] }
0x2e66   : > { %v11585_v28 = vmul.f32 %v15187_v20, %v11581_v26  ;;  %v14830_v20 = vld [vmem:[%s20627_s0 + $0x17f0] sm:$0xff]  ;;  %v14829_v26 = vld [vmem:[%s20627_s0 + $0x17e8] sm:$0xff] }
0x2e68   : > { %v19961_v29 = vadd.f32 %v15188_v24, %v11585_v28  ;;  %v14825_v24 = vld [vmem:[%s20627_s0 + $0x17c8] sm:$0xff]  ;;  %v14820_v28 = vld [vmem:[%s20627_s0 + $0x17a0] sm:$0xff] }
0x2e6a   : > { %14856 = vmatmul.msk.f32.vlgmr.msra.gmra.mxu0 %vm643_vm0, %v19961_v29  ;;  %14857 = vmatmul.msk.f32.vlgmr.msrb.gmra.mxu1 %vm643_vm0, %v19961_v29 }
0x2e6b   : > { %14858 = vmatmul.msk.f32.vlgmr.msra.gmra.mxu2 %vm643_vm0, %v19961_v29  ;;  %14868 = vmatmul.msk.f32.vlgmr.msrb.gmra.mxu3 %vm643_vm0, %v19961_v29 }
0x2e6c   : > { %11919 = vmatpush.msra.mxu0 %v14763_v30  ;;  %11939 = vmatpush.msrb.mxu1 %v14767_v31  ;;  %v14824_v30 = vld [vmem:[%s20627_s0 + $0x17c0] sm:$0xff] }
0x2e6d   : > { %11959 = vmatpush.msra.mxu2 %v14771_v60  ;;  %12199 = vmatpush.msrb.mxu3 %v14819_v32  ;;  %v14828_v31 = vld [vmem:[%s20627_s0 + $0x17e0] sm:$0xff] }
0x2e6e   : > { %11920 = vmatpush.msra.mxu0 %v14762_v33  ;;  %11940 = vmatpush.msrb.mxu1 %v14766_v34 }
0x2e6f   : > { %11960 = vmatpush.msra.mxu2 %v14770_v35  ;;  %12200 = vmatpush.msrb.mxu3 %v14818_v36 }
0x2e70   : > { %11921 = vmatpush.msra.mxu0 %v14761_v37  ;;  %11941 = vmatpush.msrb.mxu1 %v14765_v38 }
0x2e71   : > { %11961 = vmatpush.msra.mxu2 %v14769_v39  ;;  %12201 = vmatpush.msrb.mxu3 %v14817_v40  ;;  %v15199_v40 = vld [vmem:[%s20603_s5 + $0xb0] ss:$0 sm:$0xff] }
0x2e72   : > { %14859 = vmatmul.msk.f32.vlgmr.msrb.gmra.mxu0 %vm643_vm0, %v19961_v29  ;;  %14860 = vmatmul.msk.f32.vlgmr.msra.gmra.mxu1 %vm643_vm0, %v19961_v29 }
0x2e73   : > { %14861 = vmatmul.msk.f32.vlgmr.msrb.gmra.mxu2 %vm643_vm0, %v19961_v29  ;;  %14872 = vmatmul.msk.f32.vlgmr.msra.gmra.mxu3 %vm643_vm0, %v19961_v29 }
0x2e74   : > { %11922 = vmatpush.msra.mxu0 %v14760_v41  ;;  %11942 = vmatpush.msrb.mxu1 %v14764_v7  ;;  %v15192_v41 = vld [vmem:[%s20603_s5 + $0xb4] ss:$0 sm:$0xff]  ;;  %v15201_v7 = vld [vmem:[%s20603_s5 + $0xb1] ss:$0 sm:$0xff] }
0x2e75   : > { %11962 = vmatpush.msra.mxu2 %v14768_v42  ;;  %12202 = vmatpush.msrb.mxu3 %v14816_v19  ;;  %v15202_v42 = vld [vmem:[%s20603_s5 + $0xb2] ss:$0 sm:$0xff]  ;;  %v15189_v19 = vld [vmem:[%s20603_s5 + $0xa8] ss:$0 sm:$0xff] }
0x2e76   : > { %11979 = vmatpush.msrb.mxu0 %v14775_v43  ;;  %11999 = vmatpush.msra.mxu1 %v14779_v21 }
0x2e77   : > { %12019 = vmatpush.msrb.mxu2 %v14783_v44  ;;  %v15190_v44 = vld [vmem:[%s20603_s5 + $0xa9] ss:$0 sm:$0xff] }
0x2e78   : > { %11980 = vmatpush.msrb.mxu0 %v14774_v23  ;;  %12000 = vmatpush.msra.mxu1 %v14778_v45  ;;  %v15196_v23 = vld [vmem:[%s20603_s5 + $0xb8] ss:$0 sm:$0xff] }
0x2e79   : > { %12020 = vmatpush.msrb.mxu2 %v14782_v25 }
0x2e7a   : > { %14862 = vmatmul.msk.f32.vlgmr.msra.gmra.mxu0 %vm643_vm0, %v19961_v29  ;;  %14863 = vmatmul.msk.f32.vlgmr.msrb.gmra.mxu1 %vm643_vm0, %v19961_v29 }
0x2e7b   : > { %14864 = vmatmul.msk.f32.vlgmr.msra.gmra.mxu2 %vm643_vm0, %v19961_v29  ;;  %14876 = vmatmul.msk.f32.vlgmr.msrb.gmra.mxu3 %vm643_vm0, %v19961_v29 }
0x2e7c   : > { %11981 = vmatpush.msrb.mxu0 %v14773_v46  ;;  %12001 = vmatpush.msra.mxu1 %v14777_v27  ;;  %v15191_v27 = vld [vmem:[%s20603_s5 + $0xaa] ss:$0 sm:$0xff] }
0x2e7d   : > { %12021 = vmatpush.msrb.mxu2 %v14781_v47 }
0x2e7e   : > { %11982 = vmatpush.msrb.mxu0 %v14772_v48  ;;  %12002 = vmatpush.msra.mxu1 %v14776_v49 }
0x2e7f   : > { %12022 = vmatpush.msrb.mxu2 %v14780_v50 }
0x2e80   : > { %12059 = vmatpush.msra.mxu0 %v14791_v51  ;;  %12079 = vmatpush.msrb.mxu1 %v14795_v52 }
0x2e81   : > { %12099 = vmatpush.msra.mxu2 %v14799_v53  ;;  %v15203_v53 = vld [vmem:[%s20603_s5 + $0xb3] ss:$0 sm:$0xff] }
0x2e82   : > { %12060 = vmatpush.msra.mxu0 %v14790_v54  ;;  %14866 = vmatmul.msk.f32.vlgmr.msra.gmra.mxu1 %vm643_vm0, %v19961_v29 }
0x2e83   : > { %14865 = vmatmul.msk.f32.vlgmr.msrb.gmra.mxu0 %vm643_vm0, %v19961_v29  ;;  %14867 = vmatmul.msk.f32.vlgmr.msrb.gmra.mxu2 %vm643_vm0, %v19961_v29 }
0x2e84   : > { %12080 = vmatpush.msrb.mxu1 %v14794_v55  ;;  %12100 = vmatpush.msra.mxu2 %v14798_v56  ;;  %v15204_v55 = vld [vmem:[%s20603_s5 + $0xb5] ss:$0 sm:$0xff]  ;;  %v15205_v56 = vld [vmem:[%s20603_s5 + $0xb6] ss:$0 sm:$0xff] }
0x2e85   : > { %12061 = vmatpush.msra.mxu0 %v14789_v57  ;;  %v15193_v57 = vld [vmem:[%s20603_s5 + $0xab] ss:$0 sm:$0xff] }
0x2e86   : > { %12081 = vmatpush.msrb.mxu1 %v14793_v58  ;;  %12101 = vmatpush.msra.mxu2 %v14797_v59  ;;  %v15194_v58 = vld [vmem:[%s20603_s5 + $0xac] ss:$0 sm:$0xff] }
0x2e87   : > { %12062 = vmatpush.msra.mxu0 %v14788_v61  ;;  %v15195_v61 = vld [vmem:[%s20603_s5 + $0xad] ss:$0 sm:$0xff] }
0x2e88   : > { %12082 = vmatpush.msrb.mxu1 %v14792_v62  ;;  %12102 = vmatpush.msra.mxu2 %v14796_v0  ;;  %v15200_v62 = vld [vmem:[%s20603_s5 + $0xbc] ss:$0 sm:$0xff] }
0x2e89   : > { %12139 = vmatpush.msrb.mxu0 %v14807_v63 }
0x2e8a   : > { %12159 = vmatpush.msra.mxu1 %v14811_v1  ;;  %12179 = vmatpush.msrb.mxu2 %v14815_v2  ;;  %v15197_v2 = vld [vmem:[%s20603_s5 + $0xae] ss:$0 sm:$0xff] }
0x2e8b   : > { %12140 = vmatpush.msrb.mxu0 %v14806_v3  ;;  %14870 = vmatmul.msk.f32.vlgmr.msrb.gmra.mxu1 %vm643_vm0, %v19961_v29 }
0x2e8c   : > { %14869 = vmatmul.msk.f32.vlgmr.msra.gmra.mxu0 %vm643_vm0, %v19961_v29  ;;  %14871 = vmatmul.msk.f32.vlgmr.msra.gmra.mxu2 %vm643_vm0, %v19961_v29 }
0x2e8d   : > { %12160 = vmatpush.msra.mxu1 %v14810_v4  ;;  %12180 = vmatpush.msrb.mxu2 %v14814_v5 }
0x2e8e   : > { %12141 = vmatpush.msrb.mxu0 %v14805_v6 }
0x2e8f   : > { %12161 = vmatpush.msra.mxu1 %v14809_v9  ;;  %12181 = vmatpush.msrb.mxu2 %v14813_v10 }
0x2e90   : > { %12142 = vmatpush.msrb.mxu0 %v14804_v11 }
0x2e91   : > { %12162 = vmatpush.msra.mxu1 %v14808_v12  ;;  %12182 = vmatpush.msrb.mxu2 %v14812_v14  ;;  %v15206_v12 = vld [vmem:[%s20603_s5 + $0xb7] ss:$0 sm:$0xff]  ;;  %v15207_v14 = vld [vmem:[%s20603_s5 + $0xb9] ss:$0 sm:$0xff] }
0x2e92   : > { %12219 = vmatpush.msra.mxu0 %v14823_v13 }
0x2e93   : > { %12239 = vmatpush.msrb.mxu1 %v14827_v15  ;;  %12259 = vmatpush.msra.mxu2 %v14831_v16  ;;  %v15208_v15 = vld [vmem:[%s20603_s5 + $0xba] ss:$0 sm:$0xff]  ;;  %v15198_v16 = vld [vmem:[%s20603_s5 + $0xaf] ss:$0 sm:$0xff] }
0x2e94   : > { %12220 = vmatpush.msra.mxu0 %v14822_v17  ;;  %14874 = vmatmul.msk.f32.vlgmr.msra.gmra.mxu1 %vm643_vm0, %v19961_v29 }
0x2e95   : > { %14873 = vmatmul.msk.f32.vlgmr.msrb.gmra.mxu0 %vm643_vm0, %v19961_v29  ;;  %14875 = vmatmul.msk.f32.vlgmr.msrb.gmra.mxu2 %vm643_vm0, %v19961_v29 }
0x2e96   : > { %12240 = vmatpush.msrb.mxu1 %v14826_v18  ;;  %12260 = vmatpush.msra.mxu2 %v14830_v20 }
0x2e97   : > { %12221 = vmatpush.msra.mxu0 %v14821_v22 }
0x2e98   : > { %12241 = vmatpush.msrb.mxu1 %v14825_v24  ;;  %12261 = vmatpush.msra.mxu2 %v14829_v26 }
0x2e99   : > { %12222 = vmatpush.msra.mxu0 %v14820_v28 }
0x2e9a   : > { %12242 = vmatpush.msrb.mxu1 %v14824_v30  ;;  %12262 = vmatpush.msra.mxu2 %v14828_v31  ;;  %v15209_v30 = vld [vmem:[%s20603_s5 + $0xbb] ss:$0 sm:$0xff]  ;;  %v15210_v31 = vld [vmem:[%s20603_s5 + $0xbd] ss:$0 sm:$0xff] }
0x2e9c   : > { %14878 = vmatmul.msk.f32.vlgmr.msrb.gmra.mxu1 %vm643_vm0, %v19961_v29 }
0x2e9d   : > { %14877 = vmatmul.msk.f32.vlgmr.msra.gmra.mxu0 %vm643_vm0, %v19961_v29  ;;  %14879 = vmatmul.msk.f32.vlgmr.msra.gmra.mxu2 %vm643_vm0, %v19961_v29 }
0x2ee7   : > { %v11804_v60 = vpop.f32.mrf.mxu0  ;;  %v11824_v32 = vpop.f32.mrf.mxu1 }
0x2ee8   : > { %v11805_v50 = vadd.f32 %v15189_v19, %v11804_v60  ;;  %v11825_v51 = vadd.f32 %v15190_v44, %v11824_v32  ;;  %v15211_v60 = vld [vmem:[%s20603_s5 + $0xbe] ss:$0 sm:$0xff] }
0x2eee   : > { %v11844_v33 = vpop.f32.mrf.mxu2  ;;  %v12044_v36 = vpop.f32.mrf.mxu3 }
0x2eef   : > { %v11864_v34 = vpop.f32.mrf.mxu0  ;;  %v11884_v35 = vpop.f32.mrf.mxu1  ;;  %v12045_v47 = vadd.f32 %v15192_v41, %v12044_v36  ;;  %v11845_v54 = vadd.f32 %v15191_v27, %v11844_v33 }
0x2ef0   : > { %v11865_v6 = vadd.f32 %v15193_v57, %v11864_v34  ;;  %v11885_v9 = vadd.f32 %v15194_v58, %v11884_v35 }
0x2ef6   : > { %v11904_v37 = vpop.f32.mrf.mxu2  ;;  %v12124_v43 = vpop.f32.mrf.mxu3 }
0x2ef7   : > { %v11924_v38 = vpop.f32.mrf.mxu0  ;;  %v20203_v39 = vpop.f32.mrf.mxu1  ;;  %v12125_v52 = vadd.f32 %v15196_v23, %v12124_v43  ;;  %v11905_v10 = vadd.f32 %v15195_v61, %v11904_v37 }
0x2ef8   : > { %v11925_v13 = vadd.f32 %v15197_v2, %v11924_v38  ;;  %v11945_v28 = vadd.f32 %v15198_v16, %v20203_v39  ;;  %v15212_v38 = vld [vmem:[%s20603_s5 + $0xbf] ss:$0 sm:$0xff] }
0x2efe   : > { %v11964_v21 = vpop.f32.mrf.mxu2  ;;  %v12204_v3 = vpop.f32.mrf.mxu3 }
0x2eff   : > { %v11965_v45 = vadd.f32 %v15199_v40, %v11964_v21  ;;  %v12004_v46 = vpop.f32.mrf.mxu1  ;;  %v12205_v11 = vadd.f32 %v15200_v62, %v12204_v3 }
0x2f00   : > { %v11984_v25 = vpop.f32.mrf.mxu0  ;;  %v12005_v49 = vadd.f32 %v15202_v42, %v12004_v46 }
0x2f01   : > { %v11985_v48 = vadd.f32 %v15201_v7, %v11984_v25  ;;  %14880 = vmatpush.xpose.msk.msra.mxu3 %vm1356_vm5, %v11965_v45 }
0x2f02   : > { %14884 = vmatpush.xpose.msk.msra.mxu1 %vm1356_vm5, %v12005_v49 }
0x2f03   : > { %14882 = vmatpush.xpose.msk.msrb.mxu0 %vm1356_vm5, %v11985_v48 }
0x2f04   : > { %14881 = vmatmul.msk.f32.vlgmr.msra.gmra.mxu3 %vm1356_vm5, %v11805_v50 }
0x2f05   : > { %14888 = vmatpush.xpose.msk.msrb.mxu3 %vm1356_vm5, %v12045_v47  ;;  %14885 = vmatmul.msk.f32.vlgmr.msra.gmra.mxu1 %vm1356_vm5, %v11845_v54 }
0x2f06   : > { %14883 = vmatmul.msk.f32.vlgmr.msrb.gmra.mxu0 %vm1356_vm5, %v11825_v51  ;;  %v12024_v59 = vpop.f32.mrf.mxu2 }
0x2f07   : > { %v12025_v63 = vadd.f32 %v15203_v53, %v12024_v59 }
0x2f08   : > { %v12084_v1 = vpop.f32.mrf.mxu1 }
0x2f09   : > { %12589 = vmatpush.msra.mxu3 %v12125_v52  ;;  %v12064_v0 = vpop.f32.mrf.mxu0  ;;  %v12085_v5 = vadd.f32 %v15205_v56, %v12084_v1  ;;  %14886 = vmatpush.xpose.msk.msrb.mxu2 %vm1356_vm5, %v12025_v63 }
0x2f0a   : > { %v12065_v4 = vadd.f32 %v15204_v55, %v12064_v0 }
0x2f0b   : > { %14892 = vmatpush.xpose.msk.msrb.mxu1 %vm1356_vm5, %v12085_v5 }
0x2f0c   : > { %14890 = vmatpush.xpose.msk.msra.mxu0 %vm1356_vm5, %v12065_v4  ;;  %14887 = vmatmul.msk.f32.vlgmr.msrb.gmra.mxu2 %vm1356_vm5, %v11865_v6 }
0x2f0d   : > { %14889 = vmatmul.msk.f32.vlgmr.msrb.gmra.mxu3 %vm1356_vm5, %v11885_v9 }
0x2f0e   : > { %12681 = vmatpush.msrb.mxu3 %v12205_v11  ;;  %14893 = vmatmul.msk.f32.vlgmr.msrb.gmra.mxu1 %vm1356_vm5, %v11925_v13 }
0x2f0f   : > { %14891 = vmatmul.msk.f32.vlgmr.msra.gmra.mxu0 %vm1356_vm5, %v11905_v10  ;;  %v12104_v17 = vpop.f32.mrf.mxu2 }
0x2f10   : > { %v12105_v18 = vadd.f32 %v15206_v12, %v12104_v17 }
0x2f11   : > { %v12164_v22 = vpop.f32.mrf.mxu1 }
0x2f12   : > { %v12144_v20 = vpop.f32.mrf.mxu0  ;;  %v12165_v26 = vadd.f32 %v15208_v15, %v12164_v22  ;;  %14894 = vmatpush.xpose.msk.msra.mxu2 %vm1356_vm5, %v12105_v18 }
0x2f13   : > { %v12145_v24 = vadd.f32 %v15207_v14, %v12144_v20 }
0x2f14   : > { %12635 = vmatpush.msra.mxu1 %v12165_v26 }
0x2f15   : > { %12612 = vmatpush.msrb.mxu0 %v12145_v24  ;;  %14895 = vmatmul.msk.f32.vlgmr.msra.gmra.mxu2 %vm1356_vm5, %v11945_v28 }
0x2f18   : > { %v12184_v32 = vpop.f32.mrf.mxu2 }
0x2f19   : > { %v12185_v33 = vadd.f32 %v15209_v30, %v12184_v32  ;;  %v12244_v35 = vpop.f32.mrf.mxu1 }
0x2f1a   : > { %v12224_v34 = vpop.f32.mrf.mxu0  ;;  %v12245_v37 = vadd.f32 %v15211_v60, %v12244_v35 }
0x2f1b   : > { %v12225_v36 = vadd.f32 %v15210_v31, %v12224_v34  ;;  %12658 = vmatpush.msrb.mxu2 %v12185_v33 }
0x2f1c   : > { %12727 = vmatpush.msrb.mxu1 %v12245_v37 }
0x2f1d   : > { %12704 = vmatpush.msra.mxu0 %v12225_v36 }
0x2f20   : > { %v12264_v39 = vpop.f32.mrf.mxu2 }
0x2f21   : > { %v12265_v40 = vadd.f32 %v15212_v38, %v12264_v39 }
0x2f23   : > { %12750 = vmatpush.msra.mxu2 %v12265_v40 }
0x2f82   : > { %v12342_v25 = vpop.f32.mrf.mxu1 }
0x2f83   : > { %v12316_v42 = vpop.f32.mrf.mxu0  ;;  %v12477_v50 = vmul.f32 0.5, %v12342_v25 }
0x2f84   : > { %v12476_v43 = vmul.f32 0.5, %v12316_v42 }
0x2f85   : > { %v12489_v56 = vsel %vm1584_vm6, %v12477_v50, -inf }
0x2f86   : > { %v12486_v27 = vsel %vm1584_vm6, %v12476_v43, -inf }
0x2f87   : > { %v12290_v41 = vpop.f32.mrf.mxu3 }
0x2f88   : > { %v12475_v7 = vmul.f32 0.5, %v12290_v41 }
0x2f8a   : > { %v12483_v19 = vsel %vm1584_vm6, %v12475_v7, -inf }
0x2f8b   : > { %12484 = vmax.xlane.f32.xlu1 %v12483_v19  ;;  %v12446_v55 = vpop.f32.mrf.mxu1 }
0x2f8c   : > { %v12420_v48 = vpop.f32.mrf.mxu0  ;;  %v12481_v57 = vmul.f32 0.5, %v12446_v55 }
0x2f8d   : > { %v12480_v49 = vmul.f32 0.5, %v12420_v48 }
0x2f8e   : > { %v12501_v58 = vsel %vm1584_vm6, %v12481_v57, -inf }
0x2f8f   : > { %v12368_v21 = vpop.f32.mrf.mxu2  ;;  %v12498_v54 = vsel %vm1584_vm6, %v12480_v49, -inf }
0x2f90   : > { %v12394_v44 = vpop.f32.mrf.mxu3  ;;  %v12478_v23 = vmul.f32 0.5, %v12368_v21 }
0x2f91   : > { %v12479_v45 = vmul.f32 0.5, %v12394_v44 }
0x2f92   : > { %v12492_v46 = vsel %vm1584_vm6, %v12478_v23, -inf }
0x2f93   : > { %v12495_v47 = vsel %vm1584_vm6, %v12479_v45, -inf  ;;  %12493 = vmax.xlane.f32.xlu2 %v12492_v46  ;;  %12487 = vmax.xlane.f32.xlu1 %v12486_v27 }
0x2f94   : > { %12496 = vmax.xlane.f32.xlu0 %v12495_v47 }
0x2f98   : > { %v12472_v51 = vpop.f32.mrf.mxu2 }
0x2f99   : > { %v12482_v52 = vmul.f32 0.5, %v12472_v51 }
0x2f9b   : > { %v12504_v53 = vsel %vm1584_vm6, %v12482_v52, -inf  ;;  %12499 = vmax.xlane.f32.xlu1 %v12498_v54 }
0x2f9c   : > { %12505 = vmax.xlane.f32.xlu2 %v12504_v53  ;;  %12490 = vmax.xlane.f32.xlu0 %v12489_v56 }
0x2fa4   : > { %12502 = vmax.xlane.f32.xlu2 %v12501_v58 }
0x2ffe   : > { %v12485_v59 = vpop.xlane.xlu1 %12484 }
0x2fff   : > { %v12507_v61 = vsub.f32 %v12475_v7, %v12485_v59 }
0x3001   : > { %v12515_v62 = vmul.f32 1.442695, %v12507_v61 }
0x3003   : > { %15491 = vpow2.f32 %v12515_v62  ;;  %v14904_v62 = vld [vmem:[%s20604_s6 + $0xe0] sm:$0xf] }
0x3006   : > { %v12494_v63 = vpop.xlane.xlu2 %12493  ;;  %v12488_v0 = vpop.xlane.xlu1 %12487 }
0x3007   : > { %v12510_v1 = vsub.f32 %v12478_v23, %v12494_v63  ;;  %v12508_v2 = vsub.f32 %v12476_v43, %v12488_v0  ;;  %v12497_v3 = vpop.xlane.xlu0 %12496  ;;  %v14905_v63 = vld [vmem:[%s20604_s6 + $0xe4] sm:$0xf]  ;;  %v14907_v0 = vld [vmem:[%s20604_s6 + $0xec] sm:$0xf] }
0x3008   : > { %v12511_v4 = vsub.f32 %v12479_v45, %v12497_v3  ;;  %v14909_v3 = vld [vmem:[%s20604_s6 + $0xf4] sm:$0xf] }
0x3009   : > { %v15492_v5 = vpop.eup %15491  ;;  %v12521_v6 = vmul.f32 1.442695, %v12510_v1  ;;  %v12517_v9 = vmul.f32 1.442695, %v12508_v2  ;;  %v14908_v1 = vld [vmem:[%s20604_s6 + $0xf0] sm:$0xf] }
0x300a   : > { %v12523_v10 = vmul.f32 1.442695, %v12511_v4  ;;  %v12531_v11 = vsel %vm1584_vm6, %v15492_v5, 0.0  ;;  %v14906_v2 = vld [vmem:[%s20604_s6 + $0xe8] sm:$0xf] }
0x300b   : > { %15493 = vpow2.f32 %v12521_v6  ;;  %12532 = vadd.xlane.f32.xlu0 %v12531_v11  ;;  %v14911_v4 = vld [vmem:[%s20604_s6 + $0xfc] sm:$0xf] }
0x300c   : > { %15495 = vpow2.f32 %v12517_v9 }
0x300d   : > { %15497 = vpow2.f32 %v12523_v10 }
0x300e   : > { %v12500_v13 = vpop.xlane.xlu1 %12499 }
0x300f   : > { %v12506_v12 = vpop.xlane.xlu2 %12505  ;;  %v12512_v15 = vsub.f32 %v12480_v49, %v12500_v13  ;;  %v12491_v16 = vpop.xlane.xlu0 %12490 }
0x3010   : > { %v12514_v14 = vsub.f32 %v12482_v52, %v12506_v12  ;;  %v12509_v17 = vsub.f32 %v12477_v50, %v12491_v16 }
0x3011   : > { %v15494_v18 = vpop.eup %15493  ;;  %v12525_v22 = vmul.f32 1.442695, %v12512_v15 }
0x3012   : > { %v12529_v20 = vmul.f32 1.442695, %v12514_v14  ;;  %v15496_v24 = vpop.eup %15495  ;;  %v12519_v26 = vmul.f32 1.442695, %v12509_v17  ;;  %v12540_v28 = vsel %vm1584_vm6, %v15494_v18, 0.0 }
0x3013   : > { %v15498_v30 = vpop.eup %15497  ;;  %12541 = vadd.xlane.f32.xlu1 %v12540_v28  ;;  %v12534_v31 = vsel %vm1584_vm6, %v15496_v24, 0.0 }
0x3014   : > { %15499 = vpow2.f32 %v12529_v20  ;;  %12535 = vadd.xlane.f32.xlu0 %v12534_v31  ;;  %v12543_v60 = vsel %vm1584_vm6, %v15498_v30, 0.0 }
0x3015   : > { %15501 = vpow2.f32 %v12525_v22  ;;  %12544 = vadd.xlane.f32.xlu2 %v12543_v60 }
0x3016   : > { %15503 = vpow2.f32 %v12519_v26 }
0x3017   : > { %v12503_v32 = vpop.xlane.xlu2 %12502 }
0x3018   : > { %v12513_v33 = vsub.f32 %v12481_v57, %v12503_v32 }
0x301a   : > { %v15500_v34 = vpop.eup %15499  ;;  %v12527_v35 = vmul.f32 1.442695, %v12513_v33 }
0x301b   : > { %v15502_v36 = vpop.eup %15501  ;;  %v12552_v37 = vsel %vm1584_vm6, %v15500_v34, 0.0 }
0x301c   : > { %v15504_v38 = vpop.eup %15503  ;;  %15505 = vpow2.f32 %v12527_v35  ;;  %12553 = vadd.xlane.f32.xlu1 %v12552_v37  ;;  %v12546_v39 = vsel %vm1584_vm6, %v15502_v36, 0.0 }
0x301d   : > { %12547 = vadd.xlane.f32.xlu0 %v12546_v39  ;;  %v12537_v40 = vsel %vm1584_vm6, %v15504_v38, 0.0 }
0x301e   : > { %12538 = vadd.xlane.f32.xlu2 %v12537_v40 }
0x3022   : > { %v15506_v41 = vpop.eup %15505 }
0x3023   : > { %v12549_v7 = vsel %vm1584_vm6, %v15506_v41, 0.0 }
0x3024   : > { %12550 = vadd.xlane.f32.xlu1 %v12549_v7  ;;  %v15213_v7 = vld [vmem:[%s20605_s7 + $0x7] ss:$0 sm:$0xff] }
0x307e   : > { %v12533_v42 = vpop.xlane.xlu0 %12532 }
0x307f   : > { %15507 = vrcp.f32 %v12533_v42 }
0x3085   : > { %v15508_v19 = vpop.eup %15507 }
0x3086   : > { %v12563_v43 = vmul.f32 %v15508_v19, %v15492_v5  ;;  %v12542_v21 = vpop.xlane.xlu1 %12541  ;;  %v14910_v5 = vld [vmem:[%s20604_s6 + $0xf8] sm:$0xf] }
0x3087   : > { %15509 = vrcp.f32 %v12542_v21  ;;  %v12536_v44 = vpop.xlane.xlu0 %12535 }
0x3088   : > { %v12545_v23 = vpop.xlane.xlu2 %12544  ;;  %15511 = vrcp.f32 %v12536_v44  ;;  %14896 = vmatmul.msk.f32.vlgmr.msra.gmra.mxu3 %vm1584_vm6, %v12563_v43 }
0x3089   : > { %15513 = vrcp.f32 %v12545_v23  ;;  %14912 = vmatpush.msk.msra.mxu3 %vm1868_vm7, %v14904_v62 }
0x308d   : > { %v15510_v45 = vpop.eup %15509 }
0x308e   : > { %v15512_v25 = vpop.eup %15511  ;;  %v12566_v46 = vmul.f32 %v15510_v45, %v15494_v18 }
0x308f   : > { %v12554_v27 = vpop.xlane.xlu1 %12553  ;;  %v15514_v47 = vpop.eup %15513  ;;  %v12564_v48 = vmul.f32 %v15512_v25, %v15496_v24 }
0x3090   : > { %15515 = vrcp.f32 %v12554_v27  ;;  %v12548_v49 = vpop.xlane.xlu0 %12547  ;;  %v12567_v50 = vmul.f32 %v15514_v47, %v15498_v30  ;;  %14899 = vmatmul.msk.f32.vlgmr.msrb.gmra.mxu2 %vm1584_vm6, %v12566_v46  ;;  %v14934_v47 = vld [vmem:[%s20608_s10 + $0xf8] sm:$0xff] }
0x3091   : > { %v12539_v51 = vpop.xlane.xlu2 %12538  ;;  %15517 = vrcp.f32 %v12548_v49  ;;  %14897 = vmatmul.msk.f32.vlgmr.msrb.gmra.mxu0 %vm1584_vm6, %v12564_v48  ;;  %14918 = vmatpush.msk.msrb.mxu2 %vm1868_vm7, %v14907_v0  ;;  %v14932_v48 = vld [vmem:[%s20608_s10 + $0xe8] sm:$0xff]  ;;  %v14931_v49 = vld [vmem:[%s20608_s10 + $0xe0] sm:$0xff] }
0x3092   : > { %15519 = vrcp.f32 %v12539_v51  ;;  %14900 = vmatmul.msk.f32.vlgmr.msrb.gmra.mxu3 %vm1584_vm6, %v12567_v50  ;;  %14914 = vmatpush.msk.msrb.mxu0 %vm1868_vm7, %v14905_v63  ;;  %v14952_v50 = vld [vmem:[%s20610_s12 + $0x3f8] sm:$0xff]  ;;  %v14951_v51 = vld [vmem:[%s20610_s12 + $0x3f0] sm:$0xff]  ;;  %v15214_v0 = vld [vmem:[%s20606_s8 + $0x7] ss:$0 sm:$0xff] }
0x3093   : > { %14920 = vmatpush.msk.msrb.mxu3 %vm1868_vm7, %v14908_v1 }
0x3096   : > { %v15516_v52 = vpop.eup %15515 }
0x3097   : > { %v15518_v53 = vpop.eup %15517  ;;  %v12570_v54 = vmul.f32 %v15516_v52, %v15500_v34  ;;  %v12551_v55 = vpop.xlane.xlu1 %12550  ;;  %v14950_v52 = vld [vmem:[%s20610_s12 + $0x3e8] sm:$0xff] }
0x3098   : > { %v15520_v56 = vpop.eup %15519  ;;  %v12568_v57 = vmul.f32 %v15518_v53, %v15502_v36  ;;  %15521 = vrcp.f32 %v12551_v55  ;;  %v14949_v55 = vld [vmem:[%s20610_s12 + $0x3e0] sm:$0xff] }
0x3099   : > { %v12565_v58 = vmul.f32 %v15520_v56, %v15504_v38  ;;  %14903 = vmatmul.msk.f32.vlgmr.msra.gmra.mxu2 %vm1584_vm6, %v12570_v54 }
0x309a   : > { %14901 = vmatmul.msk.f32.vlgmr.msra.gmra.mxu0 %vm1584_vm6, %v12568_v57  ;;  %14926 = vmatpush.msk.msra.mxu2 %vm1868_vm7, %v14911_v4 }
0x309b   : > { %14898 = vmatmul.msk.f32.vlgmr.msra.gmra.mxu1 %vm1584_vm6, %v12565_v58  ;;  %14922 = vmatpush.msk.msra.mxu0 %vm1868_vm7, %v14909_v3 }
0x309c   : > { %14916 = vmatpush.msk.msra.mxu1 %vm1868_vm7, %v14906_v2  ;;  %v15215_v2 = vld [vmem:[%s20607_s9 + $0x7] ss:$0 sm:$0xff] }
0x309e   : > { %v15522_v59 = vpop.eup %15521 }
0x309f   : > { %v12569_v61 = vmul.f32 %v15522_v59, %v15506_v41 }
0x30a3   : > { %14902 = vmatmul.msk.f32.vlgmr.msrb.gmra.mxu1 %vm1584_vm6, %v12569_v61 }
0x30a4   : > { %14924 = vmatpush.msk.msrb.mxu1 %vm1868_vm7, %v14910_v5 }
0x310b   : > { %v12591_v6 = vpop.f32.mrf.mxu3 }
0x310c   : > { %14913 = vmatmul.msk.f32.vlgmr.msra.gmra.mxu3 %vm1356_vm5, %v12591_v6  ;;  %v14948_v6 = vld [vmem:[%s20610_s12 + $0x3d8] sm:$0xff] }
0x310d   : > { %13053 = vmatpush.msra.mxu3 %v14934_v47  ;;  %v13147_v47 = vld [vmem:[%s20614_s16] sm:$0xff] }
0x310e   : > { %v12614_v9 = vpop.f32.mrf.mxu0 }
0x310f   : > { %14915 = vmatmul.msk.f32.vlgmr.msrb.gmra.mxu0 %vm1356_vm5, %v12614_v9  ;;  %v14947_v9 = vld [vmem:[%s20610_s12 + $0x3d0] sm:$0xff] }
0x3110   : > { %13092 = vmatpush.msrb.mxu0 %v14952_v50  ;;  %v13235_v50 = vld [vmem:[%s20616_s18 + $0xf8] sm:$0xff] }
0x3112   : > { %13093 = vmatpush.msrb.mxu0 %v14951_v51  ;;  %v13234_v51 = vld [vmem:[%s20616_s18 + $0xf0] sm:$0xff] }
0x3113   : > { %v12660_v10 = vpop.f32.mrf.mxu2 }
0x3114   : > { %14919 = vmatmul.msk.f32.vlgmr.msrb.gmra.mxu2 %vm1356_vm5, %v12660_v10  ;;  %13094 = vmatpush.msrb.mxu0 %v14950_v52  ;;  %v14946_v10 = vld [vmem:[%s20610_s12 + $0x3c8] sm:$0xff] }
0x3115   : > { %v12683_v11 = vpop.f32.mrf.mxu3 }
0x3116   : > { %14921 = vmatmul.msk.f32.vlgmr.msrb.gmra.mxu3 %vm1356_vm5, %v12683_v11  ;;  %13095 = vmatpush.msrb.mxu0 %v14949_v55  ;;  %v14945_v11 = vld [vmem:[%s20610_s12 + $0x3c0] sm:$0xff] }
0x3117   : > { %v12706_v12 = vpop.f32.mrf.mxu0 }
0x3118   : > { %v12637_v13 = vpop.f32.mrf.mxu1  ;;  %14923 = vmatmul.msk.f32.vlgmr.msra.gmra.mxu0 %vm1356_vm5, %v12706_v12  ;;  %v14944_v12 = vld [vmem:[%s20610_s12 + $0x3b8] sm:$0xff] }
0x3119   : > { %14917 = vmatmul.msk.f32.vlgmr.msra.gmra.mxu1 %vm1356_vm5, %v12637_v13  ;;  %13096 = vmatpush.msrb.mxu0 %v14948_v6  ;;  %v14943_v13 = vld [vmem:[%s20610_s12 + $0x3b0] sm:$0xff]  ;;  %v13227_v6 = vld [vmem:[%s20616_s18 + $0xb8] sm:$0xff] }
0x311b   : > { %13097 = vmatpush.msrb.mxu0 %v14947_v9 }
0x311c   : > { %v12752_v14 = vpop.f32.mrf.mxu2 }
0x311d   : > { %14927 = vmatmul.msk.f32.vlgmr.msra.gmra.mxu2 %vm1356_vm5, %v12752_v14  ;;  %13098 = vmatpush.msrb.mxu0 %v14946_v10  ;;  %v14942_v14 = vld [vmem:[%s20610_s12 + $0x3a8] sm:$0xff]  ;;  %v13210_v10 = vld [vmem:[%s20616_s18 + $0x30] sm:$0xff] }
0x311f   : > { %13099 = vmatpush.msrb.mxu0 %v14945_v11  ;;  %v13226_v11 = vld [vmem:[%s20616_s18 + $0xb0] sm:$0xff] }
0x3120   : > { %v12729_v15 = vpop.f32.mrf.mxu1 }
0x3121   : > { %14925 = vmatmul.msk.f32.vlgmr.msrb.gmra.mxu1 %vm1356_vm5, %v12729_v15  ;;  %13100 = vmatpush.msrb.mxu0 %v14944_v12  ;;  %v14941_v15 = vld [vmem:[%s20610_s12 + $0x3a0] sm:$0xff] }
0x3123   : > { %13101 = vmatpush.msrb.mxu0 %v14943_v13  ;;  %v13209_v13 = vld [vmem:[%s20616_s18 + $0x28] sm:$0xff] }
0x3125   : > { %13102 = vmatpush.msrb.mxu0 %v14942_v14  ;;  %v13225_v14 = vld [vmem:[%s20616_s18 + $0xa8] sm:$0xff] }
0x3127   : > { %13103 = vmatpush.msrb.mxu0 %v14941_v15 }
0x318c   : > { %v12813_v16 = vpop.f32.mrf.mxu0 }
0x318d   : > { %v12973_v20 = vsel %vm643_vm0, %v12813_v16, 0.0  ;;  %v14940_v16 = vld [vmem:[%s20610_s12 + $0x398] sm:$0xff] }
0x318e   : > { %13104 = vmatpush.msrb.mxu0 %v14940_v16  ;;  %v13208_v16 = vld [vmem:[%s20616_s18 + $0x20] sm:$0xff] }
0x318f   : > { %v12787_v17 = vpop.f32.mrf.mxu3 }
0x3190   : > { %v12972_v18 = vsel %vm643_vm0, %v12787_v17, 0.0  ;;  %v14939_v17 = vld [vmem:[%s20610_s12 + $0x390] sm:$0xff] }
0x3191   : > { %v12974_v22 = vadd.f32 %v12973_v20, %v12972_v18  ;;  %v14938_v18 = vld [vmem:[%s20610_s12 + $0x388] sm:$0xff]  ;;  %13105 = vmatpush.msrb.mxu0 %v14939_v17  ;;  %v14937_v20 = vld [vmem:[%s20610_s12 + $0x380] sm:$0xff] }
0x3193   : > { %13106 = vmatpush.msrb.mxu0 %v14938_v18  ;;  %v13207_v18 = vld [vmem:[%s20616_s18 + $0x18] sm:$0xff] }
0x3195   : > { %v12917_v60 = vpop.f32.mrf.mxu0  ;;  %13107 = vmatpush.msrb.mxu0 %v14937_v20  ;;  %v15218_v20 = vld [vmem:[%s20612_s14 + $0x7] ss:$0 sm:$0xff] }
0x3196   : > { %v12839_v24 = vpop.f32.mrf.mxu1  ;;  %v12981_v36 = vsel %vm643_vm0, %v12917_v60, 0.0 }
0x3197   : > { %v12975_v26 = vsel %vm643_vm0, %v12839_v24, 0.0  ;;  %v12865_v30 = vpop.f32.mrf.mxu2 }
0x3198   : > { %v12976_v28 = vadd.f32 %v12975_v26, %v12974_v22  ;;  %v12977_v31 = vsel %vm643_vm0, %v12865_v30, 0.0  ;;  %v15216_v22 = vld [vmem:[%s20609_s11 + $0x7] ss:$0 sm:$0xff] }
0x3199   : > { %v12891_v33 = vpop.f32.mrf.mxu3 }
0x319a   : > { %v12978_v32 = vadd.f32 %v12977_v31, %v12976_v28  ;;  %v12979_v34 = vsel %vm643_vm0, %v12891_v33, 0.0 }
0x319c   : > { %v12980_v35 = vadd.f32 %v12979_v34, %v12978_v32 }
0x319e   : > { %v12943_v37 = vpop.f32.mrf.mxu1  ;;  %v12982_v38 = vadd.f32 %v12981_v36, %v12980_v35 }
0x319f   : > { %v12983_v39 = vsel %vm643_vm0, %v12943_v37, 0.0  ;;  %v15217_v37 = vld [vmem:[%s20611_s13 + $0x7] ss:$0 sm:$0xff] }
0x31a0   : > { %v12984_v40 = vadd.f32 %v12983_v39, %v12982_v38  ;;  %v12969_v41 = vpop.f32.mrf.mxu2 }
0x31a1   : > { %v12985_v42 = vsel %vm643_vm0, %v12969_v41, 0.0 }
0x31a2   : > { %v12986_v19 = vadd.f32 %v12985_v42, %v12984_v40 }
0x31a4   : > { %v12992_v43 = vadd.f32 %v15213_v7, %v12986_v19 }
0x31a6   : > { %v12993_v21 = vadd.f32 %v12992_v43, %v19961_v29  ;;  %v14933_v29 = vld [vmem:[%s20608_s10 + $0xf0] sm:$0xff] }
0x31a7   : > { %13054 = vmatpush.msra.mxu3 %v14933_v29  ;;  %v13148_v29 = vld [vmem:[%s20614_s16 + $0x8] sm:$0xff] }
0x31a8   : > { %v12998_v44 = vsel %vm643_vm0, %v12993_v21, 0.0 }
0x31a9   : > { %12999 = vadd.xlane.f32.xlu2 %v12998_v44  ;;  %13055 = vmatpush.msra.mxu3 %v14932_v48  ;;  %v13153_v44 = vld [vmem:[%s20614_s16 + $0x30] sm:$0xff]  ;;  %v13219_v48 = vld [vmem:[%s20616_s18 + $0x78] sm:$0xff] }
0x31aa   : > { %13176 = vmatpush.msra.mxu1 %v13153_v44 }
0x31ab   : > { %13056 = vmatpush.msra.mxu3 %v14931_v49  ;;  %v13218_v49 = vld [vmem:[%s20616_s18 + $0x70] sm:$0xff] }
0x31ad   : > { %13240 = vmatpush.msrb.mxu3 %v13219_v48 }
0x31af   : > { %13241 = vmatpush.msrb.mxu3 %v13218_v49 }
0x321c   : > { %v13000_v23 = vpop.xlane.xlu2 %12999 }
0x321d   : > { %v13001_v45 = vmul.f32 %v13000_v23, %v15667_v8  ;;  %v13154_v23 = vld [vmem:[%s20614_s16 + $0x38] sm:$0xff] }
0x321e   : > { %13196 = vmatpush.msrb.mxu2 %v13154_v23 }
0x321f   : > { %v13002_v25 = vsub.f32 %v12993_v21, %v13001_v45  ;;  %v13151_v45 = vld [vmem:[%s20614_s16 + $0x20] sm:$0xff] }
0x3220   : > { %13177 = vmatpush.msra.mxu1 %v13151_v45 }
0x3221   : > { %v13003_v46 = vmul.f32 %v13002_v25, %v13002_v25 }
0x3223   : > { %v13004_v27 = vsel %vm643_vm0, %v13003_v46, 0.0  ;;  %v13149_v46 = vld [vmem:[%s20614_s16 + $0x10] sm:$0xff] }
0x3224   : > { %13005 = vadd.xlane.f32.xlu0 %v13004_v27  ;;  %v13150_v27 = vld [vmem:[%s20614_s16 + $0x18] sm:$0xff]  ;;  %13178 = vmatpush.msra.mxu1 %v13149_v46 }
0x3226   : > { %13179 = vmatpush.msra.mxu1 %v13147_v47 }
0x3228   : > { %13260 = vmatpush.msrb.mxu1 %v13235_v50 }
0x322a   : > { %13261 = vmatpush.msrb.mxu1 %v13234_v51 }
0x3297   : > { %v13006_v53 = vpop.xlane.xlu0 %13005 }
0x3298   : > { %v13007_v54 = vmul.f32 %v13006_v53, %v15667_v8  ;;  %v13217_v53 = vld [vmem:[%s20616_s18 + $0x68] sm:$0xff] }
0x3299   : > { %13242 = vmatpush.msrb.mxu3 %v13217_v53 }
0x329a   : > { %v13008_v56 = vadd.f32 1e-05, %v13007_v54  ;;  %v13233_v54 = vld [vmem:[%s20616_s18 + $0xe8] sm:$0xff] }
0x329b   : > { %13262 = vmatpush.msrb.mxu1 %v13233_v54 }
0x329c   : > { %15523 = vrsqrt.f32 %v13008_v56  ;;  %vm13015_vm6 = vweird.f32 %v13008_v56 }
0x32a2   : > { %v15524_v57 = vpop.eup %15523 }
0x32a3   : > { %v13010_v58 = vmul.f32 %v15524_v57, %v13008_v56  ;;  %vm13016_vm5 = vweird.f32 %v15524_v57  ;;  %v13216_v56 = vld [vmem:[%s20616_s18 + $0x60] sm:$0xff] }
0x32a4   : > { %vm13017_vm7 = vmor %vm13015_vm6, %vm13016_vm5  ;;  %13243 = vmatpush.msrb.mxu3 %v13216_v56 }
0x32a5   : > { %v13011_v59 = vmul.f32 %v15524_v57, %v13010_v58 }
0x32a7   : > { %v13012_v61 = vmul.f32 0.5, %v13011_v59  ;;  %v13215_v59 = vld [vmem:[%s20616_s18 + $0x58] sm:$0xff] }
0x32a8   : > { %13244 = vmatpush.msrb.mxu3 %v13215_v59 }
0x32a9   : > { %v13013_v62 = vsub.f32 1.5, %v13012_v61  ;;  %v13214_v61 = vld [vmem:[%s20616_s18 + $0x50] sm:$0xff] }
0x32aa   : > { %13245 = vmatpush.msrb.mxu3 %v13214_v61 }
0x32ab   : > { %v13014_v63 = vmul.f32 %v15524_v57, %v13013_v62  ;;  %v13230_v62 = vld [vmem:[%s20616_s18 + $0xd0] sm:$0xff] }
0x32ad   : > { %v13018_v1 = vsel %vm13017_vm7, %v15524_v57, %v13014_v63  ;;  %v13232_v57 = vld [vmem:[%s20616_s18 + $0xe0] sm:$0xff]  ;;  %v13213_v63 = vld [vmem:[%s20616_s18 + $0x48] sm:$0xff] }
0x32ae   : > { %v13019_v3 = vmul.f32 %v13018_v1, %v13002_v25  ;;  %v13152_v25 = vld [vmem:[%s20614_s16 + $0x28] sm:$0xff]  ;;  %13263 = vmatpush.msrb.mxu1 %v13232_v57  ;;  %v13212_v1 = vld [vmem:[%s20616_s18 + $0x40] sm:$0xff]  ;;  %13246 = vmatpush.msrb.mxu3 %v13213_v63 }
0x32af   : > { %13197 = vmatpush.msrb.mxu2 %v13152_v25 }
0x32b0   : > { %v13023_v4 = vmul.f32 %v15214_v0, %v13019_v3  ;;  %v13229_v0 = vld [vmem:[%s20616_s18 + $0xc8] sm:$0xff]  ;;  %13247 = vmatpush.msrb.mxu3 %v13212_v1 }
0x32b1   : > { %13198 = vmatpush.msrb.mxu2 %v13150_v27 }
0x32b2   : > { %v13027_v5 = vadd.f32 %v15215_v2, %v13023_v4  ;;  %v13228_v2 = vld [vmem:[%s20616_s18 + $0xc0] sm:$0xff] }
0x32b3   : > { %13199 = vmatpush.msrb.mxu2 %v13148_v29 }
0x32b4   : > { %14936 = vmatmul.msk.f32.vlgmr.msra.gmra.mxu3 %vm643_vm0, %v13027_v5 }
0x3337   : > { %v13058_v24 = vpop.f32.mrf.mxu3 }
0x3338   : > { %v13059_v26 = vadd.f32 %v15216_v22, %v13058_v24  ;;  %v13206_v24 = vld [vmem:[%s20616_s18 + $0x10] sm:$0xff] }
0x333a   : > { %v13062_v28 = vmul.f32 0.044715, %v13059_v26  ;;  %v13061_v34 = vmul.f32 0.5, %v13059_v26 }
0x333c   : > { %v13063_v30 = vmul.f32 %v13062_v28, %v13059_v26 }
0x333e   : > { %v13064_v31 = vmul.f32 %v13063_v30, %v13059_v26 }
0x3340   : > { %v13065_v60 = vadd.f32 %v13064_v31, %v13059_v26  ;;  %v15219_v26 = vld [vmem:[%s20613_s15 + $0x7] ss:$0 sm:$0xff] }
0x3342   : > { %v13066_v32 = vmul.f32 0.7978846, %v13065_v60  ;;  %v13205_v60 = vld [vmem:[%s20616_s18 + $0x8] sm:$0xff] }
0x3344   : > { %15525 = vtanh.f32 %v13066_v32  ;;  %v13224_v32 = vld [vmem:[%s20616_s18 + $0xa0] sm:$0xff] }
0x334a   : > { %v15526_v33 = vpop.eup %15525 }
0x334b   : > { %v13068_v35 = vadd.f32 1.0, %v15526_v33  ;;  %v13204_v33 = vld [vmem:[%s20616_s18] sm:$0xff] }
0x334d   : > { %v13069_v36 = vmul.f32 %v13068_v35, %v13061_v34  ;;  %v13223_v34 = vld [vmem:[%s20616_s18 + $0x98] sm:$0xff]  ;;  %v13222_v35 = vld [vmem:[%s20616_s18 + $0x90] sm:$0xff] }
0x334f   : > { %13108 = vmatmul.f32.vlgmr.msrb.gmra.mxu0 %v13069_v36  ;;  %v13221_v36 = vld [vmem:[%s20616_s18 + $0x88] sm:$0xff] }
0x33cc   : > { %v13109_v38 = vpop.f32.mrf.mxu0 }
0x33cd   : > { %v13110_v39 = vadd.f32 %v15217_v37, %v13109_v38  ;;  %v13220_v37 = vld [vmem:[%s20616_s18 + $0x80] sm:$0xff] }
0x33ce   : > { %v13155_v38 = vld [vmem:[%s20615_s17] sm:$0x3] }
0x33cf   : > { %v13112_v40 = vadd.f32 %v13110_v39, %v13027_v5  ;;  %v13211_v5 = vld [vmem:[%s20616_s18 + $0x38] sm:$0xff]  ;;  %v13157_v39 = vperm.slane %v13155_v38, 0 }
0x33d0   : > { %13248 = vmatpush.msrb.mxu3 %v13211_v5 }
0x33d1   : > { %v13117_v41 = vsel %vm643_vm0, %v13112_v40, 0.0 }
0x33d2   : > { %13118 = vadd.xlane.f32.xlu1 %v13117_v41  ;;  %13249 = vmatpush.msrb.mxu3 %v13210_v10 }
0x33d4   : > { %13250 = vmatpush.msrb.mxu3 %v13209_v13 }
0x33d6   : > { %13251 = vmatpush.msrb.mxu3 %v13208_v16 }
0x33d8   : > { %13252 = vmatpush.msrb.mxu3 %v13207_v18 }
0x33da   : > { %13253 = vmatpush.msrb.mxu3 %v13206_v24 }
0x33dc   : > { %13254 = vmatpush.msrb.mxu3 %v13205_v60 }
0x33de   : > { %13255 = vmatpush.msrb.mxu3 %v13204_v33 }
0x3445   : > { %v13119_v7 = vpop.xlane.xlu1 %13118 }
0x3446   : > { %v13120_v42 = vmul.f32 %v13119_v7, %v15667_v8  ;;  %v13158_v7 = vperm.slane %v13155_v38, 1 }
0x3448   : > { %v20449_v19 = vsub.f32 %v13112_v40, %v13120_v42 }
0x344a   : > { %v13122_v43 = vmul.f32 %v20449_v19, %v20449_v19 }
0x344c   : > { %v13123_v21 = vsel %vm643_vm0, %v13122_v43, 0.0  ;;  %v15220_v43 = vld [vmem:[%s20617_s19] ss:$0 sm:$0xff] }
0x344d   : > { %13124 = vadd.xlane.f32.xlu2 %v13123_v21 }
0x34c0   : > { %v13125_v52 = vpop.xlane.xlu2 %13124 }
0x34c1   : > { %v13126_v55 = vmul.f32 %v13125_v52, %v15667_v8  ;;  %v13231_v8 = vld [vmem:[%s20616_s18 + $0xd8] sm:$0xff] }
0x34c2   : > { %13264 = vmatpush.msrb.mxu1 %v13231_v8 }
0x34c3   : > { %v13127_v58 = vadd.f32 1e-05, %v13126_v55 }
0x34c4   : > { %13265 = vmatpush.msrb.mxu1 %v13230_v62 }
0x34c5   : > { %15527 = vrsqrt.f32 %v13127_v58  ;;  %vm13134_vm15 = vweird.f32 %v13127_v58 }
0x34c6   : > { %13266 = vmatpush.msrb.mxu1 %v13229_v0 }
0x34c8   : > { %13267 = vmatpush.msrb.mxu1 %v13228_v2 }
0x34ca   : > { %13268 = vmatpush.msrb.mxu1 %v13227_v6 }
0x34cb   : > { %v15528_v3 = vpop.eup %15527 }
0x34cc   : > { %v13129_v4 = vmul.f32 %v15528_v3, %v13127_v58  ;;  %13269 = vmatpush.msrb.mxu1 %v13226_v11  ;;  %vm13135_vm14 = vweird.f32 %v15528_v3 }
0x34cd   : > { %vm13136_vm1 = vmor %vm13134_vm15, %vm13135_vm14 }
0x34ce   : > { %v13130_v9 = vmul.f32 %v15528_v3, %v13129_v4  ;;  %13270 = vmatpush.msrb.mxu1 %v13225_v14 }
0x34d0   : > { %v13131_v12 = vmul.f32 0.5, %v13130_v9  ;;  %13271 = vmatpush.msrb.mxu1 %v13224_v32 }
0x34d2   : > { %v13132_v15 = vsub.f32 1.5, %v13131_v12  ;;  %13272 = vmatpush.msrb.mxu1 %v13223_v34 }
0x34d4   : > { %v13133_v17 = vmul.f32 %v15528_v3, %v13132_v15  ;;  %13273 = vmatpush.msrb.mxu1 %v13222_v35 }
0x34d6   : > { %v13137_v22 = vsel %vm13136_vm1, %v15528_v3, %v13133_v17  ;;  %13274 = vmatpush.msrb.mxu1 %v13221_v36 }
0x34d7   : > { %v13138_v28 = vmul.f32 %v13137_v22, %v20449_v19 }
0x34d8   : > { %13275 = vmatpush.msrb.mxu1 %v13220_v37 }
0x34d9   : > { %v13142_v30 = vmul.f32 %v15218_v20, %v13138_v28 }
0x34db   : > { %v13146_v31 = vadd.f32 %v15219_v26, %v13142_v30 }
0x34dd   : > { %14956 = vmatmul.msk.f32.vlgmr.msra.gmra.mxu1 %vm643_vm0, %v13146_v31  ;;  %14957 = vmatmul.msk.f32.vlgmr.msrb.gmra.mxu2 %vm643_vm0, %v13146_v31  ;;  %vm13280_vm0 = vcmask 89088  }
0x355a   : > { %v13181_v40 = vpop.f32.mrf.mxu1 }
0x355b   : > { %v13182_v41 = vadd.f32 %v13181_v40, %v13157_v39 }
0x355d   : > { %13256 = vmatmul.f32.vlgmr.msrb.gmra.mxu3 %v13182_v41 }
0x3560   : > { %v13201_v42 = vpop.f32.mrf.mxu2 }
0x3561   : > { %v13202_v19 = vadd.f32 %v13201_v42, %v13158_v7 }
0x3563   : > { %13276 = vmatmul.f32.vlgmr.msrb.gmra.mxu1 %v13202_v19 }
0x35e0   : > { %v13257_v21 = vpop.f32.mrf.mxu3  ;;  %v13277_v23 = vpop.f32.mrf.mxu1 }
0x35e1   : > { %v13258_v44 = vadd.f32 %v15220_v43, %v13257_v21 }
0x35e3   : > { %v13278_v45 = vadd.f32 %v13277_v23, %v13258_v44 }
0x35e5   : > { %13281 = vst.msk [vmem:[%s638_s28] sm:$0xff] %vm13280_vm0, %v13278_v45 }
0x35e6 PF: > { %s30_s1 = sadd.s32 1, %s15536_s1  }
0x35e7   : > { %p27_p4 = scmp.ge.s32.totalorder %s30_s1, 4  }
0x35e9   :  { %29 = sbr.rel (!%p27_p4) target bundleno = 6 (0x6), region = 217 }

</bundles_post_ra>
